<compile_context>
chip_gen: v5e
topology: v5e:2x2
jax: 0.10.0
libtpu: 0.0.40
codegen_flags: <defaults>
</compile_context>

<pallas_src>
import functools

import jax
import jax.numpy as jnp
import numpy as np
from jax import lax
from jax.experimental import pallas as pl
from jax.experimental.pallas import tpu as pltpu


# --------------------------- host-side constant builders --------------------

def _build_static_mats(B, C1, C2):
    """Parameter-independent 0/1 selector / averaging matrices (numpy)."""
    R1, R2 = B * 32, B * 16
    z = lambda s: np.zeros(s, np.float32)

    rowvalid1, rowvalid2 = z((1, R1)), z((1, R2))
    for b in range(B):
        rowvalid1[0, b * 32:b * 32 + 28] = 1.0
        rowvalid2[0, b * 16:b * 16 + 14] = 1.0

    # per-channel mean: sum valid lanes, divide by N, spread over the segment
    ms1, ms2 = z((128, 128)), z((128, 128))
    inv_n1, inv_n2 = 1.0 / (B * 28 * 28), 1.0 / (B * 14 * 14)
    for c in range(C1):
        ms1[c * 32:c * 32 + 28, c * 32:(c + 1) * 32] = inv_n1
    for c in range(C2):
        ms2[c * 16:c * 16 + 14, c * 16:(c + 1) * 16] = inv_n2

    # pool1 lane selectors (even/odd columns) + 1-px lane border, restack to
    # C1 segments of 16; pool1 row selectors (even/odd rows) + row border.
    pe1, po1 = z((128, C1 * 16)), z((128, C1 * 16))
    for c in range(C1):
        for w in range(14):
            pe1[c * 32 + 2 * w, c * 16 + 1 + w] = 1.0
            po1[c * 32 + 2 * w + 1, c * 16 + 1 + w] = 1.0
    fe1, fo1 = z((R2 + 2, R1)), z((R2 + 2, R1))
    for b in range(B):
        for r in range(14):
            fe1[b * 16 + 1 + r, b * 32 + 2 * r] = 1.0
            fo1[b * 16 + 1 + r, b * 32 + 2 * r + 1] = 1.0

    # pool2 selectors (no border needed), rows reordered to (h-major, batch).
    e2e, e2o = z((128, 128)), z((128, 128))
    for c in range(C2):
        for w in range(7):
            e2e[c * 16 + 2 * w, c * 16 + w] = 1.0
            e2o[c * 16 + 2 * w + 1, c * 16 + w] = 1.0
    f2e, f2o = z((7 * B, R2)), z((7 * B, R2))
    for b in range(B):
        for h in range(7):
            f2e[h * B + b, b * 16 + 2 * h] = 1.0
            f2o[h * B + b, b * 16 + 2 * h + 1] = 1.0

    mats = dict(rowvalid1=rowvalid1, rowvalid2=rowvalid2, ms1=ms1, ms2=ms2,
                pe1=pe1, po1=po1, fe1=fe1, fo1=fo1,
                e2e=e2e, e2o=e2o, f2e=f2e, f2o=f2o)
    return {k: jnp.asarray(v) for k, v in mats.items()}


def _banded_conv_weights(w, seg_in, seg_out, n_valid):
    """[K, Cin*seg_in, 128] banded matrices with
       M[di][ci*seg_in + j + dj, co*seg_out + j] = w[co, ci, di, dj]."""
    cout, cin, k, _ = w.shape
    co, ci, di, dj, j = np.meshgrid(
        np.arange(cout), np.arange(cin), np.arange(k), np.arange(k),
        np.arange(n_valid), indexing="ij")
    rows = ci * seg_in + j + dj
    cols = co * seg_out + j
    vals = w.astype(jnp.float32)[co, ci, di, dj]
    mats = jnp.zeros((k, cin * seg_in, 128), jnp.float32)
    return mats.at[di, rows, cols].set(vals)


def _lane_vec(v, seg):
    """Per-channel scalar -> [1, 128] lane vector (seg lanes per channel)."""
    v = jnp.repeat(v.astype(jnp.float32), seg)
    return jnp.pad(v, (0, 128 - v.shape[0])).reshape(1, 128)


def _fc_weight_lanes(fc_w, C2, nc):
    """fc weight permuted/padded to the kernel's feature-row layout
    (row index = 128*h + 16*c + w), output lanes padded to 128."""
    wt = fc_w.astype(jnp.float32).reshape(nc, C2, 7, 7)
    wt = jnp.transpose(wt, (2, 1, 3, 0))                       # [7h, C2, 7w, nc]
    wt = jnp.pad(wt, ((0, 0), (0, 8 - C2), (0, 16 - 7), (0, 128 - nc)))
    return wt.reshape(7 * 8 * 16, 128)                         # [896, 128]


def _stack_input(x, B, Cin):
    """Zero-pad by 2 and stack to [B*32 + 4, Cin*32] (4 zero tail rows give
    in-bounds windows for the conv1 row taps)."""
    xp = jnp.pad(x.astype(jnp.float32), ((0, 0), (0, 0), (2, 2), (2, 2)))
    xs = jnp.transpose(xp, (0, 2, 1, 3)).reshape(B * 32, Cin * 32)
    return jnp.pad(xs, ((0, 4), (0, 0)))


# ------------------------------ fused kernel --------------------------------

def _make_kernel(B):
    R1, R2 = B * 32, B * 16

    def kernel(xs_ref, w1b_ref, b1v_ref, g1v_ref, be1v_ref, rv1_ref, ms1_ref,
               pe1_ref, po1_ref, fe1_ref, fo1_ref,
               w2b_ref, b2v_ref, g2v_ref, be2v_ref, rv2_ref, ms2_ref,
               e2e_ref, e2o_ref, f2e_ref, f2o_ref,
               wfc_ref, bfc_ref,
               o_ref,
               p1_ref, feat_ref):
        f32 = jnp.float32
        eps = 1e-5
        mm = functools.partial(jnp.dot, preferred_element_type=f32,
                               precision=lax.Precision.HIGHEST)

        def bn_relu(acc, bv_ref, gv_ref, bev_ref, rv_ref, ms_ref):
            # Batch-statistics BatchNorm (biased var) + ReLU, all lanes at once.
            y = acc + bv_ref[...]
            cs = mm(rv_ref[...], y)                    # [1, 128] per-lane sums
            cs2 = mm(rv_ref[...], y * y)
            mean_l = mm(cs, ms_ref[...])               # per-channel mean -> lanes
            var_l = jnp.maximum(mm(cs2, ms_ref[...]) - mean_l * mean_l, 0.0)
            scale_l = gv_ref[...] * lax.rsqrt(var_l + eps)
            shift_l = bev_ref[...] - mean_l * scale_l
            return jnp.maximum(y * scale_l + shift_l, 0.0)

        # ---- conv1 (5x5, pad 2): 5 banded MXU matmuls (one per kernel row) --
        acc1 = mm(xs_ref[0:R1, :], w1b_ref[0])
        for di in range(1, 5):
            acc1 = acc1 + mm(xs_ref[di:di + R1, :], w1b_ref[di])
        y1 = bn_relu(acc1, b1v_ref, g1v_ref, be1v_ref, rv1_ref, ms1_ref)

        # ---- 2x2 maxpool + 1-px zero border + channel restack --------------
        z = jnp.maximum(mm(y1, pe1_ref[...]), mm(y1, po1_ref[...]))
        p1_ref[...] = jnp.maximum(mm(fe1_ref[...], z), mm(fo1_ref[...], z))

        # ---- conv2 (3x3, pad 1): 3 banded MXU matmuls -----------------------
        acc2 = mm(p1_ref[0:R2, :], w2b_ref[0])
        for di in range(1, 3):
            acc2 = acc2 + mm(p1_ref[di:di + R2, :], w2b_ref[di])
        y2 = bn_relu(acc2, b2v_ref, g2v_ref, be2v_ref, rv2_ref, ms2_ref)

        # ---- 2x2 maxpool -> q[h*B + b, c*16 + w] ----------------------------
        z2 = jnp.maximum(mm(y2, e2e_ref[...]), mm(y2, e2o_ref[...]))
        q = jnp.maximum(mm(f2e_ref[...], z2), mm(f2o_ref[...], z2))

        # ---- flatten (NCHW order folded into wfc row permutation) + fc ------
        for h in range(7):
            feat_ref[:, 128 * h:128 * (h + 1)] = q[B * h:B * (h + 1), :]
        o_ref[...] = mm(feat_ref[...], wfc_ref[...]) + bfc_ref[...]

    return kernel


# ------------------------------ host wrapper --------------------------------

def fashion_convnet_forward(params, x):
    f32 = jnp.float32
    x = x.astype(f32)
    B, Cin, H, W = x.shape
    C1 = params["conv1_w"].shape[0]
    C2 = params["conv2_w"].shape[0]
    nc = params["fc_w"].shape[0]
    assert (H, W) == (28, 28), "fc expects channel_2 * 7 * 7 features"
    assert C1 * 32 <= 128 and C2 * 16 <= 128 and nc <= 128
    assert params["fc_w"].shape[1] == C2 * 7 * 7

    s = _build_static_mats(B, C1, C2)
    w1b = _banded_conv_weights(params["conv1_w"], 32, 32, 28)   # [5, Cin*32, 128]
    w2b = _banded_conv_weights(params["conv2_w"], 16, 16, 14)   # [3, C1*16, 128]
    b1v = _lane_vec(params["conv1_b"], 32)
    g1v = _lane_vec(params["bn1_gamma"], 32)
    be1v = _lane_vec(params["bn1_beta"], 32)
    b2v = _lane_vec(params["conv2_b"], 16)
    g2v = _lane_vec(params["bn2_gamma"], 16)
    be2v = _lane_vec(params["bn2_beta"], 16)
    wfc = _fc_weight_lanes(params["fc_w"], C2, nc)
    bfc = jnp.pad(params["fc_b"].astype(f32), (0, 128 - nc)).reshape(1, 128)
    xs = _stack_input(x, B, Cin)

    vmem = pl.BlockSpec(memory_space=pltpu.MemorySpace.VMEM)
    out = pl.pallas_call(
        _make_kernel(B),
        out_shape=jax.ShapeDtypeStruct((B, 128), f32),
        in_specs=[vmem] * 23,
        out_specs=vmem,
        scratch_shapes=[
            pltpu.VMEM((B * 16 + 2, C1 * 16), f32),   # p1: padded pooled stage 1
            pltpu.VMEM((B, 7 * 128), f32),            # flat fc feature rows
        ],
    )(xs, w1b, b1v, g1v, be1v, s["rowvalid1"], s["ms1"],
      s["pe1"], s["po1"], s["fe1"], s["fo1"],
      w2b, b2v, g2v, be2v, s["rowvalid2"], s["ms2"],
      s["e2e"], s["e2o"], s["f2e"], s["f2o"],
      wfc, bfc)
    return out[:, :nc]


# ------------------------------ reference & init ----------------------------

def reference_forward(params, x):
    """Pure-JAX reference (batch-stats BN, as in the kernel)."""
    f32 = jnp.float32
    hi = lax.Precision.HIGHEST
    x = x.astype(f32)

    def conv(v, w, b, pad):
        y = lax.conv_general_dilated(
            v, w.astype(f32), window_strides=(1, 1),
            padding=[(pad, pad), (pad, pad)],
            dimension_numbers=("NCHW", "OIHW", "NCHW"), precision=hi)
        return y + b.astype(f32)[None, :, None, None]

    def bn_relu(y, g, be):
        mean = jnp.mean(y, axis=(0, 2, 3), keepdims=True)
        var = jnp.mean((y - mean) ** 2, axis=(0, 2, 3), keepdims=True)
        yn = (y - mean) * lax.rsqrt(var + 1e-5)
        yn = yn * g.astype(f32)[None, :, None, None] + be.astype(f32)[None, :, None, None]
        return jnp.maximum(yn, 0.0)

    def pool(y):
        return lax.reduce_window(y, -jnp.inf, lax.max,
                                 (1, 1, 2, 2), (1, 1, 2, 2), "VALID")

    y = pool(bn_relu(conv(x, params["conv1_w"], params["conv1_b"], 2),
                     params["bn1_gamma"], params["bn1_beta"]))
    y = pool(bn_relu(conv(y, params["conv2_w"], params["conv2_b"], 1),
                     params["bn2_gamma"], params["bn2_beta"]))
    feat = y.reshape(y.shape[0], -1)
    return jnp.dot(feat, params["fc_w"].astype(f32).T, precision=hi) \
        + params["fc_b"].astype(f32)


def init_params(key, in_channel, c1, c2, num_classes):
    k = jax.random.split(key, 6)

    def kaiming(kk, shape, fan_in):
        return jax.random.normal(kk, shape, jnp.float32) * jnp.sqrt(2.0 / fan_in)

    return {
        "conv1_w": kaiming(k[0], (c1, in_channel, 5, 5), in_channel * 25),
        "conv1_b": 0.01 * jax.random.normal(k[1], (c1,), jnp.float32),
        "bn1_gamma": jnp.ones((c1,), jnp.float32),
        "bn1_beta": jnp.zeros((c1,), jnp.float32),
        "conv2_w": kaiming(k[2], (c2, c1, 3, 3), c1 * 9),
        "conv2_b": 0.01 * jax.random.normal(k[3], (c2,), jnp.float32),
        "bn2_gamma": jnp.ones((c2,), jnp.float32),
        "bn2_beta": jnp.zeros((c2,), jnp.float32),
        "fc_w": kaiming(k[4], (num_classes, c2 * 7 * 7), c2 * 49),
        "fc_b": 0.01 * jax.random.normal(k[5], (num_classes,), jnp.float32),
    }


if __name__ == "__main__":
    key = jax.random.PRNGKey(0)
    pkey, xkey = jax.random.split(key)

    # FashionMNIST-style shapes: fc expects channel_2 * 7 * 7, so spatial = 28.
    B, in_channel, channel_1, channel_2, num_classes = 2, 1, 4, 8, 10
    params = init_params(pkey, in_channel, channel_1, channel_2, num_classes)
    x = jax.random.normal(xkey, (B, in_channel, 28, 28), jnp.float32)

    fwd = jax.jit(fashion_convnet_forward)
    scores = jax.block_until_ready(fwd(params, x))
    assert scores.shape == (B, num_classes), scores.shape
    assert bool(jnp.all(jnp.isfinite(scores)))

    ref = reference_forward(params, x)
    max_err = float(jnp.max(jnp.abs(scores - ref)))
    assert max_err < 1e-2, f"mismatch vs reference: max abs err = {max_err}"
    print("KERNEL_OK")
</pallas_src>

<mosaic_0001>
module attributes {stable_mosaic.version = 11 : i64} {
  func.func @kernel(%arg0: memref<68x32xf32, #tpu.memory_space<vmem>>, %arg1: memref<5x32x128xf32, #tpu.memory_space<vmem>>, %arg2: memref<1x128xf32, #tpu.memory_space<vmem>>, %arg3: memref<1x128xf32, #tpu.memory_space<vmem>>, %arg4: memref<1x128xf32, #tpu.memory_space<vmem>>, %arg5: memref<1x64xf32, #tpu.memory_space<vmem>>, %arg6: memref<128x128xf32, #tpu.memory_space<vmem>>, %arg7: memref<128x64xf32, #tpu.memory_space<vmem>>, %arg8: memref<128x64xf32, #tpu.memory_space<vmem>>, %arg9: memref<34x64xf32, #tpu.memory_space<vmem>>, %arg10: memref<34x64xf32, #tpu.memory_space<vmem>>, %arg11: memref<3x64x128xf32, #tpu.memory_space<vmem>>, %arg12: memref<1x128xf32, #tpu.memory_space<vmem>>, %arg13: memref<1x128xf32, #tpu.memory_space<vmem>>, %arg14: memref<1x128xf32, #tpu.memory_space<vmem>>, %arg15: memref<1x32xf32, #tpu.memory_space<vmem>>, %arg16: memref<128x128xf32, #tpu.memory_space<vmem>>, %arg17: memref<128x128xf32, #tpu.memory_space<vmem>>, %arg18: memref<128x128xf32, #tpu.memory_space<vmem>>, %arg19: memref<14x32xf32, #tpu.memory_space<vmem>>, %arg20: memref<14x32xf32, #tpu.memory_space<vmem>>, %arg21: memref<896x128xf32, #tpu.memory_space<vmem>>, %arg22: memref<1x128xf32, #tpu.memory_space<vmem>>, %arg23: memref<2x128xf32, #tpu.memory_space<vmem>>, %arg24: memref<34x64xf32, #tpu.memory_space<vmem>>, %arg25: memref<2x896xf32, #tpu.memory_space<vmem>>) attributes {dimension_semantics = [], scalar_prefetch = 0 : i64, scratch_operands = 2 : i64, tpu.core_type = #tpu.core_type<tc>} {
    %c0 = arith.constant 0 : index
    %c0_0 = arith.constant 0 : index
    %0 = vector.load %arg0[%c0, %c0_0] : memref<68x32xf32, #tpu.memory_space<vmem>>, vector<64x32xf32>
    %c0_1 = arith.constant 0 : index
    %c0_2 = arith.constant 0 : index
    %c0_3 = arith.constant 0 : index
    %1 = vector.load %arg1[%c0_1, %c0_2, %c0_3] : memref<5x32x128xf32, #tpu.memory_space<vmem>>, vector<1x32x128xf32>
    %2 = vector.shape_cast %1 : vector<1x32x128xf32> to vector<32x128xf32>
    %cst = arith.constant dense<0.000000e+00> : vector<64x128xf32>
    %3 = tpu.matmul %0, %2, %cst {dimension_numbers = #tpu.dot_dimension_numbers<[1], [0], [0], [1], [0, 0, 1, 1], [], []>, precision = #tpu.contract_precision<fp32>} : vector<64x32xf32>, vector<32x128xf32>, vector<64x128xf32> -> vector<64x128xf32>
    %c1 = arith.constant 1 : index
    %c0_4 = arith.constant 0 : index
    %4 = vector.load %arg0[%c1, %c0_4] : memref<68x32xf32, #tpu.memory_space<vmem>>, vector<64x32xf32>
    %c1_5 = arith.constant 1 : index
    %c0_6 = arith.constant 0 : index
    %c0_7 = arith.constant 0 : index
    %5 = vector.load %arg1[%c1_5, %c0_6, %c0_7] : memref<5x32x128xf32, #tpu.memory_space<vmem>>, vector<1x32x128xf32>
    %6 = vector.shape_cast %5 : vector<1x32x128xf32> to vector<32x128xf32>
    %cst_8 = arith.constant dense<0.000000e+00> : vector<64x128xf32>
    %7 = tpu.matmul %4, %6, %cst_8 {dimension_numbers = #tpu.dot_dimension_numbers<[1], [0], [0], [1], [0, 0, 1, 1], [], []>, precision = #tpu.contract_precision<fp32>} : vector<64x32xf32>, vector<32x128xf32>, vector<64x128xf32> -> vector<64x128xf32>
    %8 = arith.addf %3, %7 : vector<64x128xf32>
    %c2 = arith.constant 2 : index
    %c0_9 = arith.constant 0 : index
    %9 = vector.load %arg0[%c2, %c0_9] : memref<68x32xf32, #tpu.memory_space<vmem>>, vector<64x32xf32>
    %c2_10 = arith.constant 2 : index
    %c0_11 = arith.constant 0 : index
    %c0_12 = arith.constant 0 : index
    %10 = vector.load %arg1[%c2_10, %c0_11, %c0_12] : memref<5x32x128xf32, #tpu.memory_space<vmem>>, vector<1x32x128xf32>
    %11 = vector.shape_cast %10 : vector<1x32x128xf32> to vector<32x128xf32>
    %cst_13 = arith.constant dense<0.000000e+00> : vector<64x128xf32>
    %12 = tpu.matmul %9, %11, %cst_13 {dimension_numbers = #tpu.dot_dimension_numbers<[1], [0], [0], [1], [0, 0, 1, 1], [], []>, precision = #tpu.contract_precision<fp32>} : vector<64x32xf32>, vector<32x128xf32>, vector<64x128xf32> -> vector<64x128xf32>
    %13 = arith.addf %8, %12 : vector<64x128xf32>
    %c3 = arith.constant 3 : index
    %c0_14 = arith.constant 0 : index
    %14 = vector.load %arg0[%c3, %c0_14] : memref<68x32xf32, #tpu.memory_space<vmem>>, vector<64x32xf32>
    %c3_15 = arith.constant 3 : index
    %c0_16 = arith.constant 0 : index
    %c0_17 = arith.constant 0 : index
    %15 = vector.load %arg1[%c3_15, %c0_16, %c0_17] : memref<5x32x128xf32, #tpu.memory_space<vmem>>, vector<1x32x128xf32>
    %16 = vector.shape_cast %15 : vector<1x32x128xf32> to vector<32x128xf32>
    %cst_18 = arith.constant dense<0.000000e+00> : vector<64x128xf32>
    %17 = tpu.matmul %14, %16, %cst_18 {dimension_numbers = #tpu.dot_dimension_numbers<[1], [0], [0], [1], [0, 0, 1, 1], [], []>, precision = #tpu.contract_precision<fp32>} : vector<64x32xf32>, vector<32x128xf32>, vector<64x128xf32> -> vector<64x128xf32>
    %18 = arith.addf %13, %17 : vector<64x128xf32>
    %c4 = arith.constant 4 : index
    %c0_19 = arith.constant 0 : index
    %19 = vector.load %arg0[%c4, %c0_19] : memref<68x32xf32, #tpu.memory_space<vmem>>, vector<64x32xf32>
    %c4_20 = arith.constant 4 : index
    %c0_21 = arith.constant 0 : index
    %c0_22 = arith.constant 0 : index
    %20 = vector.load %arg1[%c4_20, %c0_21, %c0_22] : memref<5x32x128xf32, #tpu.memory_space<vmem>>, vector<1x32x128xf32>
    %21 = vector.shape_cast %20 : vector<1x32x128xf32> to vector<32x128xf32>
    %cst_23 = arith.constant dense<0.000000e+00> : vector<64x128xf32>
    %22 = tpu.matmul %19, %21, %cst_23 {dimension_numbers = #tpu.dot_dimension_numbers<[1], [0], [0], [1], [0, 0, 1, 1], [], []>, precision = #tpu.contract_precision<fp32>} : vector<64x32xf32>, vector<32x128xf32>, vector<64x128xf32> -> vector<64x128xf32>
    %23 = arith.addf %18, %22 : vector<64x128xf32>
    %c0_24 = arith.constant 0 : index
    %c0_25 = arith.constant 0 : index
    %24 = vector.load %arg2[%c0_24, %c0_25] : memref<1x128xf32, #tpu.memory_space<vmem>>, vector<1x128xf32>
    %25 = vector.broadcast %24 : vector<1x128xf32> to vector<64x128xf32>
    %26 = arith.addf %23, %25 : vector<64x128xf32>
    %c0_26 = arith.constant 0 : index
    %c0_27 = arith.constant 0 : index
    %27 = vector.load %arg5[%c0_26, %c0_27] : memref<1x64xf32, #tpu.memory_space<vmem>>, vector<1x64xf32>
    %cst_28 = arith.constant dense<0.000000e+00> : vector<1x128xf32>
    %28 = tpu.matmul %27, %26, %cst_28 {dimension_numbers = #tpu.dot_dimension_numbers<[1], [0], [0], [1], [0, 0, 1, 1], [], []>, precision = #tpu.contract_precision<fp32>} : vector<1x64xf32>, vector<64x128xf32>, vector<1x128xf32> -> vector<1x128xf32>
    %c0_29 = arith.constant 0 : index
    %c0_30 = arith.constant 0 : index
    %29 = vector.load %arg5[%c0_29, %c0_30] : memref<1x64xf32, #tpu.memory_space<vmem>>, vector<1x64xf32>
    %30 = arith.mulf %26, %26 : vector<64x128xf32>
    %cst_31 = arith.constant dense<0.000000e+00> : vector<1x128xf32>
    %31 = tpu.matmul %29, %30, %cst_31 {dimension_numbers = #tpu.dot_dimension_numbers<[1], [0], [0], [1], [0, 0, 1, 1], [], []>, precision = #tpu.contract_precision<fp32>} : vector<1x64xf32>, vector<64x128xf32>, vector<1x128xf32> -> vector<1x128xf32>
    %c0_32 = arith.constant 0 : index
    %c0_33 = arith.constant 0 : index
    %32 = vector.load %arg6[%c0_32, %c0_33] : memref<128x128xf32, #tpu.memory_space<vmem>>, vector<128x128xf32>
    %cst_34 = arith.constant dense<0.000000e+00> : vector<1x128xf32>
    %33 = tpu.matmul %28, %32, %cst_34 {dimension_numbers = #tpu.dot_dimension_numbers<[1], [0], [0], [1], [0, 0, 1, 1], [], []>, precision = #tpu.contract_precision<fp32>} : vector<1x128xf32>, vector<128x128xf32>, vector<1x128xf32> -> vector<1x128xf32>
    %c0_35 = arith.constant 0 : index
    %c0_36 = arith.constant 0 : index
    %34 = vector.load %arg6[%c0_35, %c0_36] : memref<128x128xf32, #tpu.memory_space<vmem>>, vector<128x128xf32>
    %cst_37 = arith.constant dense<0.000000e+00> : vector<1x128xf32>
    %35 = tpu.matmul %31, %34, %cst_37 {dimension_numbers = #tpu.dot_dimension_numbers<[1], [0], [0], [1], [0, 0, 1, 1], [], []>, precision = #tpu.contract_precision<fp32>} : vector<1x128xf32>, vector<128x128xf32>, vector<1x128xf32> -> vector<1x128xf32>
    %36 = arith.mulf %33, %33 : vector<1x128xf32>
    %37 = arith.subf %35, %36 : vector<1x128xf32>
    %cst_38 = arith.constant 0.000000e+00 : f32
    %38 = vector.broadcast %cst_38 : f32 to vector<1x128xf32>
    %39 = arith.maximumf %37, %38 : vector<1x128xf32>
    %c0_39 = arith.constant 0 : index
    %c0_40 = arith.constant 0 : index
    %40 = vector.load %arg3[%c0_39, %c0_40] : memref<1x128xf32, #tpu.memory_space<vmem>>, vector<1x128xf32>
    %cst_41 = arith.constant 9.99999974E-6 : f32
    %41 = vector.broadcast %cst_41 : f32 to vector<1x128xf32>
    %42 = arith.addf %39, %41 : vector<1x128xf32>
    %43 = math.rsqrt %42 : vector<1x128xf32>
    %44 = arith.mulf %40, %43 : vector<1x128xf32>
    %c0_42 = arith.constant 0 : index
    %c0_43 = arith.constant 0 : index
    %45 = vector.load %arg4[%c0_42, %c0_43] : memref<1x128xf32, #tpu.memory_space<vmem>>, vector<1x128xf32>
    %46 = arith.mulf %33, %44 : vector<1x128xf32>
    %47 = arith.subf %45, %46 : vector<1x128xf32>
    %48 = vector.broadcast %44 : vector<1x128xf32> to vector<64x128xf32>
    %49 = arith.mulf %26, %48 : vector<64x128xf32>
    %50 = vector.broadcast %47 : vector<1x128xf32> to vector<64x128xf32>
    %51 = arith.addf %49, %50 : vector<64x128xf32>
    %cst_44 = arith.constant 0.000000e+00 : f32
    %52 = vector.broadcast %cst_44 : f32 to vector<64x128xf32>
    %53 = arith.maximumf %51, %52 : vector<64x128xf32>
    %c0_45 = arith.constant 0 : index
    %c0_46 = arith.constant 0 : index
    %54 = vector.load %arg7[%c0_45, %c0_46] : memref<128x64xf32, #tpu.memory_space<vmem>>, vector<128x64xf32>
    %cst_47 = arith.constant dense<0.000000e+00> : vector<64x64xf32>
    %55 = tpu.matmul %53, %54, %cst_47 {dimension_numbers = #tpu.dot_dimension_numbers<[1], [0], [0], [1], [0, 0, 1, 1], [], []>, precision = #tpu.contract_precision<fp32>} : vector<64x128xf32>, vector<128x64xf32>, vector<64x64xf32> -> vector<64x64xf32>
    %c0_48 = arith.constant 0 : index
    %c0_49 = arith.constant 0 : index
    %56 = vector.load %arg8[%c0_48, %c0_49] : memref<128x64xf32, #tpu.memory_space<vmem>>, vector<128x64xf32>
    %cst_50 = arith.constant dense<0.000000e+00> : vector<64x64xf32>
    %57 = tpu.matmul %53, %56, %cst_50 {dimension_numbers = #tpu.dot_dimension_numbers<[1], [0], [0], [1], [0, 0, 1, 1], [], []>, precision = #tpu.contract_precision<fp32>} : vector<64x128xf32>, vector<128x64xf32>, vector<64x64xf32> -> vector<64x64xf32>
    %58 = arith.maximumf %55, %57 : vector<64x64xf32>
    %c0_51 = arith.constant 0 : index
    %c0_52 = arith.constant 0 : index
    %59 = vector.load %arg9[%c0_51, %c0_52] : memref<34x64xf32, #tpu.memory_space<vmem>>, vector<34x64xf32>
    %cst_53 = arith.constant dense<0.000000e+00> : vector<34x64xf32>
    %60 = tpu.matmul %59, %58, %cst_53 {dimension_numbers = #tpu.dot_dimension_numbers<[1], [0], [0], [1], [0, 0, 1, 1], [], []>, precision = #tpu.contract_precision<fp32>} : vector<34x64xf32>, vector<64x64xf32>, vector<34x64xf32> -> vector<34x64xf32>
    %c0_54 = arith.constant 0 : index
    %c0_55 = arith.constant 0 : index
    %61 = vector.load %arg10[%c0_54, %c0_55] : memref<34x64xf32, #tpu.memory_space<vmem>>, vector<34x64xf32>
    %cst_56 = arith.constant dense<0.000000e+00> : vector<34x64xf32>
    %62 = tpu.matmul %61, %58, %cst_56 {dimension_numbers = #tpu.dot_dimension_numbers<[1], [0], [0], [1], [0, 0, 1, 1], [], []>, precision = #tpu.contract_precision<fp32>} : vector<34x64xf32>, vector<64x64xf32>, vector<34x64xf32> -> vector<34x64xf32>
    %63 = arith.maximumf %60, %62 : vector<34x64xf32>
    %c0_57 = arith.constant 0 : index
    %c0_58 = arith.constant 0 : index
    %64 = vector.load %arg24[%c0_57, %c0_58] : memref<34x64xf32, #tpu.memory_space<vmem>>, vector<34x64xf32>
    tpu.vector_store %arg24[%c0_57, %c0_58], %63 {strides = array<i32>} : memref<34x64xf32, #tpu.memory_space<vmem>>, vector<34x64xf32>,
    %c0_59 = arith.constant 0 : index
    %c0_60 = arith.constant 0 : index
    %65 = vector.load %arg24[%c0_59, %c0_60] : memref<34x64xf32, #tpu.memory_space<vmem>>, vector<32x64xf32>
    %c0_61 = arith.constant 0 : index
    %c0_62 = arith.constant 0 : index
    %c0_63 = arith.constant 0 : index
    %66 = vector.load %arg11[%c0_61, %c0_62, %c0_63] : memref<3x64x128xf32, #tpu.memory_space<vmem>>, vector<1x64x128xf32>
    %67 = vector.shape_cast %66 : vector<1x64x128xf32> to vector<64x128xf32>
    %cst_64 = arith.constant dense<0.000000e+00> : vector<32x128xf32>
    %68 = tpu.matmul %65, %67, %cst_64 {dimension_numbers = #tpu.dot_dimension_numbers<[1], [0], [0], [1], [0, 0, 1, 1], [], []>, precision = #tpu.contract_precision<fp32>} : vector<32x64xf32>, vector<64x128xf32>, vector<32x128xf32> -> vector<32x128xf32>
    %c1_65 = arith.constant 1 : index
    %c0_66 = arith.constant 0 : index
    %69 = vector.load %arg24[%c1_65, %c0_66] : memref<34x64xf32, #tpu.memory_space<vmem>>, vector<32x64xf32>
    %c1_67 = arith.constant 1 : index
    %c0_68 = arith.constant 0 : index
    %c0_69 = arith.constant 0 : index
    %70 = vector.load %arg11[%c1_67, %c0_68, %c0_69] : memref<3x64x128xf32, #tpu.memory_space<vmem>>, vector<1x64x128xf32>
    %71 = vector.shape_cast %70 : vector<1x64x128xf32> to vector<64x128xf32>
    %cst_70 = arith.constant dense<0.000000e+00> : vector<32x128xf32>
    %72 = tpu.matmul %69, %71, %cst_70 {dimension_numbers = #tpu.dot_dimension_numbers<[1], [0], [0], [1], [0, 0, 1, 1], [], []>, precision = #tpu.contract_precision<fp32>} : vector<32x64xf32>, vector<64x128xf32>, vector<32x128xf32> -> vector<32x128xf32>
    %73 = arith.addf %68, %72 : vector<32x128xf32>
    %c2_71 = arith.constant 2 : index
    %c0_72 = arith.constant 0 : index
    %74 = vector.load %arg24[%c2_71, %c0_72] : memref<34x64xf32, #tpu.memory_space<vmem>>, vector<32x64xf32>
    %c2_73 = arith.constant 2 : index
    %c0_74 = arith.constant 0 : index
    %c0_75 = arith.constant 0 : index
    %75 = vector.load %arg11[%c2_73, %c0_74, %c0_75] : memref<3x64x128xf32, #tpu.memory_space<vmem>>, vector<1x64x128xf32>
    %76 = vector.shape_cast %75 : vector<1x64x128xf32> to vector<64x128xf32>
    %cst_76 = arith.constant dense<0.000000e+00> : vector<32x128xf32>
    %77 = tpu.matmul %74, %76, %cst_76 {dimension_numbers = #tpu.dot_dimension_numbers<[1], [0], [0], [1], [0, 0, 1, 1], [], []>, precision = #tpu.contract_precision<fp32>} : vector<32x64xf32>, vector<64x128xf32>, vector<32x128xf32> -> vector<32x128xf32>
    %78 = arith.addf %73, %77 : vector<32x128xf32>
    %c0_77 = arith.constant 0 : index
    %c0_78 = arith.constant 0 : index
    %79 = vector.load %arg12[%c0_77, %c0_78] : memref<1x128xf32, #tpu.memory_space<vmem>>, vector<1x128xf32>
    %80 = vector.broadcast %79 : vector<1x128xf32> to vector<32x128xf32>
    %81 = arith.addf %78, %80 : vector<32x128xf32>
    %c0_79 = arith.constant 0 : index
    %c0_80 = arith.constant 0 : index
    %82 = vector.load %arg15[%c0_79, %c0_80] : memref<1x32xf32, #tpu.memory_space<vmem>>, vector<1x32xf32>
    %cst_81 = arith.constant dense<0.000000e+00> : vector<1x128xf32>
    %83 = tpu.matmul %82, %81, %cst_81 {dimension_numbers = #tpu.dot_dimension_numbers<[1], [0], [0], [1], [0, 0, 1, 1], [], []>, precision = #tpu.contract_precision<fp32>} : vector<1x32xf32>, vector<32x128xf32>, vector<1x128xf32> -> vector<1x128xf32>
    %c0_82 = arith.constant 0 : index
    %c0_83 = arith.constant 0 : index
    %84 = vector.load %arg15[%c0_82, %c0_83] : memref<1x32xf32, #tpu.memory_space<vmem>>, vector<1x32xf32>
    %85 = arith.mulf %81, %81 : vector<32x128xf32>
    %cst_84 = arith.constant dense<0.000000e+00> : vector<1x128xf32>
    %86 = tpu.matmul %84, %85, %cst_84 {dimension_numbers = #tpu.dot_dimension_numbers<[1], [0], [0], [1], [0, 0, 1, 1], [], []>, precision = #tpu.contract_precision<fp32>} : vector<1x32xf32>, vector<32x128xf32>, vector<1x128xf32> -> vector<1x128xf32>
    %c0_85 = arith.constant 0 : index
    %c0_86 = arith.constant 0 : index
    %87 = vector.load %arg16[%c0_85, %c0_86] : memref<128x128xf32, #tpu.memory_space<vmem>>, vector<128x128xf32>
    %cst_87 = arith.constant dense<0.000000e+00> : vector<1x128xf32>
    %88 = tpu.matmul %83, %87, %cst_87 {dimension_numbers = #tpu.dot_dimension_numbers<[1], [0], [0], [1], [0, 0, 1, 1], [], []>, precision = #tpu.contract_precision<fp32>} : vector<1x128xf32>, vector<128x128xf32>, vector<1x128xf32> -> vector<1x128xf32>
    %c0_88 = arith.constant 0 : index
    %c0_89 = arith.constant 0 : index
    %89 = vector.load %arg16[%c0_88, %c0_89] : memref<128x128xf32, #tpu.memory_space<vmem>>, vector<128x128xf32>
    %cst_90 = arith.constant dense<0.000000e+00> : vector<1x128xf32>
    %90 = tpu.matmul %86, %89, %cst_90 {dimension_numbers = #tpu.dot_dimension_numbers<[1], [0], [0], [1], [0, 0, 1, 1], [], []>, precision = #tpu.contract_precision<fp32>} : vector<1x128xf32>, vector<128x128xf32>, vector<1x128xf32> -> vector<1x128xf32>
    %91 = arith.mulf %88, %88 : vector<1x128xf32>
    %92 = arith.subf %90, %91 : vector<1x128xf32>
    %cst_91 = arith.constant 0.000000e+00 : f32
    %93 = vector.broadcast %cst_91 : f32 to vector<1x128xf32>
    %94 = arith.maximumf %92, %93 : vector<1x128xf32>
    %c0_92 = arith.constant 0 : index
    %c0_93 = arith.constant 0 : index
    %95 = vector.load %arg13[%c0_92, %c0_93] : memref<1x128xf32, #tpu.memory_space<vmem>>, vector<1x128xf32>
    %cst_94 = arith.constant 9.99999974E-6 : f32
    %96 = vector.broadcast %cst_94 : f32 to vector<1x128xf32>
    %97 = arith.addf %94, %96 : vector<1x128xf32>
    %98 = math.rsqrt %97 : vector<1x128xf32>
    %99 = arith.mulf %95, %98 : vector<1x128xf32>
    %c0_95 = arith.constant 0 : index
    %c0_96 = arith.constant 0 : index
    %100 = vector.load %arg14[%c0_95, %c0_96] : memref<1x128xf32, #tpu.memory_space<vmem>>, vector<1x128xf32>
    %101 = arith.mulf %88, %99 : vector<1x128xf32>
    %102 = arith.subf %100, %101 : vector<1x128xf32>
    %103 = vector.broadcast %99 : vector<1x128xf32> to vector<32x128xf32>
    %104 = arith.mulf %81, %103 : vector<32x128xf32>
    %105 = vector.broadcast %102 : vector<1x128xf32> to vector<32x128xf32>
    %106 = arith.addf %104, %105 : vector<32x128xf32>
    %cst_97 = arith.constant 0.000000e+00 : f32
    %107 = vector.broadcast %cst_97 : f32 to vector<32x128xf32>
    %108 = arith.maximumf %106, %107 : vector<32x128xf32>
    %c0_98 = arith.constant 0 : index
    %c0_99 = arith.constant 0 : index
    %109 = vector.load %arg17[%c0_98, %c0_99] : memref<128x128xf32, #tpu.memory_space<vmem>>, vector<128x128xf32>
    %cst_100 = arith.constant dense<0.000000e+00> : vector<32x128xf32>
    %110 = tpu.matmul %108, %109, %cst_100 {dimension_numbers = #tpu.dot_dimension_numbers<[1], [0], [0], [1], [0, 0, 1, 1], [], []>, precision = #tpu.contract_precision<fp32>} : vector<32x128xf32>, vector<128x128xf32>, vector<32x128xf32> -> vector<32x128xf32>
    %c0_101 = arith.constant 0 : index
    %c0_102 = arith.constant 0 : index
    %111 = vector.load %arg18[%c0_101, %c0_102] : memref<128x128xf32, #tpu.memory_space<vmem>>, vector<128x128xf32>
    %cst_103 = arith.constant dense<0.000000e+00> : vector<32x128xf32>
    %112 = tpu.matmul %108, %111, %cst_103 {dimension_numbers = #tpu.dot_dimension_numbers<[1], [0], [0], [1], [0, 0, 1, 1], [], []>, precision = #tpu.contract_precision<fp32>} : vector<32x128xf32>, vector<128x128xf32>, vector<32x128xf32> -> vector<32x128xf32>
    %113 = arith.maximumf %110, %112 : vector<32x128xf32>
    %c0_104 = arith.constant 0 : index
    %c0_105 = arith.constant 0 : index
    %114 = vector.load %arg19[%c0_104, %c0_105] : memref<14x32xf32, #tpu.memory_space<vmem>>, vector<14x32xf32>
    %cst_106 = arith.constant dense<0.000000e+00> : vector<14x128xf32>
    %115 = tpu.matmul %114, %113, %cst_106 {dimension_numbers = #tpu.dot_dimension_numbers<[1], [0], [0], [1], [0, 0, 1, 1], [], []>, precision = #tpu.contract_precision<fp32>} : vector<14x32xf32>, vector<32x128xf32>, vector<14x128xf32> -> vector<14x128xf32>
    %c0_107 = arith.constant 0 : index
    %c0_108 = arith.constant 0 : index
    %116 = vector.load %arg20[%c0_107, %c0_108] : memref<14x32xf32, #tpu.memory_space<vmem>>, vector<14x32xf32>
    %cst_109 = arith.constant dense<0.000000e+00> : vector<14x128xf32>
    %117 = tpu.matmul %116, %113, %cst_109 {dimension_numbers = #tpu.dot_dimension_numbers<[1], [0], [0], [1], [0, 0, 1, 1], [], []>, precision = #tpu.contract_precision<fp32>} : vector<14x32xf32>, vector<32x128xf32>, vector<14x128xf32> -> vector<14x128xf32>
    %118 = arith.maximumf %115, %117 : vector<14x128xf32>
    %119 = vector.extract_strided_slice %118 {offsets = [0, 0], sizes = [2, 128], strides = [1, 1]} : vector<14x128xf32> to vector<2x128xf32>
    %c0_110 = arith.constant 0 : index
    %c0_111 = arith.constant 0 : index
    %120 = vector.load %arg25[%c0_110, %c0_111] : memref<2x896xf32, #tpu.memory_space<vmem>>, vector<2x128xf32>
    tpu.vector_store %arg25[%c0_110, %c0_111], %119 {strides = array<i32>} : memref<2x896xf32, #tpu.memory_space<vmem>>, vector<2x128xf32>,
    %121 = vector.extract_strided_slice %118 {offsets = [2, 0], sizes = [2, 128], strides = [1, 1]} : vector<14x128xf32> to vector<2x128xf32>
    %c0_112 = arith.constant 0 : index
    %c128 = arith.constant 128 : index
    %122 = vector.load %arg25[%c0_112, %c128] : memref<2x896xf32, #tpu.memory_space<vmem>>, vector<2x128xf32>
    tpu.vector_store %arg25[%c0_112, %c128], %121 {strides = array<i32>} : memref<2x896xf32, #tpu.memory_space<vmem>>, vector<2x128xf32>,
    %123 = vector.extract_strided_slice %118 {offsets = [4, 0], sizes = [2, 128], strides = [1, 1]} : vector<14x128xf32> to vector<2x128xf32>
    %c0_113 = arith.constant 0 : index
    %c256 = arith.constant 256 : index
    %124 = vector.load %arg25[%c0_113, %c256] : memref<2x896xf32, #tpu.memory_space<vmem>>, vector<2x128xf32>
    tpu.vector_store %arg25[%c0_113, %c256], %123 {strides = array<i32>} : memref<2x896xf32, #tpu.memory_space<vmem>>, vector<2x128xf32>,
    %125 = vector.extract_strided_slice %118 {offsets = [6, 0], sizes = [2, 128], strides = [1, 1]} : vector<14x128xf32> to vector<2x128xf32>
    %c0_114 = arith.constant 0 : index
    %c384 = arith.constant 384 : index
    %126 = vector.load %arg25[%c0_114, %c384] : memref<2x896xf32, #tpu.memory_space<vmem>>, vector<2x128xf32>
    tpu.vector_store %arg25[%c0_114, %c384], %125 {strides = array<i32>} : memref<2x896xf32, #tpu.memory_space<vmem>>, vector<2x128xf32>,
    %127 = vector.extract_strided_slice %118 {offsets = [8, 0], sizes = [2, 128], strides = [1, 1]} : vector<14x128xf32> to vector<2x128xf32>
    %c0_115 = arith.constant 0 : index
    %c512 = arith.constant 512 : index
    %128 = vector.load %arg25[%c0_115, %c512] : memref<2x896xf32, #tpu.memory_space<vmem>>, vector<2x128xf32>
    tpu.vector_store %arg25[%c0_115, %c512], %127 {strides = array<i32>} : memref<2x896xf32, #tpu.memory_space<vmem>>, vector<2x128xf32>,
    %129 = vector.extract_strided_slice %118 {offsets = [10, 0], sizes = [2, 128], strides = [1, 1]} : vector<14x128xf32> to vector<2x128xf32>
    %c0_116 = arith.constant 0 : index
    %c640 = arith.constant 640 : index
    %130 = vector.load %arg25[%c0_116, %c640] : memref<2x896xf32, #tpu.memory_space<vmem>>, vector<2x128xf32>
    tpu.vector_store %arg25[%c0_116, %c640], %129 {strides = array<i32>} : memref<2x896xf32, #tpu.memory_space<vmem>>, vector<2x128xf32>,
    %131 = vector.extract_strided_slice %118 {offsets = [12, 0], sizes = [2, 128], strides = [1, 1]} : vector<14x128xf32> to vector<2x128xf32>
    %c0_117 = arith.constant 0 : index
    %c768 = arith.constant 768 : index
    %132 = vector.load %arg25[%c0_117, %c768] : memref<2x896xf32, #tpu.memory_space<vmem>>, vector<2x128xf32>
    tpu.vector_store %arg25[%c0_117, %c768], %131 {strides = array<i32>} : memref<2x896xf32, #tpu.memory_space<vmem>>, vector<2x128xf32>,
    %c0_118 = arith.constant 0 : index
    %c0_119 = arith.constant 0 : index
    %133 = vector.load %arg25[%c0_118, %c0_119] : memref<2x896xf32, #tpu.memory_space<vmem>>, vector<2x896xf32>
    %c0_120 = arith.constant 0 : index
    %c0_121 = arith.constant 0 : index
    %134 = vector.load %arg21[%c0_120, %c0_121] : memref<896x128xf32, #tpu.memory_space<vmem>>, vector<896x128xf32>
    %cst_122 = arith.constant dense<0.000000e+00> : vector<2x128xf32>
    %135 = tpu.matmul %133, %134, %cst_122 {dimension_numbers = #tpu.dot_dimension_numbers<[1], [0], [0], [1], [0, 0, 1, 1], [], []>, precision = #tpu.contract_precision<fp32>} : vector<2x896xf32>, vector<896x128xf32>, vector<2x128xf32> -> vector<2x128xf32>
    %c0_123 = arith.constant 0 : index
    %c0_124 = arith.constant 0 : index
    %136 = vector.load %arg22[%c0_123, %c0_124] : memref<1x128xf32, #tpu.memory_space<vmem>>, vector<1x128xf32>
    %137 = vector.broadcast %136 : vector<1x128xf32> to vector<2x128xf32>
    %138 = arith.addf %135, %137 : vector<2x128xf32>
    %c0_125 = arith.constant 0 : index
    %c0_126 = arith.constant 0 : index
    %139 = vector.load %arg23[%c0_125, %c0_126] : memref<2x128xf32, #tpu.memory_space<vmem>>, vector<2x128xf32>
    tpu.vector_store %arg23[%c0_125, %c0_126], %138 {strides = array<i32>} : memref<2x128xf32, #tpu.memory_space<vmem>>, vector<2x128xf32>,
    return
  }
}

</mosaic_0001>

<bundles_post_ra>
// kernel: fashion_convnet_forward.1
= control target key start
LH: loop header
LB: loop body
LE: loop exit
PB: predicated region body
PF: predicated region fallthrough
CT: control target
= control target key end

     0   :  { %s19124_s0 = inlined_call_operand.vmem [shape: f32[68,32], index: 0, kind: input, shape index: {}]   ;;  %s19125_s1 = inlined_call_operand.vmem [shape: f32[5,32,128], index: 1, kind: input, shape index: {}]   ;;  %s19126_s2 = inlined_call_operand.vmem [shape: f32[1,128], index: 2, kind: input, shape index: {}]   ;;  %s19127_s3 = inlined_call_operand.vmem [shape: f32[1,128], index: 3, kind: input, shape index: {}]   ;;  %s19128_s4 = inlined_call_operand.vmem [shape: f32[1,128], index: 4, kind: input, shape index: {}]   ;;  %s19129_s5 = inlined_call_operand.vmem [shape: f32[1,64], index: 5, kind: input, shape index: {}]   ;;  %s19130_s6 = inlined_call_operand.vmem [shape: f32[128,128], index: 6, kind: input, shape index: {}]   ;;  %s19131_s7 = inlined_call_operand.vmem [shape: f32[128,64], index: 7, kind: input, shape index: {}]   ;;  %s19132_s8 = inlined_call_operand.vmem [shape: f32[128,64], index: 8, kind: input, shape index: {}]   ;;  %s19133_s9 = inlined_call_operand.vmem [shape: f32[34,64], index: 9, kind: input, shape index: {}]   ;;  %s19134_s10 = inlined_call_operand.vmem [shape: f32[34,64], index: 10, kind: input, shape index: {}]   ;;  %s19135_s11 = inlined_call_operand.vmem [shape: f32[3,64,128], index: 11, kind: input, shape index: {}]   ;;  %s19136_s12 = inlined_call_operand.vmem [shape: f32[1,128], index: 12, kind: input, shape index: {}]   ;;  %s19137_s13 = inlined_call_operand.vmem [shape: f32[1,128], index: 13, kind: input, shape index: {}]   ;;  %s19138_s14 = inlined_call_operand.vmem [shape: f32[1,128], index: 14, kind: input, shape index: {}]   ;;  %s19139_s15 = inlined_call_operand.vmem [shape: f32[1,32], index: 15, kind: input, shape index: {}]   ;;  %s19140_s16 = inlined_call_operand.vmem [shape: f32[128,128], index: 16, kind: input, shape index: {}]   ;;  %s19141_s17 = inlined_call_operand.vmem [shape: f32[128,128], index: 17, kind: input, shape index: {}]   ;;  %s19142_s18 = inlined_call_operand.vmem [shape: f32[128,128], index: 18, kind: input, shape index: {}]   ;;  %s19143_s19 = inlined_call_operand.vmem [shape: f32[14,32], index: 19, kind: input, shape index: {}]   ;;  %s19144_s20 = inlined_call_operand.vmem [shape: f32[14,32], index: 20, kind: input, shape index: {}]   ;;  %s19145_s21 = inlined_call_operand.vmem [shape: f32[896,128], index: 21, kind: input, shape index: {}]   ;;  %s19146_s22 = inlined_call_operand.vmem [shape: f32[1,128], index: 22, kind: input, shape index: {}]   ;;  %s19147_s23 = inlined_call_operand.hbm [shape: f32[2,128], index: 23, kind: output, shape index: {}]  }
   0x1   :  { %19263 = sst [smem:[#allocation44_spill]] %s19124_s0 }
   0x2   :  { %19264 = sst [smem:[#allocation45_spill]] %s19125_s1 }
   0x3   :  { %19265 = sst [smem:[#allocation46_spill]] %s19126_s2 }
   0x4   :  { %19266 = sst [smem:[#allocation47_spill]] %s19127_s3 }
   0x5   :  { %19267 = sst [smem:[#allocation48_spill]] %s19128_s4 }
   0x6   :  { %19268 = sst [smem:[#allocation49_spill]] %s19129_s5 }
   0x7   :  { %19269 = sst [smem:[#allocation50_spill]] %s19130_s6 }
   0x8   :  { %19270 = sst [smem:[#allocation51_spill]] %s19131_s7 }
   0x9   :  { %s19271_s24 = sld [smem:[#allocation45_spill]]  ;;  %vm100_vm0 = vcmask 261120  }
   0xa   :  { %s19272_s28 = sld [smem:[#allocation44_spill]] }
   0xf   :  { %v11585_v0 = vld [vmem:[%s19271_s24 + $0x38] sm:$0xff]  ;;  %v11584_v1 = vld [vmem:[%s19271_s24 + $0x30] sm:$0xff]  ;;  %v11583_v2 = vld [vmem:[%s19271_s24 + $0x28] sm:$0xff] }
  0x10   :  { %v11786_v3 = vand.u32 4294901760, %v11585_v0  ;;  %v11788_v4 = vand.u32 4294901760, %v11584_v1  ;;  %v11790_v5 = vand.u32 4294901760, %v11583_v2  ;;  %v11582_v6 = vld [vmem:[%s19271_s24 + $0x20] sm:$0xff]  ;;  %v88_v10 = vld [vmem:[%s19272_s28 + $0x9] sm:$0xff]  ;;  %v89_v11 = vld [vmem:[%s19272_s28 + $0x11] sm:$0xff] }
  0x11   :  { %v87_v7 = vld [vmem:[%s19272_s28 + $0x1] sm:$0xff]  ;;  %v11798_v8 = vand.u32 4294901760, %v11582_v6  ;;  %v105_v17 = vsel %vm100_vm0, %v88_v10, 0  ;;  %v108_v18 = vsel %vm100_vm0, %v89_v11, 0 }
  0x12   :  { %v102_v9 = vsel %vm100_vm0, %v87_v7, 0  ;;  %138 = vmatpush.msra.mxu0 %v11786_v3  ;;  %v11809_v12 = vsub.f32 %v11585_v0, %v11786_v3  ;;  %v11812_v13 = vsub.f32 %v11584_v1, %v11788_v4  ;;  %v11815_v14 = vsub.f32 %v11583_v2, %v11790_v5 }
  0x13   :  { %v11817_v15 = vand.u32 4294901760, %v102_v9  ;;  %v11820_v16 = vsub.f32 %v11582_v6, %v11798_v8 }
  0x14   :  { %293 = vmatpush.msra.mxu2 %v11809_v12  ;;  %140 = vmatpush.msra.mxu0 %v11788_v4  ;;  %v224_v19 = vand.u32 4294901760, %v11809_v12  ;;  %v230_v21 = vand.u32 4294901760, %v11812_v13  ;;  %v236_v22 = vand.u32 4294901760, %v11815_v14 }
  0x15   :  { %v11828_v20 = vsub.f32 %v102_v9, %v11817_v15 }
  0x16   :  { %28 = vsyncpa [#allocation5], 0  ;;  %v242_v23 = vand.u32 4294901760, %v11820_v16  ;;  %v11833_v24 = vand.u32 4294901760, %v105_v17  ;;  %296 = vmatpush.msra.mxu2 %v11812_v13  ;;  %142 = vmatpush.msra.mxu0 %v11790_v5  ;;  %v225_v25 = vsub.f32 %v11809_v12, %v224_v19  ;;  %v231_v27 = vsub.f32 %v11812_v13, %v230_v21  ;;  %v94_v29 = vld [vmem:[%s19272_s28 + $0x39] sm:$0xff]  ;;  %v91_v49 = vld [vmem:[%s19272_s28 + $0x21] sm:$0xff] }
  0x17   :  { %v147_v26 = vand.u32 4294901760, %v11828_v20  ;;  %v237_v28 = vsub.f32 %v11815_v14, %v236_v22  ;;  %v11851_v31 = vand.u32 4294901760, %v108_v18  ;;  %v11862_v39 = vsel %vm100_vm0, %v94_v29, 0  ;;  %v90_v40 = vld [vmem:[%s19272_s28 + $0x19] sm:$0xff]  ;;  %v92_v56 = vld [vmem:[%s19272_s28 + $0x29] sm:$0xff]  ;;  %v93_v63 = vld [vmem:[%s19272_s28 + $0x31] sm:$0xff] }
  0x18   :  { %v11849_v30 = vsub.f32 %v105_v17, %v11833_v24  ;;  %299 = vmatpush.msra.mxu2 %v11815_v14  ;;  %144 = vmatpush.msra.mxu0 %v11798_v8  ;;  %v226_v32 = vand.u32 4294901760, %v225_v25  ;;  %v232_v34 = vand.u32 4294901760, %v231_v27  ;;  %v243_v35 = vsub.f32 %v11820_v16, %v242_v23  ;;  %v86_v2 = vld [vmem:[%s19271_s24 + $0x18] sm:$0xff]  ;;  %v84_v11 = vld [vmem:[%s19271_s24 + $0x8] sm:$0xff]  ;;  %s19335_s25 = sld [smem:[#allocation46_spill]] }
  0x19   :  { %v148_v33 = vsub.f32 %v11828_v20, %v147_v26  ;;  %v238_v38 = vand.u32 4294901760, %v237_v28  ;;  %v11870_v43 = vsub.f32 %v108_v18, %v11851_v31  ;;  %v11873_v44 = vand.u32 4294901760, %v11862_v39  ;;  %s19351_s26 = sld [smem:[#allocation49_spill]] }
  0x1a   :  { %v155_v36 = vand.u32 4294901760, %v11849_v30  ;;  %11615 = vmatpush.msra.mxu3 %v226_v32  ;;  %302 = vmatpush.msra.mxu2 %v11820_v16  ;;  %v244_v41 = vand.u32 4294901760, %v243_v35  ;;  %v111_v45 = vsel %vm100_vm0, %v90_v40, 0  ;;  %v114_v52 = vsel %vm100_vm0, %v91_v49, 0  ;;  %v83_v16 = vld [vmem:[%s19271_s24] sm:$0xff]  ;;  %s19357_s27 = sld [smem:[#allocation50_spill]] }
  0x1b   :  { %v149_v37 = vand.u32 4294901760, %v148_v33  ;;  %305 = vmatmul.f32.vlgmr.msra.gmra.mxu2 %v11828_v20  ;;  %11614 = vmatpush.msra.mxu1 %v226_v32  ;;  %v163_v47 = vand.u32 4294901760, %v11870_v43  ;;  %v11877_v48 = vand.u32 4294901760, %v111_v45  ;;  %v11897_v55 = vand.u32 4294901760, %v114_v52  ;;  %s19363_s0 = sld [smem:[#allocation51_spill]] }
  0x1c   :  { %11617 = vmatpush.msra.mxu3 %v232_v34  ;;  %v156_v42 = vsub.f32 %v11849_v30, %v155_v36  ;;  %227 = vmatpush.msrb.mxu0 %v226_v32  ;;  %v117_v59 = vsel %vm100_vm0, %v92_v56, 0  ;;  %v567_v12 = vand.u32 4294901760, %v84_v11  ;;  %v569_v17 = vand.u32 4294901760, %v83_v16  ;;  %s19364_s30 = sld [smem:[#allocation47_spill]] }
  0x1d   :  { %150 = vmatmul.f32.vlgmr.msra.gmra.mxu0 %v149_v37  ;;  %11616 = vmatpush.msra.mxu1 %v232_v34  ;;  %v164_v50 = vsub.f32 %v11870_v43, %v163_v47  ;;  %v11889_v51 = vsub.f32 %v111_v45, %v11877_v48  ;;  %v11912_v58 = vsub.f32 %v114_v52, %v11897_v55  ;;  %v11918_v62 = vand.u32 4294901760, %v117_v59  ;;  %s19365_s1 = sld [smem:[#allocation48_spill]] }
  0x1e   :  { %11619 = vmatpush.msra.mxu3 %v238_v38  ;;  %233 = vmatpush.msrb.mxu0 %v232_v34  ;;  %v157_v46 = vand.u32 4294901760, %v156_v42  ;;  %vm2307_vm1 = vcmask 523264   ;;  %vm5467_vm5 = vcmask 517120  }
  0x1f   :  { %11618 = vmatpush.msra.mxu1 %v238_v38  ;;  %v165_v53 = vand.u32 4294901760, %v164_v50  ;;  %v171_v54 = vand.u32 4294901760, %v11889_v51  ;;  %v179_v61 = vand.u32 4294901760, %v11912_v58  ;;  %v11929_v1 = vsub.f32 %v117_v59, %v11918_v62 }
  0x20   :  { %11621 = vmatpush.msra.mxu3 %v244_v41  ;;  %239 = vmatpush.msrb.mxu0 %v238_v38 }
  0x21   :  { %275 = vmatmul.f32.vlgmr.msra.gmra.mxu3 %v11873_v44  ;;  %11620 = vmatpush.msra.mxu1 %v244_v41  ;;  %v172_v57 = vsub.f32 %v11889_v51, %v171_v54  ;;  %v180_v0 = vsub.f32 %v11912_v58, %v179_v61  ;;  %v187_v6 = vand.u32 4294901760, %v11929_v1 }
  0x22   :  { %357 = vmatpush.msrb.mxu3 %v11786_v3  ;;  %251 = vmatmul.f32.vlgmr.msra.gmra.mxu1 %v11833_v24 }
  0x23   :  { %310 = vmatmul.f32.gmra.mxu2 %v11849_v30  ;;  %245 = vmatpush.msrb.mxu0 %v244_v41  ;;  %v173_v60 = vand.u32 4294901760, %v172_v57  ;;  %v188_v13 = vsub.f32 %v11929_v1, %v187_v6  ;;  %v11975_v30 = vsub.f32 %v83_v16, %v569_v17 }
  0x24   :  { %359 = vmatpush.msrb.mxu3 %v11788_v4  ;;  %487 = vmatpush.msrb.mxu1 %v11786_v3  ;;  %v120_v3 = vsel %vm100_vm0, %v93_v63, 0 }
  0x25   :  { %158 = vmatmul.f32.gmra.mxu0 %v157_v46  ;;  %v11940_v7 = vand.u32 4294901760, %v120_v3  ;;  %v668_v34 = vand.u32 4294901760, %v11975_v30 }
  0x26   :  { %361 = vmatpush.msrb.mxu3 %v11790_v5  ;;  %428 = vmatpush.msra.mxu0 %v224_v19 }
  0x27   :  { %489 = vmatpush.msrb.mxu1 %v11788_v4  ;;  %v11935_v4 = vand.u32 4294901760, %v86_v2  ;;  %v11957_v14 = vsub.f32 %v120_v3, %v11940_v7  ;;  %v669_v40 = vsub.f32 %v11975_v30, %v668_v34 }
  0x28   :  { %363 = vmatpush.msrb.mxu3 %v11798_v8  ;;  %432 = vmatpush.msra.mxu0 %v230_v21 }
  0x29   :  { %367 = vmatmul.f32.vlgmr.msrb.gmra.mxu3 %v147_v26  ;;  %491 = vmatpush.msrb.mxu1 %v11790_v5  ;;  %v181_v5 = vand.u32 4294901760, %v180_v0  ;;  %v11946_v9 = vsub.f32 %v86_v2, %v11935_v4  ;;  %v195_v25 = vand.u32 4294901760, %v11957_v14  ;;  %v75_v26 = vld [vmem:[%s19272_s28] sm:$0xff]  ;;  %v670_v42 = vand.u32 4294901760, %v669_v40 }
  0x2a   :  { %255 = vmatmul.f32.gmra.mxu1 %v11851_v31  ;;  %436 = vmatpush.msra.mxu0 %v236_v22  ;;  %v11967_v22 = vsub.f32 %v84_v11, %v567_v12  ;;  %v528_v37 = vsel %vm100_vm0, %v75_v26, 0 }
  0x2b   :  { %315 = vmatmul.f32.gmra.mxu2 %v11870_v43  ;;  %493 = vmatpush.msrb.mxu1 %v11798_v8  ;;  %v85_v8 = vld [vmem:[%s19271_s24 + $0x10] sm:$0xff]  ;;  %v650_v18 = vand.u32 4294901760, %v11946_v9  ;;  %v196_v35 = vsub.f32 %v11957_v14, %v195_v25  ;;  %v11986_v41 = vand.u32 4294901760, %v528_v37 }
  0x2c   :  { %440 = vmatpush.msra.mxu0 %v242_v23  ;;  %564 = vmatpush.msrb.mxu2 %v11935_v4  ;;  %v565_v10 = vand.u32 4294901760, %v85_v8  ;;  %v189_v23 = vand.u32 4294901760, %v188_v13  ;;  %v662_v29 = vand.u32 4294901760, %v11967_v22  ;;  %v80_v13 = vld [vmem:[%s19272_s28 + $0x28] sm:$0xff] }
  0x2d   :  { %166 = vmatmul.f32.gmra.mxu0 %v165_v53  ;;  %783 = vmatpush.msra.mxu1 %v11935_v4  ;;  %v651_v20 = vsub.f32 %v11946_v9, %v650_v18  ;;  %v197_v43 = vand.u32 4294901760, %v196_v35  ;;  %v11996_v46 = vsub.f32 %v528_v37, %v11986_v41  ;;  %v77_v53 = vld [vmem:[%s19272_s28 + $0x10] sm:$0xff]  ;;  %v543_v16 = vsel %vm100_vm0, %v80_v13, 0 }
  0x2e   :  { %566 = vmatpush.msrb.mxu2 %v565_v10  ;;  %v11963_v19 = vsub.f32 %v85_v8, %v565_v10  ;;  %v663_v33 = vsub.f32 %v11967_v22, %v662_v29  ;;  %v534_v57 = vsel %vm100_vm0, %v77_v53, 0 }
  0x2f   :  { %785 = vmatpush.msra.mxu1 %v565_v10  ;;  %v652_v27 = vand.u32 4294901760, %v651_v20  ;;  %v573_v50 = vand.u32 4294901760, %v11996_v46  ;;  %v81_v20 = vld [vmem:[%s19272_s28 + $0x30] sm:$0xff] }
  0x30   :  { %568 = vmatpush.msrb.mxu2 %v567_v12  ;;  %v656_v21 = vand.u32 4294901760, %v11963_v19  ;;  %v664_v38 = vand.u32 4294901760, %v663_v33 }
  0x31   :  { %373 = vmatmul.f32.gmra.mxu3 %v155_v36  ;;  %787 = vmatpush.msra.mxu1 %v567_v12  ;;  %v202_v36 = vsub.f32 %v11862_v39, %v11873_v44  ;;  %v76_v39 = vld [vmem:[%s19272_s28 + $0x8] sm:$0xff] }
  0x32   :  { %259 = vmatmul.f32.gmra.mxu1 %v11877_v48  ;;  %570 = vmatpush.msrb.mxu2 %v569_v17  ;;  %v657_v28 = vsub.f32 %v11963_v19, %v656_v21  ;;  %v531_v49 = vsel %vm100_vm0, %v76_v39, 0 }
  0x33   :  { %320 = vmatmul.f32.gmra.mxu2 %v11889_v51  ;;  %789 = vmatpush.msra.mxu1 %v569_v17  ;;  %v203_v45 = vand.u32 4294901760, %v202_v36  ;;  %v12001_v51 = vand.u32 4294901760, %v531_v49 }
  0x34   :  { %854 = vmatpush.msra.mxu2 %v650_v18  ;;  %653 = vmatpush.msra.mxu3 %v652_v27  ;;  %v658_v32 = vand.u32 4294901760, %v657_v28  ;;  %v82_v27 = vld [vmem:[%s19272_s28 + $0x38] sm:$0xff] }
  0x35   :  { %174 = vmatmul.f32.gmra.mxu0 %v173_v60  ;;  %v12013_v56 = vsub.f32 %v531_v49, %v12001_v51  ;;  %v12017_v60 = vand.u32 4294901760, %v534_v57 }
  0x36   :  { %858 = vmatpush.msra.mxu2 %v656_v21  ;;  %659 = vmatpush.msra.mxu3 %v658_v32 }
  0x37   :  { %v581_v59 = vand.u32 4294901760, %v12013_v56  ;;  %v12027_v0 = vsub.f32 %v534_v57, %v12017_v60 }
  0x38   :  { %862 = vmatpush.msra.mxu2 %v662_v29  ;;  %665 = vmatpush.msra.mxu3 %v664_v38  ;;  %v549_v29 = vsel %vm100_vm0, %v82_v27, 0 }
  0x39   :  { %379 = vmatmul.f32.gmra.mxu3 %v163_v47  ;;  %v204_v47 = vsub.f32 %v202_v36, %v203_v45  ;;  %v582_v63 = vsub.f32 %v12013_v56, %v581_v59  ;;  %v589_v3 = vand.u32 4294901760, %v12027_v0  ;;  %v12099_v33 = vand.u32 4294901760, %v549_v29 }
  0x3a   :  { %263 = vmatmul.f32.gmra.mxu1 %v11897_v55  ;;  %866 = vmatpush.msra.mxu2 %v668_v34 }
  0x3b   :  { %325 = vmatmul.f32.gmra.mxu2 %v11912_v58  ;;  %671 = vmatpush.msra.mxu3 %v670_v42  ;;  %v205_v52 = vand.u32 4294901760, %v204_v47  ;;  %v583_v2 = vand.u32 4294901760, %v582_v63  ;;  %v12107_v35 = vsub.f32 %v549_v29, %v12099_v33 }
  0x3d   :  { %182 = vmatmul.f32.gmra.mxu0 %v181_v5  ;;  %913 = vmatpush.msrb.mxu3 %v11935_v4  ;;  %v79_v5 = vld [vmem:[%s19272_s28 + $0x20] sm:$0xff] }
  0x3f   :  { %915 = vmatpush.msrb.mxu3 %v565_v10 }
  0x41   :  { %385 = vmatmul.f32.gmra.mxu3 %v171_v54  ;;  %v574_v54 = vsub.f32 %v11996_v46, %v573_v50 }
  0x42   :  { %267 = vmatmul.f32.gmra.mxu1 %v11918_v62  ;;  %917 = vmatpush.msrb.mxu3 %v567_v12 }
  0x43   :  { %330 = vmatmul.f32.gmra.mxu2 %v11929_v1  ;;  %v575_v58 = vand.u32 4294901760, %v574_v54 }
  0x44   :  { %919 = vmatpush.msrb.mxu3 %v569_v17 }
  0x45   :  { %190 = vmatmul.f32.gmra.mxu0 %v189_v23 }
  0x49   :  { %391 = vmatmul.f32.gmra.mxu3 %v179_v61  ;;  %v78_v61 = vld [vmem:[%s19272_s28 + $0x18] sm:$0xff] }
  0x4a   :  { %271 = vmatmul.f32.gmra.mxu1 %v11940_v7  ;;  %v537_v1 = vsel %vm100_vm0, %v78_v61, 0 }
  0x4b   :  { %335 = vmatmul.f32.gmra.mxu2 %v11957_v14  ;;  %v12033_v4 = vand.u32 4294901760, %v537_v1 }
  0x4d   :  { %198 = vmatmul.f32.gmra.mxu0 %v197_v43  ;;  %v12045_v8 = vsub.f32 %v537_v1, %v12033_v4 }
  0x4f   :  { %v597_v11 = vand.u32 4294901760, %v12045_v8 }
  0x51   :  { %397 = vmatmul.f32.gmra.mxu3 %v187_v6  ;;  %v590_v6 = vsub.f32 %v12027_v0, %v589_v3 }
  0x52   :  { %495 = vmatmul.f32.vlgmr.msrb.gmra.mxu1 %v11817_v15 }
  0x53   :  { %340 = vmatmul.f32.gmra.mxu2 %v202_v36  ;;  %v591_v10 = vand.u32 4294901760, %v590_v6  ;;  %v629_v36 = vand.u32 4294901760, %v12107_v35 }
  0x55   :  { %206 = vmatmul.f32.gmra.mxu0 %v205_v52  ;;  %v630_v37 = vsub.f32 %v12107_v35, %v629_v36 }
  0x57   :  { %v631_v38 = vand.u32 4294901760, %v630_v37 }
  0x59   :  { %403 = vmatmul.f32.gmra.mxu3 %v195_v25 }
  0x5a   :  { %499 = vmatmul.f32.gmra.mxu1 %v11833_v24 }
  0x5b   :  { %576 = vmatmul.f32.vlgmr.msrb.gmra.mxu2 %v575_v58  ;;  %v11588_v58 = vld [vmem:[%s19271_s24 + $0x50] sm:$0xff] }
  0x5c   :  { %v12160_v63 = vand.u32 4294901760, %v11588_v58 }
  0x5d   :  { %247 = vmatmul.f32.vlgmr.msrb.gmra.mxu0 %v11817_v15 }
  0x5e   :  { %719 = vmatpush.msrb.mxu0 %v11946_v9  ;;  %v540_v9 = vsel %vm100_vm0, %v79_v5, 0  ;;  %v1094_v5 = vsub.f32 %v11588_v58, %v12160_v63 }
  0x5f   :  { %v12051_v12 = vand.u32 4294901760, %v540_v9 }
  0x60   :  { %722 = vmatpush.msrb.mxu0 %v11963_v19  ;;  %v12067_v19 = vand.u32 4294901760, %v543_v16 }
  0x61   :  { %409 = vmatmul.f32.gmra.mxu3 %v203_v45  ;;  %v12062_v14 = vsub.f32 %v540_v9, %v12051_v12 }
  0x62   :  { %725 = vmatpush.msrb.mxu0 %v11967_v22  ;;  %503 = vmatmul.f32.gmra.mxu1 %v11851_v31  ;;  %v12078_v21 = vsub.f32 %v543_v16, %v12067_v19  ;;  %v546_v22 = vsel %vm100_vm0, %v81_v20, 0  ;;  %v1095_v16 = vand.u32 4294901760, %v1094_v5 }
  0x63   :  { %584 = vmatmul.f32.gmra.mxu2 %v583_v2  ;;  %v605_v18 = vand.u32 4294901760, %v12062_v14  ;;  %v12083_v26 = vand.u32 4294901760, %v546_v22 }
  0x64   :  { %728 = vmatpush.msrb.mxu0 %v11975_v30  ;;  %v613_v25 = vand.u32 4294901760, %v12078_v21  ;;  %v1096_v20 = vsub.f32 %v1094_v5, %v1095_v16 }
  0x65   :  { %442 = vmatmul.f32.vlgmr.msra.gmra.mxu0 %v11817_v15  ;;  %v598_v15 = vsub.f32 %v12045_v8, %v597_v11  ;;  %v12094_v28 = vsub.f32 %v546_v22, %v12083_v26 }
  0x67   :  { %v599_v17 = vand.u32 4294901760, %v598_v15  ;;  %v621_v32 = vand.u32 4294901760, %v12094_v28 }
  0x69   :  { %673 = vmatmul.f32.vlgmr.msra.gmra.mxu3 %v11986_v41  ;;  %v622_v34 = vsub.f32 %v12094_v28, %v621_v32 }
  0x6a   :  { %507 = vmatmul.f32.gmra.mxu1 %v11877_v48 }
  0x6b   :  { %592 = vmatmul.f32.gmra.mxu2 %v591_v10  ;;  %v11586_v10 = vld [vmem:[%s19271_s24 + $0x40] sm:$0xff] }
  0x6d   :  { %446 = vmatmul.f32.gmra.mxu0 %v11833_v24  ;;  %v606_v24 = vsub.f32 %v12062_v14, %v605_v18 }
  0x6f   :  { %v607_v23 = vand.u32 4294901760, %v606_v24 }
  0x71   :  { %677 = vmatmul.f32.gmra.mxu3 %v12001_v51 }
  0x72   :  { %511 = vmatmul.f32.gmra.mxu1 %v11897_v55 }
  0x73   :  { %600 = vmatmul.f32.gmra.mxu2 %v599_v17  ;;  %v1008_v17 = vand.u32 4294901760, %v11586_v10 }
  0x75   :  { %450 = vmatmul.f32.gmra.mxu0 %v11851_v31  ;;  %v614_v31 = vsub.f32 %v12078_v21, %v613_v25  ;;  %v1106_v24 = vsub.f32 %v11586_v10, %v1008_v17 }
  0x77   :  { %v615_v30 = vand.u32 4294901760, %v614_v31  ;;  %v1097_v31 = vand.u32 4294901760, %v1096_v20  ;;  %v1107_v29 = vand.u32 4294901760, %v1106_v24 }
  0x79   :  { %681 = vmatmul.f32.gmra.mxu3 %v12017_v60  ;;  %v1108_v37 = vsub.f32 %v1106_v24, %v1107_v29 }
  0x7a   :  { %515 = vmatmul.f32.gmra.mxu1 %v11918_v62 }
  0x7b   :  { %608 = vmatmul.f32.gmra.mxu2 %v607_v23 }
  0x7d   :  { %454 = vmatmul.f32.gmra.mxu0 %v11877_v48  ;;  %v623_v48 = vand.u32 4294901760, %v622_v34 }
  0x81   :  { %685 = vmatmul.f32.gmra.mxu3 %v12033_v4 }
  0x82   :  { %519 = vmatmul.f32.gmra.mxu1 %v11940_v7 }
  0x83   :  { %616 = vmatmul.f32.gmra.mxu2 %v615_v30 }
  0x85   :  { %458 = vmatmul.f32.gmra.mxu0 %v11897_v55 }
  0x89   :  { %689 = vmatmul.f32.gmra.mxu3 %v12051_v12 }
  0x8a   :  { %523 = vmatmul.f32.gmra.mxu1 %v11873_v44 }
  0x8b   :  { %624 = vmatmul.f32.gmra.mxu2 %v623_v48 }
  0x8d   :  { %462 = vmatmul.f32.gmra.mxu0 %v11918_v62 }
  0x91   :  { %693 = vmatmul.f32.gmra.mxu3 %v12067_v19 }
  0x92   :  { %793 = vmatmul.f32.vlgmr.msra.gmra.mxu1 %v573_v50 }
  0x93   :  { %632 = vmatmul.f32.gmra.mxu2 %v631_v38 }
  0x95   :  { %466 = vmatmul.f32.gmra.mxu0 %v11940_v7 }
  0x99   :  { %697 = vmatmul.f32.gmra.mxu3 %v12083_v26 }
  0x9a   :  { %v12121_v55 = vpop.f32.mrf.mxu0  ;;  %799 = vmatmul.f32.gmra.mxu1 %v581_v59 }
  0x9b   :  { %868 = vmatmul.f32.vlgmr.msra.gmra.mxu2 %v11986_v41 }
  0x9d   :  { %470 = vmatmul.f32.gmra.mxu0 %v11873_v44 }
  0x9e   :  { %v12128_v62 = vpop.f32.mrf.mxu2 }
  0x9f   :  { %v252_v40 = vpop.f32.mrf.mxu1 }
  0xa1   :  { %701 = vmatmul.f32.gmra.mxu3 %v12099_v33 }
  0xa2   :  { %v159_v42 = vpop.f32.mrf.mxu0  ;;  %805 = vmatmul.f32.gmra.mxu1 %v589_v3 }
  0xa3   :  { %872 = vmatmul.f32.gmra.mxu2 %v12001_v51  ;;  %v253_v43 = vadd.f32 %v252_v40, %v159_v42  ;;  %v1109_v40 = vand.u32 4294901760, %v1108_v37 }
  0xa4   :  { %v12135_v7 = vpop.f32.mrf.mxu3 }
  0xa5   :  { %731 = vmatmul.f32.vlgmr.msrb.gmra.mxu0 %v11996_v46 }
  0xa6   :  { %v311_v45 = vpop.f32.mrf.mxu2 }
  0xa7   :  { %v312_v39 = vadd.f32 %v311_v45, %v253_v43  ;;  %v256_v47 = vpop.f32.mrf.mxu1 }
  0xa9   :  { %921 = vmatmul.f32.vlgmr.msrb.gmra.mxu3 %v11986_v41  ;;  %v11589_v41 = vld [vmem:[%s19271_s24 + $0x58] sm:$0xff] }
  0xaa   :  { %v167_v44 = vpop.f32.mrf.mxu0  ;;  %811 = vmatmul.f32.gmra.mxu1 %v597_v11  ;;  %v12151_v57 = vand.u32 4294901760, %v11589_v41 }
  0xab   :  { %876 = vmatmul.f32.gmra.mxu2 %v12017_v60  ;;  %v257_v50 = vadd.f32 %v256_v47, %v167_v44 }
  0xac   :  { %v12142_v49 = vpop.f32.mrf.mxu3  ;;  %v1088_v61 = vsub.f32 %v11589_v41, %v12151_v57  ;;  %1003 = vmatpush.msra.mxu0 %v12151_v57  ;;  %1222 = vmatpush.msra.mxu3 %v12151_v57 }
  0xad   :  { %736 = vmatmul.f32.gmra.mxu0 %v12013_v56 }
  0xae   :  { %v316_v46 = vpop.f32.mrf.mxu2  ;;  %1158 = vmatpush.msrb.mxu2 %v1088_v61  ;;  %v1089_v6 = vand.u32 4294901760, %v1088_v61  ;;  %1005 = vmatpush.msra.mxu0 %v12160_v63 }
  0xaf   :  { %v317_v52 = vadd.f32 %v316_v46, %v257_v50  ;;  %v260_v53 = vpop.f32.mrf.mxu1  ;;  %1224 = vmatpush.msra.mxu3 %v12160_v63 }
  0xb0   :  { %1161 = vmatpush.msrb.mxu2 %v1094_v5  ;;  %v1090_v13 = vsub.f32 %v1088_v61, %v1089_v6 }
  0xb1   :  { %925 = vmatmul.f32.gmra.mxu3 %v12001_v51 }
  0xb2   :  { %v175_v54 = vpop.f32.mrf.mxu0  ;;  %817 = vmatmul.f32.gmra.mxu1 %v605_v18  ;;  %v1091_v18 = vand.u32 4294901760, %v1090_v13 }
  0xb3   :  { %880 = vmatmul.f32.gmra.mxu2 %v12033_v4  ;;  %v261_v59 = vadd.f32 %v260_v53, %v175_v54 }
  0xb4   :  { %v374_v56 = vpop.f32.mrf.mxu3  ;;  %1092 = vmatpush.msrb.mxu1 %v1091_v18 }
  0xb5   :  { %741 = vmatmul.f32.gmra.mxu0 %v12027_v0  ;;  %v12157_v51 = vadd.f32 %v374_v56, %v312_v39  ;;  %v11587_v0 = vld [vmem:[%s19271_s24 + $0x48] sm:$0xff] }
  0xb6   :  { %v321_v1 = vpop.f32.mrf.mxu2  ;;  %v1006_v9 = vand.u32 4294901760, %v11587_v0  ;;  %1098 = vmatpush.msrb.mxu1 %v1097_v31 }
  0xb7   :  { %v322_v2 = vadd.f32 %v321_v1, %v261_v59  ;;  %v264_v3 = vpop.f32.mrf.mxu1 }
  0xb8   :  { %v1100_v15 = vsub.f32 %v11587_v0, %v1006_v9  ;;  %1007 = vmatpush.msra.mxu0 %v1006_v9  ;;  %1226 = vmatpush.msra.mxu3 %v1006_v9 }
  0xb9   :  { %929 = vmatmul.f32.gmra.mxu3 %v12017_v60 }
  0xba   :  { %v183_v11 = vpop.f32.mrf.mxu0  ;;  %823 = vmatmul.f32.gmra.mxu1 %v613_v25  ;;  %1164 = vmatpush.msrb.mxu2 %v1100_v15  ;;  %v1101_v60 = vand.u32 4294901760, %v1100_v15 }
  0xbb   :  { %884 = vmatmul.f32.gmra.mxu2 %v12051_v12  ;;  %v265_v23 = vadd.f32 %v264_v3, %v183_v11  ;;  %1009 = vmatpush.msra.mxu0 %v1008_v17 }
  0xbc   :  { %v380_v22 = vpop.f32.mrf.mxu3  ;;  %1167 = vmatpush.msrb.mxu2 %v1106_v24  ;;  %v1102_v30 = vsub.f32 %v1100_v15, %v1101_v60  ;;  %1228 = vmatpush.msra.mxu3 %v1008_v17 }
  0xbd   :  { %746 = vmatmul.f32.gmra.mxu0 %v12045_v8  ;;  %v12178_v27 = vadd.f32 %v380_v22, %v317_v52 }
  0xbe   :  { %v326_v25 = vpop.f32.mrf.mxu2  ;;  %1293 = vmatpush.msrb.mxu0 %v1089_v6  ;;  %v1103_v8 = vand.u32 4294901760, %v1102_v30 }
  0xbf   :  { %v327_v34 = vadd.f32 %v326_v25, %v265_v23  ;;  %v268_v48 = vpop.f32.mrf.mxu1 }
  0xc0   :  { %1297 = vmatpush.msrb.mxu0 %v1095_v16  ;;  %1104 = vmatpush.msrb.mxu1 %v1103_v8 }
  0xc1   :  { %933 = vmatmul.f32.gmra.mxu3 %v12033_v4 }
  0xc2   :  { %v191_v38 = vpop.f32.mrf.mxu0  ;;  %829 = vmatmul.f32.gmra.mxu1 %v621_v32  ;;  %1301 = vmatpush.msrb.mxu0 %v1101_v60 }
  0xc3   :  { %888 = vmatmul.f32.gmra.mxu2 %v12067_v19  ;;  %v269_v43 = vadd.f32 %v268_v48, %v191_v38  ;;  %1110 = vmatpush.msrb.mxu1 %v1109_v40  ;;  %v957_v38 = vld [vmem:[%s19272_s28 + $0x22] sm:$0xff] }
  0xc4   :  { %v386_v42 = vpop.f32.mrf.mxu3  ;;  %1305 = vmatpush.msrb.mxu0 %v1107_v29 }
  0xc5   :  { %751 = vmatmul.f32.gmra.mxu0 %v12062_v14  ;;  %v12185_v45 = vadd.f32 %v386_v42, %v322_v2  ;;  %1352 = vmatpush.msra.mxu1 %v12151_v57  ;;  %v953_v14 = vld [vmem:[%s19272_s28 + $0x2] sm:$0xff] }
  0xc6   :  { %v331_v39 = vpop.f32.mrf.mxu2  ;;  %v967_v52 = vsel %vm100_vm0, %v953_v14, 0 }
  0xc7   :  { %v332_v4 = vadd.f32 %v331_v39, %v269_v43  ;;  %v272_v47 = vpop.f32.mrf.mxu1  ;;  %1354 = vmatpush.msra.mxu1 %v12160_v63 }
  0xc9   :  { %937 = vmatmul.f32.gmra.mxu3 %v12051_v12  ;;  %1356 = vmatpush.msra.mxu1 %v1006_v9 }
  0xca   :  { %v199_v32 = vpop.f32.mrf.mxu0  ;;  %835 = vmatmul.f32.gmra.mxu1 %v629_v36  ;;  %v12200_v36 = vand.u32 4294901760, %v967_v52 }
  0xcb   :  { %892 = vmatmul.f32.gmra.mxu2 %v12083_v26  ;;  %v273_v50 = vadd.f32 %v272_v47, %v199_v32  ;;  %1358 = vmatpush.msra.mxu1 %v1008_v17  ;;  %v979_v47 = vsel %vm100_vm0, %v957_v38, 0 }
  0xcc   :  { %v392_v44 = vpop.f32.mrf.mxu3  ;;  %v1011_v56 = vsub.f32 %v967_v52, %v12200_v36  ;;  %v12256_v52 = vand.u32 4294901760, %v979_v47 }
  0xcd   :  { %756 = vmatmul.f32.gmra.mxu0 %v12078_v21  ;;  %v12197_v46 = vadd.f32 %v392_v44, %v327_v34  ;;  %v954_v21 = vld [vmem:[%s19272_s28 + $0xa] sm:$0xff] }
  0xce   :  { %v336_v12 = vpop.f32.mrf.mxu2  ;;  %v970_v61 = vsel %vm100_vm0, %v954_v21, 0  ;;  %v1012_v0 = vand.u32 4294901760, %v1011_v56 }
  0xcf   :  { %v337_v53 = vadd.f32 %v336_v12, %v273_v50  ;;  %v496_v54 = vpop.f32.mrf.mxu1  ;;  %v12214_v2 = vand.u32 4294901760, %v970_v61 }
  0xd0   :  { %v1013_v9 = vsub.f32 %v1011_v56, %v1012_v0 }
  0xd1   :  { %941 = vmatmul.f32.gmra.mxu3 %v12067_v19  ;;  %v1019_v10 = vsub.f32 %v970_v61, %v12214_v2 }
  0xd2   :  { %v207_v41 = vpop.f32.mrf.mxu0  ;;  %1112 = vmatmul.f32.vlgmr.msrb.gmra.mxu1 %v12200_v36  ;;  %v1014_v16 = vand.u32 4294901760, %v1013_v9  ;;  %v959_v9 = vld [vmem:[%s19272_s28 + $0x32] sm:$0xff] }
  0xd3   :  { %896 = vmatmul.f32.gmra.mxu2 %v12099_v33  ;;  %v277_v58 = vadd.f32 %v12135_v7, %v207_v41  ;;  %v955_v7 = vld [vmem:[%s19272_s28 + $0x12] sm:$0xff]  ;;  %v1020_v17 = vand.u32 4294901760, %v1019_v10 }
  0xd4   :  { %v398_v57 = vpop.f32.mrf.mxu3 }
  0xd5   :  { %761 = vmatmul.f32.gmra.mxu0 %v12094_v28  ;;  %v12211_v59 = vadd.f32 %v398_v57, %v332_v4  ;;  %v1021_v22 = vsub.f32 %v1019_v10, %v1020_v17 }
  0xd6   :  { %v341_v19 = vpop.f32.mrf.mxu2 }
  0xd7   :  { %v342_v63 = vadd.f32 %v341_v19, %v277_v58  ;;  %v500_v1 = vpop.f32.mrf.mxu1  ;;  %v1022_v30 = vand.u32 4294901760, %v1021_v22 }
  0xd9   :  { %945 = vmatmul.f32.gmra.mxu3 %v12083_v26  ;;  %v973_v26 = vsel %vm100_vm0, %v955_v7, 0 }
  0xda   :  { %v248_v3 = vpop.f32.mrf.mxu0  ;;  %1116 = vmatmul.f32.gmra.mxu1 %v12214_v2  ;;  %v12229_v18 = vand.u32 4294901760, %v973_v26 }
  0xdb   :  { %v249_v28 = vadd.f32 %v248_v3, %v12121_v55  ;;  %1170 = vmatmul.f32.vlgmr.msrb.gmra.mxu2 %v1011_v56  ;;  %v12268_v56 = vsub.f32 %v979_v47, %v12256_v52 }
  0xdc   :  { %v404_v6 = vpop.f32.mrf.mxu3  ;;  %v1027_v60 = vsub.f32 %v973_v26, %v12229_v18 }
  0xdd   :  { %v307_v5 = vadd.f32 %v12128_v62, %v249_v28  ;;  %766 = vmatmul.f32.gmra.mxu0 %v12107_v35  ;;  %v12225_v11 = vadd.f32 %v404_v6, %v337_v53  ;;  %v956_v62 = vld [vmem:[%s19272_s28 + $0x1a] sm:$0xff]  ;;  %v958_v53 = vld [vmem:[%s19272_s28 + $0x2a] sm:$0xff]  ;;  %v1044_v7 = vand.u32 4294901760, %v12268_v56 }
  0xde   :  { %v577_v13 = vpop.f32.mrf.mxu2  ;;  %v976_v31 = vsel %vm100_vm0, %v956_v62, 0  ;;  %v1028_v34 = vand.u32 4294901760, %v1027_v60  ;;  %v982_v58 = vsel %vm100_vm0, %v958_v53, 0  ;;  %v11590_v62 = vld [vmem:[%s19271_s24 + $0x60] sm:$0xff] }
  0xdf   :  { %v369_v55 = vadd.f32 %v12142_v49, %v307_v5  ;;  %v504_v15 = vpop.f32.mrf.mxu1  ;;  %v12240_v48 = vand.u32 4294901760, %v976_v31  ;;  %v11592_v5 = vld [vmem:[%s19271_s24 + $0x70] sm:$0xff] }
  0xe0   :  { %v1029_v43 = vsub.f32 %v1027_v60, %v1028_v34 }
  0xe1   :  { %949 = vmatmul.f32.gmra.mxu3 %v12099_v33  ;;  %v12248_v39 = vsub.f32 %v976_v31, %v12240_v48 }
  0xe2   :  { %v443_v20 = vpop.f32.mrf.mxu0  ;;  %1120 = vmatmul.f32.gmra.mxu1 %v12229_v18  ;;  %v1030_v44 = vand.u32 4294901760, %v1029_v43 }
  0xe3   :  { %v444_v35 = vadd.f32 %v443_v20, %v369_v55  ;;  %1175 = vmatmul.f32.gmra.mxu2 %v1019_v10  ;;  %v1036_v50 = vand.u32 4294901760, %v12248_v39  ;;  %v12290_v10 = vand.u32 4294901760, %v11592_v5  ;;  %v11591_v55 = vld [vmem:[%s19271_s24 + $0x68] sm:$0xff]  ;;  %v1045_v20 = vsub.f32 %v12268_v56, %v1044_v7 }
  0xe4   :  { %v410_v49 = vpop.f32.mrf.mxu3 }
  0xe5   :  { %v497_v24 = vadd.f32 %v496_v54, %v444_v35  ;;  %1015 = vmatmul.f32.vlgmr.msra.gmra.mxu0 %v1014_v16  ;;  %v12237_v23 = vadd.f32 %v410_v49, %v342_v63  ;;  %v1037_v57 = vsub.f32 %v12248_v39, %v1036_v50  ;;  %v11593_v63 = vld [vmem:[%s19271_s24 + $0x78] sm:$0xff]  ;;  %v12302_v16 = vand.u32 4294901760, %v11591_v55 }
  0xe6   :  { %v585_v33 = vpop.f32.mrf.mxu2  ;;  %v12280_v3 = vand.u32 4294901760, %v11593_v63  ;;  %v985_v35 = vsel %vm100_vm0, %v959_v9, 0  ;;  %v12315_v49 = vand.u32 4294901760, %v11590_v62 }
  0xe7   :  { %v578_v29 = vadd.f32 %v577_v13, %v497_v24  ;;  %v508_v25 = vpop.f32.mrf.mxu1  ;;  %v1038_v28 = vand.u32 4294901760, %v1037_v57  ;;  %v12325_v38 = vand.u32 4294901760, %v985_v35 }
  0xe8   :  { %1450 = vmatpush.msra.mxu2 %v12280_v3  ;;  %1669 = vmatpush.msrb.mxu1 %v12280_v3 }
  0xe9   :  { %1232 = vmatmul.f32.vlgmr.msra.gmra.mxu3 %v1012_v0 }
  0xea   :  { %v447_v37 = vpop.f32.mrf.mxu0  ;;  %1124 = vmatmul.f32.gmra.mxu1 %v12240_v48  ;;  %1452 = vmatpush.msra.mxu2 %v12290_v10 }
  0xeb   :  { %v448_v8 = vadd.f32 %v447_v37, %v12157_v51  ;;  %1180 = vmatmul.f32.gmra.mxu2 %v1027_v60  ;;  %v1541_v60 = vsub.f32 %v11592_v5, %v12290_v10  ;;  %1671 = vmatpush.msrb.mxu1 %v12290_v10  ;;  %v1547_v37 = vsub.f32 %v11591_v55, %v12302_v16 }
  0xec   :  { %v674_v42 = vpop.f32.mrf.mxu3  ;;  %1454 = vmatpush.msra.mxu2 %v12302_v16 }
  0xed   :  { %v501_v40 = vadd.f32 %v500_v1, %v448_v8  ;;  %1023 = vmatmul.f32.gmra.mxu0 %v1022_v30  ;;  %v12250_v4 = vadd.f32 %v674_v42, %v578_v29  ;;  %v12276_v1 = vand.u32 4294901760, %v982_v58  ;;  %1673 = vmatpush.msrb.mxu1 %v12302_v16  ;;  %v1046_v8 = vand.u32 4294901760, %v1045_v20  ;;  %v1400_v42 = vld [vmem:[%s19272_s28 + $0x3] sm:$0xff] }
  0xee   :  { %v593_v51 = vpop.f32.mrf.mxu2  ;;  %1456 = vmatpush.msra.mxu2 %v12315_v49 }
  0xef   :  { %v586_v32 = vadd.f32 %v585_v33, %v501_v40  ;;  %v12253_v14 = vpop.f32.mrf.mxu1  ;;  %v12299_v13 = vsub.f32 %v982_v58, %v12276_v1  ;;  %1675 = vmatpush.msrb.mxu1 %v12315_v49 }
  0xf1   :  { %1238 = vmatmul.f32.gmra.mxu3 %v1020_v17  ;;  %v1052_v33 = vand.u32 4294901760, %v12299_v13 }
  0xf2   :  { %v451_v12 = vpop.f32.mrf.mxu0  ;;  %1128 = vmatmul.f32.gmra.mxu1 %v12256_v52 }
  0xf3   :  { %v452_v54 = vadd.f32 %v451_v12, %v12178_v27  ;;  %1185 = vmatmul.f32.gmra.mxu2 %v12248_v39  ;;  %v1553_v12 = vsub.f32 %v11590_v62, %v12315_v49  ;;  %v1053_v39 = vsub.f32 %v12299_v13, %v1052_v33 }
  0xf4   :  { %v678_v21 = vpop.f32.mrf.mxu3 }
  0xf5   :  { %v505_v41 = vadd.f32 %v504_v15, %v452_v54  ;;  %1031 = vmatmul.f32.gmra.mxu0 %v1030_v44  ;;  %v12271_v61 = vadd.f32 %v678_v21, %v586_v32  ;;  %v1535_v15 = vsub.f32 %v11593_v63, %v12280_v3  ;;  %v1548_v32 = vand.u32 4294901760, %v1547_v37  ;;  %v960_v44 = vld [vmem:[%s19272_s28 + $0x3a] sm:$0xff] }
  0xf6   :  { %v601_v27 = vpop.f32.mrf.mxu2  ;;  %v1414_v21 = vsel %vm100_vm0, %v1400_v42, 0  ;;  %v1554_v57 = vand.u32 4294901760, %v1553_v12  ;;  %v1054_v9 = vand.u32 4294901760, %v1053_v39 }
  0xf7   :  { %v594_v19 = vadd.f32 %v593_v51, %v505_v41  ;;  %v12278_v0 = vpop.f32.mrf.mxu1  ;;  %v1536_v22 = vand.u32 4294901760, %v1535_v15  ;;  %1605 = vmatpush.msra.mxu0 %v1535_v15  ;;  %v1549_v53 = vsub.f32 %v1547_v37, %v1548_v32  ;;  %v12345_v41 = vsub.f32 %v985_v35, %v12325_v38 }
  0xf8   :  { %v1555_v5 = vsub.f32 %v1553_v12, %v1554_v57 }
  0xf9   :  { %1244 = vmatmul.f32.gmra.mxu3 %v1028_v34  ;;  %v1537_v30 = vsub.f32 %v1535_v15, %v1536_v22  ;;  %v1542_v34 = vand.u32 4294901760, %v1541_v60  ;;  %1608 = vmatpush.msra.mxu0 %v1541_v60 }
  0xfa   :  { %v455_v6 = vpop.f32.mrf.mxu0  ;;  %1132 = vmatmul.f32.gmra.mxu1 %v12276_v1  ;;  %1740 = vmatpush.msrb.mxu2 %v1536_v22  ;;  %v1556_v15 = vand.u32 4294901760, %v1555_v5 }
  0xfb   :  { %v456_v26 = vadd.f32 %v455_v6, %v12185_v45  ;;  %1190 = vmatmul.f32.gmra.mxu2 %v12268_v56  ;;  %v1538_v43 = vand.u32 4294901760, %v1537_v30  ;;  %v1543_v47 = vsub.f32 %v1541_v60, %v1542_v34  ;;  %1611 = vmatpush.msra.mxu0 %v1547_v37  ;;  %v12354_v6 = vand.u32 4294901760, %v1414_v21 }
  0xfc   :  { %v682_v45 = vpop.f32.mrf.mxu3  ;;  %1744 = vmatpush.msrb.mxu2 %v1542_v34 }
  0xfd   :  { %v509_v17 = vadd.f32 %v508_v25, %v456_v26  ;;  %1039 = vmatmul.f32.gmra.mxu0 %v1038_v28  ;;  %v12313_v24 = vadd.f32 %v682_v45, %v594_v19  ;;  %1539 = vmatpush.msrb.mxu3 %v1538_v43  ;;  %v988_v19 = vsel %vm100_vm0, %v960_v44, 0  ;;  %v1060_v26 = vand.u32 4294901760, %v12345_v41  ;;  %v1401_v45 = vld [vmem:[%s19272_s28 + $0xb] sm:$0xff] }
  0xfe   :  { %v609_v29 = vpop.f32.mrf.mxu2  ;;  %1614 = vmatpush.msra.mxu0 %v1553_v12  ;;  %1748 = vmatpush.msrb.mxu2 %v1548_v32  ;;  %v12357_v55 = vand.u32 4294901760, %v988_v19  ;;  %v12368_v35 = vsub.f32 %v1414_v21, %v12354_v6 }
  0xff   :  { %v602_v31 = vadd.f32 %v601_v27, %v509_v17  ;;  %v12321_v25 = vpop.f32.mrf.mxu1  ;;  %v1550_v27 = vand.u32 4294901760, %v1549_v53 }
 0x100   :  { %1752 = vmatpush.msrb.mxu2 %v1554_v57  ;;  %v1067_v22 = vsub.f32 %v988_v19, %v12357_v55  ;;  %v1459_v30 = vand.u32 4294901760, %v12368_v35 }
 0x101   :  { %1250 = vmatmul.f32.gmra.mxu3 %v1036_v50  ;;  %v1544_v50 = vand.u32 4294901760, %v1543_v47 }
 0x102   :  { %v459_v40 = vpop.f32.mrf.mxu0  ;;  %1136 = vmatmul.f32.gmra.mxu1 %v12325_v38  ;;  %v1068_v37 = vand.u32 4294901760, %v1067_v22 }
 0x103   :  { %v460_v51 = vadd.f32 %v459_v40, %v12197_v46  ;;  %1195 = vmatmul.f32.gmra.mxu2 %v12299_v13  ;;  %1545 = vmatpush.msrb.mxu3 %v1544_v50  ;;  %v1402_v40 = vld [vmem:[%s19272_s28 + $0x13] sm:$0xff] }
 0x104   :  { %v686_v54 = vpop.f32.mrf.mxu3  ;;  %v1069_v43 = vsub.f32 %v1067_v22, %v1068_v37  ;;  %v1420_v47 = vsel %vm100_vm0, %v1402_v40, 0 }
 0x105   :  { %v513_v46 = vadd.f32 %v12253_v14, %v460_v51  ;;  %1047 = vmatmul.f32.gmra.mxu0 %v1046_v8  ;;  %v12348_v58 = vadd.f32 %v686_v54, %v602_v31  ;;  %1551 = vmatpush.msrb.mxu3 %v1550_v27  ;;  %v12401_v39 = vand.u32 4294901760, %v1420_v47 }
 0x106   :  { %v617_v28 = vpop.f32.mrf.mxu2  ;;  %v1070_v50 = vand.u32 4294901760, %v1069_v43 }
 0x107   :  { %v610_v63 = vadd.f32 %v609_v29, %v513_v46  ;;  %v12352_v14 = vpop.f32.mrf.mxu1  ;;  %1557 = vmatpush.msrb.mxu3 %v1556_v15 }
 0x109   :  { %1256 = vmatmul.f32.gmra.mxu3 %v1044_v7  ;;  %v1061_v7 = vsub.f32 %v12345_v41, %v1060_v26 }
 0x10a   :  { %v463_v17 = vpop.f32.mrf.mxu0  ;;  %1140 = vmatmul.f32.gmra.mxu1 %v12357_v55  ;;  %1799 = vmatpush.msra.mxu3 %v12280_v3 }
 0x10b   :  { %v464_v20 = vadd.f32 %v463_v17, %v12211_v59  ;;  %1200 = vmatmul.f32.gmra.mxu2 %v12345_v41  ;;  %v1417_v59 = vsel %vm100_vm0, %v1401_v45, 0  ;;  %v12412_v41 = vsub.f32 %v1420_v47, %v12401_v39 }
 0x10c   :  { %v690_v56 = vpop.f32.mrf.mxu3  ;;  %1801 = vmatpush.msra.mxu3 %v12290_v10  ;;  %v12379_v3 = vand.u32 4294901760, %v1417_v59 }
 0x10d   :  { %v517_v62 = vadd.f32 %v12278_v0, %v464_v20  ;;  %1055 = vmatmul.f32.gmra.mxu0 %v1054_v9  ;;  %v12375_v60 = vadd.f32 %v690_v56, %v610_v63  ;;  %v1062_v0 = vand.u32 4294901760, %v1061_v7  ;;  %v1475_v5 = vand.u32 4294901760, %v12412_v41 }
 0x10e   :  { %v625_v29 = vpop.f32.mrf.mxu2  ;;  %1803 = vmatpush.msra.mxu3 %v12302_v16  ;;  %v1460_v16 = vsub.f32 %v12368_v35, %v1459_v30  ;;  %v12394_v42 = vsub.f32 %v1417_v59, %v12379_v3 }
 0x10f   :  { %v618_v31 = vadd.f32 %v617_v28, %v517_v62  ;;  %v794_v34 = vpop.f32.mrf.mxu1  ;;  %v1476_v45 = vsub.f32 %v12412_v41, %v1475_v5 }
 0x110   :  { %1805 = vmatpush.msra.mxu3 %v12315_v49  ;;  %v1461_v49 = vand.u32 4294901760, %v1460_v16  ;;  %v1467_v44 = vand.u32 4294901760, %v12394_v42 }
 0x111   :  { %1262 = vmatmul.f32.gmra.mxu3 %v1052_v33 }
 0x112   :  { %v467_v8 = vpop.f32.mrf.mxu0  ;;  %1360 = vmatmul.f32.vlgmr.msra.gmra.mxu1 %v12200_v36  ;;  %v1468_v54 = vsub.f32 %v12394_v42, %v1467_v44 }
 0x113   :  { %v468_v10 = vadd.f32 %v467_v8, %v12225_v11  ;;  %1205 = vmatmul.f32.gmra.mxu2 %v1067_v22 }
 0x114   :  { %v694_v33 = vpop.f32.mrf.mxu3  ;;  %v1469_v28 = vand.u32 4294901760, %v1468_v54 }
 0x115   :  { %v521_v13 = vadd.f32 %v12321_v25, %v468_v10  ;;  %1063 = vmatmul.f32.gmra.mxu0 %v1062_v0  ;;  %v12398_v11 = vadd.f32 %v694_v33, %v618_v31  ;;  %v1403_v25 = vld [vmem:[%s19272_s28 + $0x1b] sm:$0xff]  ;;  %v1477_v31 = vand.u32 4294901760, %v1476_v45 }
 0x116   :  { %v633_v51 = vpop.f32.mrf.mxu2  ;;  %v1423_v19 = vsel %vm100_vm0, %v1403_v25, 0 }
 0x117   :  { %v626_v32 = vadd.f32 %v625_v29, %v521_v13  ;;  %v800_v12 = vpop.f32.mrf.mxu1 }
 0x119   :  { %1268 = vmatmul.f32.gmra.mxu3 %v1060_v26  ;;  %v12419_v26 = vand.u32 4294901760, %v1423_v19 }
 0x11a   :  { %v471_v53 = vpop.f32.mrf.mxu0  ;;  %1364 = vmatmul.f32.gmra.mxu1 %v12214_v2 }
 0x11b   :  { %v472_v46 = vadd.f32 %v471_v53, %v12237_v23  ;;  %1462 = vmatmul.f32.vlgmr.msra.gmra.mxu2 %v1461_v49  ;;  %v12430_v20 = vsub.f32 %v1423_v19, %v12419_v26 }
 0x11c   :  { %v698_v57 = vpop.f32.mrf.mxu3 }
 0x11d   :  { %v525_v21 = vadd.f32 %v12352_v14, %v472_v46  ;;  %1071 = vmatmul.f32.gmra.mxu0 %v1070_v50  ;;  %v12416_v27 = vadd.f32 %v698_v57, %v626_v32  ;;  %v1404_v14 = vld [vmem:[%s19272_s28 + $0x23] sm:$0xff]  ;;  %v1483_v29 = vand.u32 4294901760, %v12430_v20 }
 0x11e   :  { %v869_v23 = vpop.f32.mrf.mxu2  ;;  %v1426_v7 = vsel %vm100_vm0, %v1404_v14, 0 }
 0x11f   :  { %v634_v63 = vadd.f32 %v633_v51, %v525_v21  ;;  %v806_v9 = vpop.f32.mrf.mxu1  ;;  %v1484_v40 = vsub.f32 %v12430_v20, %v1483_v29 }
 0x121   :  { %1274 = vmatmul.f32.gmra.mxu3 %v1068_v37  ;;  %v12437_v37 = vand.u32 4294901760, %v1426_v7  ;;  %v1485_v32 = vand.u32 4294901760, %v1484_v40 }
 0x122   :  { %v732_v15 = vpop.f32.mrf.mxu0  ;;  %1368 = vmatmul.f32.gmra.mxu1 %v12229_v18 }
 0x123   :  { %v733_v17 = vadd.f32 %v732_v15, %v12250_v4  ;;  %1470 = vmatmul.f32.gmra.mxu2 %v1469_v28  ;;  %v12449_v10 = vsub.f32 %v1426_v7, %v12437_v37 }
 0x124   :  { %v702_v56 = vpop.f32.mrf.mxu3 }
 0x125   :  { %v795_v62 = vadd.f32 %v794_v34, %v733_v17  ;;  %1307 = vmatmul.f32.vlgmr.msrb.gmra.mxu0 %v12200_v36  ;;  %v12434_v22 = vadd.f32 %v702_v56, %v634_v63  ;;  %v1405_v36 = vld [vmem:[%s19272_s28 + $0x2b] sm:$0xff]  ;;  %v1491_v51 = vand.u32 4294901760, %v12449_v10 }
 0x126   :  { %v873_v4 = vpop.f32.mrf.mxu2  ;;  %v1429_v33 = vsel %vm100_vm0, %v1405_v36, 0 }
 0x127   :  { %v870_v59 = vadd.f32 %v869_v23, %v795_v62  ;;  %v812_v0 = vpop.f32.mrf.mxu1  ;;  %v12456_v50 = vand.u32 4294901760, %v1429_v33  ;;  %v1492_v25 = vsub.f32 %v12449_v10, %v1491_v51 }
 0x129   :  { %1559 = vmatmul.f32.vlgmr.msrb.gmra.mxu3 %v12354_v6  ;;  %v12468_v46 = vsub.f32 %v1429_v33, %v12456_v50  ;;  %v1493_v23 = vand.u32 4294901760, %v1492_v25 }
 0x12a   :  { %v737_v8 = vpop.f32.mrf.mxu0  ;;  %1372 = vmatmul.f32.gmra.mxu1 %v12240_v48 }
 0x12b   :  { %v738_v34 = vadd.f32 %v737_v8, %v12271_v61  ;;  %1478 = vmatmul.f32.gmra.mxu2 %v1477_v31  ;;  %v1499_v28 = vand.u32 4294901760, %v12468_v46 }
 0x12c   :  { %v922_v13 = vpop.f32.mrf.mxu3 }
 0x12d   :  { %v801_v16 = vadd.f32 %v800_v12, %v738_v34  ;;  %1311 = vmatmul.f32.gmra.mxu0 %v12214_v2  ;;  %v12453_v43 = vadd.f32 %v922_v13, %v870_v59  ;;  %v1406_v2 = vld [vmem:[%s19272_s28 + $0x33] sm:$0xff]  ;;  %v1500_v45 = vsub.f32 %v12468_v46, %v1499_v28 }
 0x12e   :  { %v877_v61 = vpop.f32.mrf.mxu2  ;;  %v1432_v57 = vsel %vm100_vm0, %v1406_v2, 0 }
 0x12f   :  { %v874_v47 = vadd.f32 %v873_v4, %v801_v16  ;;  %v818_v49 = vpop.f32.mrf.mxu1  ;;  %v12475_v14 = vand.u32 4294901760, %v1432_v57  ;;  %v1501_v8 = vand.u32 4294901760, %v1500_v45 }
 0x131   :  { %1563 = vmatmul.f32.gmra.mxu3 %v12379_v3  ;;  %v12487_v62 = vsub.f32 %v1432_v57, %v12475_v14 }
 0x132   :  { %v742_v53 = vpop.f32.mrf.mxu0  ;;  %1376 = vmatmul.f32.gmra.mxu1 %v12256_v52 }
 0x133   :  { %v743_v12 = vadd.f32 %v742_v53, %v12313_v24  ;;  %1486 = vmatmul.f32.gmra.mxu2 %v1485_v32  ;;  %v1507_v36 = vand.u32 4294901760, %v12487_v62 }
 0x134   :  { %v926_v21 = vpop.f32.mrf.mxu3 }
 0x135   :  { %v807_v54 = vadd.f32 %v806_v9, %v743_v12  ;;  %1315 = vmatmul.f32.gmra.mxu0 %v12229_v18  ;;  %v12472_v19 = vadd.f32 %v926_v21, %v874_v47  ;;  %v1407_v18 = vld [vmem:[%s19272_s28 + $0x3b] sm:$0xff] }
 0x136   :  { %v881_v24 = vpop.f32.mrf.mxu2  ;;  %v1435_v59 = vsel %vm100_vm0, %v1407_v18, 0 }
 0x137   :  { %v878_v63 = vadd.f32 %v877_v61, %v807_v54  ;;  %v824_v15 = vpop.f32.mrf.mxu1  ;;  %v12494_v40 = vand.u32 4294901760, %v1435_v59 }
 0x139   :  { %1567 = vmatmul.f32.gmra.mxu3 %v12401_v39  ;;  %v12503_v13 = vsub.f32 %v1435_v59, %v12494_v40 }
 0x13a   :  { %v747_v17 = vpop.f32.mrf.mxu0  ;;  %1380 = vmatmul.f32.gmra.mxu1 %v12276_v1 }
 0x13b   :  { %v748_v9 = vadd.f32 %v747_v17, %v12348_v58  ;;  %1494 = vmatmul.f32.gmra.mxu2 %v1493_v23 }
 0x13c   :  { %v930_v7 = vpop.f32.mrf.mxu3 }
 0x13d   :  { %v813_v56 = vadd.f32 %v812_v0, %v748_v9  ;;  %1319 = vmatmul.f32.gmra.mxu0 %v12240_v48  ;;  %v12491_v4 = vadd.f32 %v930_v7, %v878_v63  ;;  %v1508_v48 = vsub.f32 %v12487_v62, %v1507_v36 }
 0x13e   :  { %v885_v58 = vpop.f32.mrf.mxu2 }
 0x13f   :  { %v882_v31 = vadd.f32 %v881_v24, %v813_v56  ;;  %v830_v34 = vpop.f32.mrf.mxu1  ;;  %v1509_v2 = vand.u32 4294901760, %v1508_v48 }
 0x141   :  { %1571 = vmatmul.f32.gmra.mxu3 %v12419_v26 }
 0x142   :  { %v752_v16 = vpop.f32.mrf.mxu0  ;;  %1384 = vmatmul.f32.gmra.mxu1 %v12325_v38 }
 0x143   :  { %v753_v0 = vadd.f32 %v752_v16, %v12375_v60  ;;  %1502 = vmatmul.f32.gmra.mxu2 %v1501_v8  ;;  %v1515_v60 = vand.u32 4294901760, %v12503_v13 }
 0x144   :  { %v934_v47 = vpop.f32.mrf.mxu3 }
 0x145   :  { %v819_v33 = vadd.f32 %v818_v49, %v753_v0  ;;  %1323 = vmatmul.f32.gmra.mxu0 %v12256_v52  ;;  %v12506_v61 = vadd.f32 %v934_v47, %v882_v31  ;;  %v1516_v52 = vsub.f32 %v12503_v13, %v1515_v60 }
 0x146   :  { %v889_v53 = vpop.f32.mrf.mxu2 }
 0x147   :  { %v886_v32 = vadd.f32 %v885_v58, %v819_v33  ;;  %v836_v12 = vpop.f32.mrf.mxu1  ;;  %v1517_v23 = vand.u32 4294901760, %v1516_v52 }
 0x149   :  { %1575 = vmatmul.f32.gmra.mxu3 %v12437_v37 }
 0x14a   :  { %v757_v25 = vpop.f32.mrf.mxu0  ;;  %1388 = vmatmul.f32.gmra.mxu1 %v12357_v55 }
 0x14b   :  { %v758_v54 = vadd.f32 %v757_v25, %v12398_v11  ;;  %1510 = vmatmul.f32.gmra.mxu2 %v1509_v2 }
 0x14c   :  { %v938_v21 = vpop.f32.mrf.mxu3 }
 0x14d   :  { %v825_v49 = vadd.f32 %v824_v15, %v758_v54  ;;  %1327 = vmatmul.f32.gmra.mxu0 %v12276_v1  ;;  %v12516_v57 = vadd.f32 %v938_v21, %v886_v32 }
 0x14e   :  { %v893_v24 = vpop.f32.mrf.mxu2 }
 0x14f   :  { %v890_v63 = vadd.f32 %v889_v53, %v825_v49  ;;  %v1113_v17 = vpop.f32.mrf.mxu1 }
 0x151   :  { %1579 = vmatmul.f32.gmra.mxu3 %v12456_v50 }
 0x152   :  { %v762_v18 = vpop.f32.mrf.mxu0  ;;  %1679 = vmatmul.f32.vlgmr.msrb.gmra.mxu1 %v1459_v30 }
 0x153   :  { %v763_v11 = vadd.f32 %v762_v18, %v12416_v27  ;;  %1518 = vmatmul.f32.gmra.mxu2 %v1517_v23 }
 0x154   :  { %v942_v1 = vpop.f32.mrf.mxu3 }
 0x155   :  { %v831_v9 = vadd.f32 %v830_v34, %v763_v11  ;;  %1331 = vmatmul.f32.gmra.mxu0 %v12325_v38  ;;  %v12523_v15 = vadd.f32 %v942_v1, %v890_v63  ;;  %v11594_v11 = vld [vmem:[%s19271_s24 + $0x80] sm:$0xff] }
 0x156   :  { %v897_v56 = vpop.f32.mrf.mxu2 }
 0x157   :  { %v894_v45 = vadd.f32 %v893_v24, %v831_v9  ;;  %v1117_v7 = vpop.f32.mrf.mxu1 }
 0x159   :  { %1583 = vmatmul.f32.gmra.mxu3 %v12475_v14 }
 0x15a   :  { %v767_v59 = vpop.f32.mrf.mxu0  ;;  %1685 = vmatmul.f32.gmra.mxu1 %v1467_v44 }
 0x15b   :  { %v768_v31 = vadd.f32 %v767_v59, %v12434_v22  ;;  %1754 = vmatmul.f32.vlgmr.msrb.gmra.mxu2 %v12354_v6 }
 0x15c   :  { %v946_v38 = vpop.f32.mrf.mxu3 }
 0x15d   :  { %v837_v30 = vadd.f32 %v836_v12, %v768_v31  ;;  %1335 = vmatmul.f32.gmra.mxu0 %v12357_v55  ;;  %v12531_v27 = vadd.f32 %v946_v38, %v894_v45 }
 0x15e   :  { %v1171_v8 = vpop.f32.mrf.mxu2 }
 0x15f   :  { %v898_v58 = vadd.f32 %v897_v56, %v837_v30  ;;  %v1121_v34 = vpop.f32.mrf.mxu1 }
 0x161   :  { %1587 = vmatmul.f32.gmra.mxu3 %v12494_v40 }
 0x162   :  { %v1016_v16 = vpop.f32.mrf.mxu0  ;;  %1691 = vmatmul.f32.gmra.mxu1 %v1475_v5 }
 0x163   :  { %v1114_v0 = vadd.f32 %v1113_v17, %v1016_v16  ;;  %1758 = vmatmul.f32.gmra.mxu2 %v12379_v3 }
 0x164   :  { %v950_v22 = vpop.f32.mrf.mxu3 }
 0x165   :  { %v1172_v44 = vadd.f32 %v1171_v8, %v1114_v0  ;;  %1617 = vmatmul.f32.vlgmr.msra.gmra.mxu0 %v12368_v35  ;;  %v12538_v55 = vadd.f32 %v950_v22, %v898_v58 }
 0x166   :  { %v1176_v48 = vpop.f32.mrf.mxu2 }
 0x167   :  { %v1125_v33 = vpop.f32.mrf.mxu1 }
 0x169   :  { %1807 = vmatmul.f32.vlgmr.msra.gmra.mxu3 %v12354_v6  ;;  %v11597_v6 = vld [vmem:[%s19271_s24 + $0x98] sm:$0xff] }
 0x16a   :  { %v1024_v47 = vpop.f32.mrf.mxu0  ;;  %1697 = vmatmul.f32.gmra.mxu1 %v1483_v29 }
 0x16b   :  { %v1118_v32 = vadd.f32 %v1117_v7, %v1024_v47  ;;  %1762 = vmatmul.f32.gmra.mxu2 %v12401_v39  ;;  %v1902_v7 = vand.u32 4294901760, %v11594_v11 }
 0x16c   :  { %v1233_v53 = vpop.f32.mrf.mxu3 }
 0x16d   :  { %v1177_v5 = vadd.f32 %v1176_v48, %v1118_v32  ;;  %1622 = vmatmul.f32.gmra.mxu0 %v12394_v42  ;;  %v12545_v2 = vadd.f32 %v1233_v53, %v1172_v44  ;;  %v12556_v42 = vand.u32 4294901760, %v11597_v6  ;;  %v2000_v38 = vsub.f32 %v11594_v11, %v1902_v7 }
 0x16e   :  { %v1181_v35 = vpop.f32.mrf.mxu2 }
 0x16f   :  { %v12547_v12 = vpop.f32.mrf.mxu1  ;;  %1897 = vmatpush.msrb.mxu0 %v12556_v42  ;;  %2116 = vmatpush.msrb.mxu3 %v12556_v42  ;;  %v2001_v0 = vand.u32 4294901760, %v2000_v38 }
 0x171   :  { %1811 = vmatmul.f32.gmra.mxu3 %v12379_v3  ;;  %v11596_v3 = vld [vmem:[%s19271_s24 + $0x90] sm:$0xff]  ;;  %v2002_v48 = vsub.f32 %v2000_v38, %v2001_v0 }
 0x172   :  { %v1032_v25 = vpop.f32.mrf.mxu0  ;;  %1703 = vmatmul.f32.gmra.mxu1 %v1491_v51  ;;  %v1982_v51 = vsub.f32 %v11597_v6, %v12556_v42  ;;  %v12565_v21 = vand.u32 4294901760, %v11596_v3 }
 0x173   :  { %v1122_v54 = vadd.f32 %v1121_v34, %v1032_v25  ;;  %1766 = vmatmul.f32.gmra.mxu2 %v12419_v26 }
 0x174   :  { %v1239_v52 = vpop.f32.mrf.mxu3  ;;  %2052 = vmatpush.msra.mxu2 %v1982_v51  ;;  %v1988_v23 = vsub.f32 %v11596_v3, %v12565_v21  ;;  %v1983_v17 = vand.u32 4294901760, %v1982_v51  ;;  %1899 = vmatpush.msrb.mxu0 %v12565_v21 }
 0x175   :  { %v1182_v29 = vadd.f32 %v1181_v35, %v1122_v54  ;;  %1627 = vmatmul.f32.gmra.mxu0 %v12412_v41  ;;  %v12562_v49 = vadd.f32 %v1239_v52, %v1177_v5  ;;  %v11595_v41 = vld [vmem:[%s19271_s24 + $0x88] sm:$0xff]  ;;  %2118 = vmatpush.msrb.mxu3 %v12565_v21 }
 0x176   :  { %v1186_v63 = vpop.f32.mrf.mxu2  ;;  %v1900_v18 = vand.u32 4294901760, %v11595_v41  ;;  %2055 = vmatpush.msra.mxu2 %v1988_v23  ;;  %v1984_v1 = vsub.f32 %v1982_v51, %v1983_v17  ;;  %v1989_v56 = vand.u32 4294901760, %v1988_v23 }
 0x177   :  { %v12572_v24 = vpop.f32.mrf.mxu1 }
 0x178   :  { %v1994_v45 = vsub.f32 %v11595_v41, %v1900_v18  ;;  %1901 = vmatpush.msrb.mxu0 %v1900_v18  ;;  %v1985_v31 = vand.u32 4294901760, %v1984_v1  ;;  %v1990_v30 = vsub.f32 %v1988_v23, %v1989_v56  ;;  %2120 = vmatpush.msrb.mxu3 %v1900_v18 }
 0x179   :  { %1815 = vmatmul.f32.gmra.mxu3 %v12401_v39 }
 0x17a   :  { %v1040_v9 = vpop.f32.mrf.mxu0  ;;  %1709 = vmatmul.f32.gmra.mxu1 %v1499_v28  ;;  %2058 = vmatpush.msra.mxu2 %v1994_v45  ;;  %v1995_v8 = vand.u32 4294901760, %v1994_v45  ;;  %v1991_v16 = vand.u32 4294901760, %v1990_v30 }
 0x17b   :  { %v1126_v59 = vadd.f32 %v1125_v33, %v1040_v9  ;;  %1770 = vmatmul.f32.gmra.mxu2 %v12437_v37  ;;  %1986 = vmatpush.msra.mxu1 %v1985_v31 }
 0x17c   :  { %v1245_v39 = vpop.f32.mrf.mxu3  ;;  %1903 = vmatpush.msrb.mxu0 %v1902_v7  ;;  %2061 = vmatpush.msra.mxu2 %v2000_v38  ;;  %v1996_v44 = vsub.f32 %v1994_v45, %v1995_v8 }
 0x17d   :  { %v1187_v58 = vadd.f32 %v1186_v63, %v1126_v59  ;;  %1632 = vmatmul.f32.gmra.mxu0 %v12430_v20  ;;  %v12585_v34 = vadd.f32 %v1245_v39, %v1182_v29  ;;  %2122 = vmatpush.msrb.mxu3 %v1902_v7  ;;  %v2003_v20 = vand.u32 4294901760, %v2002_v48 }
 0x17e   :  { %v1191_v28 = vpop.f32.mrf.mxu2  ;;  %1992 = vmatpush.msra.mxu1 %v1991_v16  ;;  %2187 = vmatpush.msra.mxu0 %v1983_v17  ;;  %v1997_v33 = vand.u32 4294901760, %v1996_v44 }
 0x17f   :  { %v1137_v22 = vpop.f32.mrf.mxu1 }
 0x180   :  { %2191 = vmatpush.msra.mxu0 %v1989_v56  ;;  %1998 = vmatpush.msra.mxu1 %v1997_v33 }
 0x181   :  { %1819 = vmatmul.f32.gmra.mxu3 %v12419_v26 }
 0x182   :  { %v1048_v47 = vpop.f32.mrf.mxu0  ;;  %1715 = vmatmul.f32.gmra.mxu1 %v1507_v36  ;;  %2195 = vmatpush.msra.mxu0 %v1995_v8 }
 0x183   :  { %v1130_v32 = vadd.f32 %v12547_v12, %v1048_v47  ;;  %1774 = vmatmul.f32.gmra.mxu2 %v12456_v50  ;;  %2004 = vmatpush.msra.mxu1 %v2003_v20 }
 0x184   :  { %v1251_v53 = vpop.f32.mrf.mxu3  ;;  %2199 = vmatpush.msra.mxu0 %v2001_v0 }
 0x185   :  { %v1192_v5 = vadd.f32 %v1191_v28, %v1130_v32  ;;  %1637 = vmatmul.f32.gmra.mxu0 %v12449_v10  ;;  %v12593_v35 = vadd.f32 %v1251_v53, %v1187_v58  ;;  %2246 = vmatpush.msrb.mxu1 %v12556_v42  ;;  %v1847_v10 = vld [vmem:[%s19272_s28 + $0x4] sm:$0xff] }
 0x186   :  { %v1196_v25 = vpop.f32.mrf.mxu2 }
 0x187   :  { %v1141_v26 = vpop.f32.mrf.mxu1  ;;  %2248 = vmatpush.msrb.mxu1 %v12565_v21 }
 0x189   :  { %1823 = vmatmul.f32.gmra.mxu3 %v12437_v37  ;;  %2250 = vmatpush.msrb.mxu1 %v1900_v18  ;;  %v1861_v37 = vsel %vm100_vm0, %v1847_v10, 0 }
 0x18a   :  { %v1056_v12 = vpop.f32.mrf.mxu0  ;;  %1721 = vmatmul.f32.gmra.mxu1 %v1515_v60  ;;  %v12609_v3 = vand.u32 4294901760, %v1861_v37 }
 0x18b   :  { %v1134_v36 = vadd.f32 %v12572_v24, %v1056_v12  ;;  %1778 = vmatmul.f32.gmra.mxu2 %v12475_v14  ;;  %2252 = vmatpush.msrb.mxu1 %v1902_v7 }
 0x18c   :  { %v1257_v6 = vpop.f32.mrf.mxu3  ;;  %v1905_v41 = vsub.f32 %v1861_v37, %v12609_v3 }
 0x18d   :  { %v1197_v54 = vadd.f32 %v1196_v25, %v1134_v36  ;;  %1642 = vmatmul.f32.gmra.mxu0 %v12468_v46  ;;  %v12606_v42 = vadd.f32 %v1257_v6, %v1192_v5  ;;  %v1848_v46 = vld [vmem:[%s19272_s28 + $0xc] sm:$0xff]  ;;  %v1851_v25 = vld [vmem:[%s19272_s28 + $0x24] sm:$0xff] }
 0x18e   :  { %v1201_v29 = vpop.f32.mrf.mxu2  ;;  %v1864_v23 = vsel %vm100_vm0, %v1848_v46, 0  ;;  %v1906_v17 = vand.u32 4294901760, %v1905_v41  ;;  %v1873_v10 = vsel %vm100_vm0, %v1851_v25, 0  ;;  %v1852_v46 = vld [vmem:[%s19272_s28 + $0x2c] sm:$0xff] }
 0x18f   :  { %v1361_v52 = vpop.f32.mrf.mxu1  ;;  %v12622_v18 = vand.u32 4294901760, %v1864_v23 }
 0x190   :  { %v1907_v7 = vsub.f32 %v1905_v41, %v1906_v17 }
 0x191   :  { %1827 = vmatmul.f32.gmra.mxu3 %v12456_v50  ;;  %v1913_v59 = vsub.f32 %v1864_v23, %v12622_v18 }
 0x192   :  { %v1064_v60 = vpop.f32.mrf.mxu0  ;;  %2006 = vmatmul.f32.vlgmr.msra.gmra.mxu1 %v12609_v3  ;;  %v1908_v38 = vand.u32 4294901760, %v1907_v7 }
 0x193   :  { %v1138_v51 = vadd.f32 %v1137_v22, %v1064_v60  ;;  %1782 = vmatmul.f32.gmra.mxu2 %v12494_v40  ;;  %v1914_v58 = vand.u32 4294901760, %v1913_v59 }
 0x194   :  { %v1263_v63 = vpop.f32.mrf.mxu3 }
 0x195   :  { %v1202_v21 = vadd.f32 %v1201_v29, %v1138_v51  ;;  %1647 = vmatmul.f32.gmra.mxu0 %v12487_v62  ;;  %v12619_v24 = vadd.f32 %v1263_v63, %v1197_v54  ;;  %v1849_v62 = vld [vmem:[%s19272_s28 + $0x14] sm:$0xff]  ;;  %v1915_v44 = vsub.f32 %v1913_v59, %v1914_v58 }
 0x196   :  { %v1206_v9 = vpop.f32.mrf.mxu2 }
 0x197   :  { %v1365_v50 = vpop.f32.mrf.mxu1  ;;  %v1916_v47 = vand.u32 4294901760, %v1915_v44 }
 0x199   :  { %1831 = vmatmul.f32.gmra.mxu3 %v12475_v14  ;;  %v1867_v14 = vsel %vm100_vm0, %v1849_v62, 0 }
 0x19a   :  { %v1072_v11 = vpop.f32.mrf.mxu0  ;;  %2010 = vmatmul.f32.gmra.mxu1 %v12622_v18  ;;  %v12634_v39 = vand.u32 4294901760, %v1867_v14 }
 0x19b   :  { %v1142_v1 = vadd.f32 %v1141_v26, %v1072_v11  ;;  %2064 = vmatmul.f32.vlgmr.msra.gmra.mxu2 %v1905_v41  ;;  %v1876_v41 = vsel %vm100_vm0, %v1852_v46, 0 }
 0x19c   :  { %v1269_v56 = vpop.f32.mrf.mxu3  ;;  %v1921_v22 = vsub.f32 %v1867_v14, %v12634_v39 }
 0x19d   :  { %v1207_v45 = vadd.f32 %v1206_v9, %v1142_v1  ;;  %1652 = vmatmul.f32.gmra.mxu0 %v12503_v13  ;;  %v12631_v31 = vadd.f32 %v1269_v56, %v1202_v21  ;;  %v1850_v13 = vld [vmem:[%s19272_s28 + $0x1c] sm:$0xff]  ;;  %v12679_v9 = vand.u32 4294901760, %v1876_v41 }
 0x19e   :  { %v1870_v33 = vsel %vm100_vm0, %v1850_v13, 0  ;;  %v1922_v20 = vand.u32 4294901760, %v1921_v22  ;;  %v12657_v36 = vpop.f32.mrf.mxu2 }
 0x19f   :  { %v1369_v30 = vpop.f32.mrf.mxu1  ;;  %v12649_v32 = vand.u32 4294901760, %v1870_v33 }
 0x1a1   :  { %1835 = vmatmul.f32.gmra.mxu3 %v12494_v40  ;;  %v1929_v12 = vsub.f32 %v1870_v33, %v12649_v32 }
 0x1a2   :  { %v1308_v8 = vpop.f32.mrf.mxu0  ;;  %2014 = vmatmul.f32.gmra.mxu1 %v12634_v39 }
 0x1a3   :  { %v1309_v16 = vadd.f32 %v1308_v8, %v12545_v2  ;;  %2069 = vmatmul.f32.gmra.mxu2 %v1913_v59  ;;  %v1930_v29 = vand.u32 4294901760, %v1929_v12  ;;  %v1945_v59 = vsub.f32 %v1876_v41, %v12679_v9 }
 0x1a4   :  { %v1275_v28 = vpop.f32.mrf.mxu3 }
 0x1a5   :  { %v1362_v0 = vadd.f32 %v1361_v52, %v1309_v16  ;;  %1909 = vmatmul.f32.vlgmr.msrb.gmra.mxu0 %v1908_v38  ;;  %v12643_v48 = vadd.f32 %v1275_v28, %v1207_v45  ;;  %v12665_v52 = vand.u32 4294901760, %v1873_v10  ;;  %v1931_v21 = vsub.f32 %v1929_v12, %v1930_v29  ;;  %v1854_v28 = vld [vmem:[%s19272_s28 + $0x3c] sm:$0xff] }
 0x1a7   :  { %v12647_v40 = vadd.f32 %v1362_v0, %v12453_v43  ;;  %v1373_v2 = vpop.f32.mrf.mxu1  ;;  %v1923_v43 = vsub.f32 %v1921_v22, %v1922_v20  ;;  %v1937_v63 = vsub.f32 %v1873_v10, %v12665_v52 }
 0x1a9   :  { %19273 = vst [vmem:[#allocation7_spill] sm:$0xff] %v12647_v40  ;;  %2126 = vmatmul.f32.vlgmr.msrb.gmra.mxu3 %v1906_v17  ;;  %v1924_v37 = vand.u32 4294901760, %v1923_v43  ;;  %v1932_v17 = vand.u32 4294901760, %v1931_v21  ;;  %v1938_v11 = vand.u32 4294901760, %v1937_v63 }
 0x1aa   :  { %v1312_v5 = vpop.f32.mrf.mxu0  ;;  %2018 = vmatmul.f32.gmra.mxu1 %v12649_v32 }
 0x1ab   :  { %v1313_v53 = vadd.f32 %v1312_v5, %v12562_v49  ;;  %2074 = vmatmul.f32.gmra.mxu2 %v1921_v22  ;;  %v1939_v7 = vsub.f32 %v1937_v63, %v1938_v11 }
 0x1ac   :  { %v12663_v49 = vpop.f32.mrf.mxu3 }
 0x1ad   :  { %v1366_v26 = vadd.f32 %v1365_v50, %v1313_v53  ;;  %1917 = vmatmul.f32.gmra.mxu0 %v1916_v47  ;;  %v12677_v50 = vpop.f32.mrf.mxu2 }
 0x1af   :  { %v12661_v54 = vadd.f32 %v1366_v26, %v12472_v19  ;;  %v1377_v6 = vpop.f32.mrf.mxu1 }
 0x1b1   :  { %19274 = vst [vmem:[#allocation8_spill] sm:$0xff] %v12661_v54  ;;  %2132 = vmatmul.f32.gmra.mxu3 %v1914_v58  ;;  %v1940_v58 = vand.u32 4294901760, %v1939_v7 }
 0x1b2   :  { %v1316_v60 = vpop.f32.mrf.mxu0  ;;  %2022 = vmatmul.f32.gmra.mxu1 %v12665_v52 }
 0x1b3   :  { %v1317_v51 = vadd.f32 %v1316_v60, %v12585_v34  ;;  %2079 = vmatmul.f32.gmra.mxu2 %v1929_v12 }
 0x1b4   :  { %v12681_v1 = vpop.f32.mrf.mxu3 }
 0x1b5   :  { %v1370_v19 = vadd.f32 %v1369_v30, %v1317_v51  ;;  %1925 = vmatmul.f32.gmra.mxu0 %v1924_v37  ;;  %v12695_v16 = vpop.f32.mrf.mxu2 }
 0x1b7   :  { %v12675_v23 = vadd.f32 %v1370_v19, %v12491_v4  ;;  %v1381_v34 = vpop.f32.mrf.mxu1  ;;  %v1853_v4 = vld [vmem:[%s19272_s28 + $0x34] sm:$0xff] }
 0x1b8   :  { %v1879_v14 = vsel %vm100_vm0, %v1853_v4, 0 }
 0x1b9   :  { %19275 = vst [vmem:[#allocation9_spill] sm:$0xff] %v12675_v23  ;;  %2138 = vmatmul.f32.gmra.mxu3 %v1922_v20  ;;  %v12693_v8 = vand.u32 4294901760, %v1879_v14 }
 0x1ba   :  { %v1320_v62 = vpop.f32.mrf.mxu0  ;;  %2026 = vmatmul.f32.gmra.mxu1 %v12679_v9 }
 0x1bb   :  { %v1321_v45 = vadd.f32 %v1320_v62, %v12593_v35  ;;  %2084 = vmatmul.f32.gmra.mxu2 %v1937_v63  ;;  %v1946_v35 = vand.u32 4294901760, %v1945_v59  ;;  %v1953_v33 = vsub.f32 %v1879_v14, %v12693_v8 }
 0x1bc   :  { %v12702_v44 = vpop.f32.mrf.mxu3 }
 0x1bd   :  { %v1374_v56 = vadd.f32 %v1373_v2, %v1321_v45  ;;  %1933 = vmatmul.f32.gmra.mxu0 %v1932_v17  ;;  %v1947_v22 = vsub.f32 %v1945_v59, %v1946_v35  ;;  %v1882_v2 = vsel %vm100_vm0, %v1854_v28, 0  ;;  %v1954_v5 = vand.u32 4294901760, %v1953_v33  ;;  %v12713_v43 = vpop.f32.mrf.mxu2 }
 0x1be   :  { %v12709_v53 = vand.u32 4294901760, %v1882_v2 }
 0x1bf   :  { %v12691_v30 = vadd.f32 %v1374_v56, %v12506_v61  ;;  %v1385_v38 = vpop.f32.mrf.mxu1  ;;  %v1948_v20 = vand.u32 4294901760, %v1947_v22  ;;  %v1955_v10 = vsub.f32 %v1953_v33, %v1954_v5 }
 0x1c1   :  { %19276 = vst [vmem:[#allocation10_spill] sm:$0xff] %v12691_v30  ;;  %2144 = vmatmul.f32.gmra.mxu3 %v1930_v29  ;;  %v1956_v60 = vand.u32 4294901760, %v1955_v10 }
 0x1c2   :  { %v1324_v13 = vpop.f32.mrf.mxu0  ;;  %2030 = vmatmul.f32.gmra.mxu1 %v12693_v8 }
 0x1c3   :  { %v1325_v0 = vadd.f32 %v1324_v13, %v12606_v42  ;;  %2089 = vmatmul.f32.gmra.mxu2 %v1945_v59 }
 0x1c5   :  { %v1378_v61 = vadd.f32 %v1377_v6, %v1325_v0  ;;  %1941 = vmatmul.f32.gmra.mxu0 %v1940_v58  ;;  %v12716_v6 = vpop.f32.mrf.mxu3  ;;  %v12725_v63 = vpop.f32.mrf.mxu2 }
 0x1c7   :  { %v12707_v47 = vadd.f32 %v1378_v61, %v12516_v57  ;;  %v1389_v42 = vpop.f32.mrf.mxu1  ;;  %v1961_v57 = vsub.f32 %v1882_v2, %v12709_v53 }
 0x1c9   :  { %19277 = vst [vmem:[#allocation11_spill] sm:$0xff] %v12707_v47  ;;  %2150 = vmatmul.f32.gmra.mxu3 %v1938_v11  ;;  %v1962_v51 = vand.u32 4294901760, %v1961_v57 }
 0x1ca   :  { %v1328_v25 = vpop.f32.mrf.mxu0  ;;  %2034 = vmatmul.f32.gmra.mxu1 %v12709_v53 }
 0x1cb   :  { %v1329_v26 = vadd.f32 %v1328_v25, %v12619_v24  ;;  %2094 = vmatmul.f32.gmra.mxu2 %v1953_v33  ;;  %v1963_v21 = vsub.f32 %v1961_v57, %v1962_v51 }
 0x1cd   :  { %v1382_v12 = vadd.f32 %v1381_v34, %v1329_v26  ;;  %1949 = vmatmul.f32.gmra.mxu0 %v1948_v20  ;;  %v1964_v17 = vand.u32 4294901760, %v1963_v21  ;;  %v12739_v4 = vpop.f32.mrf.mxu2 }
 0x1cf   :  { %v12719_v37 = vadd.f32 %v1382_v12, %v12523_v15  ;;  %v12721_v29 = vpop.f32.mrf.mxu1  ;;  %v12730_v15 = vpop.f32.mrf.mxu3 }
 0x1d1   :  { %19278 = vst [vmem:[#allocation12_spill] sm:$0xff] %v12719_v37  ;;  %2156 = vmatmul.f32.gmra.mxu3 %v1946_v35 }
 0x1d2   :  { %v1332_v24 = vpop.f32.mrf.mxu0  ;;  %2254 = vmatmul.f32.vlgmr.msrb.gmra.mxu1 %v12609_v3 }
 0x1d3   :  { %v1333_v46 = vadd.f32 %v1332_v24, %v12631_v31  ;;  %2099 = vmatmul.f32.gmra.mxu2 %v1961_v57 }
 0x1d5   :  { %v1386_v19 = vadd.f32 %v1385_v38, %v1333_v46  ;;  %1957 = vmatmul.f32.gmra.mxu0 %v1956_v60  ;;  %v12751_v59 = vpop.f32.mrf.mxu2 }
 0x1d7   :  { %v12728_v41 = vadd.f32 %v1386_v19, %v12531_v27  ;;  %v12732_v34 = vpop.f32.mrf.mxu1  ;;  %v12743_v56 = vpop.f32.mrf.mxu3 }
 0x1d9   :  { %19279 = vst [vmem:[#allocation13_spill] sm:$0xff] %v12728_v41  ;;  %2162 = vmatmul.f32.gmra.mxu3 %v1954_v5 }
 0x1da   :  { %v1336_v11 = vpop.f32.mrf.mxu0  ;;  %2258 = vmatmul.f32.gmra.mxu1 %v12622_v18 }
 0x1db   :  { %v1337_v31 = vadd.f32 %v1336_v11, %v12643_v48 }
 0x1dd   :  { %v1390_v62 = vadd.f32 %v1389_v42, %v1337_v31  ;;  %1965 = vmatmul.f32.gmra.mxu0 %v1964_v17  ;;  %v12764_v35 = vpop.f32.mrf.mxu2 }
 0x1df   :  { %v12737_v45 = vadd.f32 %v1390_v62, %v12538_v55  ;;  %v12741_v27 = vpop.f32.mrf.mxu1  ;;  %v12756_v55 = vpop.f32.mrf.mxu3 }
 0x1e1   :  { %19280 = vst [vmem:[#allocation14_spill] sm:$0xff] %v12737_v45  ;;  %2168 = vmatmul.f32.gmra.mxu3 %v1962_v51 }
 0x1e2   :  { %v12745_v7 = vpop.f32.mrf.mxu0  ;;  %2262 = vmatmul.f32.gmra.mxu1 %v12634_v39 }
 0x1e5   :  { %2201 = vmatmul.f32.vlgmr.msra.gmra.mxu0 %v12609_v3 }
 0x1e7   :  { %v12749_v48 = vpop.f32.mrf.mxu1  ;;  %v12767_v3 = vpop.f32.mrf.mxu3 }
 0x1ea   :  { %v12753_v14 = vpop.f32.mrf.mxu0  ;;  %2266 = vmatmul.f32.gmra.mxu1 %v12649_v32 }
 0x1ed   :  { %2205 = vmatmul.f32.gmra.mxu0 %v12622_v18  ;;  %v12775_v18 = vpop.f32.mrf.mxu2 }
 0x1ef   :  { %v12759_v38 = vpop.f32.mrf.mxu1  ;;  %v12777_v28 = vpop.f32.mrf.mxu3 }
 0x1f0   :  { %19281 = vst [vmem:[#allocation15_spill] sm:$0xff] %v12777_v28 }
 0x1f2   :  { %v12761_v58 = vpop.f32.mrf.mxu0  ;;  %2270 = vmatmul.f32.gmra.mxu1 %v12665_v52 }
 0x1f5   :  { %2209 = vmatmul.f32.gmra.mxu0 %v12634_v39  ;;  %v12785_v39 = vpop.f32.mrf.mxu2 }
 0x1f7   :  { %v12769_v13 = vpop.f32.mrf.mxu1  ;;  %v12789_v2 = vpop.f32.mrf.mxu3 }
 0x1f8   :  { %19283 = vst [vmem:[#allocation17_spill] sm:$0xff] %v12789_v2 }
 0x1fa   :  { %v12771_v0 = vpop.f32.mrf.mxu0  ;;  %2274 = vmatmul.f32.gmra.mxu1 %v12679_v9 }
 0x1fd   :  { %2213 = vmatmul.f32.gmra.mxu0 %v12649_v32  ;;  %v12797_v20 = vpop.f32.mrf.mxu2 }
 0x1ff   :  { %v12779_v61 = vpop.f32.mrf.mxu1  ;;  %v12801_v25 = vpop.f32.mrf.mxu3 }
 0x202   :  { %v12781_v22 = vpop.f32.mrf.mxu0  ;;  %2278 = vmatmul.f32.gmra.mxu1 %v12693_v8 }
 0x205   :  { %2217 = vmatmul.f32.gmra.mxu0 %v12665_v52  ;;  %v12808_v12 = vpop.f32.mrf.mxu2 }
 0x206   :  { %19284 = vst [vmem:[#allocation18_spill] sm:$0xff] %v12808_v12 }
 0x207   :  { %v12787_v33 = vpop.f32.mrf.mxu1  ;;  %v12811_v10 = vpop.f32.mrf.mxu3 }
 0x208   :  { %19282 = vst [vmem:[#allocation16_spill] sm:$0xff] %v12787_v33 }
 0x209   :  { %19285 = vst [vmem:[#allocation19_spill] sm:$0xff] %v12811_v10 }
 0x20a   :  { %v12791_v42 = vpop.f32.mrf.mxu0  ;;  %2282 = vmatmul.f32.gmra.mxu1 %v12709_v53 }
 0x20d   :  { %2221 = vmatmul.f32.gmra.mxu0 %v12679_v9  ;;  %v12817_v60 = vpop.f32.mrf.mxu2 }
 0x20f   :  { %v12795_v32 = vpop.f32.mrf.mxu1  ;;  %v12819_v51 = vpop.f32.mrf.mxu3 }
 0x210   :  { %19286 = vst [vmem:[#allocation20_spill] sm:$0xff] %v12819_v51 }
 0x212   :  { %v12799_v5 = vpop.f32.mrf.mxu0 }
 0x215   :  { %2225 = vmatmul.f32.gmra.mxu0 %v12693_v8  ;;  %v12825_v46 = vpop.f32.mrf.mxu2 }
 0x217   :  { %v12804_v52 = vpop.f32.mrf.mxu1  ;;  %v12827_v21 = vpop.f32.mrf.mxu3 }
 0x218   :  { %19287 = vst [vmem:[#allocation21_spill] sm:$0xff] %v12827_v21 }
 0x21a   :  { %v12806_v26 = vpop.f32.mrf.mxu0 }
 0x21d   :  { %2229 = vmatmul.f32.gmra.mxu0 %v12709_v53  ;;  %v12831_v11 = vpop.f32.mrf.mxu2 }
 0x21e   :  { %19288 = vst [vmem:[#allocation22_spill] sm:$0xff] %v12831_v11 }
 0x21f   :  { %v12813_v9 = vpop.f32.mrf.mxu1  ;;  %v12833_v62 = vpop.f32.mrf.mxu3 }
 0x220   :  { %19289 = vst [vmem:[#allocation23_spill] sm:$0xff] %v12833_v62 }
 0x222   :  { %v12815_v57 = vpop.f32.mrf.mxu0 }
 0x225   :  { %v12835_v40 = vpop.f32.mrf.mxu2 }
 0x226   :  { %19290 = vst [vmem:[#allocation24_spill] sm:$0xff] %v12835_v40 }
 0x227   :  { %v12821_v24 = vpop.f32.mrf.mxu1  ;;  %v12837_v23 = vpop.f32.mrf.mxu3 }
 0x228   :  { %19291 = vst [vmem:[#allocation25_spill] sm:$0xff] %v12837_v23 }
 0x22a   :  { %v12823_v8 = vpop.f32.mrf.mxu0 }
 0x22d   :  { %v12841_v28 = vpop.f32.mrf.mxu2 }
 0x22e   :  { %19293 = vst [vmem:[#allocation27_spill] sm:$0xff] %v12841_v28 }
 0x22f   :  { %v2023_v19 = vpop.f32.mrf.mxu1  ;;  %v12843_v47 = vpop.f32.mrf.mxu3 }
 0x230   :  { %19294 = vst [vmem:[#allocation28_spill] sm:$0xff] %v12843_v47 }
 0x232   :  { %v12829_v53 = vpop.f32.mrf.mxu0 }
 0x235   :  { %v12847_v10 = vpop.f32.mrf.mxu2 }
 0x236   :  { %19296 = vst [vmem:[#allocation30_spill] sm:$0xff] %v12847_v10 }
 0x237   :  { %v2027_v17 = vpop.f32.mrf.mxu1  ;;  %v12849_v33 = vpop.f32.mrf.mxu3 }
 0x238   :  { %19297 = vst [vmem:[#allocation31_spill] sm:$0xff] %v12849_v33 }
 0x23a   :  { %v1934_v31 = vpop.f32.mrf.mxu0 }
 0x23d   :  { %v12855_v40 = vpop.f32.mrf.mxu2 }
 0x23e   :  { %19300 = vst [vmem:[#allocation34_spill] sm:$0xff] %v12855_v40 }
 0x23f   :  { %v2031_v54 = vpop.f32.mrf.mxu1 }
 0x242   :  { %v1942_v45 = vpop.f32.mrf.mxu0 }
 0x245   :  { %v2080_v51 = vpop.f32.mrf.mxu2 }
 0x247   :  { %v12839_v2 = vpop.f32.mrf.mxu1 }
 0x248   :  { %19292 = vst [vmem:[#allocation26_spill] sm:$0xff] %v12839_v2  ;;  %v12859_v2 = vpop.f32.mrf.mxu3 }
 0x249   :  { %19302 = vst [vmem:[#allocation36_spill] sm:$0xff] %v12859_v2  ;;  %v1565_v2 = vadd.f32 %v12681_v1, %v12677_v50 }
 0x24a   :  { %v1950_v30 = vpop.f32.mrf.mxu0 }
 0x24f   :  { %v12845_v37 = vpop.f32.mrf.mxu1 }
 0x250   :  { %19295 = vst [vmem:[#allocation29_spill] sm:$0xff] %v12845_v37  ;;  %v12865_v37 = vpop.f32.mrf.mxu3 }
 0x251   :  { %19305 = vst [vmem:[#allocation39_spill] sm:$0xff] %v12865_v37 }
 0x252   :  { %v1958_v41 = vpop.f32.mrf.mxu0 }
 0x257   :  { %v12853_v21 = vpop.f32.mrf.mxu1 }
 0x258   :  { %19299 = vst [vmem:[#allocation33_spill] sm:$0xff] %v12853_v21  ;;  %v2151_v12 = vpop.f32.mrf.mxu3 }
 0x25a   :  { %v12851_v62 = vpop.f32.mrf.mxu0 }
 0x25b   :  { %19298 = vst [vmem:[#allocation32_spill] sm:$0xff] %v12851_v62  ;;  %v2085_v62 = vpop.f32.mrf.mxu2 }
 0x25f   :  { %v12861_v28 = vpop.f32.mrf.mxu1 }
 0x260   :  { %19303 = vst [vmem:[#allocation37_spill] sm:$0xff] %v12861_v28  ;;  %v1569_v28 = vadd.f32 %v12702_v44, %v12695_v16  ;;  %v2157_v37 = vpop.f32.mrf.mxu3 }
 0x262   :  { %v12857_v23 = vpop.f32.mrf.mxu0 }
 0x263   :  { %19301 = vst [vmem:[#allocation35_spill] sm:$0xff] %v12857_v23  ;;  %v1561_v23 = vadd.f32 %v12663_v49, %v12657_v36  ;;  %v1624_v36 = vadd.f32 %v12753_v14, %v1565_v2  ;;  %v1585_v49 = vadd.f32 %v12756_v55, %v12751_v59  ;;  %v2024_v59 = vadd.f32 %v2023_v19, %v1942_v45 }
 0x264   :  { %v2032_v45 = vadd.f32 %v2031_v54, %v1958_v41  ;;  %v2008_v54 = vadd.f32 %v12795_v32, %v12815_v57  ;;  %v19315_v32 = vld [vmem:[#allocation23_spill] sm:$0xff] }
 0x267   :  { %v12869_v33 = vpop.f32.mrf.mxu1 }
 0x268   :  { %19307 = vst [vmem:[#allocation41_spill] sm:$0xff] %v12869_v33  ;;  %v1629_v33 = vadd.f32 %v12761_v58, %v1569_v28  ;;  %v2163_v28 = vpop.f32.mrf.mxu3 }
 0x26a   :  { %v12863_v47 = vpop.f32.mrf.mxu0  ;;  %v1693_v44 = vadd.f32 %v12741_v27, %v1629_v33 }
 0x26b   :  { %19304 = vst [vmem:[#allocation38_spill] sm:$0xff] %v12863_v47  ;;  %v2090_v47 = vpop.f32.mrf.mxu2 }
 0x26f   :  { %v12873_v40 = vpop.f32.mrf.mxu1 }
 0x270   :  { %19309 = vst [vmem:[#allocation43_spill] sm:$0xff] %v12873_v40  ;;  %v1581_v40 = vadd.f32 %v12743_v56, %v12739_v4  ;;  %v2028_v4 = vadd.f32 %v2027_v17, %v1950_v30  ;;  %v1687_v56 = vadd.f32 %v12732_v34, %v1624_v36  ;;  %v2020_v34 = vadd.f32 %v12821_v24, %v1934_v31  ;;  %v19319_v31 = vld [vmem:[#allocation30_spill] sm:$0xff]  ;;  %v19320_v36 = vld [vmem:[#allocation36_spill] sm:$0xff] }
 0x272   :  { %v12867_v10 = vpop.f32.mrf.mxu0  ;;  %v1644_v50 = vadd.f32 %v12791_v42, %v1581_v40  ;;  %v2091_v58 = vadd.f32 %v2090_v47, %v2028_v4  ;;  %v2012_v47 = vadd.f32 %v12804_v52, %v12823_v8  ;;  %v2081_v2 = vadd.f32 %v2080_v51, %v2020_v34  ;;  %v19317_v8 = vld [vmem:[#allocation16_spill] sm:$0xff]  ;;  %v19318_v51 = vld [vmem:[#allocation27_spill] sm:$0xff] }
 0x273   :  { %19306 = vst [vmem:[#allocation40_spill] sm:$0xff] %v12867_v10  ;;  %v1619_v10 = vadd.f32 %v12745_v7, %v1561_v23  ;;  %v1573_v23 = vadd.f32 %v12716_v6, %v12713_v43  ;;  %v1589_v43 = vadd.f32 %v12767_v3, %v12764_v35  ;;  %v1764_v6 = vadd.f32 %v12797_v20, %v1693_v44 }
 0x274   :  { %v1711_v40 = vadd.f32 %v12769_v13, %v1644_v50  ;;  %v2066_v17 = vadd.f32 %v19318_v51, %v2008_v54  ;;  %v19321_v50 = vld [vmem:[#allocation32_spill] sm:$0xff]  ;;  %v2169_v54 = vpop.f32.mrf.mxu3 }
 0x275   :  { %v1681_v1 = vadd.f32 %v12721_v29, %v1619_v10  ;;  %v1634_v7 = vadd.f32 %v12771_v0, %v1573_v23  ;;  %v2095_v29 = vpop.f32.mrf.mxu2  ;;  %v2016_v0 = vadd.f32 %v12813_v9, %v12829_v53  ;;  %v1817_v35 = vadd.f32 %v12801_v25, %v1764_v6  ;;  %v19312_v10 = vld [vmem:[#allocation20_spill] sm:$0xff]  ;;  %v19322_v23 = vld [vmem:[#allocation26_spill] sm:$0xff] }
 0x276   :  { %v1654_v33 = vadd.f32 %v12806_v26, %v1589_v43  ;;  %v2096_v42 = vadd.f32 %v2095_v29, %v2032_v45 }
 0x277   :  { %v12902_v55 = vadd.f32 %v12775_v18, %v1681_v1  ;;  %v1699_v13 = vadd.f32 %v12749_v48, %v1634_v7  ;;  %v2086_v18 = vadd.f32 %v2085_v62, %v2024_v59  ;;  %v19310_v48 = vld [vmem:[#allocation22_spill] sm:$0xff]  ;;  %v2071_v62 = vadd.f32 %v19319_v31, %v2012_v47  ;;  %v19325_v59 = vld [vmem:[#allocation31_spill] sm:$0xff] }
 0x278   :  { %v1723_v53 = vadd.f32 %v19317_v8, %v1654_v33  ;;  %v19327_v29 = vld [vmem:[#allocation43_spill] sm:$0xff]  ;;  %v19334_v47 = vld [vmem:[#allocation38_spill] sm:$0xff] }
 0x279   :  { %v2152_v41 = vadd.f32 %v2151_v12, %v2086_v18  ;;  %v2164_v12 = vadd.f32 %v2163_v28, %v2096_v42  ;;  %v19331_v28 = vld [vmem:[#allocation11_spill] sm:$0xff] }
 0x27a   :  { %v12871_v21 = vpop.f32.mrf.mxu0  ;;  %v19326_v43 = vld [vmem:[#allocation40_spill] sm:$0xff] }
 0x27b   :  { %19308 = vst [vmem:[#allocation42_spill] sm:$0xff] %v12871_v21  ;;  %v1577_v21 = vadd.f32 %v12730_v15, %v12725_v63  ;;  %v2275_v63 = vpop.f32.mrf.mxu1  ;;  %v1649_v15 = vadd.f32 %v12799_v5, %v1585_v49  ;;  %v19311_v5 = vld [vmem:[#allocation18_spill] sm:$0xff] }
 0x27c   :  { %v1768_v25 = vadd.f32 %v19311_v5, %v1699_v13  ;;  %v19330_v13 = vld [vmem:[#allocation13_spill] sm:$0xff] }
 0x27d   :  { %v1639_v16 = vadd.f32 %v12781_v22, %v1577_v21  ;;  %v1717_v30 = vadd.f32 %v12779_v61, %v1649_v15  ;;  %v1776_v22 = vadd.f32 %v12825_v46, %v1711_v40  ;;  %v2158_v61 = vadd.f32 %v2157_v37, %v2091_v58  ;;  %v19314_v46 = vld [vmem:[#allocation21_spill] sm:$0xff]  ;;  %v19316_v21 = vld [vmem:[#allocation39_spill] sm:$0xff]  ;;  %v2100_v40 = vpop.f32.mrf.mxu2  ;;  %v19329_v58 = vld [vmem:[#allocation12_spill] sm:$0xff] }
 0x27e   :  { %v2146_v52 = vadd.f32 %v19316_v21, %v2081_v2  ;;  %v19336_v2 = vld [vmem:[#allocation41_spill] sm:$0xff] }
 0x27f   :  { %v1705_v14 = vadd.f32 %v12759_v38, %v1639_v16  ;;  %v1760_v38 = vadd.f32 %v12785_v39, %v1687_v56  ;;  %v1780_v39 = vadd.f32 %v19310_v48, %v1717_v30  ;;  %v1829_v19 = vadd.f32 %v19314_v46, %v1776_v22  ;;  %v19324_v56 = vld [vmem:[#allocation28_spill] sm:$0xff]  ;;  %v19328_v30 = vld [vmem:[#allocation19_spill] sm:$0xff]  ;;  %v19340_v46 = vld [vmem:[#allocation10_spill] sm:$0xff] }
 0x280   :  { %v2128_v7 = vadd.f32 %v19324_v56, %v2066_v17  ;;  %v1821_v34 = vadd.f32 %v19328_v30, %v1768_v25  ;;  %v19337_v25 = vld [vmem:[#allocation15_spill] sm:$0xff]  ;;  %v19345_v17 = vld [vmem:[#allocation33_spill] sm:$0xff] }
 0x281   :  { %v1772_v3 = vadd.f32 %v12817_v60, %v1705_v14  ;;  %v19313_v60 = vld [vmem:[#allocation34_spill] sm:$0xff]  ;;  %v1833_v57 = vadd.f32 %v19315_v32, %v1780_v39  ;;  %v2134_v14 = vadd.f32 %v19325_v59, %v2071_v62  ;;  %v1844_v45 = vadd.f32 %v1829_v19, %v19329_v58  ;;  %v11623_v39 = vld [vmem:[%s19335_s25] ss:$0 sm:$0xff]  ;;  %v19341_v32 = vld [vmem:[#allocation25_spill] sm:$0xff] }
 0x282   :  { %v2218_v11 = vpop.f32.mrf.mxu0  ;;  %v2076_v37 = vadd.f32 %v19313_v60, %v2016_v0  ;;  %v19323_v1 = vld [vmem:[#allocation42_spill] sm:$0xff]  ;;  %v1842_v19 = vadd.f32 %v1821_v34, %v19340_v46 }
 0x283   :  { %v1825_v9 = vadd.f32 %v19312_v10, %v1772_v3  ;;  %v2219_v24 = vadd.f32 %v2218_v11, %v2152_v41  ;;  %v2279_v26 = vpop.f32.mrf.mxu1  ;;  %v2036_v11 = vadd.f32 %v19322_v23, %v19321_v50  ;;  %v2215_v44 = vadd.f32 %v19323_v1, %v2146_v52  ;;  %v19348_v23 = vld [vmem:[#allocation8_spill] sm:$0xff] }
 0x284   :  { %v2140_v49 = vadd.f32 %v19320_v36, %v2076_v37  ;;  %v1845_v0 = vadd.f32 %v1833_v57, %v19330_v13  ;;  %v2207_v41 = vadd.f32 %v19334_v47, %v2134_v14  ;;  %v1809_v10 = vadd.f32 %v19337_v25, %v12902_v55  ;;  %v19339_v37 = vld [vmem:[#allocation37_spill] sm:$0xff]  ;;  %v2306_v14 = vld [vmem:[%s19351_s26] sm:$0x1] }
 0x285   :  { %v1843_v3 = vadd.f32 %v1825_v9, %v19331_v28  ;;  %v2101_v48 = vadd.f32 %v2100_v40, %v2036_v11  ;;  %v2268_v42 = vadd.f32 %v19336_v2, %v2215_v44  ;;  %v19338_v9 = vld [vmem:[#allocation17_spill] sm:$0xff] }
 0x286   :  { %v2211_v6 = vadd.f32 %v19326_v43, %v2140_v49  ;;  %v1813_v60 = vadd.f32 %v19338_v9, %v1760_v38  ;;  %v2260_v31 = vadd.f32 %v19345_v17, %v2207_v41 }
 0x287   :  { %v2170_v21 = vadd.f32 %v2169_v54, %v2101_v48  ;;  %v2289_v36 = vadd.f32 %v2268_v42, %v1842_v19 }
 0x288   :  { %v1840_v11 = vadd.f32 %v1813_v60, %v19348_v23 }
 0x289   :  { %v12974_v40 = vadd.f32 %v11623_v39, %v2289_v36 }
 0x28a   :  { %v2222_v27 = vpop.f32.mrf.mxu0  ;;  %v2287_v59 = vadd.f32 %v2260_v31, %v1840_v11 }
 0x28b   :  { %v2223_v20 = vadd.f32 %v2222_v27, %v2158_v61  ;;  %v2272_v27 = vadd.f32 %v19327_v29, %v2219_v24  ;;  %v19333_v61 = vld [vmem:[#allocation35_spill] sm:$0xff]  ;;  %v2264_v24 = vadd.f32 %v19339_v37, %v2211_v6  ;;  %v2283_v55 = vpop.f32.mrf.mxu1  ;;  %19352 = vst [vmem:[#allocation34_spill] sm:$0xff] %v12974_v40  ;;  %v2551_v37 = vmul.f32 %v12974_v40, %v12974_v40 }
 0x28c   :  { %v2203_v33 = vadd.f32 %v19333_v61, %v2128_v7 }
 0x28d   :  { %v2276_v15 = vadd.f32 %v2275_v63, %v2223_v20  ;;  %v19332_v63 = vld [vmem:[#allocation24_spill] sm:$0xff] }
 0x28e   :  { %v1784_v22 = vadd.f32 %v19332_v63, %v1723_v53  ;;  %v19344_v53 = vld [vmem:[#allocation29_spill] sm:$0xff] }
 0x28f   :  { %v2291_v20 = vadd.f32 %v2276_v15, %v1844_v45  ;;  %v2256_v51 = vadd.f32 %v19344_v53, %v2203_v33  ;;  %v19350_v15 = vld [vmem:[#allocation14_spill] sm:$0xff]  ;;  %v2309_v45 = vsel %vm2307_vm1, %v2306_v14, 0 }
 0x290   :  { %v1837_v57 = vadd.f32 %v19341_v32, %v1784_v22  ;;  %v13018_v54 = vand.u32 4294901760, %v2309_v45 }
 0x291   :  { %v12961_v38 = vadd.f32 %v11623_v39, %v2291_v20 }
 0x292   :  { %v2226_v16 = vpop.f32.mrf.mxu0 }
 0x293   :  { %v2227_v4 = vadd.f32 %v2226_v16, %v2164_v12  ;;  %v19343_v12 = vld [vmem:[#allocation9_spill] sm:$0xff]  ;;  %19346 = vst [vmem:[#allocation18_spill] sm:$0xff] %v12961_v38  ;;  %v19347_v16 = vld [vmem:[#allocation7_spill] sm:$0xff]  ;;  %v12977_v6 = vand.u32 4294901760, %v12961_v38  ;;  %v2553_v22 = vmul.f32 %v12961_v38, %v12961_v38 }
 0x294   :  { %v1841_v8 = vadd.f32 %v1817_v35, %v19343_v12  ;;  %v1839_v50 = vadd.f32 %v1809_v10, %v19347_v16 }
 0x295   :  { %v2280_v18 = vadd.f32 %v2279_v26, %v2227_v4  ;;  %v2290_v26 = vadd.f32 %v2272_v27, %v1843_v3  ;;  %v1846_v4 = vadd.f32 %v1837_v57, %v19350_v15  ;;  %v13003_v3 = vand.u32 4294901760, %v12974_v40 }
 0x296   :  { %v2288_v1 = vadd.f32 %v2264_v24, %v1841_v8  ;;  %v2286_v7 = vadd.f32 %v2256_v51, %v1839_v50  ;;  %v13007_v63 = vsub.f32 %v12961_v38, %v12977_v6  ;;  %v13049_v60 = vand.u32 4294901760, %v2553_v22 }
 0x297   :  { %v2292_v5 = vadd.f32 %v2280_v18, %v1845_v0  ;;  %v12965_v44 = vadd.f32 %v11623_v39, %v2290_v26  ;;  %v12995_v0 = vadd.f32 %v11623_v39, %v2287_v59  ;;  %v13047_v9 = vsub.f32 %v12974_v40, %v13003_v3 }
 0x298   :  { %v12979_v29 = vadd.f32 %v11623_v39, %v2288_v1  ;;  %v12993_v13 = vadd.f32 %v11623_v39, %v2286_v7  ;;  %v2366_v10 = vand.u32 4294901760, %v13007_v63  ;;  %v13058_v26 = vsub.f32 %v2309_v45, %v13018_v54 }
 0x299   :  { %v12956_v52 = vadd.f32 %v11623_v39, %v2292_v5  ;;  %19349 = vst [vmem:[#allocation20_spill] sm:$0xff] %v12965_v44  ;;  %v12982_v27 = vand.u32 4294901760, %v12965_v44  ;;  %v2552_v2 = vmul.f32 %v12965_v44, %v12965_v44  ;;  %v13033_v42 = vand.u32 4294901760, %v12995_v0 }
 0x29a   :  { %v2230_v62 = vpop.f32.mrf.mxu0  ;;  %19353 = vst [vmem:[#allocation21_spill] sm:$0xff] %v12979_v29  ;;  %v13012_v61 = vand.u32 4294901760, %v12979_v29  ;;  %v13036_v20 = vand.u32 4294901760, %v12993_v13  ;;  %v2550_v12 = vmul.f32 %v12979_v29, %v12979_v29  ;;  %v2367_v53 = vsub.f32 %v13007_v63, %v2366_v10 }
 0x29b   :  { %19342 = vst [vmem:[#allocation22_spill] sm:$0xff] %v12956_v52  ;;  %v2231_v49 = vadd.f32 %v2230_v62, %v2170_v21  ;;  %v12969_v56 = vand.u32 4294901760, %v12956_v52  ;;  %v2554_v34 = vmul.f32 %v12956_v52, %v12956_v52  ;;  %v13016_v33 = vsub.f32 %v12965_v44, %v12982_v27 }
 0x29c   :  { %19355 = vst [vmem:[#allocation39_spill] sm:$0xff] %v12993_v13  ;;  %v13055_v24 = vsub.f32 %v12979_v29, %v13012_v61  ;;  %v13073_v21 = vand.u32 4294901760, %v2552_v2  ;;  %v2378_v51 = vand.u32 4294901760, %v13047_v9  ;;  %v13085_v17 = vsub.f32 %v12995_v0, %v13033_v42 }
 0x29d   :  { %v2284_v35 = vadd.f32 %v2283_v55, %v2231_v49  ;;  %v12990_v58 = vsub.f32 %v12956_v52, %v12969_v56  ;;  %19356 = vst [vmem:[#allocation16_spill] sm:$0xff] %v12995_v0  ;;  %v13023_v41 = vand.u32 4294901760, %v2554_v34  ;;  %v2372_v57 = vand.u32 4294901760, %v13016_v33 }
 0x29e   :  { %v13089_v31 = vsub.f32 %v2553_v22, %v13049_v60  ;;  %v13091_v62 = vand.u32 4294901760, %v2551_v37  ;;  %v2549_v55 = vmul.f32 %v12995_v0, %v12995_v0  ;;  %v13096_v36 = vand.u32 4294901760, %v13058_v26 }
 0x29f   :  { %v2293_v43 = vadd.f32 %v2284_v35, %v1846_v4  ;;  %v13063_v46 = vsub.f32 %v2554_v34, %v13023_v41  ;;  %v2373_v16 = vsub.f32 %v13016_v33, %v2372_v57  ;;  %v2384_v50 = vand.u32 4294901760, %v13055_v24 }
 0x2a0   :  { %v13105_v23 = vsub.f32 %v12993_v13, %v13036_v20  ;;  %v13110_v11 = vsub.f32 %v2552_v2, %v13073_v21  ;;  %v13112_v1 = vand.u32 4294901760, %v2550_v12  ;;  %v2548_v15 = vmul.f32 %v12993_v13, %v12993_v13 }
 0x2a1   :  { %v12984_v30 = vadd.f32 %v11623_v39, %v2293_v43  ;;  %v2360_v39 = vand.u32 4294901760, %v12990_v58  ;;  %v2368_v4 = vand.u32 4294901760, %v2367_v53  ;;  %v2379_v35 = vsub.f32 %v13047_v9, %v2378_v51 }
 0x2a2   :  { %v2390_v7 = vand.u32 4294901760, %v13085_v17  ;;  %v13124_v59 = vsub.f32 %v2551_v37, %v13091_v62  ;;  %v13126_v14 = vand.u32 4294901760, %v2549_v55  ;;  %v2338_v43 = vsub.f32 %v13058_v26, %v13096_v36 }
 0x2a3   :  { %19354 = vst [vmem:[#allocation23_spill] sm:$0xff] %v12984_v30  ;;  %v12998_v18 = vand.u32 4294901760, %v12984_v30  ;;  %v2555_v28 = vmul.f32 %v12984_v30, %v12984_v30  ;;  %v2361_v32 = vsub.f32 %v12990_v58, %v2360_v39  ;;  %v2374_v34 = vand.u32 4294901760, %v2373_v16 }
 0x2a4   :  { %v2385_v45 = vsub.f32 %v13055_v24, %v2384_v50  ;;  %v13138_v22 = vsub.f32 %v2550_v12, %v13112_v1  ;;  %v13140_v2 = vand.u32 4294901760, %v2548_v15  ;;  %v2380_v37 = vand.u32 4294901760, %v2379_v35  ;;  %v2804_v35 = vld [vmem:[%s19357_s27 + $0x58] sm:$0xff] }
 0x2a5   :  { %2320 = vmatpush.msrb.mxu2 %v12998_v18  ;;  %v13021_v47 = vand.u32 4294901760, %v2555_v28  ;;  %v13027_v48 = vsub.f32 %v12984_v30, %v12998_v18  ;;  %v2362_v49 = vand.u32 4294901760, %v2361_v32  ;;  %v13149_v32 = vsub.f32 %v2549_v55, %v13126_v14 }
 0x2a6   :  { %v2386_v12 = vand.u32 4294901760, %v2385_v45  ;;  %v13275_v45 = vand.u32 4294901760, %v2804_v35 }
 0x2a7   :  { %2322 = vmatpush.msrb.mxu2 %v12969_v56  ;;  %2697 = vmatpush.msra.mxu1 %v13021_v47  ;;  %v13041_v5 = vsub.f32 %v2555_v28, %v13021_v47  ;;  %v2354_v25 = vand.u32 4294901760, %v13027_v48  ;;  %v2396_v28 = vand.u32 4294901760, %v13105_v23 }
 0x2a9   :  { %2324 = vmatpush.msrb.mxu2 %v12977_v6  ;;  %2660 = vmatpush.msrb.mxu0 %v13041_v5  ;;  %v2355_v19 = vsub.f32 %v13027_v48, %v2354_v25  ;;  %v2397_v53 = vsub.f32 %v13105_v23, %v2396_v28 }
 0x2aa   :  { %2699 = vmatpush.msra.mxu1 %v13023_v41 }
 0x2ab   :  { %2326 = vmatpush.msrb.mxu2 %v12982_v27  ;;  %2663 = vmatpush.msrb.mxu0 %v13063_v46  ;;  %v2356_v8 = vand.u32 4294901760, %v2355_v19  ;;  %v2391_v19 = vsub.f32 %v13085_v17, %v2390_v7  ;;  %v2398_v16 = vand.u32 4294901760, %v2397_v53  ;;  %v2803_v53 = vld [vmem:[%s19357_s27 + $0x50] sm:$0xff] }
 0x2ac   :  { %2701 = vmatpush.msra.mxu1 %v13049_v60 }
 0x2ad   :  { %2328 = vmatpush.msrb.mxu2 %v13003_v3  ;;  %2357 = vmatpush.msra.mxu3 %v2356_v8  ;;  %v13151_v8 = vand.u32 4294901760, %v2338_v43  ;;  %v2392_v55 = vand.u32 4294901760, %v2391_v19 }
 0x2ae   :  { %2666 = vmatpush.msrb.mxu0 %v13089_v31  ;;  %2703 = vmatpush.msra.mxu1 %v13073_v21 }
 0x2af   :  { %2330 = vmatpush.msrb.mxu2 %v13012_v61  ;;  %2363 = vmatpush.msra.mxu3 %v2362_v49  ;;  %v13158_v49 = vsub.f32 %v2548_v15, %v13140_v2 }
 0x2b0   :  { %2669 = vmatpush.msrb.mxu0 %v13110_v11  ;;  %2705 = vmatpush.msra.mxu1 %v13091_v62 }
 0x2b1   :  { %2332 = vmatpush.msrb.mxu2 %v13033_v42  ;;  %2369 = vmatpush.msra.mxu3 %v2368_v4 }
 0x2b2   :  { %2672 = vmatpush.msrb.mxu0 %v13124_v59  ;;  %2707 = vmatpush.msra.mxu1 %v13112_v1 }
 0x2b3   :  { %2334 = vmatpush.msrb.mxu2 %v13036_v20  ;;  %2375 = vmatpush.msra.mxu3 %v2374_v34 }
 0x2b4   :  { %2675 = vmatpush.msrb.mxu0 %v13138_v22  ;;  %2709 = vmatpush.msra.mxu1 %v13126_v14 }
 0x2b5   :  { %2415 = vmatpush.msra.mxu2 %v13027_v48  ;;  %2381 = vmatpush.msra.mxu3 %v2380_v37  ;;  %v19155_v48 = vand.u32 4294901760, %v13124_v59 }
 0x2b6   :  { %2678 = vmatpush.msrb.mxu0 %v13149_v32  ;;  %2711 = vmatpush.msra.mxu1 %v13140_v2 }
 0x2b7   :  { %2418 = vmatpush.msra.mxu2 %v12990_v58  ;;  %2387 = vmatpush.msra.mxu3 %v2386_v12  ;;  %v2599_v58 = vand.u32 4294901760, %v13041_v5  ;;  %v2624_v43 = vsub.f32 %v13124_v59, %v19155_v48 }
 0x2b8   :  { %2681 = vmatpush.msrb.mxu0 %v13158_v49  ;;  %2340 = vmatmul.f32.vlgmr.msrb.gmra.mxu2 %v13151_v8 }
 0x2b9   :  { %2421 = vmatpush.msra.mxu2 %v13007_v63  ;;  %2393 = vmatpush.msra.mxu3 %v2392_v55  ;;  %v19152_v63 = vand.u32 4294901760, %v13149_v32 }
 0x2ba   :  { %2684 = vmatmul.f32.vlgmr.msrb.gmra.mxu0 %v13058_v26  ;;  %2715 = vmatmul.f32.vlgmr.msra.gmra.mxu1 %v13096_v36 }
 0x2bb   :  { %2424 = vmatpush.msra.mxu2 %v13016_v33  ;;  %2399 = vmatpush.msra.mxu3 %v2398_v16 }
 0x2bc   :  { %2401 = vmatmul.f32.vlgmr.msra.gmra.mxu3 %v13018_v54 }
 0x2bd   :  { %2452 = vmatpush.msrb.mxu3 %v12998_v18  ;;  %2427 = vmatpush.msra.mxu2 %v13047_v9 }
 0x2bf   :  { %2454 = vmatpush.msrb.mxu3 %v12969_v56  ;;  %2430 = vmatpush.msra.mxu2 %v13055_v24 }
 0x2c1   :  { %2456 = vmatpush.msrb.mxu3 %v12977_v6  ;;  %2433 = vmatpush.msra.mxu2 %v13085_v17  ;;  %v13250_v17 = vsub.f32 %v13149_v32, %v19152_v63 }
 0x2c3   :  { %2458 = vmatpush.msrb.mxu3 %v12982_v27  ;;  %2436 = vmatpush.msra.mxu2 %v13105_v23 }
 0x2c4   :  { %2439 = vmatmul.f32.vlgmr.msra.gmra.mxu2 %v13058_v26  ;;  %v2805_v26 = vld [vmem:[%s19357_s27 + $0x60] sm:$0xff] }
 0x2c5   :  { %2485 = vmatpush.msrb.mxu2 %v2354_v25  ;;  %2460 = vmatpush.msrb.mxu3 %v13003_v3  ;;  %v2806_v25 = vld [vmem:[%s19357_s27 + $0x68] sm:$0xff] }
 0x2c6   :  { %v13239_v24 = vand.u32 4294901760, %v2806_v25 }
 0x2c7   :  { %2489 = vmatpush.msrb.mxu2 %v2360_v39  ;;  %2462 = vmatpush.msrb.mxu3 %v13012_v61  ;;  %v2808_v39 = vld [vmem:[%s19357_s27 + $0x78] sm:$0xff] }
 0x2c8   :  { %v13263_v4 = vsub.f32 %v2806_v25, %v13239_v24  ;;  %v2625_v25 = vand.u32 4294901760, %v2624_v43  ;;  %v2801_v43 = vld [vmem:[%s19357_s27 + $0x40] sm:$0xff] }
 0x2c9   :  { %2493 = vmatpush.msrb.mxu2 %v2366_v10  ;;  %2464 = vmatpush.msrb.mxu3 %v13033_v42  ;;  %v13235_v10 = vand.u32 4294901760, %v2808_v39 }
 0x2ca   :  { %v13288_v12 = vand.u32 4294901760, %v13263_v4 }
 0x2cb   :  { %2497 = vmatpush.msrb.mxu2 %v2372_v57  ;;  %2466 = vmatpush.msrb.mxu3 %v13036_v20  ;;  %v13257_v23 = vsub.f32 %v2808_v39, %v13235_v10 }
 0x2cc   :  { %2470 = vmatmul.f32.vlgmr.msrb.gmra.mxu3 %v13096_v36  ;;  %v13252_v36 = vand.u32 4294901760, %v2805_v26  ;;  %2810 = vmatpush.msra.mxu0 %v13235_v10  ;;  %v2865_v39 = vsub.f32 %v13263_v4, %v13288_v12 }
 0x2cd   :  { %2528 = vmatpush.msra.mxu3 %v12998_v18  ;;  %2501 = vmatpush.msrb.mxu2 %v2378_v51  ;;  %v2605_v18 = vand.u32 4294901760, %v13063_v46  ;;  %v13282_v37 = vand.u32 4294901760, %v13257_v23 }
 0x2ce   :  { %v13273_v34 = vsub.f32 %v2805_v26, %v13252_v36 }
 0x2cf   :  { %2530 = vmatpush.msra.mxu3 %v12969_v56  ;;  %2505 = vmatpush.msrb.mxu2 %v2384_v50  ;;  %v2600_v56 = vsub.f32 %v13041_v5, %v2599_v58  ;;  %v19154_v50 = vand.u32 4294901760, %v13158_v49 }
 0x2d0   :  { %v13295_v16 = vand.u32 4294901760, %v13273_v34 }
 0x2d1   :  { %2532 = vmatpush.msra.mxu3 %v12977_v6  ;;  %2509 = vmatpush.msrb.mxu2 %v2390_v7  ;;  %v2611_v6 = vand.u32 4294901760, %v13089_v31 }
 0x2d2   :  { %v2871_v63 = vsub.f32 %v13273_v34, %v13295_v16 }
 0x2d3   :  { %2534 = vmatpush.msra.mxu3 %v12982_v27  ;;  %2513 = vmatpush.msrb.mxu2 %v2396_v28  ;;  %v2606_v27 = vsub.f32 %v13063_v46, %v2605_v18  ;;  %v2612_v33 = vsub.f32 %v13089_v31, %v2611_v6  ;;  %v2798_v31 = vld [vmem:[%s19357_s27 + $0x28] sm:$0xff] }
 0x2d4   :  { %2515 = vmatmul.f32.vlgmr.msrb.gmra.mxu2 %v13018_v54 }
 0x2d5   :  { %2536 = vmatpush.msra.mxu3 %v13003_v3  ;;  %2565 = vmatpush.msra.mxu2 %v13021_v47  ;;  %v19156_v3 = vand.u32 4294901760, %v13110_v11  ;;  %v2607_v57 = vand.u32 4294901760, %v2606_v27  ;;  %v2613_v7 = vand.u32 4294901760, %v2612_v33  ;;  %v13300_v27 = vand.u32 4294901760, %v2803_v53 }
 0x2d7   :  { %2538 = vmatpush.msra.mxu3 %v13012_v61  ;;  %2567 = vmatpush.msra.mxu2 %v13023_v41  ;;  %v2601_v61 = vand.u32 4294901760, %v2600_v56  ;;  %v2618_v51 = vsub.f32 %v13110_v11, %v19156_v3  ;;  %v13298_v56 = vsub.f32 %v2804_v35, %v13275_v45 }
 0x2d9   :  { %2540 = vmatpush.msra.mxu3 %v13033_v42  ;;  %2569 = vmatpush.msra.mxu2 %v13049_v60  ;;  %v2807_v42 = vld [vmem:[%s19357_s27 + $0x70] sm:$0xff]  ;;  %v2619_v55 = vand.u32 4294901760, %v2618_v51  ;;  %v13314_v26 = vand.u32 4294901760, %v13298_v56 }
 0x2da   :  { %v13237_v9 = vand.u32 4294901760, %v2807_v42 }
 0x2db   :  { %2542 = vmatpush.msra.mxu3 %v13036_v20  ;;  %2571 = vmatpush.msra.mxu2 %v13073_v21  ;;  %v19153_v20 = vand.u32 4294901760, %v13138_v22  ;;  %v2877_v5 = vsub.f32 %v13298_v56, %v13314_v26 }
 0x2dc   :  { %2544 = vmatmul.f32.vlgmr.msra.gmra.mxu3 %v13018_v54  ;;  %v13260_v15 = vsub.f32 %v2807_v42, %v13237_v9  ;;  %2812 = vmatpush.msra.mxu0 %v13237_v9  ;;  %v2802_v42 = vld [vmem:[%s19357_s27 + $0x48] sm:$0xff] }
 0x2dd   :  { %2602 = vmatpush.msrb.mxu3 %v2601_v61  ;;  %2573 = vmatpush.msra.mxu2 %v13091_v62  ;;  %v2630_v28 = vsub.f32 %v13138_v22, %v19153_v20  ;;  %v2853_v61 = vsub.f32 %v13257_v23, %v13282_v37  ;;  %v13319_v51 = vand.u32 4294901760, %v2802_v42  ;;  %v13345_v20 = vand.u32 4294901760, %v2865_v39 }
 0x2de   :  { %v13285_v19 = vand.u32 4294901760, %v13260_v15  ;;  %2814 = vmatpush.msra.mxu0 %v13239_v24  ;;  %v13382_v48 = vand.u32 4294901760, %v2877_v5 }
 0x2df   :  { %2608 = vmatpush.msrb.mxu3 %v2607_v57  ;;  %2575 = vmatpush.msra.mxu2 %v13112_v1  ;;  %v13317_v57 = vsub.f32 %v2803_v53, %v13300_v27  ;;  %v13322_v35 = vand.u32 4294901760, %v2853_v61  ;;  %v2631_v53 = vand.u32 4294901760, %v2630_v28  ;;  %v2800_v28 = vld [vmem:[%s19357_s27 + $0x38] sm:$0xff] }
 0x2e0   :  { %v2859_v33 = vsub.f32 %v13260_v15, %v13285_v19  ;;  %2816 = vmatpush.msra.mxu0 %v13252_v36  ;;  %v13360_v39 = vand.u32 4294901760, %v2800_v28 }
 0x2e1   :  { %2614 = vmatpush.msrb.mxu3 %v2613_v7  ;;  %2577 = vmatpush.msra.mxu2 %v13126_v14  ;;  %v13338_v61 = vand.u32 4294901760, %v13317_v57 }
 0x2e2   :  { %v13324_v7 = vand.u32 4294901760, %v2859_v33  ;;  %v13341_v33 = vsub.f32 %v2802_v42, %v13319_v51  ;;  %2855 = vmatpush.msrb.mxu1 %v13322_v35  ;;  %v2637_v42 = vand.u32 4294901760, %v13250_v17  ;;  %2818 = vmatpush.msra.mxu0 %v13275_v45 }
 0x2e3   :  { %2620 = vmatpush.msrb.mxu3 %v2619_v55  ;;  %2579 = vmatpush.msra.mxu2 %v13140_v2  ;;  %v2642_v55 = vsub.f32 %v13158_v49, %v19154_v50  ;;  %v2883_v50 = vsub.f32 %v13317_v57, %v13338_v61 }
 0x2e4   :  { %2585 = vmatmul.f32.vlgmr.msra.gmra.mxu2 %v13151_v8  ;;  %v13358_v8 = vand.u32 4294901760, %v13341_v33  ;;  %2861 = vmatpush.msrb.mxu1 %v13324_v7 }
 0x2e5   :  { %2730 = vmatpush.msrb.mxu2 %v2599_v58  ;;  %2626 = vmatpush.msrb.mxu3 %v2625_v25  ;;  %v13349_v58 = vand.u32 4294901760, %v2801_v43  ;;  %v13363_v25 = vand.u32 4294901760, %v2871_v63  ;;  %v2643_v17 = vand.u32 4294901760, %v2642_v55  ;;  %v13377_v63 = vsub.f32 %v2800_v28, %v13360_v39 }
 0x2e6   :  { %2867 = vmatpush.msrb.mxu1 %v13345_v20  ;;  %2820 = vmatpush.msra.mxu0 %v13300_v27  ;;  %v13401_v28 = vand.u32 4294901760, %v2798_v31 }
 0x2e7   :  { %2734 = vmatpush.msrb.mxu2 %v2605_v18  ;;  %2632 = vmatpush.msrb.mxu3 %v2631_v53  ;;  %v13369_v46 = vsub.f32 %v2801_v43, %v13349_v58  ;;  %v2799_v18 = vld [vmem:[%s19357_s27 + $0x30] sm:$0xff]  ;;  %v2889_v43 = vsub.f32 %v13341_v33, %v13358_v8  ;;  %v13396_v55 = vand.u32 4294901760, %v13377_v63 }
 0x2e8   :  { %v13379_v53 = vand.u32 4294901760, %v2799_v18  ;;  %2873 = vmatpush.msrb.mxu1 %v13363_v25  ;;  %2822 = vmatpush.msra.mxu0 %v13319_v51 }
 0x2e9   :  { %2738 = vmatpush.msrb.mxu2 %v2611_v6  ;;  %2638 = vmatpush.msrb.mxu3 %v2637_v42  ;;  %v13387_v3 = vand.u32 4294901760, %v13369_v46  ;;  %v19358_v6 = vand.u32 4294901760, %v13110_v11  ;;  %v13405_v42 = vand.u32 4294901760, %v2883_v50  ;;  %v2797_v11 = vld [vmem:[%s19357_s27 + $0x20] sm:$0xff]  ;;  %v13425_v30 = vand.u32 4294901760, %v2889_v43 }
 0x2ea   :  { %v13399_v5 = vsub.f32 %v2799_v18, %v13379_v53  ;;  %v13421_v50 = vand.u32 4294901760, %v2797_v11  ;;  %2879 = vmatpush.msrb.mxu1 %v13382_v48  ;;  %v2901_v52 = vsub.f32 %v13377_v63, %v13396_v55  ;;  %2824 = vmatpush.msra.mxu0 %v13349_v58 }
 0x2eb   :  { %2742 = vmatpush.msrb.mxu2 %v19358_v6  ;;  %2644 = vmatpush.msrb.mxu3 %v2643_v17  ;;  %v19359_v17 = vand.u32 4294901760, %v13124_v59  ;;  %v2895_v18 = vsub.f32 %v13369_v46, %v13387_v3  ;;  %v2796_v59 = vld [vmem:[%s19357_s27 + $0x18] sm:$0xff] }
 0x2ec   :  { %2646 = vmatmul.f32.vlgmr.msrb.gmra.mxu3 %v13018_v54  ;;  %v13416_v6 = vand.u32 4294901760, %v13399_v5  ;;  %2885 = vmatpush.msrb.mxu1 %v13405_v42  ;;  %v13443_v43 = vand.u32 4294901760, %v2796_v59 }
 0x2ed   :  { %2773 = vmatpush.msra.mxu3 %v13021_v47  ;;  %2746 = vmatpush.msrb.mxu2 %v19359_v17  ;;  %v13419_v47 = vsub.f32 %v2798_v31, %v13401_v28  ;;  %v19360_v17 = vand.u32 4294901760, %v13138_v22  ;;  %v13436_v31 = vsub.f32 %v2797_v11, %v13421_v50  ;;  %v2795_v22 = vld [vmem:[%s19357_s27 + $0x10] sm:$0xff]  ;;  %v13450_v38 = vand.u32 4294901760, %v2895_v18 }
 0x2ee   :  { %v2907_v11 = vsub.f32 %v13399_v5, %v13416_v6  ;;  %2891 = vmatpush.msrb.mxu1 %v13425_v30  ;;  %v13463_v40 = vsub.f32 %v2796_v59, %v13443_v43  ;;  %v19362_v18 = vand.u32 4294901760, %v13158_v49  ;;  %2826 = vmatpush.msra.mxu0 %v13360_v39 }
 0x2ef   :  { %2775 = vmatpush.msra.mxu3 %v13023_v41  ;;  %2750 = vmatpush.msrb.mxu2 %v19360_v17  ;;  %v13441_v41 = vand.u32 4294901760, %v13419_v47  ;;  %v19361_v17 = vand.u32 4294901760, %v13149_v32  ;;  %v13460_v44 = vand.u32 4294901760, %v13436_v31  ;;  %v2794_v32 = vld [vmem:[%s19357_s27 + $0x8] sm:$0xff] }
 0x2f0   :  { %v13476_v29 = vand.u32 4294901760, %v2794_v32  ;;  %v13483_v0 = vand.u32 4294901760, %v13463_v40  ;;  %2897 = vmatpush.msrb.mxu1 %v13450_v38  ;;  %2828 = vmatpush.msra.mxu0 %v13379_v53 }
 0x2f1   :  { %2777 = vmatpush.msra.mxu3 %v13049_v60  ;;  %2754 = vmatpush.msrb.mxu2 %v19361_v17  ;;  %v13455_v60 = vand.u32 4294901760, %v2795_v22  ;;  %v13470_v17 = vand.u32 4294901760, %v2901_v52  ;;  %v2913_v59 = vsub.f32 %v13419_v47, %v13441_v41  ;;  %v13487_v52 = vand.u32 4294901760, %v2907_v11 }
 0x2f2   :  { %v13490_v49 = vsub.f32 %v2794_v32, %v13476_v29  ;;  %v2925_v32 = vsub.f32 %v13463_v40, %v13483_v0  ;;  %2830 = vmatpush.msra.mxu0 %v13401_v28 }
 0x2f3   :  { %2779 = vmatpush.msra.mxu3 %v13073_v21  ;;  %2758 = vmatpush.msrb.mxu2 %v19362_v18  ;;  %v13474_v21 = vsub.f32 %v2795_v22, %v13455_v60  ;;  %v13502_v11 = vand.u32 4294901760, %v2913_v59 }
 0x2f4   :  { %2760 = vmatmul.f32.vlgmr.msrb.gmra.mxu2 %v13018_v54  ;;  %2903 = vmatpush.msrb.mxu1 %v13470_v17  ;;  %v13522_v59 = vand.u32 4294901760, %v2925_v32  ;;  %v2793_v32 = vld [vmem:[%s19357_s27] sm:$0xff] }
 0x2f5   :  { %2781 = vmatpush.msra.mxu3 %v13091_v62  ;;  %2953 = vmatpush.msra.mxu2 %v13257_v23  ;;  %v2919_v62 = vsub.f32 %v13436_v31, %v13460_v44  ;;  %v13497_v22 = vand.u32 4294901760, %v13474_v21 }
 0x2f6   :  { %2909 = vmatpush.msrb.mxu1 %v13487_v52  ;;  %2832 = vmatpush.msra.mxu0 %v13421_v50 }
 0x2f7   :  { %2783 = vmatpush.msra.mxu3 %v13112_v1  ;;  %2956 = vmatpush.msra.mxu2 %v13260_v15  ;;  %v13508_v1 = vand.u32 4294901760, %v13490_v49  ;;  %v13513_v18 = vand.u32 4294901760, %v2919_v62 }
 0x2f8   :  { %2915 = vmatpush.msrb.mxu1 %v13502_v11  ;;  %2834 = vmatpush.msra.mxu0 %v13443_v43 }
 0x2f9   :  { %2785 = vmatpush.msra.mxu3 %v13126_v14  ;;  %2959 = vmatpush.msra.mxu2 %v13263_v4  ;;  %v2931_v14 = vsub.f32 %v13474_v21, %v13497_v22 }
 0x2fa   :  { %2921 = vmatpush.msrb.mxu1 %v13513_v18  ;;  %2836 = vmatpush.msra.mxu0 %v13455_v60 }
 0x2fb   :  { %2787 = vmatpush.msra.mxu3 %v13140_v2  ;;  %2962 = vmatpush.msra.mxu2 %v13273_v34  ;;  %v2937_v2 = vsub.f32 %v13490_v49, %v13508_v1 }
 0x2fc   :  { %2789 = vmatmul.f32.vlgmr.msra.gmra.mxu3 %v13018_v54  ;;  %v13530_v54 = vand.u32 4294901760, %v2931_v14  ;;  %2927 = vmatpush.msrb.mxu1 %v13522_v59  ;;  %v13565_v14 = vand.u32 4294901760, %v2793_v32 }
 0x2fd   :  { %3006 = vmatpush.msrb.mxu3 %v13235_v10  ;;  %2965 = vmatpush.msra.mxu2 %v13298_v56  ;;  %v13536_v62 = vand.u32 4294901760, %v2937_v2 }
 0x2fe   :  { %2838 = vmatpush.msra.mxu0 %v13476_v29  ;;  %2933 = vmatpush.msrb.mxu1 %v13530_v54  ;;  %v13568_v2 = vsub.f32 %v2793_v32, %v13565_v14 }
 0x2ff   :  { %3008 = vmatpush.msrb.mxu3 %v13237_v9  ;;  %2968 = vmatpush.msra.mxu2 %v13317_v57 }
 0x300   :  { %2939 = vmatpush.msrb.mxu1 %v13536_v62  ;;  %2840 = vmatpush.msra.mxu0 %v13565_v14  ;;  %v13575_v13 = vand.u32 4294901760, %v13568_v2 }
 0x301   :  { %3010 = vmatpush.msrb.mxu3 %v13239_v24  ;;  %2971 = vmatpush.msra.mxu2 %v13341_v33 }
 0x302   :  { %3047 = vmatpush.msrb.mxu0 %v13282_v37  ;;  %v2943_v32 = vsub.f32 %v13568_v2, %v13575_v13 }
 0x303   :  { %3012 = vmatpush.msrb.mxu3 %v13252_v36  ;;  %2974 = vmatpush.msra.mxu2 %v13369_v46 }
 0x304   :  { %3051 = vmatpush.msrb.mxu0 %v13285_v19 }
 0x305   :  { %3014 = vmatpush.msrb.mxu3 %v13275_v45  ;;  %2977 = vmatpush.msra.mxu2 %v13377_v63 }
 0x306   :  { %3055 = vmatpush.msrb.mxu0 %v13288_v12 }
 0x307   :  { %3016 = vmatpush.msrb.mxu3 %v13300_v27  ;;  %2980 = vmatpush.msra.mxu2 %v13399_v5 }
 0x308   :  { %3059 = vmatpush.msrb.mxu0 %v13295_v16 }
 0x309   :  { %3018 = vmatpush.msrb.mxu3 %v13319_v51  ;;  %2983 = vmatpush.msra.mxu2 %v13419_v47 }
 0x30a   :  { %3063 = vmatpush.msrb.mxu0 %v13314_v26 }
 0x30b   :  { %3020 = vmatpush.msrb.mxu3 %v13349_v58  ;;  %2986 = vmatpush.msra.mxu2 %v13436_v31 }
 0x30c   :  { %3067 = vmatpush.msrb.mxu0 %v13338_v61 }
 0x30d   :  { %3022 = vmatpush.msrb.mxu3 %v13360_v39  ;;  %2989 = vmatpush.msra.mxu2 %v13463_v40 }
 0x30e   :  { %3071 = vmatpush.msrb.mxu0 %v13358_v8 }
 0x30f   :  { %3024 = vmatpush.msrb.mxu3 %v13379_v53  ;;  %2992 = vmatpush.msra.mxu2 %v13474_v21 }
 0x310   :  { %3075 = vmatpush.msrb.mxu0 %v13387_v3 }
 0x311   :  { %3026 = vmatpush.msrb.mxu3 %v13401_v28  ;;  %2995 = vmatpush.msra.mxu2 %v13490_v49 }
 0x312   :  { %3079 = vmatpush.msrb.mxu0 %v13396_v55 }
 0x313   :  { %3028 = vmatpush.msrb.mxu3 %v13421_v50  ;;  %2998 = vmatpush.msra.mxu2 %v13568_v2 }
 0x314   :  { %3083 = vmatpush.msrb.mxu0 %v13416_v6 }
 0x315   :  { %3030 = vmatpush.msrb.mxu3 %v13443_v43  ;;  %3151 = vmatpush.msrb.mxu2 %v13235_v10 }
 0x316   :  { %3087 = vmatpush.msrb.mxu0 %v13441_v41 }
 0x317   :  { %3032 = vmatpush.msrb.mxu3 %v13455_v60  ;;  %3153 = vmatpush.msrb.mxu2 %v13237_v9 }
 0x318   :  { %3091 = vmatpush.msrb.mxu0 %v13460_v44 }
 0x319   :  { %3034 = vmatpush.msrb.mxu3 %v13476_v29  ;;  %3155 = vmatpush.msrb.mxu2 %v13239_v24 }
 0x31a   :  { %3095 = vmatpush.msrb.mxu0 %v13483_v0 }
 0x31b   :  { %3036 = vmatpush.msrb.mxu3 %v13565_v14  ;;  %3157 = vmatpush.msrb.mxu2 %v13252_v36 }
 0x31c   :  { %3099 = vmatpush.msrb.mxu0 %v13497_v22 }
 0x31d   :  { %3196 = vmatpush.msra.mxu3 %v13322_v35  ;;  %v2944_v35 = vand.u32 4294901760, %v2943_v32  ;;  %3159 = vmatpush.msrb.mxu2 %v13275_v45 }
 0x31e   :  { %3103 = vmatpush.msrb.mxu0 %v13508_v1 }
 0x31f   :  { %3202 = vmatpush.msra.mxu3 %v13324_v7  ;;  %2945 = vmatpush.msrb.mxu1 %v2944_v35 }
 0x320   :  { %3161 = vmatpush.msrb.mxu2 %v13300_v27  ;;  %3107 = vmatpush.msrb.mxu0 %v13575_v13 }
 0x321   :  { %3208 = vmatpush.msra.mxu3 %v13345_v20  ;;  %3114 = vmatpush.msra.mxu1 %v13235_v10 }
 0x322   :  { %3163 = vmatpush.msrb.mxu2 %v13319_v51 }
 0x323   :  { %3214 = vmatpush.msra.mxu3 %v13363_v25  ;;  %3116 = vmatpush.msra.mxu1 %v13237_v9 }
 0x324   :  { %3165 = vmatpush.msrb.mxu2 %v13349_v58 }
 0x325   :  { %3220 = vmatpush.msra.mxu3 %v13382_v48  ;;  %3118 = vmatpush.msra.mxu1 %v13239_v24 }
 0x326   :  { %3167 = vmatpush.msrb.mxu2 %v13360_v39 }
 0x327   :  { %3226 = vmatpush.msra.mxu3 %v13405_v42  ;;  %3120 = vmatpush.msra.mxu1 %v13252_v36 }
 0x328   :  { %3169 = vmatpush.msrb.mxu2 %v13379_v53 }
 0x329   :  { %3232 = vmatpush.msra.mxu3 %v13425_v30  ;;  %3122 = vmatpush.msra.mxu1 %v13275_v45 }
 0x32a   :  { %3171 = vmatpush.msrb.mxu2 %v13401_v28 }
 0x32b   :  { %3238 = vmatpush.msra.mxu3 %v13450_v38  ;;  %3124 = vmatpush.msra.mxu1 %v13300_v27 }
 0x32c   :  { %3173 = vmatpush.msrb.mxu2 %v13421_v50 }
 0x32d   :  { %3244 = vmatpush.msra.mxu3 %v13470_v17  ;;  %3126 = vmatpush.msra.mxu1 %v13319_v51 }
 0x32e   :  { %3175 = vmatpush.msrb.mxu2 %v13443_v43 }
 0x32f   :  { %3250 = vmatpush.msra.mxu3 %v13487_v52  ;;  %3128 = vmatpush.msra.mxu1 %v13349_v58 }
 0x330   :  { %3177 = vmatpush.msrb.mxu2 %v13455_v60 }
 0x331   :  { %3256 = vmatpush.msra.mxu3 %v13502_v11  ;;  %3130 = vmatpush.msra.mxu1 %v13360_v39 }
 0x332   :  { %3179 = vmatpush.msrb.mxu2 %v13476_v29 }
 0x333   :  { %3262 = vmatpush.msra.mxu3 %v13513_v18  ;;  %3132 = vmatpush.msra.mxu1 %v13379_v53 }
 0x334   :  { %3181 = vmatpush.msrb.mxu2 %v13565_v14 }
 0x335   :  { %3268 = vmatpush.msra.mxu3 %v13522_v59  ;;  %3134 = vmatpush.msra.mxu1 %v13401_v28 }
 0x337   :  { %3274 = vmatpush.msra.mxu3 %v13530_v54  ;;  %3136 = vmatpush.msra.mxu1 %v13421_v50 }
 0x339   :  { %3280 = vmatpush.msra.mxu3 %v13536_v62  ;;  %3138 = vmatpush.msra.mxu1 %v13443_v43 }
 0x33b   :  { %3286 = vmatpush.msra.mxu3 %v2944_v35  ;;  %3140 = vmatpush.msra.mxu1 %v13455_v60  ;;  %v2341_v38 = vpop.f32.mrf.mxu2 }
 0x33d   :  { %3142 = vmatpush.msra.mxu1 %v13476_v29 }
 0x33f   :  { %3144 = vmatpush.msra.mxu1 %v13565_v14  ;;  %v2402_v30 = vpop.f32.mrf.mxu3 }
 0x340   :  { %v2403_v20 = vadd.f32 %v2402_v30, %v2341_v38 }
 0x347   :  { %v2440_v48 = vpop.f32.mrf.mxu2 }
 0x348   :  { %v2441_v25 = vadd.f32 %v2440_v48, %v2403_v20 }
 0x34f   :  { %v2471_v7 = vpop.f32.mrf.mxu3 }
 0x350   :  { %v2472_v17 = vadd.f32 %v2471_v7, %v2441_v25  ;;  %v3548_v25 = vld [vmem:[%s19363_s0 + $0x40] sm:$0xff] }
 0x357   :  { %v2516_v42 = vpop.f32.mrf.mxu2 }
 0x358   :  { %v2517_v52 = vadd.f32 %v2516_v42, %v2472_v17 }
 0x35f   :  { %v2545_v11 = vpop.f32.mrf.mxu3 }
 0x360   :  { %v2546_v18 = vadd.f32 %v2545_v11, %v2517_v52  ;;  %v13798_v11 = vand.u32 4294901760, %v3548_v25 }
 0x362   :  { %v2841_v59 = vand.u32 4294901760, %v2546_v18 }
 0x364   :  { %v2842_v54 = vsub.f32 %v2546_v18, %v2841_v59  ;;  %2947 = vmatmul.f32.vlgmr.msrb.gmra.mxu1 %v2841_v59 }
 0x365   :  { %3347 = vmatpush.msrb.mxu1 %v13235_v10 }
 0x366   :  { %v2843_v62 = vand.u32 4294901760, %v2842_v54  ;;  %3001 = vmatmul.f32.vlgmr.msra.gmra.mxu2 %v2842_v54 }
 0x367   :  { %3349 = vmatpush.msrb.mxu1 %v13237_v9  ;;  %3388 = vmatpush.msra.mxu2 %v13282_v37 }
 0x368   :  { %v2844_v32 = vsub.f32 %v2842_v54, %v2843_v62  ;;  %3040 = vmatmul.f32.vlgmr.msrb.gmra.mxu3 %v2843_v62  ;;  %v3547_v54 = vld [vmem:[%s19363_s0 + $0x38] sm:$0xff] }
 0x369   :  { %3351 = vmatpush.msrb.mxu1 %v13239_v24  ;;  %3455 = vmatpush.msrb.mxu3 %v13235_v10  ;;  %v2586_v10 = vpop.f32.mrf.mxu2 }
 0x36a   :  { %v2845_v35 = vand.u32 4294901760, %v2844_v32  ;;  %3392 = vmatpush.msra.mxu2 %v13285_v19 }
 0x36b   :  { %3353 = vmatpush.msrb.mxu1 %v13252_v36  ;;  %3457 = vmatpush.msrb.mxu3 %v13237_v9 }
 0x36c   :  { %2846 = vmatmul.f32.vlgmr.msra.gmra.mxu0 %v2845_v35  ;;  %3146 = vmatmul.f32.vlgmr.msra.gmra.mxu1 %v2841_v59  ;;  %v13814_v35 = vsub.f32 %v3548_v25, %v13798_v11  ;;  %v3542_v25 = vld [vmem:[%s19363_s0 + $0x10] sm:$0xff] }
 0x36d   :  { %3294 = vmatpush.msra.mxu0 %v13257_v23  ;;  %3355 = vmatpush.msrb.mxu1 %v13275_v45  ;;  %v2716_v23 = vpop.f32.mrf.mxu1 }
 0x36e   :  { %3459 = vmatpush.msrb.mxu3 %v13239_v24  ;;  %3396 = vmatpush.msra.mxu2 %v13288_v12  ;;  %v2685_v24 = vpop.f32.mrf.mxu0 }
 0x36f   :  { %3297 = vmatpush.msra.mxu0 %v13260_v15  ;;  %3357 = vmatpush.msrb.mxu1 %v13300_v27  ;;  %v2647_v37 = vpop.f32.mrf.mxu3 }
 0x370   :  { %3461 = vmatpush.msrb.mxu3 %v13252_v36  ;;  %3400 = vmatpush.msra.mxu2 %v13295_v16  ;;  %v2648_v9 = vadd.f32 %v2647_v37, %v2586_v10  ;;  %v13816_v10 = vand.u32 4294901760, %v3547_v54 }
 0x371   :  { %3300 = vmatpush.msra.mxu0 %v13263_v4  ;;  %3359 = vmatpush.msrb.mxu1 %v13319_v51 }
 0x372   :  { %3463 = vmatpush.msrb.mxu3 %v13275_v45  ;;  %3404 = vmatpush.msra.mxu2 %v13314_v26  ;;  %v2686_v36 = vadd.f32 %v2685_v24, %v2648_v9  ;;  %v3546_v24 = vld [vmem:[%s19363_s0 + $0x30] sm:$0xff] }
 0x373   :  { %3303 = vmatpush.msra.mxu0 %v13273_v34  ;;  %3361 = vmatpush.msrb.mxu1 %v13349_v58 }
 0x374   :  { %3109 = vmatmul.f32.vlgmr.msrb.gmra.mxu0 %v2841_v59  ;;  %3465 = vmatpush.msrb.mxu3 %v13300_v27  ;;  %v2717_v15 = vadd.f32 %v2716_v23, %v2686_v36 }
 0x375   :  { %3306 = vmatpush.msra.mxu0 %v13298_v56  ;;  %3363 = vmatpush.msrb.mxu1 %v13360_v39 }
 0x376   :  { %3467 = vmatpush.msrb.mxu3 %v13319_v51  ;;  %3408 = vmatpush.msra.mxu2 %v13338_v61 }
 0x377   :  { %3309 = vmatpush.msra.mxu0 %v13317_v57  ;;  %3365 = vmatpush.msrb.mxu1 %v13379_v53  ;;  %v2761_v4 = vpop.f32.mrf.mxu2 }
 0x378   :  { %3469 = vmatpush.msrb.mxu3 %v13349_v58  ;;  %3412 = vmatpush.msra.mxu2 %v13358_v8  ;;  %v2762_v34 = vadd.f32 %v2761_v4, %v2717_v15  ;;  %v3552_v58 = vld [vmem:[%s19363_s0 + $0x60] sm:$0xff]  ;;  %v3697_v4 = vand.u32 4294901760, %v13814_v35 }
 0x379   :  { %3312 = vmatpush.msra.mxu0 %v13341_v33  ;;  %3367 = vmatpush.msrb.mxu1 %v13401_v28 }
 0x37a   :  { %3471 = vmatpush.msrb.mxu3 %v13360_v39  ;;  %3416 = vmatpush.msra.mxu2 %v13387_v3 }
 0x37b   :  { %3315 = vmatpush.msra.mxu0 %v13369_v46  ;;  %3369 = vmatpush.msrb.mxu1 %v13421_v50 }
 0x37c   :  { %3473 = vmatpush.msrb.mxu3 %v13379_v53  ;;  %3420 = vmatpush.msra.mxu2 %v13396_v55  ;;  %v3551_v53 = vld [vmem:[%s19363_s0 + $0x58] sm:$0xff] }
 0x37d   :  { %3318 = vmatpush.msra.mxu0 %v13377_v63  ;;  %3371 = vmatpush.msrb.mxu1 %v13443_v43  ;;  %v13743_v63 = vand.u32 4294901760, %v3552_v58 }
 0x37e   :  { %3475 = vmatpush.msrb.mxu3 %v13401_v28  ;;  %3424 = vmatpush.msra.mxu2 %v13416_v6 }
 0x37f   :  { %v2790_v45 = vpop.f32.mrf.mxu3  ;;  %3321 = vmatpush.msra.mxu0 %v13399_v5  ;;  %3373 = vmatpush.msrb.mxu1 %v13455_v60 }
 0x380   :  { %v2791_v19 = vadd.f32 %v2790_v45, %v2762_v34  ;;  %3477 = vmatpush.msrb.mxu3 %v13421_v50  ;;  %3428 = vmatpush.msra.mxu2 %v13441_v41  ;;  %v13759_v50 = vand.u32 4294901760, %v3551_v53  ;;  %v13829_v34 = vsub.f32 %v3547_v54, %v13816_v10  ;;  %v13833_v45 = vand.u32 4294901760, %v3546_v24 }
 0x381   :  { %3324 = vmatpush.msra.mxu0 %v13419_v47  ;;  %3375 = vmatpush.msrb.mxu1 %v13476_v29  ;;  %v13755_v47 = vsub.f32 %v3552_v58, %v13743_v63  ;;  %v13889_v54 = vand.u32 4294901760, %v3542_v25 }
 0x382   :  { %v3182_v3 = vand.u32 4294901760, %v2791_v19  ;;  %3479 = vmatpush.msrb.mxu3 %v13443_v43  ;;  %3432 = vmatpush.msra.mxu2 %v13460_v44 }
 0x383   :  { %3327 = vmatpush.msra.mxu0 %v13436_v31  ;;  %3377 = vmatpush.msrb.mxu1 %v13565_v14  ;;  %v3550_v31 = vld [vmem:[%s19363_s0 + $0x50] sm:$0xff] }
 0x384   :  { %v3183_v12 = vsub.f32 %v2791_v19, %v3182_v3  ;;  %3288 = vmatmul.f32.vlgmr.msra.gmra.mxu3 %v3182_v3  ;;  %3436 = vmatpush.msra.mxu2 %v13483_v0  ;;  %v3554_v0 = vld [vmem:[%s19363_s0 + $0x70] sm:$0xff]  ;;  %v3545_v19 = vld [vmem:[%s19363_s0 + $0x28] sm:$0xff] }
 0x385   :  { %3481 = vmatpush.msrb.mxu3 %v13455_v60  ;;  %3330 = vmatpush.msra.mxu0 %v13463_v40  ;;  %v3555_v40 = vld [vmem:[%s19363_s0 + $0x78] sm:$0xff]  ;;  %v13716_v26 = vand.u32 4294901760, %v3554_v0  ;;  %v3673_v60 = vand.u32 4294901760, %v13755_v47 }
 0x386   :  { %v3184_v16 = vand.u32 4294901760, %v3183_v12  ;;  %3440 = vmatpush.msra.mxu2 %v13497_v22  ;;  %v3549_v22 = vld [vmem:[%s19363_s0 + $0x48] sm:$0xff] }
 0x387   :  { %3483 = vmatpush.msrb.mxu3 %v13476_v29  ;;  %3333 = vmatpush.msra.mxu0 %v13474_v21  ;;  %v13708_v29 = vand.u32 4294901760, %v3555_v40  ;;  %v13725_v51 = vsub.f32 %v3554_v0, %v13716_v26  ;;  %v13770_v21 = vand.u32 4294901760, %v3550_v31  ;;  %v13786_v38 = vand.u32 4294901760, %v3549_v22 }
 0x388   :  { %v3185_v56 = vsub.f32 %v3183_v12, %v3184_v16  ;;  %3381 = vmatmul.f32.vlgmr.msrb.gmra.mxu1 %v3184_v16  ;;  %3444 = vmatpush.msra.mxu2 %v13508_v1  ;;  %v3703_v16 = vand.u32 4294901760, %v13829_v34 }
 0x389   :  { %3485 = vmatpush.msrb.mxu3 %v13565_v14  ;;  %3336 = vmatpush.msra.mxu0 %v13490_v49  ;;  %v13714_v27 = vsub.f32 %v3555_v40, %v13708_v29  ;;  %v3661_v39 = vand.u32 4294901760, %v13725_v51  ;;  %v13773_v49 = vsub.f32 %v3551_v53, %v13759_v50  ;;  %v3674_v14 = vsub.f32 %v13755_v47, %v3673_v60 }
 0x38a   :  { %v3186_v44 = vand.u32 4294901760, %v3185_v56  ;;  %3448 = vmatpush.msra.mxu2 %v13575_v13  ;;  %v3553_v13 = vld [vmem:[%s19363_s0 + $0x68] sm:$0xff]  ;;  %v13796_v52 = vsub.f32 %v3549_v22, %v13786_v38  ;;  %v13842_v56 = vand.u32 4294901760, %v3545_v19  ;;  %v3704_v53 = vsub.f32 %v13829_v34, %v3703_v16 }
 0x38b   :  { %3339 = vmatpush.msra.mxu0 %v13568_v2  ;;  %3872 = vmatpush.msra.mxu3 %v13708_v29  ;;  %v3655_v57 = vand.u32 4294901760, %v13714_v27  ;;  %v13728_v61 = vand.u32 4294901760, %v3553_v13  ;;  %v3662_v28 = vsub.f32 %v13725_v51, %v3661_v39  ;;  %v13784_v2 = vsub.f32 %v3550_v31, %v13770_v21 }
 0x38c   :  { %3187 = vmatmul.f32.vlgmr.msrb.gmra.mxu2 %v3186_v44  ;;  %3487 = vmatmul.f32.vlgmr.msrb.gmra.mxu3 %v3182_v3  ;;  %v3679_v7 = vand.u32 4294901760, %v13773_v49  ;;  %v3675_v42 = vand.u32 4294901760, %v3674_v14  ;;  %v3691_v32 = vand.u32 4294901760, %v13796_v52 }
 0x38d   :  { %3342 = vmatmul.f32.vlgmr.msra.gmra.mxu0 %v3183_v12  ;;  %3784 = vmatpush.msrb.mxu2 %v13714_v27  ;;  %v3656_v8 = vsub.f32 %v13714_v27, %v3655_v57  ;;  %v13740_v46 = vsub.f32 %v3553_v13, %v13728_v61  ;;  %v3663_v41 = vand.u32 4294901760, %v3662_v28  ;;  %v3685_v17 = vand.u32 4294901760, %v13784_v2 }
 0x38e   :  { %3557 = vmatpush.msrb.mxu0 %v13708_v29  ;;  %3874 = vmatpush.msra.mxu3 %v13716_v26  ;;  %v3680_v59 = vsub.f32 %v13773_v49, %v3679_v7  ;;  %v3692_v15 = vsub.f32 %v13796_v52, %v3691_v32  ;;  %v3698_v12 = vsub.f32 %v13814_v35, %v3697_v4 }
 0x38f   :  { %3787 = vmatpush.msrb.mxu2 %v13725_v51  ;;  %v3657_v5 = vand.u32 4294901760, %v3656_v8  ;;  %v3667_v6 = vand.u32 4294901760, %v13740_v46  ;;  %v3686_v62 = vsub.f32 %v13784_v2, %v3685_v17  ;;  %v13847_v13 = vsub.f32 %v3546_v24, %v13833_v45 }
 0x390   :  { %3559 = vmatpush.msrb.mxu0 %v13716_v26  ;;  %3876 = vmatpush.msra.mxu3 %v13728_v61  ;;  %v3681_v9 = vand.u32 4294901760, %v3680_v59  ;;  %v3699_v8 = vand.u32 4294901760, %v3698_v12 }
 0x391   :  { %3790 = vmatpush.msrb.mxu2 %v13740_v46  ;;  %3658 = vmatpush.msra.mxu1 %v3657_v5  ;;  %v3668_v43 = vsub.f32 %v13740_v46, %v3667_v6  ;;  %v3687_v23 = vand.u32 4294901760, %v3686_v62  ;;  %v3709_v31 = vand.u32 4294901760, %v13847_v13 }
 0x392   :  { %3561 = vmatpush.msrb.mxu0 %v13728_v61  ;;  %3878 = vmatpush.msra.mxu3 %v13743_v63 }
 0x393   :  { %3793 = vmatpush.msrb.mxu2 %v13755_v47  ;;  %3664 = vmatpush.msra.mxu1 %v3663_v41  ;;  %v3669_v1 = vand.u32 4294901760, %v3668_v43  ;;  %v3543_v43 = vld [vmem:[%s19363_s0 + $0x18] sm:$0xff] }
 0x394   :  { %3450 = vmatmul.f32.vlgmr.msra.gmra.mxu2 %v3182_v3  ;;  %3563 = vmatpush.msrb.mxu0 %v13743_v63  ;;  %v3693_v3 = vand.u32 4294901760, %v3692_v15 }
 0x395   :  { %3880 = vmatpush.msra.mxu3 %v13759_v50  ;;  %3796 = vmatpush.msrb.mxu2 %v13773_v49  ;;  %v19366_v49 = vld [vmem:[#allocation39_spill] sm:$0xff] }
 0x396   :  { %3565 = vmatpush.msrb.mxu0 %v13759_v50  ;;  %3670 = vmatpush.msra.mxu1 %v3669_v1  ;;  %v3705_v1 = vand.u32 4294901760, %v3704_v53 }
 0x397   :  { %3882 = vmatpush.msra.mxu3 %v13770_v21  ;;  %3799 = vmatpush.msrb.mxu2 %v13784_v2 }
 0x398   :  { %3567 = vmatpush.msrb.mxu0 %v13770_v21  ;;  %3676 = vmatpush.msra.mxu1 %v3675_v42 }
 0x399   :  { %3884 = vmatpush.msra.mxu3 %v13786_v38  ;;  %3802 = vmatpush.msrb.mxu2 %v13796_v52 }
 0x39a   :  { %3569 = vmatpush.msrb.mxu0 %v13786_v38  ;;  %3682 = vmatpush.msra.mxu1 %v3681_v9 }
 0x39b   :  { %3886 = vmatpush.msra.mxu3 %v13798_v11  ;;  %3805 = vmatpush.msrb.mxu2 %v13814_v35  ;;  %v4129_v35 = vld [vmem:[%s19132_s8 + $0x78] sm:$0xff] }
 0x39c   :  { %3571 = vmatpush.msrb.mxu0 %v13798_v11  ;;  %3688 = vmatpush.msra.mxu1 %v3687_v23  ;;  %v3541_v23 = vld [vmem:[%s19363_s0 + $0x8] sm:$0xff] }
 0x39d   :  { %3888 = vmatpush.msra.mxu3 %v13816_v10  ;;  %3808 = vmatpush.msrb.mxu2 %v13829_v34  ;;  %v13904_v12 = vand.u32 4294901760, %v3541_v23 }
 0x39e   :  { %3573 = vmatpush.msrb.mxu0 %v13816_v10  ;;  %3694 = vmatpush.msra.mxu1 %v3693_v3  ;;  %v13902_v3 = vsub.f32 %v3542_v25, %v13889_v54 }
 0x39f   :  { %3890 = vmatpush.msra.mxu3 %v13833_v45  ;;  %3811 = vmatpush.msrb.mxu2 %v13847_v13 }
 0x3a0   :  { %3575 = vmatpush.msrb.mxu0 %v13833_v45  ;;  %3700 = vmatpush.msra.mxu1 %v3699_v8  ;;  %v13920_v8 = vsub.f32 %v3541_v23, %v13904_v12 }
 0x3a1   :  { %3892 = vmatpush.msra.mxu3 %v13842_v56 }
 0x3a2   :  { %3577 = vmatpush.msrb.mxu0 %v13842_v56  ;;  %3706 = vmatpush.msra.mxu1 %v3705_v1  ;;  %v3739_v25 = vand.u32 4294901760, %v13920_v8 }
 0x3e1   :  { %v2948_v55 = vpop.f32.mrf.mxu1 }
 0x3e9   :  { %v2847_v33 = vpop.f32.mrf.mxu0  ;;  %v3002_v48 = vpop.f32.mrf.mxu2 }
 0x3ea   :  { %v2949_v30 = vadd.f32 %v2948_v55, %v2847_v33  ;;  %v3147_v36 = vpop.f32.mrf.mxu1  ;;  %v3544_v33 = vld [vmem:[%s19363_s0 + $0x20] sm:$0xff]  ;;  %v13857_v55 = vsub.f32 %v3545_v19, %v13842_v56 }
 0x3eb   :  { %v3041_v20 = vpop.f32.mrf.mxu3  ;;  %v13863_v41 = vand.u32 4294901760, %v3544_v33 }
 0x3ec   :  { %v3003_v37 = vadd.f32 %v3002_v48, %v2949_v30  ;;  %v3715_v14 = vand.u32 4294901760, %v13857_v55  ;;  %v13869_v30 = vand.u32 4294901760, %v3543_v43  ;;  %v3710_v48 = vsub.f32 %v13847_v13, %v3709_v31  ;;  %3814 = vmatpush.msrb.mxu2 %v13857_v55 }
 0x3ed   :  { %3894 = vmatpush.msra.mxu3 %v13863_v41  ;;  %3579 = vmatpush.msrb.mxu0 %v13863_v41 }
 0x3ee   :  { %v3042_v44 = vadd.f32 %v3041_v20, %v3003_v37  ;;  %v13877_v20 = vsub.f32 %v3544_v33, %v13863_v41  ;;  %v13887_v59 = vsub.f32 %v3543_v43, %v13869_v30  ;;  %v3711_v9 = vand.u32 4294901760, %v3710_v48 }
 0x3ef   :  { %3896 = vmatpush.msra.mxu3 %v13869_v30  ;;  %3581 = vmatpush.msrb.mxu0 %v13869_v30 }
 0x3f0   :  { %v3721_v24 = vand.u32 4294901760, %v13877_v20  ;;  %3817 = vmatpush.msrb.mxu2 %v13877_v20  ;;  %v3727_v19 = vand.u32 4294901760, %v13887_v59  ;;  %3712 = vmatpush.msra.mxu1 %v3711_v9  ;;  %v3740_v9 = vsub.f32 %v13920_v8, %v3739_v25 }
 0x3f1   :  { %v3110_v18 = vpop.f32.mrf.mxu0  ;;  %3898 = vmatpush.msra.mxu3 %v13889_v54  ;;  %3583 = vmatpush.msrb.mxu0 %v13889_v54 }
 0x3f2   :  { %v3111_v5 = vadd.f32 %v3110_v18, %v3042_v44  ;;  %v3716_v18 = vsub.f32 %v13857_v55, %v3715_v14  ;;  %v3722_v44 = vsub.f32 %v13877_v20, %v3721_v24  ;;  %3820 = vmatpush.msrb.mxu2 %v13887_v59  ;;  %v3728_v33 = vsub.f32 %v13887_v59, %v3727_v19 }
 0x3f3   :  { %3900 = vmatpush.msra.mxu3 %v13904_v12  ;;  %3585 = vmatpush.msrb.mxu0 %v13904_v12 }
 0x3f4   :  { %v13893_v62 = vadd.f32 %v3147_v36, %v3111_v5  ;;  %v3717_v15 = vand.u32 4294901760, %v3716_v18  ;;  %3823 = vmatpush.msrb.mxu2 %v13902_v3  ;;  %v3729_v1 = vand.u32 4294901760, %v3728_v33 }
 0x3f6   :  { %v3491_v53 = vmul.f32 %v13893_v62, %v13893_v62  ;;  %3718 = vmatpush.msra.mxu1 %v3717_v15  ;;  %3826 = vmatpush.msrb.mxu2 %v13920_v8 }
 0x405   :  { %v3382_v42 = vpop.f32.mrf.mxu1 }
 0x407   :  { %v3289_v40 = vpop.f32.mrf.mxu3 }
 0x40a   :  { %v3343_v28 = vpop.f32.mrf.mxu0 }
 0x40f   :  { %v3188_v0 = vpop.f32.mrf.mxu2  ;;  %v3488_v5 = vpop.f32.mrf.mxu3 }
 0x410   :  { %v3290_v58 = vadd.f32 %v3289_v40, %v3188_v0  ;;  %v3540_v40 = vld [vmem:[%s19363_s0] sm:$0xff] }
 0x411   :  { %v13927_v43 = vand.u32 4294901760, %v3540_v40 }
 0x412   :  { %v3344_v22 = vadd.f32 %v3343_v28, %v3290_v58  ;;  %v3733_v58 = vand.u32 4294901760, %v13902_v3  ;;  %v3723_v28 = vand.u32 4294901760, %v3722_v44 }
 0x413   :  { %3902 = vmatpush.msra.mxu3 %v13927_v43  ;;  %3587 = vmatpush.msrb.mxu0 %v13927_v43 }
 0x414   :  { %v3383_v37 = vadd.f32 %v3382_v42, %v3344_v22  ;;  %v3734_v48 = vsub.f32 %v13902_v3, %v3733_v58  ;;  %3724 = vmatpush.msra.mxu1 %v3723_v28  ;;  %v13936_v42 = vsub.f32 %v3540_v40, %v13927_v43  ;;  %v19369_v3 = vld [vmem:[#allocation34_spill] sm:$0xff] }
 0x415   :  { %3955 = vmatpush.msra.mxu0 %v3655_v57 }
 0x416   :  { %3730 = vmatpush.msra.mxu1 %v3729_v1  ;;  %v3745_v23 = vand.u32 4294901760, %v13936_v42  ;;  %3829 = vmatpush.msrb.mxu2 %v13936_v42 }
 0x417   :  { %v3451_v36 = vpop.f32.mrf.mxu2  ;;  %3959 = vmatpush.msra.mxu0 %v3661_v39 }
 0x418   :  { %v3452_v0 = vadd.f32 %v3451_v36, %v3383_v37  ;;  %v3735_v37 = vand.u32 4294901760, %v3734_v48  ;;  %v3741_v36 = vand.u32 4294901760, %v3740_v9  ;;  %v3746_v44 = vsub.f32 %v13936_v42, %v3745_v23 }
 0x419   :  { %3963 = vmatpush.msra.mxu0 %v3667_v6  ;;  %v3507_v6 = vld [vmem:[%s19365_s1] sm:$0x1] }
 0x41a   :  { %v3489_v22 = vadd.f32 %v3488_v5, %v3452_v0  ;;  %3736 = vmatpush.msra.mxu1 %v3735_v37  ;;  %v3747_v0 = vand.u32 4294901760, %v3746_v44 }
 0x41b   :  { %3967 = vmatpush.msra.mxu0 %v3673_v60 }
 0x41c   :  { %v3492_v18 = vsub.f32 %v3489_v22, %v3491_v53  ;;  %3742 = vmatpush.msra.mxu1 %v3741_v36 }
 0x41d   :  { %3971 = vmatpush.msra.mxu0 %v3679_v7 }
 0x41e   :  { %v3493_v15 = vmax.f32 %v3492_v18, 0.0  ;;  %3748 = vmatpush.msra.mxu1 %v3747_v0  ;;  %v19371_v0 = vld [vmem:[#allocation20_spill] sm:$0xff] }
 0x41f   :  { %3975 = vmatpush.msra.mxu0 %v3685_v17 }
 0x420   :  { %v3495_v40 = vadd.f32 1e-05, %v3493_v15  ;;  %4050 = vmatpush.msrb.mxu1 %v13708_v29  ;;  %v4125_v15 = vld [vmem:[%s19132_s8 + $0x58] sm:$0xff] }
 0x421   :  { %3979 = vmatpush.msra.mxu0 %v3691_v32  ;;  %v14101_v44 = vand.u32 4294901760, %v4125_v15 }
 0x422   :  { %11626 = vrsqrt.f32 %v3495_v40  ;;  %4052 = vmatpush.msrb.mxu1 %v13716_v26  ;;  %vm3502_vm3 = vweird.f32 %v3495_v40 }
 0x423   :  { %3983 = vmatpush.msra.mxu0 %v3697_v4 }
 0x424   :  { %4054 = vmatpush.msrb.mxu1 %v13728_v61  ;;  %v3494_v61 = vld [vmem:[%s19364_s30] sm:$0x1] }
 0x425   :  { %3987 = vmatpush.msra.mxu0 %v3703_v16  ;;  %v4128_v16 = vld [vmem:[%s19132_s8 + $0x70] sm:$0xff] }
 0x426   :  { %4056 = vmatpush.msrb.mxu1 %v13743_v63 }
 0x427   :  { %3991 = vmatpush.msra.mxu0 %v3709_v31  ;;  %v14028_v31 = vand.u32 4294901760, %v4128_v16 }
 0x428   :  { %v11627_v27 = vpop.eup %11626  ;;  %4058 = vmatpush.msrb.mxu1 %v13759_v50 }
 0x429   :  { %v3497_v57 = vmul.f32 %v11627_v27, %v3495_v40  ;;  %vm3503_vm2 = vweird.f32 %v11627_v27  ;;  %3995 = vmatpush.msra.mxu0 %v3715_v14 }
 0x42a   :  { %4060 = vmatpush.msrb.mxu1 %v13770_v21  ;;  %vm3504_vm4 = vmor %vm3502_vm3, %vm3503_vm2 }
 0x42b   :  { %v3498_v29 = vmul.f32 %v11627_v27, %v3497_v57  ;;  %3999 = vmatpush.msra.mxu0 %v3721_v24 }
 0x42c   :  { %4062 = vmatpush.msrb.mxu1 %v13786_v38  ;;  %v19367_v38 = vld [vmem:[#allocation16_spill] sm:$0xff] }
 0x42d   :  { %v3499_v26 = vmul.f32 0.5, %v3498_v29  ;;  %4003 = vmatpush.msra.mxu0 %v3727_v19  ;;  %v4124_v29 = vld [vmem:[%s19132_s8 + $0x50] sm:$0xff] }
 0x42e   :  { %4064 = vmatpush.msrb.mxu1 %v13798_v11  ;;  %v19368_v11 = vld [vmem:[#allocation21_spill] sm:$0xff] }
 0x42f   :  { %v3500_v51 = vsub.f32 1.5, %v3499_v26  ;;  %4007 = vmatpush.msra.mxu0 %v3733_v58 }
 0x430   :  { %4066 = vmatpush.msrb.mxu1 %v13816_v10 }
 0x431   :  { %v3501_v39 = vmul.f32 %v11627_v27, %v3500_v51  ;;  %4011 = vmatpush.msra.mxu0 %v3739_v25  ;;  %v14115_v51 = vand.u32 4294901760, %v4124_v29 }
 0x432   :  { %4068 = vmatpush.msrb.mxu1 %v13833_v45  ;;  %v14014_v45 = vand.u32 4294901760, %v4129_v35 }
 0x433   :  { %v3505_v46 = vsel %vm3504_vm4, %v11627_v27, %v3501_v39  ;;  %4015 = vmatpush.msra.mxu0 %v3745_v23  ;;  %v4123_v39 = vld [vmem:[%s19132_s8 + $0x48] sm:$0xff] }
 0x434   :  { %v3506_v63 = vmul.f32 %v3505_v46, %v3494_v61  ;;  %4070 = vmatpush.msrb.mxu1 %v13842_v56  ;;  %4131 = vmatpush.msra.mxu2 %v14014_v45  ;;  %v14026_v55 = vsub.f32 %v4129_v35, %v14014_v45  ;;  %v14118_v61 = vsub.f32 %v4125_v15, %v14101_v44 }
 0x436   :  { %v3508_v47 = vmul.f32 %v3506_v63, %v13893_v62  ;;  %v13987_v50 = vperm.slane %v3506_v63, 0  ;;  %4072 = vmatpush.msrb.mxu1 %v13863_v41  ;;  %v4127_v41 = vld [vmem:[%s19132_s8 + $0x68] sm:$0xff]  ;;  %4133 = vmatpush.msra.mxu2 %v14028_v31  ;;  %v19176_v20 = vand.u32 4294901760, %v14026_v55  ;;  %v4126_v62 = vld [vmem:[%s19132_s8 + $0x60] sm:$0xff] }
 0x437   :  { %v14039_v59 = vand.u32 4294901760, %v4127_v41  ;;  %v14063_v8 = vand.u32 4294901760, %v4126_v62 }
 0x438   :  { %v3509_v60 = vsub.f32 %v3507_v6, %v3508_v47  ;;  %v3513_v2 = vmul.f32 %v13987_v50, %v19366_v49  ;;  %v3514_v7 = vmul.f32 %v13987_v50, %v19367_v38  ;;  %4074 = vmatpush.msrb.mxu1 %v13869_v30  ;;  %v3515_v32 = vmul.f32 %v13987_v50, %v19368_v11  ;;  %v4122_v11 = vld [vmem:[%s19132_s8 + $0x40] sm:$0xff] }
 0x439   :  { %v4230_v33 = vsub.f32 %v14026_v55, %v19176_v20  ;;  %4135 = vmatpush.msra.mxu2 %v14039_v59  ;;  %v14076_v1 = vsub.f32 %v4127_v41, %v14039_v59  ;;  %v14104_v40 = vsub.f32 %v4126_v62, %v14063_v8  ;;  %v3517_v27 = vmul.f32 %v13987_v50, %v19371_v0 }
 0x43a   :  { %v13995_v21 = vperm.slane %v3509_v60, 0  ;;  %4076 = vmatpush.msrb.mxu1 %v13889_v54  ;;  %v14042_v54 = vsub.f32 %v4128_v16, %v14028_v31  ;;  %v14131_v47 = vand.u32 4294901760, %v4123_v39  ;;  %v14142_v38 = vsub.f32 %v4124_v29, %v14115_v51 }
 0x43b   :  { %4137 = vmatpush.msra.mxu2 %v14063_v8  ;;  %v19173_v18 = vand.u32 4294901760, %v14076_v1  ;;  %v19172_v26 = vand.u32 4294901760, %v14104_v40  ;;  %v14165_v16 = vand.u32 4294901760, %v4122_v11 }
 0x43c   :  { %v3524_v17 = vadd.f32 %v13995_v21, %v3513_v2  ;;  %v3525_v52 = vadd.f32 %v13995_v21, %v3514_v7  ;;  %v3526_v34 = vadd.f32 %v13995_v21, %v3515_v32  ;;  %4078 = vmatpush.msrb.mxu1 %v13904_v12  ;;  %v3516_v12 = vmul.f32 %v13987_v50, %v19369_v3 }
 0x43d   :  { %v19175_v58 = vand.u32 4294901760, %v14042_v54  ;;  %v4242_v23 = vsub.f32 %v14076_v1, %v19173_v18  ;;  %4139 = vmatpush.msra.mxu2 %v14101_v44  ;;  %v14129_v6 = vadd.f32 %v13995_v21, %v3517_v27  ;;  %v4248_v49 = vsub.f32 %v14104_v40, %v19172_v26 }
 0x43e   :  { %v3532_v10 = vmax.f32 %v3524_v17, 0.0  ;;  %v3533_v4 = vmax.f32 %v3525_v52, 0.0  ;;  %v3534_v30 = vmax.f32 %v3526_v34, 0.0  ;;  %4080 = vmatpush.msrb.mxu1 %v13927_v43  ;;  %v3527_v5 = vadd.f32 %v13995_v21, %v3516_v12  ;;  %v4121_v12 = vld [vmem:[%s19132_s8 + $0x38] sm:$0xff] }
 0x43f   :  { %v4231_v43 = vand.u32 4294901760, %v4230_v33  ;;  %v4236_v22 = vsub.f32 %v14042_v54, %v19175_v58  ;;  %v4243_v57 = vand.u32 4294901760, %v4242_v23  ;;  %4141 = vmatpush.msra.mxu2 %v14115_v51  ;;  %v19171_v2 = vand.u32 4294901760, %v14118_v61 }
 0x440   :  { %v14019_v56 = vand.u32 4294901760, %v3532_v10  ;;  %v14021_v13 = vand.u32 4294901760, %v3533_v4  ;;  %v14069_v28 = vand.u32 4294901760, %v3534_v30  ;;  %v3535_v9 = vmax.f32 %v3527_v5, 0.0 }
 0x441   :  { %4232 = vmatpush.msrb.mxu3 %v4231_v43  ;;  %v4237_v42 = vand.u32 4294901760, %v4236_v22  ;;  %v4249_v7 = vand.u32 4294901760, %v4248_v49  ;;  %v4254_v17 = vsub.f32 %v14118_v61, %v19171_v2  ;;  %v19170_v52 = vand.u32 4294901760, %v14142_v38  ;;  %4143 = vmatpush.msra.mxu2 %v14131_v47 }
 0x442   :  { %3750 = vmatmul.f32.vlgmr.msra.gmra.mxu1 %v14019_v56  ;;  %v14035_v14 = vsub.f32 %v3532_v10, %v14019_v56  ;;  %v14053_v19 = vsub.f32 %v3533_v4, %v14021_v13  ;;  %v14089_v37 = vsub.f32 %v3534_v30, %v14069_v28  ;;  %v14126_v63 = vand.u32 4294901760, %v3535_v9  ;;  %v19373_v4 = vld [vmem:[#allocation18_spill] sm:$0xff] }
 0x443   :  { %4446 = vmatpush.msra.mxu1 %v14014_v45  ;;  %4238 = vmatpush.msrb.mxu3 %v4237_v42  ;;  %v14156_v32 = vsub.f32 %v4123_v39, %v14131_v47  ;;  %v3536_v10 = vmax.f32 %v14129_v6, 0.0  ;;  %v3518_v34 = vmul.f32 %v13987_v50, %v19373_v4  ;;  %v4255_v30 = vand.u32 4294901760, %v4254_v17  ;;  %v4120_v42 = vld [vmem:[%s19132_s8 + $0x30] sm:$0xff] }
 0x444   :  { %3832 = vmatmul.f32.vlgmr.msrb.gmra.mxu2 %v14035_v14  ;;  %v14050_v24 = vand.u32 4294901760, %v14035_v14  ;;  %v14082_v25 = vand.u32 4294901760, %v14053_v19  ;;  %19370 = vst [vmem:[#allocation27_spill] sm:$0xff] %v14089_v37  ;;  %v14124_v46 = vand.u32 4294901760, %v14089_v37  ;;  %v14159_v35 = vsub.f32 %v3535_v9, %v14126_v63  ;;  %v4119_v9 = vld [vmem:[%s19132_s8 + $0x28] sm:$0xff] }
 0x445   :  { %4448 = vmatpush.msra.mxu1 %v14028_v31  ;;  %4244 = vmatpush.msrb.mxu3 %v4243_v57  ;;  %v4260_v62 = vsub.f32 %v14142_v38, %v19170_v52  ;;  %v19168_v3 = vand.u32 4294901760, %v14156_v32  ;;  %v14179_v33 = vand.u32 4294901760, %v4121_v12  ;;  %v14187_v5 = vadd.f32 %v13995_v21, %v3518_v34 }
 0x446   :  { %3906 = vmatmul.f32.vlgmr.msra.gmra.mxu3 %v14050_v24  ;;  %v3591_v53 = vsub.f32 %v14035_v14, %v14050_v24  ;;  %v3599_v36 = vsub.f32 %v14053_v19, %v14082_v25  ;;  %19372 = vst [vmem:[#allocation30_spill] sm:$0xff] %v14159_v35  ;;  %v3607_v41 = vsub.f32 %v14089_v37, %v14124_v46  ;;  %v14201_v15 = vand.u32 4294901760, %v4120_v42 }
 0x447   :  { %4450 = vmatpush.msra.mxu1 %v14039_v59  ;;  %4250 = vmatpush.msrb.mxu3 %v4249_v7  ;;  %v4261_v43 = vand.u32 4294901760, %v4260_v62  ;;  %v4266_v22 = vsub.f32 %v14156_v32, %v19168_v3  ;;  %v14206_v0 = vand.u32 4294901760, %v4119_v9  ;;  %v14211_v57 = vand.u32 4294901760, %v14159_v35 }
 0x448   :  { %v14079_v48 = vand.u32 4294901760, %v3591_v53  ;;  %v14134_v60 = vand.u32 4294901760, %v3599_v36  ;;  %4145 = vmatpush.msra.mxu2 %v14165_v16  ;;  %v14182_v53 = vsub.f32 %v4122_v11, %v14165_v16  ;;  %v14204_v36 = vsub.f32 %v4121_v12, %v14179_v33  ;;  %v4118_v11 = vld [vmem:[%s19132_s8 + $0x20] sm:$0xff] }
 0x449   :  { %4452 = vmatpush.msra.mxu1 %v14063_v8  ;;  %4256 = vmatpush.msrb.mxu3 %v4255_v30  ;;  %v14208_v27 = vand.u32 4294901760, %v3607_v41  ;;  %19374 = vst [vmem:[#allocation36_spill] sm:$0xff] %v14211_v57  ;;  %v14213_v29 = vand.u32 4294901760, %v3536_v10  ;;  %v4267_v39 = vand.u32 4294901760, %v4266_v22  ;;  %v14223_v7 = vsub.f32 %v4120_v42, %v14201_v15 }
 0x44a   :  { %3593 = vmatmul.f32.vlgmr.msrb.gmra.mxu0 %v14079_v48  ;;  %3754 = vmatmul.f32.gmra.mxu1 %v14021_v13  ;;  %v19166_v23 = vand.u32 4294901760, %v14182_v53  ;;  %v19165_v49 = vand.u32 4294901760, %v14204_v36  ;;  %v3537_v17 = vmax.f32 %v14187_v5, 0.0  ;;  %v14232_v4 = vsub.f32 %v4119_v9, %v14206_v0  ;;  %v4117_v9 = vld [vmem:[%s19132_s8 + $0x18] sm:$0xff] }
 0x44b   :  { %4358 = vmatpush.msrb.mxu0 %v14026_v55  ;;  %4454 = vmatpush.msra.mxu1 %v14101_v44  ;;  %v19167_v30 = vand.u32 4294901760, %v14223_v7  ;;  %v14239_v62 = vand.u32 4294901760, %v4118_v11  ;;  %v3615_v12 = vsub.f32 %v14159_v35, %v14211_v57  ;;  %v14245_v5 = vsub.f32 %v3536_v10, %v14213_v29 }
 0x44c   :  { %3837 = vmatmul.f32.gmra.mxu2 %v14053_v19  ;;  %4262 = vmatpush.msrb.mxu3 %v4261_v43  ;;  %v4272_v6 = vsub.f32 %v14182_v53, %v19166_v23  ;;  %v4278_v41 = vsub.f32 %v14204_v36, %v19165_v49  ;;  %v19376_v43 = vld [vmem:[#allocation22_spill] sm:$0xff]  ;;  %v19169_v42 = vand.u32 4294901760, %v14232_v4  ;;  %v14258_v10 = vand.u32 4294901760, %v4117_v9 }
 0x44d   :  { %4361 = vmatpush.msrb.mxu0 %v14042_v54  ;;  %4456 = vmatpush.msra.mxu1 %v14115_v51  ;;  %19375 = vst [vmem:[#allocation32_spill] sm:$0xff] %v14245_v5  ;;  %v3519_v22 = vmul.f32 %v13987_v50, %v19376_v43  ;;  %v14261_v43 = vsub.f32 %v4118_v11, %v14239_v62  ;;  %v14264_v49 = vand.u32 4294901760, %v3537_v17  ;;  %v4115_v11 = vld [vmem:[%s19132_s8 + $0x8] sm:$0xff]  ;;  %v14286_v52 = vand.u32 4294901760, %v3615_v12 }
 0x44e   :  { %3912 = vmatmul.f32.gmra.mxu3 %v14082_v25  ;;  %4147 = vmatpush.msra.mxu2 %v14179_v33  ;;  %v4273_v34 = vand.u32 4294901760, %v4272_v6  ;;  %v4284_v6 = vsub.f32 %v14223_v7, %v19167_v30  ;;  %v14289_v2 = vand.u32 4294901760, %v14245_v5  ;;  %v14291_v18 = vand.u32 4294901760, %v4115_v11 }
 0x44f   :  { %4364 = vmatpush.msrb.mxu0 %v14076_v1  ;;  %4458 = vmatpush.msra.mxu1 %v14131_v47  ;;  %v14267_v23 = vadd.f32 %v13995_v21, %v3519_v22  ;;  %v19174_v22 = vand.u32 4294901760, %v14261_v43 }
 0x450   :  { %4149 = vmatpush.msra.mxu2 %v14201_v15  ;;  %4268 = vmatpush.msrb.mxu3 %v4267_v39  ;;  %v4279_v39 = vand.u32 4294901760, %v4278_v41  ;;  %v4116_v41 = vld [vmem:[%s19132_s8 + $0x10] sm:$0xff]  ;;  %v4285_v30 = vand.u32 4294901760, %v4284_v6  ;;  %19377 = vst [vmem:[#allocation26_spill] sm:$0xff] %v14289_v2  ;;  %v4114_v6 = vld [vmem:[%s19132_s8] sm:$0xff]  ;;  %v3623_v20 = vsub.f32 %v14245_v5, %v14289_v2 }
 0x451   :  { %4367 = vmatpush.msrb.mxu0 %v14104_v40  ;;  %4460 = vmatpush.msra.mxu1 %v14165_v16  ;;  %v14281_v3 = vand.u32 4294901760, %v4116_v41  ;;  %v14316_v58 = vand.u32 4294901760, %v4114_v6 }
 0x452   :  { %3601 = vmatmul.f32.gmra.mxu0 %v14134_v60  ;;  %3758 = vmatmul.f32.gmra.mxu1 %v14069_v28 }
 0x453   :  { %4370 = vmatpush.msrb.mxu0 %v14118_v61  ;;  %4151 = vmatpush.msra.mxu2 %v14206_v0 }
 0x454   :  { %3842 = vmatmul.f32.gmra.mxu2 %v14089_v37  ;;  %4462 = vmatpush.msra.mxu1 %v14179_v33 }
 0x455   :  { %4274 = vmatpush.msrb.mxu3 %v4273_v34  ;;  %4153 = vmatpush.msra.mxu2 %v14239_v62  ;;  %v4290_v34 = vsub.f32 %v14232_v4, %v19169_v42  ;;  %v14284_v42 = vsub.f32 %v4117_v9, %v14258_v10  ;;  %v14301_v9 = vsub.f32 %v4116_v41, %v14281_v3 }
 0x456   :  { %3918 = vmatmul.f32.gmra.mxu3 %v14124_v46  ;;  %4373 = vmatpush.msrb.mxu0 %v14142_v38 }
 0x457   :  { %4280 = vmatpush.msrb.mxu3 %v4279_v39  ;;  %4155 = vmatpush.msra.mxu2 %v14258_v10  ;;  %v4291_v26 = vand.u32 4294901760, %v4290_v34  ;;  %v4296_v39 = vsub.f32 %v14261_v43, %v19174_v22  ;;  %v19177_v12 = vand.u32 4294901760, %v14284_v42 }
 0x458   :  { %4464 = vmatpush.msra.mxu1 %v14201_v15  ;;  %4376 = vmatpush.msrb.mxu0 %v14156_v32 }
 0x459   :  { %4286 = vmatpush.msrb.mxu3 %v4285_v30  ;;  %4157 = vmatpush.msra.mxu2 %v14281_v3  ;;  %v14309_v30 = vsub.f32 %v4115_v11, %v14291_v18  ;;  %v4297_v34 = vand.u32 4294901760, %v4296_v39  ;;  %v4302_v22 = vsub.f32 %v14284_v42, %v19177_v12  ;;  %v14322_v11 = vsub.f32 %v3537_v17, %v14264_v49  ;;  %v19378_v12 = vld [vmem:[#allocation23_spill] sm:$0xff] }
 0x45a   :  { %3609 = vmatmul.f32.gmra.mxu0 %v14208_v27  ;;  %3762 = vmatmul.f32.gmra.mxu1 %v14126_v63  ;;  %v14334_v17 = vsub.f32 %v4114_v6, %v14316_v58 }
 0x45b   :  { %4292 = vmatpush.msrb.mxu3 %v4291_v26  ;;  %4159 = vmatpush.msra.mxu2 %v14291_v18  ;;  %v3538_v26 = vmax.f32 %v14267_v23, 0.0  ;;  %v19183_v39 = vand.u32 4294901760, %v14309_v30  ;;  %v4303_v41 = vand.u32 4294901760, %v4302_v22  ;;  %v14348_v6 = vand.u32 4294901760, %v14322_v11 }
 0x45c   :  { %3847 = vmatmul.f32.gmra.mxu2 %v14159_v35  ;;  %4466 = vmatpush.msra.mxu1 %v14206_v0  ;;  %v3520_v35 = vmul.f32 %v13987_v50, %v19378_v12  ;;  %v14345_v12 = vand.u32 4294901760, %v3623_v20  ;;  %v19382_v20 = vand.u32 4294901760, %v14076_v1  ;;  %v19384_v1 = vand.u32 4294901760, %v14118_v61 }
 0x45d   :  { %4298 = vmatpush.msrb.mxu3 %v4297_v34  ;;  %4161 = vmatpush.msra.mxu2 %v14316_v58  ;;  %v4314_v23 = vsub.f32 %v14309_v30, %v19183_v39  ;;  %v14350_v34 = vand.u32 4294901760, %v3538_v26  ;;  %v19381_v39 = vand.u32 4294901760, %v14042_v54  ;;  %v3631_v54 = vsub.f32 %v14322_v11, %v14348_v6 }
 0x45e   :  { %3924 = vmatmul.f32.gmra.mxu3 %v14211_v57  ;;  %v19379_v57 = vand.u32 4294901760, %v14301_v9  ;;  %v3531_v50 = vadd.f32 %v13995_v21, %v3520_v35  ;;  %4379 = vmatpush.msrb.mxu0 %v14182_v53 }
 0x45f   :  { %4304 = vmatpush.msrb.mxu3 %v4303_v41  ;;  %4468 = vmatpush.msra.mxu1 %v14239_v62 }
 0x460   :  { %v4308_v37 = vsub.f32 %v14301_v9, %v19379_v57  ;;  %v4319_v57 = vand.u32 4294901760, %v14334_v17  ;;  %4382 = vmatpush.msrb.mxu0 %v14204_v36  ;;  %v3539_v35 = vmax.f32 %v3531_v50, 0.0 }
 0x461   :  { %4470 = vmatpush.msra.mxu1 %v14258_v10 }
 0x462   :  { %3617 = vmatmul.f32.gmra.mxu0 %v14286_v52  ;;  %3766 = vmatmul.f32.gmra.mxu1 %v14213_v29  ;;  %v4309_v22 = vand.u32 4294901760, %v4308_v37  ;;  %v4320_v21 = vsub.f32 %v14334_v17, %v4319_v57  ;;  %v14367_v37 = vsub.f32 %v3538_v26, %v14350_v34  ;;  %v14382_v26 = vand.u32 4294901760, %v3539_v35 }
 0x463   :  { %4385 = vmatpush.msrb.mxu0 %v14223_v7  ;;  %4472 = vmatpush.msra.mxu1 %v14281_v3 }
 0x464   :  { %3852 = vmatmul.f32.gmra.mxu2 %v14245_v5  ;;  %v19380_v5 = vand.u32 4294901760, %v14026_v55  ;;  %4310 = vmatpush.msrb.mxu3 %v4309_v22  ;;  %v4321_v55 = vand.u32 4294901760, %v4320_v21  ;;  %v14380_v41 = vand.u32 4294901760, %v14367_v37 }
 0x465   :  { %4388 = vmatpush.msrb.mxu0 %v14232_v4  ;;  %4474 = vmatpush.msra.mxu1 %v14291_v18 }
 0x466   :  { %3930 = vmatmul.f32.gmra.mxu3 %v14289_v2  ;;  %4529 = vmatpush.msrb.mxu2 %v19380_v5  ;;  %v4315_v2 = vand.u32 4294901760, %v4314_v23  ;;  %v19383_v5 = vand.u32 4294901760, %v14104_v40  ;;  %v19385_v40 = vand.u32 4294901760, %v14142_v38  ;;  %v3639_v61 = vsub.f32 %v14367_v37, %v14380_v41 }
 0x467   :  { %4391 = vmatpush.msrb.mxu0 %v14261_v43  ;;  %4476 = vmatpush.msra.mxu1 %v14316_v58 }
 0x468   :  { %4533 = vmatpush.msrb.mxu2 %v19381_v39  ;;  %4316 = vmatpush.msrb.mxu3 %v4315_v2  ;;  %v14377_v2 = vand.u32 4294901760, %v3631_v54  ;;  %v14398_v39 = vsub.f32 %v3539_v35, %v14382_v26  ;;  %v3640_v38 = vand.u32 4294901760, %v3639_v61 }
 0x469   :  { %4394 = vmatpush.msrb.mxu0 %v14284_v42 }
 0x46a   :  { %3625 = vmatmul.f32.gmra.mxu0 %v14345_v12  ;;  %3770 = vmatmul.f32.gmra.mxu1 %v14264_v49 }
 0x46b   :  { %4537 = vmatpush.msrb.mxu2 %v19382_v20  ;;  %4322 = vmatpush.msrb.mxu3 %v4321_v55 }
 0x46c   :  { %3857 = vmatmul.f32.gmra.mxu2 %v14322_v11  ;;  %4397 = vmatpush.msrb.mxu0 %v14301_v9 }
 0x46d   :  { %4541 = vmatpush.msrb.mxu2 %v19383_v5  ;;  %4624 = vmatpush.msra.mxu3 %v14014_v45  ;;  %v19386_v45 = vand.u32 4294901760, %v14156_v32  ;;  %v14410_v32 = vand.u32 4294901760, %v14398_v39 }
 0x46e   :  { %3936 = vmatmul.f32.gmra.mxu3 %v14348_v6  ;;  %4400 = vmatpush.msrb.mxu0 %v14309_v30 }
 0x46f   :  { %4545 = vmatpush.msrb.mxu2 %v19384_v1  ;;  %4626 = vmatpush.msra.mxu3 %v14028_v31  ;;  %v19387_v31 = vand.u32 4294901760, %v14182_v53  ;;  %v3647_v53 = vsub.f32 %v14398_v39, %v14410_v32 }
 0x470   :  { %4403 = vmatpush.msrb.mxu0 %v14334_v17 }
 0x471   :  { %4549 = vmatpush.msrb.mxu2 %v19385_v40  ;;  %4628 = vmatpush.msra.mxu3 %v14039_v59  ;;  %v19388_v59 = vand.u32 4294901760, %v14204_v36  ;;  %v3648_v36 = vand.u32 4294901760, %v3647_v53 }
 0x472   :  { %3633 = vmatmul.f32.gmra.mxu0 %v14377_v2  ;;  %3774 = vmatmul.f32.gmra.mxu1 %v14350_v34 }
 0x473   :  { %4553 = vmatpush.msrb.mxu2 %v19386_v45  ;;  %4630 = vmatpush.msra.mxu3 %v14063_v8  ;;  %v19389_v8 = vand.u32 4294901760, %v14223_v7  ;;  %v19393_v7 = vand.u32 4294901760, %v14301_v9 }
 0x474   :  { %3862 = vmatmul.f32.gmra.mxu2 %v14367_v37 }
 0x475   :  { %4557 = vmatpush.msrb.mxu2 %v19387_v31  ;;  %4632 = vmatpush.msra.mxu3 %v14101_v44  ;;  %v19390_v44 = vand.u32 4294901760, %v14232_v4 }
 0x476   :  { %3942 = vmatmul.f32.gmra.mxu3 %v14380_v41 }
 0x477   :  { %4561 = vmatpush.msrb.mxu2 %v19388_v59  ;;  %4634 = vmatpush.msra.mxu3 %v14115_v51  ;;  %v19391_v51 = vand.u32 4294901760, %v14261_v43 }
 0x479   :  { %4565 = vmatpush.msrb.mxu2 %v19389_v8  ;;  %4636 = vmatpush.msra.mxu3 %v14131_v47  ;;  %v19392_v47 = vand.u32 4294901760, %v14284_v42  ;;  %v19402_v42 = vld [vmem:[#allocation26_spill] sm:$0xff] }
 0x47a   :  { %3641 = vmatmul.f32.gmra.mxu0 %v3640_v38  ;;  %3778 = vmatmul.f32.gmra.mxu1 %v14382_v26 }
 0x47b   :  { %4569 = vmatpush.msrb.mxu2 %v19390_v44  ;;  %4638 = vmatpush.msra.mxu3 %v14165_v16  ;;  %v19394_v16 = vand.u32 4294901760, %v14309_v30  ;;  %v19403_v30 = vld [vmem:[#allocation32_spill] sm:$0xff] }
 0x47c   :  { %3867 = vmatmul.f32.gmra.mxu2 %v14398_v39 }
 0x47d   :  { %4573 = vmatpush.msrb.mxu2 %v19391_v51  ;;  %4640 = vmatpush.msra.mxu3 %v14179_v33 }
 0x47e   :  { %3948 = vmatmul.f32.gmra.mxu3 %v14410_v32 }
 0x47f   :  { %4577 = vmatpush.msrb.mxu2 %v19392_v47  ;;  %4642 = vmatpush.msra.mxu3 %v14201_v15 }
 0x481   :  { %4581 = vmatpush.msrb.mxu2 %v19393_v7  ;;  %4644 = vmatpush.msra.mxu3 %v14206_v0  ;;  %v19398_v0 = vld [vmem:[#allocation27_spill] sm:$0xff] }
 0x482   :  { %3649 = vmatmul.f32.gmra.mxu0 %v3648_v36  ;;  %4082 = vmatmul.f32.vlgmr.msrb.gmra.mxu1 %v14019_v56 }
 0x483   :  { %4585 = vmatpush.msrb.mxu2 %v19394_v16  ;;  %4646 = vmatpush.msra.mxu3 %v14239_v62  ;;  %v19401_v62 = vld [vmem:[#allocation30_spill] sm:$0xff] }
 0x484   :  { %4167 = vmatmul.f32.vlgmr.msra.gmra.mxu2 %v14079_v48 }
 0x485   :  { %4589 = vmatpush.msrb.mxu2 %v4319_v57  ;;  %4648 = vmatpush.msra.mxu3 %v14258_v10 }
 0x486   :  { %4324 = vmatmul.f32.vlgmr.msrb.gmra.mxu3 %v14019_v56 }
 0x487   :  { %4650 = vmatpush.msra.mxu3 %v14281_v3 }
 0x489   :  { %4652 = vmatpush.msra.mxu3 %v14291_v18 }
 0x48a   :  { %4017 = vmatmul.f32.vlgmr.msra.gmra.mxu0 %v14019_v56  ;;  %4086 = vmatmul.f32.gmra.mxu1 %v14021_v13 }
 0x48b   :  { %4654 = vmatpush.msra.mxu3 %v14316_v58 }
 0x48c   :  { %4175 = vmatmul.f32.gmra.mxu2 %v14134_v60 }
 0x48e   :  { %4328 = vmatmul.f32.gmra.mxu3 %v14021_v13 }
 0x492   :  { %4021 = vmatmul.f32.gmra.mxu0 %v14021_v13  ;;  %4090 = vmatmul.f32.gmra.mxu1 %v14069_v28 }
 0x494   :  { %4183 = vmatmul.f32.gmra.mxu2 %v14208_v27  ;;  %v19399_v27 = vld [vmem:[#allocation36_spill] sm:$0xff] }
 0x496   :  { %4332 = vmatmul.f32.gmra.mxu3 %v14069_v28 }
 0x49a   :  { %4025 = vmatmul.f32.gmra.mxu0 %v14069_v28  ;;  %4094 = vmatmul.f32.gmra.mxu1 %v14126_v63 }
 0x49c   :  { %4191 = vmatmul.f32.gmra.mxu2 %v14286_v52 }
 0x49e   :  { %4336 = vmatmul.f32.gmra.mxu3 %v14126_v63 }
 0x4a2   :  { %4029 = vmatmul.f32.gmra.mxu0 %v14126_v63  ;;  %4098 = vmatmul.f32.gmra.mxu1 %v14213_v29 }
 0x4a4   :  { %4199 = vmatmul.f32.gmra.mxu2 %v14345_v12 }
 0x4a6   :  { %4340 = vmatmul.f32.gmra.mxu3 %v14213_v29 }
 0x4aa   :  { %4033 = vmatmul.f32.gmra.mxu0 %v14213_v29  ;;  %4102 = vmatmul.f32.gmra.mxu1 %v14264_v49 }
 0x4ac   :  { %4207 = vmatmul.f32.gmra.mxu2 %v14377_v2 }
 0x4ae   :  { %4344 = vmatmul.f32.gmra.mxu3 %v14264_v49 }
 0x4b2   :  { %4037 = vmatmul.f32.gmra.mxu0 %v14264_v49  ;;  %4106 = vmatmul.f32.gmra.mxu1 %v14350_v34 }
 0x4b4   :  { %4215 = vmatmul.f32.gmra.mxu2 %v3640_v38 }
 0x4b6   :  { %4348 = vmatmul.f32.gmra.mxu3 %v14350_v34 }
 0x4ba   :  { %4041 = vmatmul.f32.gmra.mxu0 %v14350_v34  ;;  %4110 = vmatmul.f32.gmra.mxu1 %v14382_v26 }
 0x4bc   :  { %4223 = vmatmul.f32.gmra.mxu2 %v3648_v36 }
 0x4be   :  { %4352 = vmatmul.f32.gmra.mxu3 %v14382_v26 }
 0x4bf   :  { %v14476_v58 = vpop.f32.mrf.mxu1 }
 0x4c2   :  { %4045 = vmatmul.f32.gmra.mxu0 %v14382_v26  ;;  %4480 = vmatmul.f32.vlgmr.msra.gmra.mxu1 %v14050_v24 }
 0x4c4   :  { %4591 = vmatmul.f32.vlgmr.msrb.gmra.mxu2 %v14019_v56 }
 0x4c6   :  { %4656 = vmatmul.f32.vlgmr.msra.gmra.mxu3 %v14019_v56 }
 0x4c7   :  { %v14482_v48 = vpop.f32.mrf.mxu0  ;;  %v14484_v18 = vpop.f32.mrf.mxu1 }
 0x4c8   :  { %v14486_v60 = vpop.f32.mrf.mxu2 }
 0x4c9   :  { %v14488_v52 = vpop.f32.mrf.mxu3 }
 0x4ca   :  { %19395 = vst [vmem:[#allocation42_spill] sm:$0xff] %v14488_v52  ;;  %4406 = vmatmul.f32.vlgmr.msrb.gmra.mxu0 %v14035_v14  ;;  %4486 = vmatmul.f32.gmra.mxu1 %v14082_v25 }
 0x4cc   :  { %4595 = vmatmul.f32.gmra.mxu2 %v14021_v13 }
 0x4ce   :  { %4660 = vmatmul.f32.gmra.mxu3 %v14021_v13 }
 0x4cf   :  { %v14494_v24 = vpop.f32.mrf.mxu0  ;;  %v14496_v3 = vpop.f32.mrf.mxu1 }
 0x4d0   :  { %v14498_v56 = vpop.f32.mrf.mxu2 }
 0x4d1   :  { %v14500_v33 = vpop.f32.mrf.mxu3 }
 0x4d2   :  { %19396 = vst [vmem:[#allocation28_spill] sm:$0xff] %v14500_v33  ;;  %4411 = vmatmul.f32.gmra.mxu0 %v14053_v19  ;;  %4492 = vmatmul.f32.gmra.mxu1 %v14124_v46 }
 0x4d4   :  { %4599 = vmatmul.f32.gmra.mxu2 %v14069_v28 }
 0x4d6   :  { %4664 = vmatmul.f32.gmra.mxu3 %v14069_v28 }
 0x4d7   :  { %v14506_v14 = vpop.f32.mrf.mxu0  ;;  %v14508_v25 = vpop.f32.mrf.mxu1 }
 0x4d8   :  { %v14510_v13 = vpop.f32.mrf.mxu2 }
 0x4d9   :  { %v14512_v15 = vpop.f32.mrf.mxu3 }
 0x4da   :  { %19397 = vst [vmem:[#allocation31_spill] sm:$0xff] %v14512_v15  ;;  %4416 = vmatmul.f32.gmra.mxu0 %v19398_v0  ;;  %4498 = vmatmul.f32.gmra.mxu1 %v19399_v27 }
 0x4dc   :  { %4603 = vmatmul.f32.gmra.mxu2 %v14126_v63 }
 0x4de   :  { %4668 = vmatmul.f32.gmra.mxu3 %v14126_v63 }
 0x4df   :  { %v14518_v19 = vpop.f32.mrf.mxu0  ;;  %v14520_v46 = vpop.f32.mrf.mxu1 }
 0x4e0   :  { %v14522_v28 = vpop.f32.mrf.mxu2 }
 0x4e1   :  { %v14524_v4 = vpop.f32.mrf.mxu3 }
 0x4e2   :  { %19400 = vst [vmem:[#allocation40_spill] sm:$0xff] %v14524_v4  ;;  %4421 = vmatmul.f32.gmra.mxu0 %v19401_v62  ;;  %4504 = vmatmul.f32.gmra.mxu1 %v19402_v42 }
 0x4e4   :  { %4607 = vmatmul.f32.gmra.mxu2 %v14213_v29 }
 0x4e6   :  { %4672 = vmatmul.f32.gmra.mxu3 %v14213_v29 }
 0x4e7   :  { %v14530_v10 = vpop.f32.mrf.mxu0  ;;  %v14532_v43 = vpop.f32.mrf.mxu1 }
 0x4e8   :  { %v14534_v63 = vpop.f32.mrf.mxu2 }
 0x4e9   :  { %v14536_v9 = vpop.f32.mrf.mxu3 }
 0x4ea   :  { %4426 = vmatmul.f32.gmra.mxu0 %v19403_v30  ;;  %4510 = vmatmul.f32.gmra.mxu1 %v14348_v6 }
 0x4ec   :  { %4611 = vmatmul.f32.gmra.mxu2 %v14264_v49 }
 0x4ee   :  { %4676 = vmatmul.f32.gmra.mxu3 %v14264_v49 }
 0x4ef   :  { %v14542_v17 = vpop.f32.mrf.mxu0  ;;  %v14544_v23 = vpop.f32.mrf.mxu1 }
 0x4f0   :  { %v14546_v29 = vpop.f32.mrf.mxu2 }
 0x4f1   :  { %v14548_v50 = vpop.f32.mrf.mxu3 }
 0x4f2   :  { %4431 = vmatmul.f32.gmra.mxu0 %v14322_v11  ;;  %4516 = vmatmul.f32.gmra.mxu1 %v14380_v41 }
 0x4f4   :  { %4615 = vmatmul.f32.gmra.mxu2 %v14350_v34 }
 0x4f6   :  { %4680 = vmatmul.f32.gmra.mxu3 %v14350_v34 }
 0x4f7   :  { %v14554_v22 = vpop.f32.mrf.mxu0  ;;  %v14556_v57 = vpop.f32.mrf.mxu1 }
 0x4f8   :  { %v14558_v49 = vpop.f32.mrf.mxu2 }
 0x4f9   :  { %v14560_v12 = vpop.f32.mrf.mxu3 }
 0x4fa   :  { %4436 = vmatmul.f32.gmra.mxu0 %v14367_v37  ;;  %4522 = vmatmul.f32.gmra.mxu1 %v14410_v32 }
 0x4fc   :  { %4619 = vmatmul.f32.gmra.mxu2 %v14382_v26 }
 0x4fe   :  { %4684 = vmatmul.f32.gmra.mxu3 %v14382_v26 }
 0x4ff   :  { %v14566_v11 = vpop.f32.mrf.mxu0  ;;  %v14568_v6 = vpop.f32.mrf.mxu1 }
 0x500   :  { %19404 = vst [vmem:[#allocation43_spill] sm:$0xff] %v14568_v6  ;;  %v14570_v34 = vpop.f32.mrf.mxu2 }
 0x501   :  { %v14572_v21 = vpop.f32.mrf.mxu3 }
 0x502   :  { %19405 = vst [vmem:[#allocation19_spill] sm:$0xff] %v14572_v21  ;;  %4441 = vmatmul.f32.gmra.mxu0 %v14398_v39 }
 0x507   :  { %v14575_v55 = vpop.f32.mrf.mxu0  ;;  %v14577_v20 = vpop.f32.mrf.mxu1 }
 0x508   :  { %19406 = vst [vmem:[#allocation12_spill] sm:$0xff] %v14575_v55  ;;  %v14579_v54 = vpop.f32.mrf.mxu2 }
 0x509   :  { %19407 = vst [vmem:[#allocation13_spill] sm:$0xff] %v14577_v20  ;;  %v14581_v37 = vpop.f32.mrf.mxu3 }
 0x50f   :  { %v14583_v35 = vpop.f32.mrf.mxu0  ;;  %v14585_v5 = vpop.f32.mrf.mxu1 }
 0x510   :  { %19408 = vst [vmem:[#allocation11_spill] sm:$0xff] %v14583_v35  ;;  %v14587_v1 = vpop.f32.mrf.mxu2 }
 0x511   :  { %19409 = vst [vmem:[#allocation24_spill] sm:$0xff] %v14585_v5  ;;  %v14589_v2 = vpop.f32.mrf.mxu3 }
 0x517   :  { %v14591_v41 = vpop.f32.mrf.mxu0  ;;  %v14593_v26 = vpop.f32.mrf.mxu1 }
 0x518   :  { %19410 = vst [vmem:[#allocation35_spill] sm:$0xff] %v14591_v41  ;;  %v14595_v40 = vpop.f32.mrf.mxu2 }
 0x519   :  { %19411 = vst [vmem:[#allocation38_spill] sm:$0xff] %v14593_v26  ;;  %v14597_v45 = vpop.f32.mrf.mxu3 }
 0x51f   :  { %v14599_v61 = vpop.f32.mrf.mxu0  ;;  %v14601_v39 = vpop.f32.mrf.mxu1 }
 0x520   :  { %19412 = vst [vmem:[#allocation41_spill] sm:$0xff] %v14599_v61  ;;  %v4192_v31 = vpop.f32.mrf.mxu2 }
 0x521   :  { %19413 = vst [vmem:[#allocation15_spill] sm:$0xff] %v14601_v39  ;;  %v4337_v59 = vpop.f32.mrf.mxu3 }
 0x527   :  { %v14603_v38 = vpop.f32.mrf.mxu0  ;;  %v14605_v32 = vpop.f32.mrf.mxu1 }
 0x528   :  { %19414 = vst [vmem:[#allocation17_spill] sm:$0xff] %v14605_v32  ;;  %v4200_v8 = vpop.f32.mrf.mxu2 }
 0x529   :  { %v4341_v44 = vpop.f32.mrf.mxu3 }
 0x52f   :  { %v14607_v53 = vpop.f32.mrf.mxu0  ;;  %v14609_v51 = vpop.f32.mrf.mxu1 }
 0x530   :  { %19415 = vst [vmem:[#allocation37_spill] sm:$0xff] %v14609_v51  ;;  %v4208_v47 = vpop.f32.mrf.mxu2  ;;  %v3752_v51 = vadd.f32 %v14476_v58, %v14482_v48 }
 0x531   :  { %v4345_v36 = vpop.f32.mrf.mxu3 }
 0x532   :  { %v4346_v4 = vadd.f32 %v4345_v36, %v4208_v47  ;;  %v4338_v47 = vadd.f32 %v4337_v59, %v4192_v31 }
 0x537   :  { %v4042_v7 = vpop.f32.mrf.mxu0  ;;  %v14611_v16 = vpop.f32.mrf.mxu1 }
 0x538   :  { %19416 = vst [vmem:[#allocation10_spill] sm:$0xff] %v14611_v16  ;;  %v4216_v0 = vpop.f32.mrf.mxu2 }
 0x539   :  { %v4349_v27 = vpop.f32.mrf.mxu3 }
 0x53f   :  { %v14613_v62 = vpop.f32.mrf.mxu0  ;;  %v14615_v42 = vpop.f32.mrf.mxu1 }
 0x540   :  { %19417 = vst [vmem:[#allocation25_spill] sm:$0xff] %v14613_v62  ;;  %v14617_v30 = vpop.f32.mrf.mxu2 }
 0x541   :  { %19418 = vst [vmem:[#allocation9_spill] sm:$0xff] %v14615_v42  ;;  %v14619_v6 = vpop.f32.mrf.mxu3 }
 0x542   :  { %19419 = vst [vmem:[#allocation29_spill] sm:$0xff] %v14617_v30 }
 0x543   :  { %19420 = vst [vmem:[#allocation33_spill] sm:$0xff] %v14619_v6  ;;  %v4342_v6 = vadd.f32 %v4341_v44, %v4200_v8  ;;  %v19438_v44 = vld [vmem:[#allocation40_spill] sm:$0xff] }
 0x547   :  { %v14621_v20 = vpop.f32.mrf.mxu0  ;;  %v14623_v55 = vpop.f32.mrf.mxu1 }
 0x548   :  { %19421 = vst [vmem:[#allocation7_spill] sm:$0xff] %v14621_v20  ;;  %v14625_v5 = vpop.f32.mrf.mxu2 }
 0x549   :  { %19422 = vst [vmem:[#allocation8_spill] sm:$0xff] %v14623_v55  ;;  %v14627_v35 = vpop.f32.mrf.mxu3 }
 0x54a   :  { %19423 = vst [vmem:[#allocation14_spill] sm:$0xff] %v14625_v5  ;;  %v19436_v31 = vld [vmem:[#allocation33_spill] sm:$0xff] }
 0x54b   :  { %19424 = vst [vmem:[#allocation39_spill] sm:$0xff] %v14627_v35 }
 0x54f   :  { %v14629_v26 = vpop.f32.mrf.mxu0  ;;  %v14631_v16 = vpop.f32.mrf.mxu1  ;;  %v19440_v36 = vld [vmem:[#allocation7_spill] sm:$0xff] }
 0x550   :  { %19425 = vst [vmem:[#allocation16_spill] sm:$0xff] %v14629_v26  ;;  %v14633_v33 = vpop.f32.mrf.mxu2 }
 0x551   :  { %19426 = vst [vmem:[#allocation21_spill] sm:$0xff] %v14631_v16  ;;  %v14635_v52 = vpop.f32.mrf.mxu3 }
 0x552   :  { %19427 = vst [vmem:[#allocation34_spill] sm:$0xff] %v14633_v33  ;;  %v3776_v33 = vadd.f32 %v14544_v23, %v14554_v22  ;;  %v3756_v23 = vadd.f32 %v14484_v18, %v14494_v24  ;;  %v3764_v22 = vadd.f32 %v14508_v25, %v14518_v19  ;;  %v3760_v18 = vadd.f32 %v14496_v3, %v14506_v14 }
 0x553   :  { %19428 = vst [vmem:[#allocation20_spill] sm:$0xff] %v14635_v52  ;;  %v4334_v24 = vadd.f32 %v14597_v45, %v14595_v40  ;;  %v19433_v45 = vld [vmem:[#allocation37_spill] sm:$0xff] }
 0x557   :  { %v4417_v42 = vpop.f32.mrf.mxu0  ;;  %v4499_v62 = vpop.f32.mrf.mxu1 }
 0x558   :  { %v14637_v41 = vpop.f32.mrf.mxu2 }
 0x559   :  { %19429 = vst [vmem:[#allocation18_spill] sm:$0xff] %v14637_v41  ;;  %v14639_v39 = vpop.f32.mrf.mxu3 }
 0x55a   :  { %19430 = vst [vmem:[#allocation22_spill] sm:$0xff] %v14639_v39  ;;  %v3772_v39 = vadd.f32 %v14532_v43, %v14542_v17  ;;  %v4350_v17 = vadd.f32 %v4349_v27, %v4216_v0 }
 0x55c   :  { %v3859_v43 = vadd.f32 %v14546_v29, %v3772_v39  ;;  %v3849_v29 = vadd.f32 %v14522_v28, %v3764_v22  ;;  %v19435_v39 = vld [vmem:[#allocation29_spill] sm:$0xff] }
 0x55d   :  { %v19444_v22 = vld [vmem:[#allocation41_spill] sm:$0xff] }
 0x55f   :  { %v4422_v61 = vpop.f32.mrf.mxu0  ;;  %v4505_v35 = vpop.f32.mrf.mxu1 }
 0x560   :  { %v14641_v55 = vpop.f32.mrf.mxu2 }
 0x561   :  { %19431 = vst [vmem:[#allocation23_spill] sm:$0xff] %v14641_v55  ;;  %v14643_v5 = vpop.f32.mrf.mxu3  ;;  %v3864_v55 = vadd.f32 %v14558_v49, %v3776_v33  ;;  %v3780_v33 = vadd.f32 %v14556_v57, %v14566_v11  ;;  %v3938_v57 = vadd.f32 %v14548_v50, %v3859_v43  ;;  %v4418_v11 = vadd.f32 %v4417_v42, %v4334_v24  ;;  %v19449_v24 = vld [vmem:[#allocation35_spill] sm:$0xff] }
 0x562   :  { %19432 = vst [vmem:[#allocation27_spill] sm:$0xff] %v14643_v5  ;;  %v3768_v5 = vadd.f32 %v14520_v46, %v14530_v10  ;;  %v3834_v10 = vadd.f32 %v14486_v60, %v3752_v51  ;;  %v4326_v50 = vadd.f32 %v14581_v37, %v14579_v54 }
 0x563   :  { %v3944_v46 = vadd.f32 %v14560_v12, %v3864_v55  ;;  %v3869_v14 = vadd.f32 %v14570_v34, %v3780_v33  ;;  %v4330_v55 = vadd.f32 %v14589_v2, %v14587_v1  ;;  %v4039_v28 = vadd.f32 %v14607_v53, %v3938_v57  ;;  %v19437_v2 = vld [vmem:[#allocation21_spill] sm:$0xff] }
 0x564   :  { %v4354_v1 = vadd.f32 %v19436_v31, %v19435_v39  ;;  %v4494_v59 = vadd.f32 %v19437_v2, %v4418_v11  ;;  %v3926_v53 = vadd.f32 %v19438_v44, %v3849_v29  ;;  %v19452_v11 = vld [vmem:[#allocation42_spill] sm:$0xff]  ;;  %v19458_v39 = vld [vmem:[#allocation11_spill] sm:$0xff] }
 0x565   :  { %v4043_v49 = vadd.f32 %v4042_v7, %v3944_v46  ;;  %v4408_v7 = vadd.f32 %v19440_v36, %v4326_v50  ;;  %v19447_v46 = vld [vmem:[#allocation25_spill] sm:$0xff] }
 0x567   :  { %v4427_v15 = vpop.f32.mrf.mxu0  ;;  %v4511_v21 = vpop.f32.mrf.mxu1 }
 0x568   :  { %v4608_v32 = vpop.f32.mrf.mxu2  ;;  %v4428_v26 = vadd.f32 %v4427_v15, %v4342_v6  ;;  %v4423_v15 = vadd.f32 %v4422_v61, %v4338_v47  ;;  %v19434_v61 = vld [vmem:[#allocation16_spill] sm:$0xff]  ;;  %v19441_v54 = vld [vmem:[#allocation23_spill] sm:$0xff]  ;;  %v4031_v47 = vadd.f32 %v19444_v22, %v3926_v53 }
 0x569   :  { %v4673_v20 = vpop.f32.mrf.mxu3  ;;  %v4413_v34 = vadd.f32 %v19434_v61, %v4330_v55  ;;  %v19453_v55 = vld [vmem:[#allocation28_spill] sm:$0xff] }
 0x56a   :  { %v4506_v25 = vadd.f32 %v4505_v35, %v4428_v26  ;;  %v4500_v35 = vadd.f32 %v4499_v62, %v4423_v15  ;;  %v19448_v15 = vld [vmem:[#allocation18_spill] sm:$0xff] }
 0x56c   :  { %v4605_v37 = vadd.f32 %v19441_v54, %v4500_v35 }
 0x56f   :  { %v4432_v52 = vpop.f32.mrf.mxu0  ;;  %v4517_v58 = vpop.f32.mrf.mxu1 }
 0x570   :  { %v4612_v16 = vpop.f32.mrf.mxu2  ;;  %v4433_v30 = vadd.f32 %v4432_v52, %v4346_v4  ;;  %v3854_v4 = vadd.f32 %v14534_v63, %v3768_v5  ;;  %v3839_v63 = vadd.f32 %v14498_v56, %v3756_v23  ;;  %v3844_v56 = vadd.f32 %v14510_v13, %v3760_v18 }
 0x571   :  { %v4677_v41 = vpop.f32.mrf.mxu3  ;;  %v4609_v5 = vadd.f32 %v4608_v32, %v4506_v25  ;;  %v19439_v32 = vld [vmem:[#allocation19_spill] sm:$0xff] }
 0x572   :  { %v4512_v52 = vadd.f32 %v4511_v21, %v4433_v30  ;;  %v3932_v3 = vadd.f32 %v14536_v9, %v3854_v4  ;;  %v4108_v9 = vadd.f32 %v19433_v45, %v4043_v49  ;;  %v3950_v51 = vadd.f32 %v19439_v32, %v3869_v14  ;;  %v19443_v30 = vld [vmem:[#allocation31_spill] sm:$0xff] }
 0x573   :  { %v4674_v27 = vadd.f32 %v4673_v20, %v4609_v5  ;;  %v3920_v23 = vadd.f32 %v19443_v30, %v3844_v56  ;;  %v4696_v20 = vld [vmem:[%s19133_s9] sm:$0xff]  ;;  %v3914_v35 = vadd.f32 %v19453_v55, %v3839_v63 }
 0x574   :  { %v4613_v6 = vadd.f32 %v4612_v16, %v4512_v52  ;;  %v4035_v40 = vadd.f32 %v14603_v38, %v3932_v3  ;;  %v19442_v16 = vld [vmem:[#allocation17_spill] sm:$0xff]  ;;  %v4047_v33 = vadd.f32 %v19447_v46, %v3950_v51  ;;  %v19451_v49 = vld [vmem:[#allocation27_spill] sm:$0xff]  ;;  %v4702_v50 = vsel %vm2307_vm1, %v4696_v20, 0  ;;  %v19461_v51 = vld [vmem:[#allocation12_spill] sm:$0xff] }
 0x575   :  { %v4104_v0 = vadd.f32 %v19442_v16, %v4039_v28  ;;  %v4027_v25 = vadd.f32 %v19449_v24, %v3920_v23  ;;  %v19455_v28 = vld [vmem:[#allocation34_spill] sm:$0xff]  ;;  %v4023_v31 = vadd.f32 %v19458_v39, %v3914_v35  ;;  %v14721_v32 = vand.u32 4294901760, %v4702_v50 }
 0x576   :  { %v4678_v8 = vadd.f32 %v4677_v41, %v4613_v6  ;;  %v19445_v41 = vld [vmem:[#allocation15_spill] sm:$0xff]  ;;  %v3908_v6 = vadd.f32 %v19452_v11, %v3834_v10 }
 0x577   :  { %v4437_v48 = vpop.f32.mrf.mxu0  ;;  %v4100_v43 = vadd.f32 %v19445_v41, %v4035_v40  ;;  %v4523_v4 = vpop.f32.mrf.mxu1  ;;  %v19456_v40 = vld [vmem:[#allocation10_spill] sm:$0xff] }
 0x578   :  { %v4438_v19 = vadd.f32 %v4437_v48, %v4350_v17  ;;  %v4616_v12 = vpop.f32.mrf.mxu2  ;;  %v19446_v17 = vld [vmem:[#allocation8_spill] sm:$0xff]  ;;  %v4693_v48 = vmax.f32 %v4104_v0, %v4678_v8  ;;  %v4112_v45 = vadd.f32 %v19456_v40, %v4047_v33  ;;  %v4019_v36 = vadd.f32 %v19461_v51, %v3908_v6  ;;  %v19463_v0 = vld [vmem:[#allocation13_spill] sm:$0xff] }
 0x579   :  { %v4681_v60 = vpop.f32.mrf.mxu3  ;;  %v4488_v52 = vadd.f32 %v19446_v17, %v4413_v34  ;;  %v19465_v17 = vld [vmem:[#allocation43_spill] sm:$0xff] }
 0x57a   :  { %v4518_v21 = vadd.f32 %v4517_v58, %v4438_v19  ;;  %v4601_v58 = vadd.f32 %v19448_v15, %v4494_v59  ;;  %v19450_v19 = vld [vmem:[#allocation9_spill] sm:$0xff]  ;;  %v14711_v34 = vand.u32 4294901760, %v4693_v48  ;;  %v19460_v59 = vld [vmem:[#allocation14_spill] sm:$0xff] }
 0x57b   :  { %v4482_v29 = vadd.f32 %v19450_v19, %v4408_v7  ;;  %v4597_v5 = vadd.f32 %v19455_v28, %v4488_v52  ;;  %v19462_v7 = vld [vmem:[#allocation20_spill] sm:$0xff]  ;;  %v4084_v52 = vadd.f32 %v19465_v17, %v4019_v36 }
 0x57c   :  { %v4617_v26 = vadd.f32 %v4616_v12, %v4518_v21  ;;  %v4670_v12 = vadd.f32 %v19451_v49, %v4605_v37  ;;  %v4692_v21 = vmax.f32 %v4100_v43, %v4674_v27  ;;  %v4088_v27 = vadd.f32 %v19463_v0, %v4023_v31 }
 0x57d   :  { %v4593_v63 = vadd.f32 %v19460_v59, %v4482_v29  ;;  %v4662_v54 = vadd.f32 %v19462_v7, %v4597_v5  ;;  %v14749_v43 = vsub.f32 %v4702_v50, %v14721_v32 }
 0x57e   :  { %v4682_v13 = vadd.f32 %v4681_v60, %v4617_v26  ;;  %v19454_v60 = vld [vmem:[#allocation38_spill] sm:$0xff] }
 0x57f   :  { %v4442_v38 = vpop.f32.mrf.mxu0  ;;  %v4096_v56 = vadd.f32 %v19454_v60, %v4031_v47  ;;  %v4742_v19 = vand.u32 4294901760, %v14749_v43 }
 0x580   :  { %v4694_v62 = vmax.f32 %v4108_v9, %v4682_v13  ;;  %v4443_v42 = vadd.f32 %v4442_v38, %v4354_v1  ;;  %v4620_v57 = vpop.f32.mrf.mxu2  ;;  %v19457_v9 = vld [vmem:[#allocation22_spill] sm:$0xff]  ;;  %v19459_v1 = vld [vmem:[#allocation24_spill] sm:$0xff]  ;;  %v14716_v13 = vand.u32 4294901760, %v4692_v21  ;;  %v14726_v38 = vsub.f32 %v4693_v48, %v14711_v34 }
 0x581   :  { %v4685_v26 = vpop.f32.mrf.mxu3  ;;  %v4666_v61 = vadd.f32 %v19457_v9, %v4601_v58  ;;  %v4092_v2 = vadd.f32 %v19459_v1, %v4027_v25  ;;  %v4691_v8 = vmax.f32 %v4096_v56, %v4670_v12  ;;  %v4743_v35 = vsub.f32 %v14749_v43, %v4742_v19 }
 0x582   :  { %v4524_v18 = vadd.f32 %v4523_v4, %v4443_v42  ;;  %v14703_v3 = vand.u32 4294901760, %v4694_v62  ;;  %v19464_v42 = vld [vmem:[#allocation39_spill] sm:$0xff]  ;;  %v14738_v22 = vsub.f32 %v4692_v21, %v14716_v13  ;;  %v4689_v4 = vmax.f32 %v4088_v27, %v4662_v54 }
 0x583   :  { %v4690_v37 = vmax.f32 %v4092_v2, %v4666_v61  ;;  %v4658_v30 = vadd.f32 %v19464_v42, %v4593_v63  ;;  %v14732_v23 = vand.u32 4294901760, %v4691_v8  ;;  %v14760_v15 = vand.u32 4294901760, %v14726_v38 }
 0x584   :  { %v4621_v14 = vadd.f32 %v4620_v57, %v4524_v18  ;;  %v14719_v44 = vsub.f32 %v4694_v62, %v14703_v3  ;;  %v4697_v62 = vld [vmem:[%s19133_s9 + $0x8] sm:$0xff]  ;;  %v14774_v25 = vand.u32 4294901760, %v14738_v22  ;;  %v14777_v29 = vand.u32 4294901760, %v4689_v4 }
 0x585   :  { %v14752_v46 = vand.u32 4294901760, %v4690_v37  ;;  %v4705_v58 = vsel %vm2307_vm1, %v4697_v62, 0  ;;  %v4688_v48 = vmax.f32 %v4084_v52, %v4658_v30  ;;  %v14764_v18 = vsub.f32 %v4691_v8, %v14732_v23 }
 0x586   :  { %v4686_v10 = vadd.f32 %v4685_v26, %v4621_v14  ;;  %v14746_v41 = vand.u32 4294901760, %v14719_v44  ;;  %v14780_v49 = vand.u32 4294901760, %v4705_v58  ;;  %v4804_v11 = vsub.f32 %v14726_v38, %v14760_v15  ;;  %v4698_v26 = vld [vmem:[%s19133_s9 + $0x10] sm:$0xff] }
 0x587   :  { %v14783_v12 = vsub.f32 %v4690_v37, %v14752_v46  ;;  %v14789_v6 = vand.u32 4294901760, %v4688_v48  ;;  %v14793_v21 = vand.u32 4294901760, %v14764_v18  ;;  %v4810_v55 = vsub.f32 %v14738_v22, %v14774_v25  ;;  %v4699_v37 = vld [vmem:[%s19133_s9 + $0x18] sm:$0xff] }
 0x588   :  { %v4695_v53 = vmax.f32 %v4112_v45, %v4686_v10  ;;  %v4798_v24 = vsub.f32 %v14719_v44, %v14746_v41  ;;  %v14800_v60 = vsub.f32 %v4689_v4, %v14777_v29  ;;  %v14805_v56 = vsub.f32 %v4705_v58, %v14780_v49 }
 0x589   :  { %v4805_v28 = vand.u32 4294901760, %v4804_v11  ;;  %v14809_v5 = vand.u32 4294901760, %v14783_v12  ;;  %v14815_v50 = vsub.f32 %v4688_v48, %v14789_v6  ;;  %v4816_v40 = vsub.f32 %v14764_v18, %v14793_v21 }
 0x58a   :  { %v14728_v16 = vand.u32 4294901760, %v4695_v53  ;;  %v4799_v14 = vand.u32 4294901760, %v4798_v24  ;;  %v4811_v45 = vand.u32 4294901760, %v4810_v55  ;;  %v4744_v9 = vand.u32 4294901760, %v4743_v35 }
 0x58b   :  { %v14825_v61 = vand.u32 4294901760, %v14800_v60  ;;  %v4750_v10 = vand.u32 4294901760, %v14805_v56  ;;  %v4708_v39 = vsel %vm2307_vm1, %v4698_v26, 0  ;;  %v4822_v31 = vsub.f32 %v14783_v12, %v14809_v5 }
 0x58c   :  { %v14741_v47 = vsub.f32 %v4695_v53, %v14728_v16  ;;  %4725 = vmatpush.msra.mxu0 %v14728_v16  ;;  %4925 = vmatpush.msrb.mxu3 %v14728_v16  ;;  %v4817_v1 = vand.u32 4294901760, %v4816_v40  ;;  %v14835_v2 = vand.u32 4294901760, %v14815_v50  ;;  %v14837_v59 = vand.u32 4294901760, %v4708_v39 }
 0x58d   :  { %v4828_v63 = vsub.f32 %v14800_v60, %v14825_v61  ;;  %v4751_v8 = vsub.f32 %v14805_v56, %v4750_v10  ;;  %v4823_v53 = vand.u32 4294901760, %v4822_v31  ;;  %v4711_v42 = vsel %vm2307_vm1, %v4699_v37, 0 }
 0x58e   :  { %4727 = vmatpush.msra.mxu0 %v14703_v3  ;;  %4868 = vmatpush.msra.mxu2 %v14741_v47  ;;  %v14757_v33 = vand.u32 4294901760, %v14741_v47  ;;  %v4834_v51 = vsub.f32 %v14815_v50, %v14835_v2  ;;  %v4757_v36 = vsub.f32 %v4708_v39, %v14837_v59  ;;  %v14862_v30 = vand.u32 4294901760, %v4711_v42 }
 0x58f   :  { %4927 = vmatpush.msrb.mxu3 %v14703_v3  ;;  %v4829_v7 = vand.u32 4294901760, %v4828_v63  ;;  %v4752_v54 = vand.u32 4294901760, %v4751_v8 }
 0x590   :  { %4729 = vmatpush.msra.mxu0 %v14711_v34  ;;  %4871 = vmatpush.msra.mxu2 %v14719_v44  ;;  %v4792_v20 = vsub.f32 %v14741_v47, %v14757_v33  ;;  %v4835_v0 = vand.u32 4294901760, %v4834_v51  ;;  %v4758_v27 = vand.u32 4294901760, %v4757_v36  ;;  %v4765_v17 = vsub.f32 %v4711_v42, %v14862_v30 }
 0x591   :  { %4929 = vmatpush.msrb.mxu3 %v14711_v34 }
 0x592   :  { %4731 = vmatpush.msra.mxu0 %v14716_v13  ;;  %4874 = vmatpush.msra.mxu2 %v14726_v38  ;;  %v4793_v57 = vand.u32 4294901760, %v4792_v20  ;;  %v4759_v62 = vsub.f32 %v4757_v36, %v4758_v27  ;;  %v4766_v58 = vand.u32 4294901760, %v4765_v17 }
 0x593   :  { %4931 = vmatpush.msrb.mxu3 %v14716_v13 }
 0x594   :  { %4733 = vmatpush.msra.mxu0 %v14732_v23  ;;  %4794 = vmatpush.msrb.mxu1 %v4793_v57  ;;  %v4760_v52 = vand.u32 4294901760, %v4759_v62  ;;  %v4767_v20 = vsub.f32 %v4765_v17, %v4766_v58 }
 0x595   :  { %4877 = vmatpush.msra.mxu2 %v14738_v22  ;;  %4933 = vmatpush.msrb.mxu3 %v14732_v23 }
 0x596   :  { %4735 = vmatpush.msra.mxu0 %v14752_v46  ;;  %4800 = vmatpush.msrb.mxu1 %v4799_v14 }
 0x597   :  { %4880 = vmatpush.msra.mxu2 %v14764_v18  ;;  %4935 = vmatpush.msrb.mxu3 %v14752_v46 }
 0x598   :  { %4737 = vmatpush.msra.mxu0 %v14777_v29  ;;  %4806 = vmatpush.msrb.mxu1 %v4805_v28 }
 0x599   :  { %4883 = vmatpush.msra.mxu2 %v14783_v12  ;;  %4937 = vmatpush.msrb.mxu3 %v14777_v29 }
 0x59a   :  { %4739 = vmatpush.msra.mxu0 %v14789_v6  ;;  %4812 = vmatpush.msrb.mxu1 %v4811_v45 }
 0x59b   :  { %4886 = vmatpush.msra.mxu2 %v14800_v60  ;;  %4939 = vmatpush.msrb.mxu3 %v14789_v6 }
 0x59c   :  { %4745 = vmatmul.f32.vlgmr.msra.gmra.mxu0 %v4744_v9  ;;  %4818 = vmatpush.msrb.mxu1 %v4817_v1 }
 0x59d   :  { %5175 = vmatpush.msra.mxu3 %v4793_v57  ;;  %4982 = vmatpush.msrb.mxu0 %v14757_v33 }
 0x59e   :  { %4889 = vmatpush.msra.mxu2 %v14815_v50  ;;  %4824 = vmatpush.msrb.mxu1 %v4823_v53 }
 0x59f   :  { %5181 = vmatpush.msra.mxu3 %v4799_v14  ;;  %4986 = vmatpush.msrb.mxu0 %v14746_v41 }
 0x5a0   :  { %5106 = vmatpush.msrb.mxu2 %v14728_v16  ;;  %4943 = vmatmul.f32.vlgmr.msrb.gmra.mxu3 %v4742_v19 }
 0x5a1   :  { %4892 = vmatmul.f32.vlgmr.msra.gmra.mxu2 %v14749_v43  ;;  %4990 = vmatpush.msrb.mxu0 %v14760_v15  ;;  %v4700_v43 = vld [vmem:[%s19133_s9 + $0x20] sm:$0x3] }
 0x5a2   :  { %5108 = vmatpush.msrb.mxu2 %v14703_v3  ;;  %5187 = vmatpush.msra.mxu3 %v4805_v28  ;;  %v4714_v4 = vsel %vm2307_vm1, %v4700_v43, 0 }
 0x5a3   :  { %4830 = vmatpush.msrb.mxu1 %v4829_v7  ;;  %4994 = vmatpush.msrb.mxu0 %v14774_v25  ;;  %v14880_v48 = vand.u32 4294901760, %v4714_v4 }
 0x5a4   :  { %5110 = vmatpush.msrb.mxu2 %v14711_v34  ;;  %5193 = vmatpush.msra.mxu3 %v4811_v45 }
 0x5a5   :  { %4836 = vmatpush.msrb.mxu1 %v4835_v0  ;;  %4753 = vmatmul.f32.gmra.mxu0 %v4752_v54 }
 0x5a6   :  { %4838 = vmatmul.f32.vlgmr.msrb.gmra.mxu1 %v14721_v32  ;;  %4998 = vmatpush.msrb.mxu0 %v14793_v21 }
 0x5a7   :  { %5041 = vmatpush.msra.mxu1 %v14728_v16  ;;  %5112 = vmatpush.msrb.mxu2 %v14716_v13 }
 0x5a8   :  { %5199 = vmatpush.msra.mxu3 %v4817_v1  ;;  %5002 = vmatpush.msrb.mxu0 %v14809_v5 }
 0x5a9   :  { %5043 = vmatpush.msra.mxu1 %v14703_v3  ;;  %5114 = vmatpush.msrb.mxu2 %v14732_v23 }
 0x5aa   :  { %5205 = vmatpush.msra.mxu3 %v4823_v53  ;;  %4897 = vmatmul.f32.gmra.mxu2 %v14805_v56  ;;  %v5081_v56 = vld [vmem:[%s19134_s10 + $0x20] sm:$0x3] }
 0x5ab   :  { %4949 = vmatmul.f32.gmra.mxu3 %v4750_v10  ;;  %5006 = vmatpush.msrb.mxu0 %v14825_v61  ;;  %v5095_v26 = vsel %vm2307_vm1, %v5081_v56, 0 }
 0x5ac   :  { %5045 = vmatpush.msra.mxu1 %v14711_v34  ;;  %5116 = vmatpush.msrb.mxu2 %v14752_v46  ;;  %v5153_v45 = vand.u32 4294901760, %v5095_v26 }
 0x5ad   :  { %5211 = vmatpush.msra.mxu3 %v4829_v7  ;;  %5010 = vmatpush.msrb.mxu0 %v14835_v2 }
 0x5ae   :  { %5047 = vmatpush.msra.mxu1 %v14716_v13  ;;  %5118 = vmatpush.msrb.mxu2 %v14777_v29 }
 0x5af   :  { %5217 = vmatpush.msra.mxu3 %v4835_v0  ;;  %5249 = vmatpush.msra.mxu0 %v14741_v47  ;;  %v4773_v47 = vsub.f32 %v4714_v4, %v14880_v48 }
 0x5b0   :  { %4761 = vmatmul.f32.gmra.mxu0 %v4760_v52  ;;  %4842 = vmatmul.f32.gmra.mxu1 %v14780_v49 }
 0x5b1   :  { %5422 = vmatpush.msrb.mxu3 %v14728_v16  ;;  %5120 = vmatpush.msrb.mxu2 %v14789_v6  ;;  %v4774_v24 = vand.u32 4294901760, %v4773_v47 }
 0x5b2   :  { %5049 = vmatpush.msra.mxu1 %v14732_v23  ;;  %5252 = vmatpush.msra.mxu0 %v14719_v44  ;;  %v5077_v44 = vld [vmem:[%s19134_s10] sm:$0xff] }
 0x5b3   :  { %5363 = vmatpush.msra.mxu2 %v14757_v33  ;;  %5424 = vmatpush.msrb.mxu3 %v14703_v3  ;;  %v4768_v33 = vand.u32 4294901760, %v4767_v20 }
 0x5b4   :  { %5051 = vmatpush.msra.mxu1 %v14752_v46  ;;  %5255 = vmatpush.msra.mxu0 %v14726_v38  ;;  %v5083_v38 = vsel %vm2307_vm1, %v5077_v44, 0 }
 0x5b5   :  { %5367 = vmatpush.msra.mxu2 %v14746_v41  ;;  %5426 = vmatpush.msrb.mxu3 %v14711_v34  ;;  %v14909_v41 = vand.u32 4294901760, %v5083_v38 }
 0x5b6   :  { %4902 = vmatmul.f32.gmra.mxu2 %v4757_v36  ;;  %4955 = vmatmul.f32.gmra.mxu3 %v4758_v27 }
 0x5b7   :  { %5053 = vmatpush.msra.mxu1 %v14777_v29  ;;  %5258 = vmatpush.msra.mxu0 %v14738_v22  ;;  %v4775_v22 = vsub.f32 %v4773_v47, %v4774_v24 }
 0x5b8   :  { %5371 = vmatpush.msra.mxu2 %v14760_v15  ;;  %5428 = vmatpush.msrb.mxu3 %v14716_v13 }
 0x5b9   :  { %5055 = vmatpush.msra.mxu1 %v14789_v6  ;;  %5261 = vmatpush.msra.mxu0 %v14764_v18  ;;  %v4776_v15 = vand.u32 4294901760, %v4775_v22  ;;  %v11605_v22 = vld [vmem:[%s19135_s11 + $0x78] sm:$0xff] }
 0x5ba   :  { %5375 = vmatpush.msra.mxu2 %v14774_v25  ;;  %5430 = vmatpush.msrb.mxu3 %v14732_v23 }
 0x5bb   :  { %5306 = vmatpush.msrb.mxu1 %v14728_v16  ;;  %4769 = vmatmul.f32.gmra.mxu0 %v4768_v33  ;;  %v5078_v16 = vld [vmem:[%s19134_s10 + $0x8] sm:$0xff] }
 0x5bc   :  { %4846 = vmatmul.f32.gmra.mxu1 %v14837_v59  ;;  %5264 = vmatpush.msra.mxu0 %v14783_v12  ;;  %v5086_v18 = vsel %vm2307_vm1, %v5078_v16, 0  ;;  %v15027_v16 = vand.u32 4294901760, %v11605_v22 }
 0x5bd   :  { %5308 = vmatpush.msrb.mxu1 %v14703_v3  ;;  %5379 = vmatpush.msra.mxu2 %v14793_v21  ;;  %v14922_v3 = vsub.f32 %v5083_v38, %v14909_v41  ;;  %v5129_v25 = vand.u32 4294901760, %v5086_v18 }
 0x5be   :  { %5432 = vmatpush.msrb.mxu3 %v14752_v46  ;;  %5267 = vmatpush.msra.mxu0 %v14800_v60 }
 0x5bf   :  { %5310 = vmatpush.msrb.mxu1 %v14711_v34  ;;  %5383 = vmatpush.msra.mxu2 %v14809_v5  ;;  %v5123_v34 = vand.u32 4294901760, %v14922_v3  ;;  %v5130_v12 = vsub.f32 %v5086_v18, %v5129_v25  ;;  %v15035_v18 = vsub.f32 %v11605_v22, %v15027_v16 }
 0x5c0   :  { %5434 = vmatpush.msrb.mxu3 %v14777_v29  ;;  %4907 = vmatmul.f32.gmra.mxu2 %v4765_v17 }
 0x5c1   :  { %4961 = vmatmul.f32.gmra.mxu3 %v4766_v58  ;;  %5270 = vmatpush.msra.mxu0 %v14815_v50  ;;  %v5124_v19 = vsub.f32 %v14922_v3, %v5123_v34  ;;  %v5131_v11 = vand.u32 4294901760, %v5130_v12 }
 0x5c2   :  { %5312 = vmatpush.msrb.mxu1 %v14716_v13  ;;  %5387 = vmatpush.msra.mxu2 %v14825_v61  ;;  %v5079_v13 = vld [vmem:[%s19134_s10 + $0x10] sm:$0xff] }
 0x5c3   :  { %5436 = vmatpush.msrb.mxu3 %v14789_v6  ;;  %4777 = vmatmul.f32.gmra.mxu0 %v4776_v15  ;;  %v5125_v57 = vand.u32 4294901760, %v5124_v19  ;;  %v5132_v21 = vsub.f32 %v5130_v12, %v5131_v11  ;;  %v11604_v15 = vld [vmem:[%s19135_s11 + $0x70] sm:$0xff] }
 0x5c4   :  { %5314 = vmatpush.msrb.mxu1 %v14732_v23  ;;  %5391 = vmatpush.msra.mxu2 %v14835_v2  ;;  %v5089_v23 = vsel %vm2307_vm1, %v5079_v13, 0  ;;  %v11603_v13 = vld [vmem:[%s19135_s11 + $0x68] sm:$0xff] }
 0x5c5   :  { %4850 = vmatmul.f32.gmra.mxu1 %v14862_v30 }
 0x5c6   :  { %5316 = vmatpush.msrb.mxu1 %v14752_v46  ;;  %v5137_v46 = vand.u32 4294901760, %v5089_v23 }
 0x5c8   :  { %5318 = vmatpush.msrb.mxu1 %v14777_v29  ;;  %4912 = vmatmul.f32.gmra.mxu2 %v4773_v47  ;;  %v5080_v29 = vld [vmem:[%s19134_s10 + $0x18] sm:$0xff]  ;;  %v5138_v14 = vsub.f32 %v5089_v23, %v5137_v46 }
 0x5c9   :  { %4967 = vmatmul.f32.gmra.mxu3 %v4774_v24  ;;  %v5092_v55 = vsel %vm2307_vm1, %v5080_v29, 0 }
 0x5ca   :  { %5320 = vmatpush.msrb.mxu1 %v14789_v6  ;;  %v5133_v6 = vand.u32 4294901760, %v5132_v21  ;;  %v5139_v35 = vand.u32 4294901760, %v5138_v14  ;;  %v5145_v60 = vand.u32 4294901760, %v5092_v55 }
 0x5cb   :  { %5012 = vmatmul.f32.vlgmr.msrb.gmra.mxu0 %v14721_v32 }
 0x5cc   :  { %v5140_v28 = vsub.f32 %v5138_v14, %v5139_v35  ;;  %v5146_v5 = vsub.f32 %v5092_v55, %v5145_v60  ;;  %5515 = vmatpush.msrb.mxu0 %v15027_v16  ;;  %v11601_v55 = vld [vmem:[%s19135_s11 + $0x58] sm:$0xff] }
 0x5cd   :  { %4854 = vmatmul.f32.gmra.mxu1 %v14880_v48 }
 0x5ce   :  { %v5141_v50 = vand.u32 4294901760, %v5140_v28  ;;  %v5147_v40 = vand.u32 4294901760, %v5146_v5 }
 0x5d0   :  { %5126 = vmatmul.f32.vlgmr.msrb.gmra.mxu2 %v5125_v57  ;;  %v5148_v9 = vsub.f32 %v5146_v5, %v5147_v40  ;;  %v15053_v57 = vand.u32 4294901760, %v11603_v13 }
 0x5d1   :  { %5219 = vmatmul.f32.vlgmr.msra.gmra.mxu3 %v14909_v41  ;;  %5646 = vmatpush.msrb.mxu2 %v15035_v18 }
 0x5d2   :  { %v5149_v61 = vand.u32 4294901760, %v5148_v9  ;;  %5698 = vmatpush.msra.mxu3 %v15027_v16  ;;  %v15065_v21 = vsub.f32 %v11603_v13, %v15053_v57 }
 0x5d3   :  { %5016 = vmatmul.f32.gmra.mxu0 %v14780_v49 }
 0x5d4   :  { %v19184_v56 = vand.u32 4294901760, %v15065_v21 }
 0x5d5   :  { %5057 = vmatmul.f32.vlgmr.msra.gmra.mxu1 %v14721_v32  ;;  %v5154_v32 = vsub.f32 %v5095_v26, %v5153_v45  ;;  %v11600_v26 = vld [vmem:[%s19135_s11 + $0x50] sm:$0xff] }
 0x5d7   :  { %v5155_v10 = vand.u32 4294901760, %v5154_v32 }
 0x5d8   :  { %5134 = vmatmul.f32.gmra.mxu2 %v5133_v6 }
 0x5d9   :  { %5223 = vmatmul.f32.gmra.mxu3 %v5129_v25  ;;  %v5156_v39 = vsub.f32 %v5154_v32, %v5155_v10 }
 0x5db   :  { %5020 = vmatmul.f32.gmra.mxu0 %v14837_v59  ;;  %v5157_v31 = vand.u32 4294901760, %v5156_v39  ;;  %v11599_v39 = vld [vmem:[%s19135_s11 + $0x48] sm:$0xff] }
 0x5dd   :  { %5061 = vmatmul.f32.gmra.mxu1 %v14780_v49 }
 0x5e0   :  { %5142 = vmatmul.f32.gmra.mxu2 %v5141_v50 }
 0x5e1   :  { %5227 = vmatmul.f32.gmra.mxu3 %v5137_v46 }
 0x5e3   :  { %5024 = vmatmul.f32.gmra.mxu0 %v14862_v30 }
 0x5e5   :  { %5065 = vmatmul.f32.gmra.mxu1 %v14837_v59 }
 0x5e8   :  { %5150 = vmatmul.f32.gmra.mxu2 %v5149_v61 }
 0x5e9   :  { %5231 = vmatmul.f32.gmra.mxu3 %v5145_v60 }
 0x5eb   :  { %5028 = vmatmul.f32.gmra.mxu0 %v14880_v48 }
 0x5ed   :  { %5069 = vmatmul.f32.gmra.mxu1 %v14862_v30 }
 0x5f0   :  { %5158 = vmatmul.f32.gmra.mxu2 %v5157_v31 }
 0x5f1   :  { %5235 = vmatmul.f32.gmra.mxu3 %v5153_v45 }
 0x5f3   :  { %5273 = vmatmul.f32.vlgmr.msra.gmra.mxu0 %v14922_v3 }
 0x5f5   :  { %5073 = vmatmul.f32.gmra.mxu1 %v14880_v48 }
 0x5f8   :  { %5393 = vmatmul.f32.vlgmr.msra.gmra.mxu2 %v14909_v41 }
 0x5f9   :  { %5438 = vmatmul.f32.vlgmr.msrb.gmra.mxu3 %v14909_v41 }
 0x5fb   :  { %5278 = vmatmul.f32.gmra.mxu0 %v5130_v12  ;;  %v19186_v12 = vand.u32 4294901760, %v15035_v18 }
 0x5fd   :  { %5324 = vmatmul.f32.vlgmr.msrb.gmra.mxu1 %v5123_v34  ;;  %v15037_v34 = vand.u32 4294901760, %v11604_v15 }
 0x5ff   :  { %v15050_v23 = vsub.f32 %v11604_v15, %v15037_v34  ;;  %5700 = vmatpush.msra.mxu3 %v15037_v34  ;;  %5517 = vmatpush.msrb.mxu0 %v15037_v34 }
 0x600   :  { %5397 = vmatmul.f32.gmra.mxu2 %v5129_v25 }
 0x601   :  { %5442 = vmatmul.f32.gmra.mxu3 %v5129_v25  ;;  %v19185_v29 = vand.u32 4294901760, %v15050_v23  ;;  %5649 = vmatpush.msrb.mxu2 %v15050_v23 }
 0x602   :  { %5702 = vmatpush.msra.mxu3 %v15053_v57  ;;  %5519 = vmatpush.msrb.mxu0 %v15053_v57 }
 0x603   :  { %5283 = vmatmul.f32.gmra.mxu0 %v5138_v14  ;;  %5652 = vmatpush.msrb.mxu2 %v15065_v21 }
 0x605   :  { %5330 = vmatmul.f32.gmra.mxu1 %v5131_v11  ;;  %v11602_v11 = vld [vmem:[%s19135_s11 + $0x60] sm:$0xff] }
 0x606   :  { %v15068_v14 = vand.u32 4294901760, %v11602_v11 }
 0x608   :  { %5401 = vmatmul.f32.gmra.mxu2 %v5137_v46  ;;  %v15082_v28 = vsub.f32 %v11602_v11, %v15068_v14  ;;  %5704 = vmatpush.msra.mxu3 %v15068_v14  ;;  %v15115_v11 = vand.u32 4294901760, %v11599_v39 }
 0x609   :  { %5446 = vmatmul.f32.gmra.mxu3 %v5137_v46  ;;  %v5574_v46 = vsub.f32 %v15035_v18, %v19186_v12  ;;  %5521 = vmatpush.msrb.mxu0 %v15068_v14 }
 0x60a   :  { %v5591_v9 = vand.u32 4294901760, %v15082_v28  ;;  %5655 = vmatpush.msrb.mxu2 %v15082_v28 }
 0x60b   :  { %5288 = vmatmul.f32.gmra.mxu0 %v5146_v5  ;;  %v15086_v5 = vand.u32 4294901760, %v11601_v55 }
 0x60c   :  { %v5592_v15 = vsub.f32 %v15082_v28, %v5591_v9 }
 0x60d   :  { %5336 = vmatmul.f32.gmra.mxu1 %v5139_v35  ;;  %v5575_v35 = vand.u32 4294901760, %v5574_v46  ;;  %5706 = vmatpush.msra.mxu3 %v15086_v5 }
 0x60e   :  { %5523 = vmatpush.msrb.mxu0 %v15086_v5 }
 0x60f   :  { %5576 = vmatpush.msra.mxu1 %v5575_v35  ;;  %v5593_v35 = vand.u32 4294901760, %v5592_v15 }
 0x610   :  { %5405 = vmatmul.f32.gmra.mxu2 %v5145_v60 }
 0x611   :  { %5450 = vmatmul.f32.gmra.mxu3 %v5145_v60  ;;  %v5580_v60 = vsub.f32 %v15050_v23, %v19185_v29 }
 0x613   :  { %5293 = vmatmul.f32.gmra.mxu0 %v5154_v32  ;;  %v15099_v32 = vand.u32 4294901760, %v11600_v26 }
 0x615   :  { %5342 = vmatmul.f32.gmra.mxu1 %v5147_v40  ;;  %v5581_v40 = vand.u32 4294901760, %v5580_v60  ;;  %v5602_v13 = vsub.f32 %v11600_v26, %v15099_v32  ;;  %5708 = vmatpush.msra.mxu3 %v15099_v32 }
 0x616   :  { %5525 = vmatpush.msrb.mxu0 %v15099_v32 }
 0x617   :  { %5582 = vmatpush.msra.mxu1 %v5581_v40  ;;  %v5603_v60 = vand.u32 4294901760, %v5602_v13  ;;  %v5608_v40 = vsub.f32 %v11599_v39, %v15115_v11  ;;  %5710 = vmatpush.msra.mxu3 %v15115_v11 }
 0x618   :  { %5409 = vmatmul.f32.gmra.mxu2 %v5153_v45  ;;  %5527 = vmatpush.msrb.mxu0 %v15115_v11 }
 0x619   :  { %5454 = vmatmul.f32.gmra.mxu3 %v5153_v45  ;;  %v14964_v49 = vpop.f32.mrf.mxu0  ;;  %v5586_v45 = vsub.f32 %v15065_v21, %v19184_v56  ;;  %v5604_v56 = vsub.f32 %v5602_v13, %v5603_v60  ;;  %v5609_v29 = vand.u32 4294901760, %v5608_v40 }
 0x61b   :  { %v5587_v22 = vand.u32 4294901760, %v5586_v45  ;;  %v5605_v15 = vand.u32 4294901760, %v5604_v56 }
 0x61d   :  { %5348 = vmatmul.f32.gmra.mxu1 %v5155_v10  ;;  %v15104_v10 = vsub.f32 %v11601_v55, %v15086_v5  ;;  %v11598_v55 = vld [vmem:[%s19135_s11 + $0x40] sm:$0xff] }
 0x61e   :  { %5588 = vmatpush.msra.mxu1 %v5587_v22  ;;  %v15124_v28 = vand.u32 4294901760, %v11598_v55 }
 0x61f   :  { %v5597_v46 = vand.u32 4294901760, %v15104_v10  ;;  %5658 = vmatpush.msrb.mxu2 %v15104_v10 }
 0x620   :  { %5594 = vmatpush.msra.mxu1 %v5593_v35  ;;  %v5614_v12 = vsub.f32 %v11598_v55, %v15124_v28  ;;  %5712 = vmatpush.msra.mxu3 %v15124_v28 }
 0x621   :  { %v5598_v26 = vsub.f32 %v15104_v10, %v5597_v46  ;;  %5661 = vmatpush.msrb.mxu2 %v5602_v13  ;;  %5529 = vmatpush.msrb.mxu0 %v15124_v28 }
 0x622   :  { %v14966_v1 = vpop.f32.mrf.mxu0  ;;  %v5615_v10 = vand.u32 4294901760, %v5614_v12 }
 0x623   :  { %v14968_v2 = vpop.f32.mrf.mxu1  ;;  %v14972_v63 = vpop.f32.mrf.mxu3  ;;  %v5599_v22 = vand.u32 4294901760, %v5598_v26  ;;  %5664 = vmatpush.msrb.mxu2 %v5608_v40 }
 0x624   :  { %v14970_v59 = vpop.f32.mrf.mxu2  ;;  %v4840_v35 = vadd.f32 %v14968_v2, %v14964_v49 }
 0x625   :  { %5600 = vmatpush.msra.mxu1 %v5599_v22  ;;  %5667 = vmatpush.msrb.mxu2 %v5614_v12  ;;  %v19472_v22 = vand.u32 4294901760, %v15065_v21 }
 0x627   :  { %5606 = vmatpush.msra.mxu1 %v5605_v15 }
 0x62d   :  { %v14974_v8 = vpop.f32.mrf.mxu0  ;;  %v14976_v53 = vpop.f32.mrf.mxu1 }
 0x62e   :  { %v14978_v51 = vpop.f32.mrf.mxu2  ;;  %v14980_v36 = vpop.f32.mrf.mxu3 }
 0x638   :  { %v14982_v7 = vpop.f32.mrf.mxu0 }
 0x639   :  { %v14984_v54 = vpop.f32.mrf.mxu1  ;;  %v14986_v37 = vpop.f32.mrf.mxu2 }
 0x63a   :  { %v14988_v0 = vpop.f32.mrf.mxu3 }
 0x640   :  { %v14990_v27 = vpop.f32.mrf.mxu0 }
 0x642   :  { %v14992_v42 = vpop.f32.mrf.mxu1 }
 0x643   :  { %v14994_v30 = vpop.f32.mrf.mxu2 }
 0x644   :  { %v14996_v62 = vpop.f32.mrf.mxu3 }
 0x648   :  { %v14998_v43 = vpop.f32.mrf.mxu0 }
 0x64a   :  { %v15000_v17 = vpop.f32.mrf.mxu1 }
 0x64b   :  { %v15002_v52 = vpop.f32.mrf.mxu2 }
 0x64c   :  { %v15004_v4 = vpop.f32.mrf.mxu3 }
 0x64d   :  { %19466 = vst [vmem:[#allocation36_spill] sm:$0xff] %v15004_v4  ;;  %v5616_v4 = vsub.f32 %v5614_v12, %v5615_v10 }
 0x64f   :  { %v5617_v56 = vand.u32 4294901760, %v5616_v4 }
 0x650   :  { %v15006_v58 = vpop.f32.mrf.mxu0 }
 0x652   :  { %v15008_v48 = vpop.f32.mrf.mxu1 }
 0x653   :  { %v15010_v20 = vpop.f32.mrf.mxu2 }
 0x654   :  { %v15012_v47 = vpop.f32.mrf.mxu3 }
 0x655   :  { %v5221_v49 = vadd.f32 %v15012_v47, %v15010_v20 }
 0x658   :  { %v15014_v44 = vpop.f32.mrf.mxu0 }
 0x65a   :  { %v15016_v33 = vpop.f32.mrf.mxu1 }
 0x65b   :  { %v15018_v24 = vpop.f32.mrf.mxu2 }
 0x65c   :  { %v15020_v38 = vpop.f32.mrf.mxu3 }
 0x660   :  { %v15025_v41 = vpop.f32.mrf.mxu0 }
 0x662   :  { %v15032_v3 = vpop.f32.mrf.mxu1 }
 0x663   :  { %v15041_v25 = vpop.f32.mrf.mxu2 }
 0x664   :  { %v15046_v19 = vpop.f32.mrf.mxu3 }
 0x668   :  { %v15075_v6 = vpop.f32.mrf.mxu0 }
 0x669   :  { %19467 = vst [vmem:[#allocation30_spill] sm:$0xff] %v15075_v6  ;;  %v5610_v6 = vsub.f32 %v5608_v40, %v5609_v29  ;;  %v19471_v40 = vand.u32 4294901760, %v15050_v23 }
 0x66a   :  { %v15092_v50 = vpop.f32.mrf.mxu1 }
 0x66b   :  { %19468 = vst [vmem:[#allocation26_spill] sm:$0xff] %v15092_v50  ;;  %v15101_v61 = vpop.f32.mrf.mxu2  ;;  %v5611_v26 = vand.u32 4294901760, %v5610_v6  ;;  %v19470_v50 = vand.u32 4294901760, %v15035_v18  ;;  %v4844_v18 = vadd.f32 %v14976_v53, %v14966_v1 }
 0x66c   :  { %v15111_v31 = vpop.f32.mrf.mxu3 }
 0x66d   :  { %5749 = vmatpush.msra.mxu0 %v19470_v50  ;;  %5612 = vmatpush.msra.mxu1 %v5611_v26 }
 0x66f   :  { %5753 = vmatpush.msra.mxu0 %v19471_v40  ;;  %5618 = vmatpush.msra.mxu1 %v5617_v56 }
 0x670   :  { %v5274_v45 = vpop.f32.mrf.mxu0 }
 0x671   :  { %5757 = vmatpush.msra.mxu0 %v19472_v22  ;;  %v5275_v6 = vadd.f32 %v5274_v45, %v5221_v49  ;;  %5804 = vmatpush.msrb.mxu1 %v15027_v16  ;;  %v4899_v16 = vadd.f32 %v14978_v51, %v4844_v18  ;;  %v4848_v51 = vadd.f32 %v14984_v54, %v14974_v8  ;;  %v5479_v8 = vld [vmem:[%s19135_s11 + $0x30] sm:$0xff] }
 0x672   :  { %v15132_v39 = vpop.f32.mrf.mxu1  ;;  %v15181_v54 = vand.u32 4294901760, %v5479_v8 }
 0x673   :  { %19469 = vst [vmem:[#allocation32_spill] sm:$0xff] %v15132_v39  ;;  %v15137_v13 = vpop.f32.mrf.mxu2  ;;  %v4894_v39 = vadd.f32 %v14970_v59, %v4840_v35  ;;  %5761 = vmatpush.msra.mxu0 %v5591_v9  ;;  %5806 = vmatpush.msrb.mxu1 %v15037_v34 }
 0x674   :  { %v15139_v55 = vpop.f32.mrf.mxu3 }
 0x675   :  { %v4945_v4 = vadd.f32 %v14972_v63, %v4894_v39  ;;  %5765 = vmatpush.msra.mxu0 %v5597_v46  ;;  %5808 = vmatpush.msrb.mxu1 %v15053_v57  ;;  %v5225_v63 = vadd.f32 %v15020_v38, %v15018_v24  ;;  %v5480_v38 = vld [vmem:[%s19135_s11 + $0x38] sm:$0xff]  ;;  %v5478_v39 = vld [vmem:[%s19135_s11 + $0x28] sm:$0xff] }
 0x677   :  { %v5014_v20 = vadd.f32 %v14998_v43, %v4945_v4  ;;  %5769 = vmatpush.msra.mxu0 %v5603_v60  ;;  %5810 = vmatpush.msrb.mxu1 %v15068_v14  ;;  %v4951_v43 = vadd.f32 %v14980_v36, %v4899_v16  ;;  %v4904_v60 = vadd.f32 %v14986_v37, %v4848_v51 }
 0x678   :  { %v5279_v2 = vpop.f32.mrf.mxu0  ;;  %v4852_v37 = vadd.f32 %v14992_v42, %v14982_v7 }
 0x679   :  { %v5059_v21 = vadd.f32 %v15008_v48, %v5014_v20  ;;  %5773 = vmatpush.msra.mxu0 %v5609_v29  ;;  %v5280_v53 = vadd.f32 %v5279_v2, %v5225_v63  ;;  %5812 = vmatpush.msrb.mxu1 %v15086_v5  ;;  %v15170_v29 = vand.u32 4294901760, %v5480_v38  ;;  %v5018_v14 = vadd.f32 %v15006_v58, %v4951_v43  ;;  %v5476_v2 = vld [vmem:[%s19135_s11 + $0x18] sm:$0xff] }
 0x67a   :  { %v5325_v12 = vpop.f32.mrf.mxu1  ;;  %v5229_v58 = vadd.f32 %v15046_v19, %v15041_v25  ;;  %v5477_v19 = vld [vmem:[%s19135_s11 + $0x20] sm:$0xff]  ;;  %v4957_v7 = vadd.f32 %v14988_v0, %v4904_v60  ;;  %v15224_v0 = vand.u32 4294901760, %v5476_v2 }
 0x67b   :  { %v5326_v59 = vadd.f32 %v5325_v12, %v5275_v6  ;;  %v5394_v23 = vpop.f32.mrf.mxu2  ;;  %5777 = vmatpush.msra.mxu0 %v5615_v10  ;;  %5814 = vmatpush.msrb.mxu1 %v15099_v32  ;;  %v15179_v36 = vsub.f32 %v5480_v38, %v15170_v29  ;;  %v5063_v32 = vadd.f32 %v15016_v33, %v5018_v14  ;;  %v15193_v10 = vand.u32 4294901760, %v5478_v39  ;;  %v5473_v38 = vld [vmem:[%s19135_s11] sm:$0xff] }
 0x67c   :  { %v5439_v50 = vpop.f32.mrf.mxu3  ;;  %5857 = vmatpush.msra.mxu2 %v15170_v29  ;;  %v15209_v40 = vand.u32 4294901760, %v5477_v19 }
 0x67d   :  { %v5395_v47 = vadd.f32 %v5394_v23, %v5326_v59  ;;  %5816 = vmatpush.msrb.mxu1 %v15115_v11  ;;  %v5915_v15 = vand.u32 4294901760, %v15179_v36  ;;  %v15196_v11 = vsub.f32 %v5479_v8, %v15181_v54  ;;  %v4909_v59 = vadd.f32 %v14994_v30, %v4852_v37 }
 0x67e   :  { %5859 = vmatpush.msra.mxu2 %v15181_v54  ;;  %v5022_v23 = vadd.f32 %v15014_v44, %v4957_v7  ;;  %v15229_v20 = vsub.f32 %v5477_v19, %v15209_v40  ;;  %v15241_v30 = vsub.f32 %v5476_v2, %v15224_v0 }
 0x67f   :  { %v5440_v1 = vadd.f32 %v5439_v50, %v5395_v47  ;;  %5818 = vmatpush.msrb.mxu1 %v15124_v28  ;;  %v5916_v26 = vsub.f32 %v15179_v36, %v5915_v15  ;;  %v5921_v56 = vand.u32 4294901760, %v15196_v11  ;;  %v15212_v28 = vsub.f32 %v5478_v39, %v15193_v10  ;;  %v5475_v47 = vld [vmem:[%s19135_s11 + $0x10] sm:$0xff] }
 0x680   :  { %v5284_v9 = vpop.f32.mrf.mxu0  ;;  %5861 = vmatpush.msra.mxu2 %v15193_v10  ;;  %v15238_v63 = vand.u32 4294901760, %v5475_v47  ;;  %v5067_v44 = vadd.f32 %v15032_v3, %v5022_v23  ;;  %v5939_v43 = vand.u32 4294901760, %v15241_v30  ;;  %v4963_v60 = vadd.f32 %v14996_v62, %v4909_v59 }
 0x681   :  { %v5458_v34 = vmax.f32 %v5059_v21, %v5440_v1  ;;  %v5285_v33 = vadd.f32 %v5284_v9, %v5229_v58  ;;  %v5917_v12 = vand.u32 4294901760, %v5916_v26  ;;  %v5922_v4 = vsub.f32 %v15196_v11, %v5921_v56  ;;  %v5474_v9 = vld [vmem:[%s19135_s11 + $0x8] sm:$0xff] }
 0x682   :  { %v5331_v46 = vpop.f32.mrf.mxu1  ;;  %5863 = vmatpush.msra.mxu2 %v15209_v40  ;;  %v5927_v18 = vand.u32 4294901760, %v15212_v28  ;;  %v5233_v1 = vadd.f32 %v15111_v31, %v15101_v61  ;;  %v15252_v51 = vand.u32 4294901760, %v5474_v9  ;;  %v15255_v3 = vsub.f32 %v5475_v47, %v15238_v63 }
 0x683   :  { %5463 = vst.msk [vmem:[#allocation2] sm:$0xff] %vm2307_vm1, %v5458_v34  ;;  %v5332_v48 = vadd.f32 %v5331_v46, %v5280_v53  ;;  %v5398_v24 = vpop.f32.mrf.mxu2  ;;  %5918 = vmatpush.msrb.mxu3 %v5917_v12  ;;  %v5923_v16 = vand.u32 4294901760, %v5922_v4  ;;  %v5933_v34 = vand.u32 4294901760, %v15229_v20  ;;  %v4856_v61 = vadd.f32 %v15000_v17, %v14990_v27  ;;  %v19473_v12 = vld [vmem:[#allocation26_spill] sm:$0xff] }
 0x684   :  { %v5443_v57 = vpop.f32.mrf.mxu3  ;;  %v5928_v21 = vsub.f32 %v15212_v28, %v5927_v18  ;;  %5865 = vmatpush.msra.mxu2 %v15224_v0  ;;  %v5945_v27 = vand.u32 4294901760, %v15255_v3  ;;  %v15270_v17 = vand.u32 4294901760, %v5473_v38  ;;  %v15273_v8 = vsub.f32 %v5474_v9, %v15252_v51 }
 0x685   :  { %v5399_v5 = vadd.f32 %v5398_v24, %v5332_v48  ;;  %5924 = vmatpush.msrb.mxu3 %v5923_v16  ;;  %v5934_v24 = vsub.f32 %v15229_v20, %v5933_v34  ;;  %v5026_v62 = vadd.f32 %v15025_v41, %v4963_v60  ;;  %v5237_v41 = vadd.f32 %v15139_v55, %v15137_v13  ;;  %v19476_v60 = vld [vmem:[#allocation32_spill] sm:$0xff] }
 0x686   :  { %v5929_v46 = vand.u32 4294901760, %v5928_v21  ;;  %5867 = vmatpush.msra.mxu2 %v15238_v63  ;;  %v5946_v19 = vsub.f32 %v15255_v3, %v5945_v27  ;;  %v15287_v7 = vsub.f32 %v5473_v38, %v15270_v17 }
 0x687   :  { %v5444_v45 = vadd.f32 %v5443_v57, %v5399_v5  ;;  %v5940_v5 = vsub.f32 %v15241_v30, %v5939_v43  ;;  %v5935_v39 = vand.u32 4294901760, %v5934_v24  ;;  %v5071_v4 = vadd.f32 %v19473_v12, %v5026_v62 }
 0x688   :  { %v5289_v22 = vpop.f32.mrf.mxu0  ;;  %5930 = vmatpush.msrb.mxu3 %v5929_v46  ;;  %5869 = vmatpush.msra.mxu2 %v15252_v51  ;;  %v5957_v23 = vand.u32 4294901760, %v15287_v7 }
 0x689   :  { %v5459_v25 = vmax.f32 %v5063_v32, %v5444_v45  ;;  %v5290_v31 = vadd.f32 %v5289_v22, %v5233_v1  ;;  %v5947_v22 = vand.u32 4294901760, %v5946_v19  ;;  %v19474_v1 = vld [vmem:[#allocation36_spill] sm:$0xff] }
 0x68a   :  { %v5337_v35 = vpop.f32.mrf.mxu1  ;;  %5871 = vmatpush.msra.mxu2 %v15270_v17  ;;  %5936 = vmatpush.msrb.mxu3 %v5935_v39  ;;  %v5958_v21 = vsub.f32 %v15287_v7, %v5957_v23 }
 0x68b   :  { %5464 = vst.msk [vmem:[#allocation2 + $0x8] sm:$0xff] %vm2307_vm1, %v5459_v25  ;;  %v5338_v42 = vadd.f32 %v5337_v35, %v5285_v33  ;;  %v5402_v49 = vpop.f32.mrf.mxu2  ;;  %v5941_v25 = vand.u32 4294901760, %v5940_v5  ;;  %v5951_v35 = vand.u32 4294901760, %v15273_v8 }
 0x68c   :  { %v5447_v6 = vpop.f32.mrf.mxu3 }
 0x68d   :  { %v5403_v50 = vadd.f32 %v5402_v49, %v5338_v42  ;;  %v4914_v42 = vadd.f32 %v15002_v52, %v4856_v61  ;;  %5942 = vmatpush.msrb.mxu3 %v5941_v25 }
 0x68f   :  { %v5448_v53 = vadd.f32 %v5447_v6, %v5403_v50  ;;  %v5952_v6 = vsub.f32 %v15273_v8, %v5951_v35  ;;  %5948 = vmatpush.msrb.mxu3 %v5947_v22 }
 0x690   :  { %v5294_v49 = vpop.f32.mrf.mxu0 }
 0x691   :  { %v5460_v48 = vmax.f32 %v5067_v44, %v5448_v53  ;;  %v5953_v50 = vand.u32 4294901760, %v5952_v6  ;;  %v5295_v47 = vadd.f32 %v5294_v49, %v5237_v41  ;;  %v4969_v53 = vadd.f32 %v19474_v1, %v4914_v42 }
 0x692   :  { %v5343_v57 = vpop.f32.mrf.mxu1  ;;  %v5481_v14 = vld [vmem:[#allocation2 + $0x1] sm:$0xff] }
 0x693   :  { %5465 = vst.msk [vmem:[#allocation2 + $0x10] sm:$0xff] %vm2307_vm1, %v5460_v48  ;;  %v5344_v32 = vadd.f32 %v5343_v57, %v5290_v31  ;;  %v5406_v58 = vpop.f32.mrf.mxu2  ;;  %v5495_v45 = vsel %vm2307_vm1, %v5481_v14, 0  ;;  %5954 = vmatpush.msrb.mxu3 %v5953_v50  ;;  %v5959_v31 = vand.u32 4294901760, %v5958_v21  ;;  %v11613_v50 = vld [vmem:[%s19135_s11 + $0xb8] sm:$0xff] }
 0x694   :  { %v5451_v37 = vpop.f32.mrf.mxu3  ;;  %v15278_v33 = vand.u32 4294901760, %v5495_v45 }
 0x695   :  { %v5407_v26 = vadd.f32 %v5406_v58, %v5344_v32  ;;  %5960 = vmatpush.msrb.mxu3 %v5959_v31  ;;  %v11610_v31 = vld [vmem:[%s19135_s11 + $0xa0] sm:$0xff] }
 0x696   :  { %5620 = vmatmul.f32.vlgmr.msra.gmra.mxu1 %v15278_v33  ;;  %v5531_v2 = vsub.f32 %v5495_v45, %v15278_v33  ;;  %v5469_v45 = vld [vmem:[#allocation2] sm:$0xff] }
 0x697   :  { %v5452_v59 = vadd.f32 %v5451_v37, %v5407_v26  ;;  %6040 = vmatpush.msra.mxu1 %v15170_v29 }
 0x698   :  { %5670 = vmatmul.f32.vlgmr.msrb.gmra.mxu2 %v5531_v2  ;;  %v5532_v52 = vand.u32 4294901760, %v5531_v2 }
 0x699   :  { %v5461_v16 = vmax.f32 %v5071_v4, %v5452_v59  ;;  %6042 = vmatpush.msra.mxu1 %v15181_v54  ;;  %6091 = vmatpush.msrb.mxu2 %v5915_v15  ;;  %v19475_v15 = vld [vmem:[#allocation30_spill] sm:$0xff] }
 0x69a   :  { %v5349_v44 = vpop.f32.mrf.mxu1  ;;  %5716 = vmatmul.f32.vlgmr.msra.gmra.mxu3 %v5532_v52  ;;  %v5533_v13 = vsub.f32 %v5531_v2, %v5532_v52  ;;  %v5482_v55 = vld [vmem:[#allocation2 + $0x9] sm:$0xff]  ;;  %v5030_v57 = vadd.f32 %v19475_v15, %v4969_v53 }
 0x69b   :  { %5466 = vst.msk [vmem:[#allocation2 + $0x18] sm:$0xff] %vm2307_vm1, %v5461_v16  ;;  %v5350_v9 = vadd.f32 %v5349_v44, %v5295_v47  ;;  %v5410_v46 = vpop.f32.mrf.mxu2  ;;  %v5498_v61 = vsel %vm2307_vm1, %v5482_v55, 0  ;;  %6044 = vmatpush.msra.mxu1 %v15193_v10  ;;  %6095 = vmatpush.msrb.mxu2 %v5921_v56  ;;  %v15398_v47 = vand.u32 4294901760, %v11613_v50  ;;  %v11611_v55 = vld [vmem:[%s19135_s11 + $0xa8] sm:$0xff] }
 0x69c   :  { %v5455_v48 = vpop.f32.mrf.mxu3  ;;  %v5534_v24 = vand.u32 4294901760, %v5533_v13  ;;  %v15310_v38 = vand.u32 4294901760, %v5498_v61  ;;  %v5075_v32 = vadd.f32 %v19476_v60, %v5030_v57  ;;  %6146 = vmatpush.msra.mxu3 %v15170_v29  ;;  %v15442_v57 = vand.u32 4294901760, %v11610_v31 }
 0x69d   :  { %v5411_v14 = vadd.f32 %v5410_v46, %v5350_v9  ;;  %6046 = vmatpush.msra.mxu1 %v15209_v40  ;;  %6099 = vmatpush.msrb.mxu2 %v5927_v18  ;;  %v5837_v18 = vsel %vm2307_vm1, %v5469_v45, 0  ;;  %v15411_v44 = vsub.f32 %v11613_v50, %v15398_v47  ;;  %v15425_v9 = vand.u32 4294901760, %v11611_v55  ;;  %v11608_v45 = vld [vmem:[%s19135_s11 + $0x90] sm:$0xff] }
 0x69e   :  { %5535 = vmatmul.f32.vlgmr.msrb.gmra.mxu0 %v5534_v24  ;;  %5624 = vmatmul.f32.gmra.mxu1 %v15310_v38  ;;  %v5539_v5 = vsub.f32 %v5498_v61, %v15310_v38 }
 0x69f   :  { %v5456_v58 = vadd.f32 %v5455_v48, %v5411_v14  ;;  %5988 = vmatpush.msrb.mxu0 %v15179_v36  ;;  %6148 = vmatpush.msra.mxu3 %v15181_v54  ;;  %v6270_v1 = vand.u32 4294901760, %v15411_v44  ;;  %v15440_v15 = vsub.f32 %v11611_v55, %v15425_v9  ;;  %v11609_v14 = vld [vmem:[%s19135_s11 + $0x98] sm:$0xff] }
 0x6a0   :  { %5675 = vmatmul.f32.gmra.mxu2 %v5539_v5  ;;  %v5540_v56 = vand.u32 4294901760, %v5539_v5  ;;  %6048 = vmatpush.msra.mxu1 %v15224_v0 }
 0x6a1   :  { %v5462_v39 = vmax.f32 %v5075_v32, %v5456_v58  ;;  %6103 = vmatpush.msrb.mxu2 %v5933_v34  ;;  %6150 = vmatpush.msra.mxu3 %v15193_v10  ;;  %v15340_v10 = vand.u32 4294901760, %v5837_v18  ;;  %v5470_v34 = vld [vmem:[#allocation2 + $0x8] sm:$0xff]  ;;  %v6271_v48 = vsub.f32 %v15411_v44, %v6270_v1  ;;  %v6282_v60 = vand.u32 4294901760, %v15440_v15 }
 0x6a2   :  { %5722 = vmatmul.f32.gmra.mxu3 %v5540_v56  ;;  %v5541_v37 = vsub.f32 %v5539_v5, %v5540_v56  ;;  %v5483_v25 = vld [vmem:[#allocation2 + $0x11] sm:$0xff]  ;;  %5991 = vmatpush.msrb.mxu0 %v15196_v11  ;;  %v5840_v62 = vsel %vm2307_vm1, %v5470_v34, 0  ;;  %v15454_v32 = vsub.f32 %v11610_v31, %v15442_v57  ;;  %v15461_v56 = vand.u32 4294901760, %v11609_v14 }
 0x6a3   :  { %5468 = vst.msk [vmem:[#allocation2 + $0x20] sm:$0x3] %vm5467_vm5, %v5462_v39  ;;  %v5501_v29 = vsel %vm2307_vm1, %v5483_v25, 0  ;;  %6050 = vmatpush.msra.mxu1 %v15238_v63  ;;  %6107 = vmatpush.msrb.mxu2 %v5939_v43  ;;  %v15349_v43 = vsub.f32 %v5837_v18, %v15340_v10 }
 0x6a4   :  { %v5542_v36 = vand.u32 4294901760, %v5541_v37  ;;  %v15331_v19 = vand.u32 4294901760, %v5501_v29  ;;  %6152 = vmatpush.msra.mxu3 %v15209_v40  ;;  %5994 = vmatpush.msrb.mxu0 %v15212_v28  ;;  %v6283_v37 = vsub.f32 %v15440_v15, %v6282_v60  ;;  %v6288_v25 = vand.u32 4294901760, %v15454_v32 }
 0x6a5   :  { %6052 = vmatpush.msra.mxu1 %v15252_v51  ;;  %6111 = vmatpush.msrb.mxu2 %v5945_v27  ;;  %v5874_v26 = vand.u32 4294901760, %v15349_v43  ;;  %v15475_v18 = vsub.f32 %v11609_v14, %v15461_v56 }
 0x6a6   :  { %5543 = vmatmul.f32.gmra.mxu0 %v5542_v36  ;;  %5628 = vmatmul.f32.gmra.mxu1 %v15331_v19  ;;  %v5547_v54 = vsub.f32 %v5501_v29, %v15331_v19  ;;  %v15472_v29 = vand.u32 4294901760, %v11608_v45  ;;  %v11607_v36 = vld [vmem:[%s19135_s11 + $0x88] sm:$0xff] }
 0x6a7   :  { %6154 = vmatpush.msra.mxu3 %v15224_v0  ;;  %5997 = vmatpush.msrb.mxu0 %v15229_v20 }
 0x6a8   :  { %5680 = vmatmul.f32.gmra.mxu2 %v5547_v54  ;;  %v5548_v11 = vand.u32 4294901760, %v5547_v54  ;;  %6054 = vmatpush.msra.mxu1 %v15270_v17  ;;  %v15486_v34 = vsub.f32 %v11608_v45, %v15472_v29 }
 0x6a9   :  { %6115 = vmatpush.msrb.mxu2 %v5951_v35  ;;  %6156 = vmatpush.msra.mxu3 %v15238_v63  ;;  %v15366_v63 = vand.u32 4294901760, %v5840_v62 }
 0x6aa   :  { %5728 = vmatmul.f32.gmra.mxu3 %v5548_v11  ;;  %v5549_v40 = vsub.f32 %v5547_v54, %v5548_v11  ;;  %v5484_v28 = vld [vmem:[#allocation2 + $0x19] sm:$0xff]  ;;  %6000 = vmatpush.msrb.mxu0 %v15241_v30  ;;  %v5471_v30 = vld [vmem:[#allocation2 + $0x10] sm:$0xff]  ;;  %v6284_v54 = vand.u32 4294901760, %v6283_v37  ;;  %v6289_v11 = vsub.f32 %v15454_v32, %v6288_v25 }
 0x6ab   :  { %v5504_v27 = vsel %vm2307_vm1, %v5484_v28, 0  ;;  %6119 = vmatpush.msrb.mxu2 %v5957_v23  ;;  %6158 = vmatpush.msra.mxu3 %v15252_v51  ;;  %v15375_v49 = vsub.f32 %v5840_v62, %v15366_v63  ;;  %v5843_v2 = vsel %vm2307_vm1, %v5471_v30, 0  ;;  %v11606_v62 = vld [vmem:[%s19135_s11 + $0x80] sm:$0xff] }
 0x6ac   :  { %v5550_v0 = vand.u32 4294901760, %v5549_v40  ;;  %v15357_v20 = vand.u32 4294901760, %v5504_v27  ;;  %6003 = vmatpush.msrb.mxu0 %v15255_v3  ;;  %v5875_v3 = vsub.f32 %v15349_v43, %v5874_v26  ;;  %v15378_v6 = vand.u32 4294901760, %v5843_v2  ;;  %v6181_v55 = vld [vmem:[#allocation2 + $0x1a] sm:$0xff] }
 0x6ad   :  { %6160 = vmatpush.msra.mxu3 %v15270_v17  ;;  %v6223_v40 = vand.u32 4294901760, %v11607_v36 }
 0x6ae   :  { %5551 = vmatmul.f32.gmra.mxu0 %v5550_v0  ;;  %5632 = vmatmul.f32.gmra.mxu1 %v15357_v20  ;;  %v5555_v35 = vsub.f32 %v5504_v27, %v15357_v20  ;;  %v5876_v17 = vand.u32 4294901760, %v5875_v3  ;;  %v15383_v12 = vsub.f32 %v5843_v2, %v15378_v6  ;;  %v6294_v27 = vand.u32 4294901760, %v15475_v18 }
 0x6af   :  { %6006 = vmatpush.msrb.mxu0 %v15273_v8  ;;  %v5882_v8 = vand.u32 4294901760, %v15375_v49  ;;  %v6290_v0 = vand.u32 4294901760, %v6289_v11  ;;  %v6305_v30 = vsub.f32 %v11607_v36, %v6223_v40 }
 0x6b0   :  { %5685 = vmatmul.f32.gmra.mxu2 %v5555_v35  ;;  %v5556_v42 = vand.u32 4294901760, %v5555_v35  ;;  %v5890_v59 = vand.u32 4294901760, %v15383_v12 }
 0x6b1   :  { %6009 = vmatpush.msrb.mxu0 %v15287_v7  ;;  %v5472_v7 = vld [vmem:[#allocation2 + $0x18] sm:$0xff]  ;;  %v5883_v4 = vsub.f32 %v15375_v49, %v5882_v8  ;;  %v6306_v2 = vand.u32 4294901760, %v6305_v30 }
 0x6b2   :  { %5734 = vmatmul.f32.gmra.mxu3 %v5556_v42  ;;  %v5557_v51 = vsub.f32 %v5555_v35, %v5556_v42  ;;  %v5846_v41 = vsel %vm2307_vm1, %v5472_v7, 0  ;;  %v5891_v16 = vsub.f32 %v15383_v12, %v5890_v59  ;;  %v6300_v35 = vand.u32 4294901760, %v15486_v34 }
 0x6b3   :  { %v15391_v23 = vand.u32 4294901760, %v5846_v41  ;;  %v5884_v52 = vand.u32 4294901760, %v5883_v4  ;;  %v6225_v42 = vand.u32 4294901760, %v11606_v62  ;;  %v6307_v7 = vsub.f32 %v6305_v30, %v6306_v2 }
 0x6b4   :  { %v5558_v22 = vand.u32 4294901760, %v5557_v51  ;;  %v5892_v46 = vand.u32 4294901760, %v5891_v16  ;;  %v6295_v51 = vsub.f32 %v15475_v18, %v6294_v27  ;;  %v6301_v3 = vsub.f32 %v15486_v34, %v6300_v35 }
 0x6b5   :  { %v15404_v21 = vsub.f32 %v5846_v41, %v15391_v23  ;;  %v6308_v41 = vand.u32 4294901760, %v6307_v7 }
 0x6b6   :  { %5559 = vmatmul.f32.gmra.mxu0 %v5558_v22  ;;  %5820 = vmatmul.f32.vlgmr.msrb.gmra.mxu1 %v15278_v33  ;;  %v6311_v22 = vsub.f32 %v11606_v62, %v6225_v42 }
 0x6b7   :  { %v5898_v61 = vand.u32 4294901760, %v15404_v21 }
 0x6b8   :  { %5877 = vmatmul.f32.vlgmr.msra.gmra.mxu2 %v5876_v17  ;;  %v6302_v17 = vand.u32 4294901760, %v6301_v3  ;;  %v6312_v4 = vand.u32 4294901760, %v6311_v22 }
 0x6b9   :  { %6343 = vmatpush.msra.mxu2 %v15411_v44  ;;  %v5899_v58 = vsub.f32 %v15404_v21, %v5898_v61 }
 0x6ba   :  { %5962 = vmatmul.f32.vlgmr.msrb.gmra.mxu3 %v15340_v10 }
 0x6bb   :  { %6395 = vmatpush.msrb.mxu3 %v15398_v47  ;;  %v5900_v28 = vand.u32 4294901760, %v5899_v58 }
 0x6be   :  { %5779 = vmatmul.f32.vlgmr.msra.gmra.mxu0 %v15278_v33  ;;  %5824 = vmatmul.f32.gmra.mxu1 %v15310_v38  ;;  %v11612_v33 = vld [vmem:[%s19135_s11 + $0xb0] sm:$0xff]  ;;  %s11573_s11 = sshll.u32 %s19147_s23, 4  ;;  %s11574_s11 = int_to_ptr.hbm [resolvable:$true] %s11573_s11 }
 0x6bf   :  { %v15413_v13 = vand.u32 4294901760, %v11612_v33  ;;  %6212 = vmatpush.msra.mxu0 %v15398_v47 }
 0x6c0   :  { %5885 = vmatmul.f32.gmra.mxu2 %v5884_v52  ;;  %v6313_v52 = vsub.f32 %v6311_v22, %v6312_v4 }
 0x6c1   :  { %v15422_v53 = vsub.f32 %v11612_v33, %v15413_v13  ;;  %6214 = vmatpush.msra.mxu0 %v15413_v13  ;;  %6397 = vmatpush.msrb.mxu3 %v15413_v13 }
 0x6c2   :  { %5966 = vmatmul.f32.gmra.mxu3 %v15366_v63  ;;  %v6314_v50 = vand.u32 4294901760, %v6313_v52 }
 0x6c3   :  { %v6276_v24 = vand.u32 4294901760, %v15422_v53  ;;  %6346 = vmatpush.msra.mxu2 %v15422_v53  ;;  %6399 = vmatpush.msrb.mxu3 %v15425_v9 }
 0x6c4   :  { %6216 = vmatpush.msra.mxu0 %v15425_v9 }
 0x6c5   :  { %v6277_v5 = vsub.f32 %v15422_v53, %v6276_v24  ;;  %6349 = vmatpush.msra.mxu2 %v15440_v15  ;;  %6401 = vmatpush.msrb.mxu3 %v15442_v57  ;;  %v6201_v53 = vsel %vm2307_vm1, %v6181_v55, 0 }
 0x6c6   :  { %5783 = vmatmul.f32.gmra.mxu0 %v15310_v38  ;;  %5828 = vmatmul.f32.gmra.mxu1 %v15331_v19  ;;  %v6272_v38 = vand.u32 4294901760, %v6271_v48 }
 0x6c7   :  { %v6278_v39 = vand.u32 4294901760, %v6277_v5  ;;  %6352 = vmatpush.msra.mxu2 %v15454_v32  ;;  %6403 = vmatpush.msrb.mxu3 %v15461_v56 }
 0x6c8   :  { %5893 = vmatmul.f32.gmra.mxu2 %v5892_v46  ;;  %6273 = vmatpush.msrb.mxu1 %v6272_v38  ;;  %v6251_v46 = vand.u32 4294901760, %v6201_v53 }
 0x6c9   :  { %6218 = vmatpush.msra.mxu0 %v15442_v57  ;;  %6355 = vmatpush.msra.mxu2 %v15475_v18 }
 0x6ca   :  { %5970 = vmatmul.f32.gmra.mxu3 %v15378_v6  ;;  %6279 = vmatpush.msrb.mxu1 %v6278_v39  ;;  %v6252_v31 = vsub.f32 %v6201_v53, %v6251_v46 }
 0x6cb   :  { %6405 = vmatpush.msrb.mxu3 %v15472_v29  ;;  %6358 = vmatpush.msra.mxu2 %v15486_v34 }
 0x6cc   :  { %6285 = vmatpush.msrb.mxu1 %v6284_v54  ;;  %6220 = vmatpush.msra.mxu0 %v15461_v56 }
 0x6cd   :  { %6361 = vmatpush.msra.mxu2 %v6305_v30  ;;  %6407 = vmatpush.msrb.mxu3 %v6223_v40 }
 0x6ce   :  { %5787 = vmatmul.f32.gmra.mxu0 %v15331_v19  ;;  %5832 = vmatmul.f32.gmra.mxu1 %v15357_v20  ;;  %v6296_v19 = vand.u32 4294901760, %v6295_v51 }
 0x6cf   :  { %6291 = vmatpush.msrb.mxu1 %v6290_v0  ;;  %6222 = vmatpush.msra.mxu0 %v15472_v29 }
 0x6d0   :  { %5901 = vmatmul.f32.gmra.mxu2 %v5900_v28  ;;  %6409 = vmatpush.msrb.mxu3 %v6225_v42 }
 0x6d1   :  { %6297 = vmatpush.msrb.mxu1 %v6296_v19  ;;  %6364 = vmatpush.msra.mxu2 %v6311_v22 }
 0x6d2   :  { %5974 = vmatmul.f32.gmra.mxu3 %v15391_v23  ;;  %6224 = vmatpush.msra.mxu0 %v6223_v40 }
 0x6d3   :  { %6303 = vmatpush.msrb.mxu1 %v6302_v17 }
 0x6d4   :  { %6226 = vmatpush.msra.mxu0 %v6225_v42 }
 0x6d5   :  { %6309 = vmatpush.msrb.mxu1 %v6308_v41 }
 0x6d6   :  { %5791 = vmatmul.f32.gmra.mxu0 %v15357_v20  ;;  %6058 = vmatmul.f32.vlgmr.msra.gmra.mxu1 %v5874_v26  ;;  %v6179_v26 = vld [vmem:[#allocation2 + $0xa] sm:$0xff] }
 0x6d7   :  { %6315 = vmatpush.msrb.mxu1 %v6314_v50 }
 0x6d8   :  { %6121 = vmatmul.f32.vlgmr.msrb.gmra.mxu2 %v15340_v10 }
 0x6d9   :  { %6501 = vmatpush.msra.mxu1 %v15398_v47 }
 0x6da   :  { %6162 = vmatmul.f32.vlgmr.msra.gmra.mxu3 %v15340_v10  ;;  %v6178_v10 = vld [vmem:[#allocation2 + $0x2] sm:$0xff] }
 0x6db   :  { %6503 = vmatpush.msra.mxu1 %v15413_v13 }
 0x6dd   :  { %6505 = vmatpush.msra.mxu1 %v15425_v9 }
 0x6de   :  { %6012 = vmatmul.f32.vlgmr.msrb.gmra.mxu0 %v15349_v43  ;;  %6064 = vmatmul.f32.gmra.mxu1 %v5882_v8  ;;  %v6192_v43 = vsel %vm2307_vm1, %v6178_v10, 0 }
 0x6df   :  { %6446 = vmatpush.msrb.mxu0 %v6270_v1  ;;  %6507 = vmatpush.msra.mxu1 %v15442_v57  ;;  %v6227_v20 = vand.u32 4294901760, %v6192_v43 }
 0x6e0   :  { %6125 = vmatmul.f32.gmra.mxu2 %v15366_v63 }
 0x6e1   :  { %6450 = vmatpush.msrb.mxu0 %v6276_v24  ;;  %6509 = vmatpush.msra.mxu1 %v15461_v56  ;;  %v6253_v24 = vand.u32 4294901760, %v6252_v31 }
 0x6e2   :  { %6166 = vmatmul.f32.gmra.mxu3 %v15366_v63  ;;  %v6228_v63 = vsub.f32 %v6192_v43, %v6227_v20 }
 0x6e3   :  { %6454 = vmatpush.msrb.mxu0 %v6282_v60  ;;  %6511 = vmatpush.msra.mxu1 %v15472_v29  ;;  %v6254_v15 = vsub.f32 %v6252_v31, %v6253_v24 }
 0x6e4   :  { %v6229_v8 = vand.u32 4294901760, %v6228_v63 }
 0x6e5   :  { %6458 = vmatpush.msrb.mxu0 %v6288_v25  ;;  %6513 = vmatpush.msra.mxu1 %v6223_v40  ;;  %v6255_v14 = vand.u32 4294901760, %v6254_v15 }
 0x6e6   :  { %6017 = vmatmul.f32.gmra.mxu0 %v15375_v49  ;;  %6070 = vmatmul.f32.gmra.mxu1 %v5890_v59  ;;  %v6195_v49 = vsel %vm2307_vm1, %v6179_v26, 0  ;;  %v6230_v47 = vsub.f32 %v6228_v63, %v6229_v8 }
 0x6e7   :  { %6462 = vmatpush.msrb.mxu0 %v6294_v27  ;;  %6515 = vmatpush.msra.mxu1 %v6225_v42  ;;  %v6235_v59 = vand.u32 4294901760, %v6195_v49 }
 0x6e8   :  { %6129 = vmatmul.f32.gmra.mxu2 %v15378_v6  ;;  %v6231_v33 = vand.u32 4294901760, %v6230_v47 }
 0x6e9   :  { %6466 = vmatpush.msrb.mxu0 %v6300_v35 }
 0x6ea   :  { %6170 = vmatmul.f32.gmra.mxu3 %v15378_v6  ;;  %v6180_v6 = vld [vmem:[#allocation2 + $0x12] sm:$0xff] }
 0x6eb   :  { %6470 = vmatpush.msrb.mxu0 %v6306_v2  ;;  %v6198_v16 = vsel %vm2307_vm1, %v6180_v6, 0 }
 0x6ec   :  { %v6243_v13 = vand.u32 4294901760, %v6198_v16 }
 0x6ed   :  { %6474 = vmatpush.msrb.mxu0 %v6312_v4 }
 0x6ee   :  { %6022 = vmatmul.f32.gmra.mxu0 %v15383_v12  ;;  %6076 = vmatmul.f32.gmra.mxu1 %v5898_v61  ;;  %v6236_v12 = vsub.f32 %v6195_v49, %v6235_v59  ;;  %v6244_v1 = vsub.f32 %v6198_v16, %v6243_v13 }
 0x6f0   :  { %6133 = vmatmul.f32.gmra.mxu2 %v15391_v23  ;;  %v6237_v44 = vand.u32 4294901760, %v6236_v12  ;;  %v6245_v9 = vand.u32 4294901760, %v6244_v1 }
 0x6f2   :  { %6174 = vmatmul.f32.gmra.mxu3 %v15391_v23  ;;  %v6238_v23 = vsub.f32 %v6236_v12, %v6237_v44  ;;  %v6246_v61 = vsub.f32 %v6244_v1, %v6245_v9 }
 0x6f4   :  { %v6247_v48 = vand.u32 4294901760, %v6246_v61 }
 0x6f6   :  { %6027 = vmatmul.f32.gmra.mxu0 %v15404_v21  ;;  %6317 = vmatmul.f32.vlgmr.msrb.gmra.mxu1 %v6227_v20  ;;  %v6239_v21 = vand.u32 4294901760, %v6238_v23 }
 0x6f8   :  { %6367 = vmatmul.f32.vlgmr.msra.gmra.mxu2 %v6228_v63 }
 0x6fa   :  { %6413 = vmatmul.f32.vlgmr.msrb.gmra.mxu3 %v6229_v8 }
 0x6fe   :  { %6232 = vmatmul.f32.vlgmr.msra.gmra.mxu0 %v6231_v33  ;;  %6321 = vmatmul.f32.gmra.mxu1 %v6235_v59 }
 0x700   :  { %6372 = vmatmul.f32.gmra.mxu2 %v6236_v12 }
 0x702   :  { %6419 = vmatmul.f32.gmra.mxu3 %v6237_v44 }
 0x706   :  { %6240 = vmatmul.f32.gmra.mxu0 %v6239_v21  ;;  %6325 = vmatmul.f32.gmra.mxu1 %v6243_v13 }
 0x708   :  { %6377 = vmatmul.f32.gmra.mxu2 %v6244_v1 }
 0x70a   :  { %6425 = vmatmul.f32.gmra.mxu3 %v6245_v9 }
 0x70e   :  { %6248 = vmatmul.f32.gmra.mxu0 %v6247_v48  ;;  %6329 = vmatmul.f32.gmra.mxu1 %v6251_v46 }
 0x710   :  { %6382 = vmatmul.f32.gmra.mxu2 %v6252_v31 }
 0x712   :  { %6431 = vmatmul.f32.gmra.mxu3 %v6253_v24 }
 0x713   :  { %v15543_v57 = vpop.f32.mrf.mxu1 }
 0x716   :  { %6256 = vmatmul.f32.gmra.mxu0 %v6255_v14  ;;  %6517 = vmatmul.f32.vlgmr.msra.gmra.mxu1 %v6227_v20 }
 0x71b   :  { %v5536_v38 = vpop.f32.mrf.mxu0  ;;  %v5625_v5 = vpop.f32.mrf.mxu1 }
 0x71c   :  { %v15545_v60 = vpop.f32.mrf.mxu2  ;;  %v5622_v21 = vadd.f32 %v15543_v57, %v5536_v38 }
 0x71d   :  { %v15547_v32 = vpop.f32.mrf.mxu3 }
 0x71e   :  { %6476 = vmatmul.f32.vlgmr.msrb.gmra.mxu0 %v6227_v20  ;;  %6521 = vmatmul.f32.gmra.mxu1 %v6235_v59  ;;  %v5672_v48 = vadd.f32 %v15545_v60, %v5622_v21 }
 0x723   :  { %v5544_v58 = vpop.f32.mrf.mxu0  ;;  %v5629_v56 = vpop.f32.mrf.mxu1 }
 0x724   :  { %v5676_v45 = vpop.f32.mrf.mxu2  ;;  %v5626_v23 = vadd.f32 %v5625_v5, %v5544_v58 }
 0x725   :  { %v5723_v39 = vpop.f32.mrf.mxu3 }
 0x726   :  { %6480 = vmatmul.f32.gmra.mxu0 %v6235_v59  ;;  %6525 = vmatmul.f32.gmra.mxu1 %v6243_v13 }
 0x72b   :  { %v5552_v37 = vpop.f32.mrf.mxu0  ;;  %v5633_v25 = vpop.f32.mrf.mxu1 }
 0x72c   :  { %v5681_v29 = vpop.f32.mrf.mxu2  ;;  %v5630_v1 = vadd.f32 %v5629_v56, %v5552_v37 }
 0x72d   :  { %v5729_v18 = vpop.f32.mrf.mxu3 }
 0x72e   :  { %6484 = vmatmul.f32.gmra.mxu0 %v6243_v13  ;;  %6529 = vmatmul.f32.gmra.mxu1 %v6251_v46  ;;  %v5682_v61 = vadd.f32 %v5681_v29, %v5630_v1 }
 0x730   :  { %v5730_v14 = vadd.f32 %v5729_v18, %v5682_v61 }
 0x733   :  { %v5560_v36 = vpop.f32.mrf.mxu0  ;;  %v5821_v54 = vpop.f32.mrf.mxu1 }
 0x734   :  { %v5686_v11 = vpop.f32.mrf.mxu2 }
 0x735   :  { %v5735_v34 = vpop.f32.mrf.mxu3 }
 0x736   :  { %6488 = vmatmul.f32.gmra.mxu0 %v6251_v46  ;;  %v5677_v46 = vadd.f32 %v5676_v45, %v5626_v23 }
 0x738   :  { %v5724_v15 = vadd.f32 %v5723_v39, %v5677_v46 }
 0x73b   :  { %v5780_v40 = vpop.f32.mrf.mxu0  ;;  %v5825_v28 = vpop.f32.mrf.mxu1 }
 0x73c   :  { %v15549_v27 = vpop.f32.mrf.mxu2 }
 0x73d   :  { %v15551_v62 = vpop.f32.mrf.mxu3 }
 0x743   :  { %v5784_v0 = vpop.f32.mrf.mxu0  ;;  %v5829_v35 = vpop.f32.mrf.mxu1 }
 0x744   :  { %v5886_v30 = vpop.f32.mrf.mxu2 }
 0x745   :  { %v5967_v3 = vpop.f32.mrf.mxu3 }
 0x74b   :  { %v5788_v42 = vpop.f32.mrf.mxu0  ;;  %v15553_v51 = vpop.f32.mrf.mxu1 }
 0x74c   :  { %v5894_v2 = vpop.f32.mrf.mxu2 }
 0x74d   :  { %v5971_v17 = vpop.f32.mrf.mxu3 }
 0x753   :  { %v5792_v22 = vpop.f32.mrf.mxu0  ;;  %v15555_v19 = vpop.f32.mrf.mxu1 }
 0x754   :  { %v15561_v41 = vpop.f32.mrf.mxu2 }
 0x755   :  { %v15563_v52 = vpop.f32.mrf.mxu3 }
 0x75b   :  { %v15557_v7 = vpop.f32.mrf.mxu0  ;;  %v15559_v4 = vpop.f32.mrf.mxu1 }
 0x75c   :  { %v15567_v43 = vpop.f32.mrf.mxu2 }
 0x75d   :  { %v15569_v20 = vpop.f32.mrf.mxu3 }
 0x75e   :  { %19477 = vst [vmem:[#allocation37_spill] sm:$0xff] %v15569_v20  ;;  %v5634_v20 = vadd.f32 %v5633_v25, %v5560_v36 }
 0x760   :  { %v5687_v37 = vadd.f32 %v5686_v11, %v5634_v20 }
 0x762   :  { %v5736_v23 = vadd.f32 %v5735_v34, %v5687_v37 }
 0x763   :  { %v6018_v50 = vpop.f32.mrf.mxu0  ;;  %v15565_v10 = vpop.f32.mrf.mxu1 }
 0x764   :  { %v15573_v49 = vpop.f32.mrf.mxu2  ;;  %v5793_v39 = vadd.f32 %v5792_v22, %v5736_v23 }
 0x765   :  { %v15577_v6 = vpop.f32.mrf.mxu3 }
 0x76b   :  { %v6023_v26 = vpop.f32.mrf.mxu0  ;;  %v15571_v63 = vpop.f32.mrf.mxu1 }
 0x76c   :  { %19478 = vst [vmem:[#allocation16_spill] sm:$0xff] %v15571_v63  ;;  %v15579_v47 = vpop.f32.mrf.mxu2  ;;  %v5718_v63 = vadd.f32 %v15547_v32, %v5672_v48 }
 0x76d   :  { %v15581_v33 = vpop.f32.mrf.mxu3 }
 0x76e   :  { %19479 = vst [vmem:[#allocation29_spill] sm:$0xff] %v15581_v33  ;;  %v5785_v33 = vadd.f32 %v5784_v0, %v5724_v15  ;;  %v5781_v56 = vadd.f32 %v5780_v40, %v5718_v63  ;;  %v5834_v40 = vadd.f32 %v15553_v51, %v5793_v39 }
 0x770   :  { %v5822_v45 = vadd.f32 %v5821_v54, %v5781_v56 }
 0x772   :  { %v5879_v25 = vadd.f32 %v15549_v27, %v5822_v45  ;;  %v5903_v27 = vadd.f32 %v15561_v41, %v5834_v40 }
 0x773   :  { %v15575_v8 = vpop.f32.mrf.mxu0  ;;  %v6318_v59 = vpop.f32.mrf.mxu1 }
 0x774   :  { %v15583_v55 = vpop.f32.mrf.mxu2  ;;  %v5964_v11 = vadd.f32 %v15551_v62, %v5879_v25 }
 0x775   :  { %19480 = vst [vmem:[#allocation33_spill] sm:$0xff] %v15583_v55  ;;  %v15585_v53 = vpop.f32.mrf.mxu3  ;;  %v5789_v55 = vadd.f32 %v5788_v42, %v5730_v14  ;;  %v19484_v14 = vld [vmem:[#allocation37_spill] sm:$0xff] }
 0x776   :  { %19481 = vst [vmem:[#allocation21_spill] sm:$0xff] %v15585_v53  ;;  %v5826_v53 = vadd.f32 %v5825_v28, %v5785_v33 }
 0x777   :  { %v5830_v57 = vadd.f32 %v5829_v35, %v5789_v55 }
 0x778   :  { %v5887_v1 = vadd.f32 %v5886_v30, %v5826_v53  ;;  %v6014_v30 = vadd.f32 %v15557_v7, %v5964_v11 }
 0x779   :  { %v5895_v60 = vadd.f32 %v5894_v2, %v5830_v57 }
 0x77a   :  { %v5968_v36 = vadd.f32 %v5967_v3, %v5887_v1  ;;  %v6060_v62 = vadd.f32 %v15555_v19, %v6014_v30  ;;  %v6545_v19 = vld [vmem:[%s19139_s15] sm:$0x1] }
 0x77b   :  { %v6233_v12 = vpop.f32.mrf.mxu0  ;;  %v6322_v16 = vpop.f32.mrf.mxu1  ;;  %v5972_v0 = vadd.f32 %v5971_v17, %v5895_v60 }
 0x77c   :  { %v6368_v24 = vpop.f32.mrf.mxu2  ;;  %v6319_v42 = vadd.f32 %v6318_v59, %v6233_v12  ;;  %v6019_v28 = vadd.f32 %v6018_v50, %v5968_v36  ;;  %v5976_v12 = vadd.f32 %v15563_v52, %v5903_v27 }
 0x77d   :  { %v6414_v5 = vpop.f32.mrf.mxu3  ;;  %v6024_v35 = vadd.f32 %v6023_v26, %v5972_v0  ;;  %v19489_v36 = vld [vmem:[#allocation21_spill] sm:$0xff] }
 0x77e   :  { %v6369_v2 = vadd.f32 %v6368_v24, %v6319_v42  ;;  %v6066_v3 = vadd.f32 %v15559_v4, %v6019_v28  ;;  %v6029_v41 = vadd.f32 %v15575_v8, %v5976_v12  ;;  %v19483_v24 = vld [vmem:[#allocation16_spill] sm:$0xff] }
 0x77f   :  { %v6072_v17 = vadd.f32 %v15565_v10, %v6024_v35  ;;  %v6123_v10 = vadd.f32 %v15567_v43, %v6060_v62  ;;  %v6547_v43 = vsel %vm100_vm0, %v6545_v19, 0 }
 0x780   :  { %v6415_v50 = vadd.f32 %v6414_v5, %v6369_v2  ;;  %v6127_v7 = vadd.f32 %v15573_v49, %v6066_v3  ;;  %v19482_v49 = vld [vmem:[#allocation29_spill] sm:$0xff]  ;;  %v6078_v8 = vadd.f32 %v19483_v24, %v6029_v41  ;;  %v15614_v45 = vand.u32 4294901760, %v6547_v43 }
 0x781   :  { %v6131_v33 = vadd.f32 %v15579_v47, %v6072_v17  ;;  %v6164_v5 = vadd.f32 %v19484_v14, %v6123_v10 }
 0x782   :  { %v6168_v46 = vadd.f32 %v15577_v6, %v6127_v7 }
 0x783   :  { %v6241_v44 = vpop.f32.mrf.mxu0  ;;  %v6326_v13 = vpop.f32.mrf.mxu1  ;;  %v6172_v61 = vadd.f32 %v19482_v49, %v6131_v33  ;;  %v6938_v49 = vld [vmem:[%s19140_s16 + $0x78] sm:$0xff] }
 0x784   :  { %v6373_v29 = vpop.f32.mrf.mxu2  ;;  %v6323_v32 = vadd.f32 %v6322_v16, %v6241_v44 }
 0x785   :  { %v6420_v18 = vpop.f32.mrf.mxu3 }
 0x786   :  { %v6374_v20 = vadd.f32 %v6373_v29, %v6323_v32  ;;  %v19485_v29 = vld [vmem:[#allocation33_spill] sm:$0xff]  ;;  %v15624_v32 = vsub.f32 %v6547_v43, %v15614_v45 }
 0x788   :  { %v6421_v59 = vadd.f32 %v6420_v18, %v6374_v20 }
 0x78b   :  { %v6249_v9 = vpop.f32.mrf.mxu0  ;;  %v6330_v31 = vpop.f32.mrf.mxu1 }
 0x78c   :  { %v6327_v34 = vadd.f32 %v6326_v13, %v6249_v9  ;;  %v6378_v22 = vpop.f32.mrf.mxu2 }
 0x78d   :  { %v6426_v26 = vpop.f32.mrf.mxu3 }
 0x78e   :  { %v6379_v51 = vadd.f32 %v6378_v22, %v6327_v34 }
 0x790   :  { %v6427_v13 = vadd.f32 %v6426_v26, %v6379_v51 }
 0x793   :  { %v6257_v58 = vpop.f32.mrf.mxu0  ;;  %v6518_v38 = vpop.f32.mrf.mxu1 }
 0x794   :  { %v6331_v4 = vadd.f32 %v6330_v31, %v6257_v58  ;;  %v6383_v47 = vpop.f32.mrf.mxu2  ;;  %v11624_v58 = vld [vmem:[%s19136_s12] ss:$0 sm:$0xff] }
 0x795   :  { %v6432_v57 = vpop.f32.mrf.mxu3 }
 0x796   :  { %v6384_v15 = vadd.f32 %v6383_v47, %v6331_v4  ;;  %v6936_v47 = vld [vmem:[%s19140_s16 + $0x68] sm:$0xff] }
 0x798   :  { %v6433_v23 = vadd.f32 %v6432_v57, %v6384_v15  ;;  %v6935_v15 = vld [vmem:[%s19140_s16 + $0x60] sm:$0xff] }
 0x79b   :  { %v6477_v21 = vpop.f32.mrf.mxu0  ;;  %v6522_v54 = vpop.f32.mrf.mxu1 }
 0x79c   :  { %v6478_v44 = vadd.f32 %v6477_v21, %v6415_v50 }
 0x79e   :  { %v6519_v48 = vadd.f32 %v6518_v38, %v6478_v44  ;;  %v6135_v38 = vadd.f32 %v19485_v29, %v6078_v8  ;;  %v15713_v8 = vand.u32 4294901760, %v6936_v47 }
 0x7a0   :  { %v6533_v6 = vadd.f32 %v6519_v48, %v6164_v5  ;;  %v6176_v0 = vadd.f32 %v19489_v36, %v6135_v38  ;;  %v15709_v48 = vand.u32 4294901760, %v6938_v49  ;;  %v15725_v5 = vand.u32 4294901760, %v6935_v15 }
 0x7a1   :  { %v15737_v57 = vsub.f32 %v6936_v47, %v15713_v8 }
 0x7a2   :  { %v15621_v25 = vadd.f32 %v11624_v58, %v6533_v6  ;;  %6940 = vmatpush.msra.mxu0 %v15709_v48  ;;  %v6933_v6 = vld [vmem:[%s19140_s16 + $0x50] sm:$0xff]  ;;  %v15748_v38 = vsub.f32 %v6935_v15, %v15725_v5 }
 0x7a3   :  { %v6481_v63 = vpop.f32.mrf.mxu0  ;;  %v6526_v55 = vpop.f32.mrf.mxu1  ;;  %19491 = vst [vmem:[#allocation17_spill] sm:$0xff] %v15737_v57 }
 0x7a4   :  { %v6482_v16 = vadd.f32 %v6481_v63, %v6421_v59  ;;  %19488 = vst [vmem:[#allocation7_spill] sm:$0xff] %v15621_v25  ;;  %v15634_v35 = vand.u32 4294901760, %v15621_v25  ;;  %v15675_v7 = vmul.f32 %v15621_v25, %v15621_v25 }
 0x7a5   :  { %19492 = vst [vmem:[#allocation31_spill] sm:$0xff] %v15748_v38 }
 0x7a6   :  { %v6523_v9 = vadd.f32 %v6522_v54, %v6482_v16  ;;  %v15637_v54 = vand.u32 4294901760, %v15624_v32  ;;  %v15656_v3 = vsub.f32 %v15621_v25, %v15634_v35 }
 0x7a8   :  { %v6534_v56 = vadd.f32 %v6523_v9, %v6168_v46  ;;  %v6572_v27 = vsub.f32 %v15624_v32, %v15637_v54 }
 0x7aa   :  { %v15619_v21 = vadd.f32 %v11624_v58, %v6534_v56  ;;  %v15671_v16 = vand.u32 4294901760, %v6572_v27  ;;  %v15731_v56 = vsub.f32 %v6938_v49, %v15709_v48 }
 0x7ab   :  { %v6485_v53 = vpop.f32.mrf.mxu0  ;;  %v6530_v18 = vpop.f32.mrf.mxu1 }
 0x7ac   :  { %v6486_v52 = vadd.f32 %v6485_v53, %v6427_v13  ;;  %19487 = vst [vmem:[#allocation19_spill] sm:$0xff] %v15619_v21  ;;  %v15631_v28 = vand.u32 4294901760, %v15619_v21  ;;  %v15663_v59 = vmul.f32 %v15619_v21, %v15619_v21  ;;  %v6610_v13 = vand.u32 4294901760, %v15656_v3 }
 0x7ae   :  { %v6527_v31 = vadd.f32 %v6526_v55, %v6486_v52  ;;  %v6603_v63 = vsub.f32 %v15619_v21, %v15631_v28  ;;  %v15680_v33 = vand.u32 4294901760, %v15663_v59  ;;  %v15687_v55 = vand.u32 4294901760, %v15675_v7 }
 0x7af   :  { %v6611_v19 = vsub.f32 %v15656_v3, %v6610_v13 }
 0x7b0   :  { %v6535_v37 = vadd.f32 %v6527_v31, %v6172_v61  ;;  %v6604_v12 = vand.u32 4294901760, %v6603_v63  ;;  %v6937_v61 = vld [vmem:[%s19140_s16 + $0x70] sm:$0xff]  ;;  %v6934_v31 = vld [vmem:[%s19140_s16 + $0x58] sm:$0xff]  ;;  %v15745_v29 = vsub.f32 %v15663_v59, %v15680_v33 }
 0x7b1   :  { %v6612_v52 = vand.u32 4294901760, %v6611_v19  ;;  %v15711_v24 = vand.u32 4294901760, %v6937_v61 }
 0x7b2   :  { %v15617_v1 = vadd.f32 %v11624_v58, %v6535_v37  ;;  %v6605_v10 = vsub.f32 %v6603_v63, %v6604_v12 }
 0x7b3   :  { %v6489_v60 = vpop.f32.mrf.mxu0  ;;  %v15734_v37 = vsub.f32 %v6937_v61, %v15711_v24  ;;  %6942 = vmatpush.msra.mxu0 %v15711_v24  ;;  %v6928_v61 = vld [vmem:[%s19140_s16 + $0x28] sm:$0xff] }
 0x7b4   :  { %19486 = vst [vmem:[#allocation40_spill] sm:$0xff] %v15617_v1  ;;  %v6490_v39 = vadd.f32 %v6489_v60, %v6433_v23  ;;  %v15628_v40 = vand.u32 4294901760, %v15617_v1  ;;  %v6736_v22 = vmul.f32 %v15617_v1, %v15617_v1  ;;  %v6606_v9 = vand.u32 4294901760, %v6605_v10 }
 0x7b5   :  { %v15750_v23 = vand.u32 4294901760, %v6933_v6  ;;  %v15755_v60 = vand.u32 4294901760, %v15731_v56  ;;  %6944 = vmatpush.msra.mxu0 %v15713_v8 }
 0x7b6   :  { %v6531_v42 = vadd.f32 %v6530_v18, %v6490_v39  ;;  %v6597_v34 = vsub.f32 %v15617_v1, %v15628_v40  ;;  %v15669_v50 = vand.u32 4294901760, %v6736_v22  ;;  %v15758_v39 = vand.u32 4294901760, %v15734_v37 }
 0x7b7   :  { %v15761_v18 = vand.u32 4294901760, %v15737_v57  ;;  %v15791_v27 = vsub.f32 %v6933_v6, %v15750_v23  ;;  %6946 = vmatpush.msra.mxu0 %v15725_v5 }
 0x7b8   :  { %v6536_v11 = vadd.f32 %v6531_v42, %v6176_v0  ;;  %v6598_v62 = vand.u32 4294901760, %v6597_v34  ;;  %v15723_v14 = vsub.f32 %v6736_v22, %v15669_v50  ;;  %v6932_v0 = vld [vmem:[%s19140_s16 + $0x48] sm:$0xff]  ;;  %v6989_v22 = vsub.f32 %v15734_v37, %v15758_v39 }
 0x7b9   :  { %v15827_v10 = vand.u32 4294901760, %v15791_v27 }
 0x7ba   :  { %v15639_v20 = vadd.f32 %v11624_v58, %v6536_v11  ;;  %v6599_v41 = vsub.f32 %v6597_v34, %v6598_v62  ;;  %v15727_v58 = vand.u32 4294901760, %v6934_v31  ;;  %v6787_v11 = vand.u32 4294901760, %v15723_v14 }
 0x7bc   :  { %19490 = vst [vmem:[#allocation23_spill] sm:$0xff] %v15639_v20  ;;  %v15644_v30 = vand.u32 4294901760, %v15639_v20  ;;  %v6737_v2 = vmul.f32 %v15639_v20, %v15639_v20  ;;  %v6600_v53 = vand.u32 4294901760, %v6599_v41  ;;  %v15764_v36 = vsub.f32 %v6934_v31, %v15727_v58  ;;  %6948 = vmatpush.msra.mxu0 %v15727_v58 }
 0x7be   :  { %6562 = vmatpush.msrb.mxu2 %v15644_v30  ;;  %v15659_v17 = vand.u32 4294901760, %v6737_v2  ;;  %v6591_v51 = vsub.f32 %v15639_v20, %v15644_v30  ;;  %6950 = vmatpush.msra.mxu0 %v15750_v23 }
 0x7c0   :  { %6564 = vmatpush.msrb.mxu2 %v15628_v40  ;;  %6851 = vmatpush.msrb.mxu1 %v15659_v17  ;;  %v6592_v26 = vand.u32 4294901760, %v6591_v51  ;;  %v15695_v46 = vsub.f32 %v6737_v2, %v15659_v17  ;;  %v15779_v2 = vand.u32 4294901760, %v6932_v0 }
 0x7c2   :  { %6566 = vmatpush.msrb.mxu2 %v15631_v28  ;;  %6853 = vmatpush.msrb.mxu1 %v15669_v50  ;;  %v6593_v44 = vsub.f32 %v6591_v51, %v6592_v26  ;;  %v6781_v43 = vand.u32 4294901760, %v15695_v46  ;;  %v15821_v41 = vsub.f32 %v6932_v0, %v15779_v2  ;;  %v7013_v0 = vsub.f32 %v15791_v27, %v15827_v10 }
 0x7c3   :  { %6952 = vmatpush.msra.mxu0 %v15779_v2 }
 0x7c4   :  { %6568 = vmatpush.msrb.mxu2 %v15634_v35  ;;  %6855 = vmatpush.msrb.mxu1 %v15680_v33  ;;  %v6594_v4 = vand.u32 4294901760, %v6593_v44  ;;  %v6782_v42 = vsub.f32 %v15695_v46, %v6781_v43  ;;  %v15818_v44 = vand.u32 4294901760, %v6989_v22  ;;  %v15856_v15 = vand.u32 4294901760, %v15821_v41 }
 0x7c5   :  { %6574 = vmatmul.f32.vlgmr.msrb.gmra.mxu2 %v15671_v16 }
 0x7c6   :  { %6633 = vmatpush.msra.mxu2 %v6591_v51  ;;  %6595 = vmatpush.msra.mxu3 %v6594_v4  ;;  %v6995_v51 = vsub.f32 %v15737_v57, %v15761_v18 }
 0x7c7   :  { %6857 = vmatpush.msrb.mxu1 %v15687_v55 }
 0x7c8   :  { %6636 = vmatpush.msra.mxu2 %v6597_v34  ;;  %6601 = vmatpush.msra.mxu3 %v6600_v53  ;;  %v15776_v34 = vsub.f32 %v15675_v7, %v15687_v55  ;;  %v6929_v53 = vld [vmem:[%s19140_s16 + $0x30] sm:$0xff] }
 0x7c9   :  { %6861 = vmatmul.f32.vlgmr.msrb.gmra.mxu1 %v15637_v54  ;;  %v15859_v31 = vand.u32 4294901760, %v6929_v53 }
 0x7ca   :  { %6639 = vmatpush.msra.mxu2 %v6603_v63  ;;  %6607 = vmatpush.msra.mxu3 %v6606_v9  ;;  %v15788_v63 = vand.u32 4294901760, %v15748_v38  ;;  %v19187_v7 = vand.u32 4294901760, %v15776_v34  ;;  %v15841_v9 = vand.u32 4294901760, %v6995_v51 }
 0x7cc   :  { %6642 = vmatpush.msra.mxu2 %v15656_v3  ;;  %6613 = vmatpush.msra.mxu3 %v6612_v52  ;;  %v6931_v3 = vld [vmem:[%s19140_s16 + $0x40] sm:$0xff]  ;;  %v7001_v4 = vsub.f32 %v15748_v38, %v15788_v63  ;;  %v6800_v47 = vsub.f32 %v15776_v34, %v19187_v7  ;;  %v6924_v7 = vld [vmem:[%s19140_s16 + $0x8] sm:$0xff] }
 0x7cd   :  { %6615 = vmatmul.f32.vlgmr.msra.gmra.mxu3 %v15614_v45  ;;  %6645 = vmatmul.f32.vlgmr.msra.gmra.mxu2 %v15624_v32 }
 0x7ce   :  { %6691 = vmatpush.msrb.mxu2 %v6592_v26  ;;  %6662 = vmatpush.msrb.mxu3 %v15644_v30  ;;  %v15807_v26 = vand.u32 4294901760, %v6931_v3  ;;  %v15863_v6 = vand.u32 4294901760, %v7001_v4  ;;  %v15890_v4 = vsub.f32 %v6929_v53, %v15859_v31 }
 0x7d0   :  { %6695 = vmatpush.msrb.mxu2 %v6598_v62  ;;  %6664 = vmatpush.msrb.mxu3 %v15628_v40  ;;  %v15804_v62 = vand.u32 4294901760, %v15764_v36  ;;  %v15846_v49 = vsub.f32 %v6931_v3, %v15807_v26  ;;  %v15874_v3 = vand.u32 4294901760, %v6928_v61 }
 0x7d1   :  { %6954 = vmatpush.msra.mxu0 %v15807_v26 }
 0x7d2   :  { %6699 = vmatpush.msrb.mxu2 %v6604_v12  ;;  %6666 = vmatpush.msrb.mxu3 %v15631_v28  ;;  %v6930_v12 = vld [vmem:[%s19140_s16 + $0x38] sm:$0xff]  ;;  %v7007_v52 = vsub.f32 %v15764_v36, %v15804_v62  ;;  %v15907_v53 = vsub.f32 %v6928_v61, %v15874_v3 }
 0x7d4   :  { %6703 = vmatpush.msrb.mxu2 %v6610_v13  ;;  %6668 = vmatpush.msrb.mxu3 %v15634_v35  ;;  %v6783_v13 = vand.u32 4294901760, %v6782_v42  ;;  %v15878_v51 = vand.u32 4294901760, %v7007_v52  ;;  %v15896_v52 = vand.u32 4294901760, %v7013_v0 }
 0x7d5   :  { %6672 = vmatmul.f32.vlgmr.msrb.gmra.mxu3 %v15637_v54  ;;  %6705 = vmatmul.f32.vlgmr.msrb.gmra.mxu2 %v15614_v45  ;;  %v6793_v54 = vand.u32 4294901760, %v15745_v29 }
 0x7d6   :  { %6751 = vmatpush.msra.mxu2 %v15659_v17  ;;  %6722 = vmatpush.msra.mxu3 %v15644_v30  ;;  %v6983_v30 = vsub.f32 %v15731_v56, %v15755_v60 }
 0x7d7   :  { %v6794_v19 = vsub.f32 %v15745_v29, %v6793_v54 }
 0x7d8   :  { %6753 = vmatpush.msra.mxu2 %v15669_v50  ;;  %6724 = vmatpush.msra.mxu3 %v15628_v40  ;;  %v15799_v59 = vand.u32 4294901760, %v6983_v30  ;;  %v6788_v40 = vsub.f32 %v15723_v14, %v6787_v11  ;;  %v6927_v30 = vld [vmem:[%s19140_s16 + $0x20] sm:$0xff] }
 0x7d9   :  { %v6795_v22 = vand.u32 4294901760, %v6794_v19  ;;  %v15892_v19 = vand.u32 4294901760, %v6927_v30 }
 0x7da   :  { %6755 = vmatpush.msra.mxu2 %v15680_v33  ;;  %6726 = vmatpush.msra.mxu3 %v15631_v28  ;;  %v15830_v28 = vand.u32 4294901760, %v6930_v12 }
 0x7db   :  { %6985 = vmatpush.msra.mxu1 %v15799_v59 }
 0x7dc   :  { %6757 = vmatpush.msra.mxu2 %v15687_v55  ;;  %6728 = vmatpush.msra.mxu3 %v15634_v35  ;;  %v6789_v35 = vand.u32 4294901760, %v6788_v40  ;;  %v15868_v42 = vsub.f32 %v6930_v12, %v15830_v28  ;;  %v15881_v40 = vand.u32 4294901760, %v15846_v49  ;;  %v6926_v12 = vld [vmem:[%s19140_s16 + $0x18] sm:$0xff] }
 0x7dd   :  { %6991 = vmatpush.msra.mxu1 %v15818_v44  ;;  %6730 = vmatmul.f32.vlgmr.msra.gmra.mxu3 %v15614_v45 }
 0x7de   :  { %6822 = vmatpush.msrb.mxu2 %v15695_v46  ;;  %6784 = vmatpush.msrb.mxu3 %v6783_v13  ;;  %v6801_v13 = vand.u32 4294901760, %v6800_v47  ;;  %v6925_v47 = vld [vmem:[%s19140_s16 + $0x10] sm:$0xff]  ;;  %v7025_v0 = vsub.f32 %v15846_v49, %v15881_v40 }
 0x7df   :  { %6763 = vmatmul.f32.vlgmr.msra.gmra.mxu2 %v15671_v16  ;;  %6997 = vmatpush.msra.mxu1 %v15841_v9  ;;  %v7019_v16 = vsub.f32 %v15821_v41, %v15856_v15  ;;  %v15929_v61 = vand.u32 4294901760, %v6925_v47 }
 0x7e0   :  { %6825 = vmatpush.msrb.mxu2 %v15723_v14  ;;  %6790 = vmatpush.msrb.mxu3 %v6789_v35  ;;  %v15899_v35 = vand.u32 4294901760, %v15868_v42 }
 0x7e1   :  { %7003 = vmatpush.msra.mxu1 %v15863_v6  ;;  %v15920_v46 = vand.u32 4294901760, %v7019_v16  ;;  %v15951_v16 = vand.u32 4294901760, %v7025_v0  ;;  %6956 = vmatpush.msra.mxu0 %v15830_v28 }
 0x7e2   :  { %6828 = vmatpush.msrb.mxu2 %v15745_v29  ;;  %6796 = vmatpush.msrb.mxu3 %v6795_v22  ;;  %v15909_v22 = vand.u32 4294901760, %v6926_v12  ;;  %v7031_v14 = vsub.f32 %v15868_v42, %v15899_v35  ;;  %v19493_v29 = vand.u32 4294901760, %v15776_v34 }
 0x7e3   :  { %7009 = vmatpush.msra.mxu1 %v15878_v51  ;;  %6958 = vmatpush.msra.mxu0 %v15859_v31 }
 0x7e4   :  { %6831 = vmatpush.msrb.mxu2 %v15776_v34  ;;  %6802 = vmatpush.msrb.mxu3 %v6801_v13  ;;  %v15944_v13 = vsub.f32 %v6926_v12, %v15909_v22  ;;  %v15961_v12 = vsub.f32 %v6925_v47, %v15929_v61 }
 0x7e5   :  { %7015 = vmatpush.msra.mxu1 %v15896_v52  ;;  %6804 = vmatmul.f32.vlgmr.msrb.gmra.mxu3 %v15614_v45 }
 0x7e6   :  { %6880 = vmatpush.msra.mxu2 %v6781_v43  ;;  %6911 = vmatpush.msra.mxu3 %v15659_v17  ;;  %v15923_v43 = vand.u32 4294901760, %v15890_v4  ;;  %v15927_v17 = vsub.f32 %v6927_v30, %v15892_v19  ;;  %v15941_v30 = vand.u32 4294901760, %v15907_v53  ;;  %v15975_v0 = vand.u32 4294901760, %v15944_v13 }
 0x7e7   :  { %6834 = vmatmul.f32.vlgmr.msrb.gmra.mxu2 %v15624_v32  ;;  %7021 = vmatpush.msra.mxu1 %v15920_v46 }
 0x7e8   :  { %6884 = vmatpush.msra.mxu2 %v6787_v11  ;;  %6913 = vmatpush.msra.mxu3 %v15669_v50  ;;  %v6923_v11 = vld [vmem:[%s19140_s16] sm:$0xff]  ;;  %v15946_v50 = vand.u32 4294901760, %v6924_v7  ;;  %v7037_v32 = vsub.f32 %v15890_v4, %v15923_v43  ;;  %v15958_v20 = vand.u32 4294901760, %v15927_v17 }
 0x7e9   :  { %v15963_v1 = vand.u32 4294901760, %v6923_v11  ;;  %7027 = vmatpush.msra.mxu1 %v15951_v16  ;;  %6960 = vmatpush.msra.mxu0 %v15874_v3 }
 0x7ea   :  { %6888 = vmatpush.msra.mxu2 %v6793_v54  ;;  %6915 = vmatpush.msra.mxu3 %v15680_v33  ;;  %v15968_v33 = vand.u32 4294901760, %v7031_v14  ;;  %v7043_v54 = vsub.f32 %v15907_v53, %v15941_v30  ;;  %v15978_v47 = vsub.f32 %v6924_v7, %v15946_v50  ;;  %v7049_v34 = vsub.f32 %v15927_v17, %v15958_v20 }
 0x7eb   :  { %v15989_v14 = vand.u32 4294901760, %v15961_v12  ;;  %6962 = vmatpush.msra.mxu0 %v15892_v19 }
 0x7ec   :  { %6892 = vmatpush.msra.mxu2 %v19493_v29  ;;  %6917 = vmatpush.msra.mxu3 %v15687_v55  ;;  %v15984_v55 = vand.u32 4294901760, %v7037_v32  ;;  %v15992_v29 = vsub.f32 %v6923_v11, %v15963_v1  ;;  %v15998_v7 = vand.u32 4294901760, %v7043_v54  ;;  %v7055_v32 = vsub.f32 %v15944_v13, %v15975_v0 }
 0x7ed   :  { %7033 = vmatpush.msra.mxu1 %v15968_v33  ;;  %6919 = vmatmul.f32.vlgmr.msra.gmra.mxu3 %v15614_v45  ;;  %v16003_v21 = vand.u32 4294901760, %v15978_v47  ;;  %v16008_v11 = vand.u32 4294901760, %v7049_v34  ;;  %v7061_v25 = vsub.f32 %v15961_v12, %v15989_v14 }
 0x7ee   :  { %7083 = vmatpush.msrb.mxu2 %v15731_v56  ;;  %7136 = vmatpush.msrb.mxu3 %v15709_v48  ;;  %v16019_v54 = vand.u32 4294901760, %v7055_v32 }
 0x7ef   :  { %6894 = vmatmul.f32.vlgmr.msra.gmra.mxu2 %v15614_v45  ;;  %7039 = vmatpush.msra.mxu1 %v15984_v55  ;;  %v16014_v45 = vand.u32 4294901760, %v15992_v29  ;;  %v7067_v34 = vsub.f32 %v15978_v47, %v16003_v21 }
 0x7f0   :  { %7086 = vmatpush.msrb.mxu2 %v15734_v37  ;;  %7138 = vmatpush.msrb.mxu3 %v15711_v24 }
 0x7f1   :  { %7045 = vmatpush.msra.mxu1 %v15998_v7  ;;  %6964 = vmatpush.msra.mxu0 %v15909_v22  ;;  %v16035_v32 = vand.u32 4294901760, %v7067_v34 }
 0x7f2   :  { %7089 = vmatpush.msrb.mxu2 %v15737_v57  ;;  %7140 = vmatpush.msrb.mxu3 %v15713_v8  ;;  %v16027_v57 = vand.u32 4294901760, %v7061_v25 }
 0x7f3   :  { %7051 = vmatpush.msra.mxu1 %v16008_v11  ;;  %6966 = vmatpush.msra.mxu0 %v15929_v61 }
 0x7f4   :  { %7092 = vmatpush.msrb.mxu2 %v15748_v38  ;;  %7142 = vmatpush.msrb.mxu3 %v15725_v5  ;;  %v7073_v38 = vsub.f32 %v15992_v29, %v16014_v45 }
 0x7f5   :  { %7057 = vmatpush.msra.mxu1 %v16019_v54  ;;  %6968 = vmatpush.msra.mxu0 %v15946_v50 }
 0x7f6   :  { %7095 = vmatpush.msrb.mxu2 %v15764_v36  ;;  %7144 = vmatpush.msrb.mxu3 %v15727_v58  ;;  %v16041_v25 = vand.u32 4294901760, %v7073_v38 }
 0x7f7   :  { %7063 = vmatpush.msra.mxu1 %v16027_v57  ;;  %6970 = vmatpush.msra.mxu0 %v15963_v1 }
 0x7f8   :  { %7098 = vmatpush.msrb.mxu2 %v15791_v27  ;;  %7146 = vmatpush.msrb.mxu3 %v15750_v23 }
 0x7f9   :  { %7069 = vmatpush.msra.mxu1 %v16035_v32  ;;  %7177 = vmatpush.msrb.mxu0 %v15755_v60 }
 0x7fa   :  { %7101 = vmatpush.msrb.mxu2 %v15821_v41  ;;  %7148 = vmatpush.msrb.mxu3 %v15779_v2 }
 0x7fb   :  { %7075 = vmatpush.msra.mxu1 %v16041_v25  ;;  %7181 = vmatpush.msrb.mxu0 %v15758_v39 }
 0x7fc   :  { %7104 = vmatpush.msrb.mxu2 %v15846_v49  ;;  %7150 = vmatpush.msrb.mxu3 %v15807_v26 }
 0x7fd   :  { %7244 = vmatpush.msrb.mxu1 %v15709_v48  ;;  %7185 = vmatpush.msrb.mxu0 %v15761_v18 }
 0x7fe   :  { %7107 = vmatpush.msrb.mxu2 %v15868_v42  ;;  %7152 = vmatpush.msrb.mxu3 %v15830_v28 }
 0x7ff   :  { %7246 = vmatpush.msrb.mxu1 %v15711_v24  ;;  %7189 = vmatpush.msrb.mxu0 %v15788_v63 }
 0x800   :  { %7110 = vmatpush.msrb.mxu2 %v15890_v4  ;;  %7154 = vmatpush.msrb.mxu3 %v15859_v31 }
 0x801   :  { %7248 = vmatpush.msrb.mxu1 %v15713_v8  ;;  %7193 = vmatpush.msrb.mxu0 %v15804_v62 }
 0x802   :  { %7113 = vmatpush.msrb.mxu2 %v15907_v53  ;;  %7156 = vmatpush.msrb.mxu3 %v15874_v3 }
 0x803   :  { %7250 = vmatpush.msrb.mxu1 %v15725_v5  ;;  %7197 = vmatpush.msrb.mxu0 %v15827_v10 }
 0x804   :  { %7116 = vmatpush.msrb.mxu2 %v15927_v17  ;;  %7158 = vmatpush.msrb.mxu3 %v15892_v19 }
 0x805   :  { %7252 = vmatpush.msrb.mxu1 %v15727_v58  ;;  %7201 = vmatpush.msrb.mxu0 %v15856_v15 }
 0x806   :  { %7119 = vmatpush.msrb.mxu2 %v15944_v13  ;;  %7160 = vmatpush.msrb.mxu3 %v15909_v22 }
 0x807   :  { %7254 = vmatpush.msrb.mxu1 %v15750_v23  ;;  %7205 = vmatpush.msrb.mxu0 %v15881_v40 }
 0x808   :  { %7122 = vmatpush.msrb.mxu2 %v15961_v12  ;;  %7162 = vmatpush.msrb.mxu3 %v15929_v61 }
 0x809   :  { %7256 = vmatpush.msrb.mxu1 %v15779_v2  ;;  %7209 = vmatpush.msrb.mxu0 %v15899_v35 }
 0x80a   :  { %7125 = vmatpush.msrb.mxu2 %v15978_v47  ;;  %7164 = vmatpush.msrb.mxu3 %v15946_v50 }
 0x80b   :  { %7258 = vmatpush.msrb.mxu1 %v15807_v26  ;;  %7213 = vmatpush.msrb.mxu0 %v15923_v43 }
 0x80c   :  { %7128 = vmatpush.msrb.mxu2 %v15992_v29  ;;  %7166 = vmatpush.msrb.mxu3 %v15963_v1 }
 0x80d   :  { %7260 = vmatpush.msrb.mxu1 %v15830_v28  ;;  %7217 = vmatpush.msrb.mxu0 %v15941_v30 }
 0x80e   :  { %7281 = vmatpush.msra.mxu2 %v15709_v48  ;;  %7326 = vmatpush.msra.mxu3 %v15799_v59 }
 0x80f   :  { %7262 = vmatpush.msrb.mxu1 %v15859_v31  ;;  %7221 = vmatpush.msrb.mxu0 %v15958_v20 }
 0x810   :  { %7283 = vmatpush.msra.mxu2 %v15711_v24  ;;  %7332 = vmatpush.msra.mxu3 %v15818_v44 }
 0x811   :  { %7264 = vmatpush.msrb.mxu1 %v15874_v3  ;;  %7225 = vmatpush.msrb.mxu0 %v15975_v0 }
 0x812   :  { %7285 = vmatpush.msra.mxu2 %v15713_v8  ;;  %7338 = vmatpush.msra.mxu3 %v15841_v9 }
 0x813   :  { %7266 = vmatpush.msrb.mxu1 %v15892_v19  ;;  %7229 = vmatpush.msrb.mxu0 %v15989_v14 }
 0x814   :  { %7287 = vmatpush.msra.mxu2 %v15725_v5  ;;  %7344 = vmatpush.msra.mxu3 %v15863_v6 }
 0x815   :  { %7268 = vmatpush.msrb.mxu1 %v15909_v22  ;;  %7233 = vmatpush.msrb.mxu0 %v16003_v21 }
 0x816   :  { %7289 = vmatpush.msra.mxu2 %v15727_v58  ;;  %7350 = vmatpush.msra.mxu3 %v15878_v51 }
 0x817   :  { %7270 = vmatpush.msrb.mxu1 %v15929_v61  ;;  %7237 = vmatpush.msrb.mxu0 %v16014_v45 }
 0x818   :  { %7291 = vmatpush.msra.mxu2 %v15750_v23  ;;  %7356 = vmatpush.msra.mxu3 %v15896_v52 }
 0x819   :  { %7272 = vmatpush.msrb.mxu1 %v15946_v50 }
 0x81a   :  { %7293 = vmatpush.msra.mxu2 %v15779_v2  ;;  %7362 = vmatpush.msra.mxu3 %v15920_v46 }
 0x81b   :  { %7274 = vmatpush.msrb.mxu1 %v15963_v1 }
 0x81c   :  { %7295 = vmatpush.msra.mxu2 %v15807_v26  ;;  %7368 = vmatpush.msra.mxu3 %v15951_v16 }
 0x81e   :  { %7297 = vmatpush.msra.mxu2 %v15830_v28  ;;  %7374 = vmatpush.msra.mxu3 %v15968_v33 }
 0x820   :  { %7299 = vmatpush.msra.mxu2 %v15859_v31  ;;  %7380 = vmatpush.msra.mxu3 %v15984_v55 }
 0x822   :  { %7301 = vmatpush.msra.mxu2 %v15874_v3  ;;  %7386 = vmatpush.msra.mxu3 %v15998_v7 }
 0x824   :  { %7303 = vmatpush.msra.mxu2 %v15892_v19  ;;  %7392 = vmatpush.msra.mxu3 %v16008_v11 }
 0x826   :  { %7305 = vmatpush.msra.mxu2 %v15909_v22  ;;  %7398 = vmatpush.msra.mxu3 %v16019_v54 }
 0x828   :  { %7307 = vmatpush.msra.mxu2 %v15929_v61  ;;  %7404 = vmatpush.msra.mxu3 %v16027_v57 }
 0x82a   :  { %7309 = vmatpush.msra.mxu2 %v15946_v50  ;;  %7410 = vmatpush.msra.mxu3 %v16035_v32 }
 0x82c   :  { %7311 = vmatpush.msra.mxu2 %v15963_v1  ;;  %7416 = vmatpush.msra.mxu3 %v16041_v25 }
 0x848   :  { %v6575_v38 = vpop.f32.mrf.mxu2 }
 0x850   :  { %v6616_v59 = vpop.f32.mrf.mxu3  ;;  %v6646_v44 = vpop.f32.mrf.mxu2 }
 0x851   :  { %v6617_v9 = vadd.f32 %v6616_v59, %v6575_v38 }
 0x853   :  { %v6647_v52 = vadd.f32 %v6646_v44, %v6617_v9  ;;  %v6862_v9 = vpop.f32.mrf.mxu1 }
 0x858   :  { %v6673_v6 = vpop.f32.mrf.mxu3  ;;  %v6706_v51 = vpop.f32.mrf.mxu2 }
 0x859   :  { %v6674_v46 = vadd.f32 %v6673_v6, %v6647_v52  ;;  %v7666_v52 = vld [vmem:[%s19141_s17 + $0x40] sm:$0xff] }
 0x85b   :  { %v6707_v16 = vadd.f32 %v6706_v51, %v6674_v46 }
 0x860   :  { %v6731_v33 = vpop.f32.mrf.mxu3 }
 0x861   :  { %v6732_v55 = vadd.f32 %v6731_v33, %v6707_v16 }
 0x862   :  { %v6764_v57 = vpop.f32.mrf.mxu2 }
 0x863   :  { %v6971_v7 = vand.u32 4294901760, %v6732_v55 }
 0x865   :  { %v6972_v11 = vsub.f32 %v6732_v55, %v6971_v7  ;;  %7077 = vmatmul.f32.vlgmr.msra.gmra.mxu1 %v6971_v7 }
 0x866   :  { %7477 = vmatpush.msra.mxu1 %v15709_v48 }
 0x867   :  { %v6973_v54 = vand.u32 4294901760, %v6972_v11  ;;  %7131 = vmatmul.f32.vlgmr.msrb.gmra.mxu2 %v6972_v11 }
 0x868   :  { %7479 = vmatpush.msra.mxu1 %v15711_v24  ;;  %7518 = vmatpush.msrb.mxu2 %v15755_v60  ;;  %v6805_v32 = vpop.f32.mrf.mxu3 }
 0x869   :  { %v6974_v34 = vsub.f32 %v6972_v11, %v6973_v54  ;;  %7170 = vmatmul.f32.vlgmr.msrb.gmra.mxu3 %v6973_v54  ;;  %v6806_v38 = vadd.f32 %v6805_v32, %v6764_v57  ;;  %v16286_v57 = vand.u32 4294901760, %v7666_v52  ;;  %v7665_v11 = vld [vmem:[%s19141_s17 + $0x38] sm:$0xff] }
 0x86a   :  { %v6835_v25 = vpop.f32.mrf.mxu2  ;;  %7481 = vmatpush.msra.mxu1 %v15713_v8  ;;  %7585 = vmatpush.msrb.mxu3 %v15709_v48 }
 0x86b   :  { %v6975_v59 = vand.u32 4294901760, %v6974_v34  ;;  %7522 = vmatpush.msrb.mxu2 %v15758_v39  ;;  %v6836_v44 = vadd.f32 %v6835_v25, %v6806_v38  ;;  %v16302_v32 = vsub.f32 %v7666_v52, %v16286_v57  ;;  %v16304_v25 = vand.u32 4294901760, %v7665_v11  ;;  %v7660_v52 = vld [vmem:[%s19141_s17 + $0x10] sm:$0xff] }
 0x86c   :  { %7483 = vmatpush.msra.mxu1 %v15725_v5  ;;  %7587 = vmatpush.msrb.mxu3 %v15711_v24 }
 0x86d   :  { %7526 = vmatpush.msrb.mxu2 %v15761_v18  ;;  %6976 = vmatmul.f32.vlgmr.msra.gmra.mxu0 %v6975_v59  ;;  %v6863_v48 = vadd.f32 %v6862_v9, %v6836_v44  ;;  %v19494_v18 = vld [vmem:[#allocation17_spill] sm:$0xff] }
 0x86e   :  { %7276 = vmatmul.f32.vlgmr.msrb.gmra.mxu1 %v6971_v7  ;;  %7424 = vmatpush.msra.mxu0 %v15731_v56  ;;  %v19495_v56 = vld [vmem:[#allocation31_spill] sm:$0xff]  ;;  %v7664_v9 = vld [vmem:[%s19141_s17 + $0x30] sm:$0xff] }
 0x86f   :  { %7485 = vmatpush.msra.mxu1 %v15727_v58  ;;  %7589 = vmatpush.msrb.mxu3 %v15713_v8 }
 0x870   :  { %7530 = vmatpush.msrb.mxu2 %v15788_v63  ;;  %7427 = vmatpush.msra.mxu0 %v15734_v37  ;;  %v6920_v60 = vpop.f32.mrf.mxu3 }
 0x871   :  { %7487 = vmatpush.msra.mxu1 %v15750_v23  ;;  %7591 = vmatpush.msrb.mxu3 %v15725_v5 }
 0x872   :  { %v6895_v24 = vpop.f32.mrf.mxu2  ;;  %7534 = vmatpush.msrb.mxu2 %v15804_v62  ;;  %7430 = vmatpush.msra.mxu0 %v19494_v18 }
 0x873   :  { %v6896_v39 = vadd.f32 %v6895_v24, %v6863_v48  ;;  %7489 = vmatpush.msra.mxu1 %v15779_v2  ;;  %7593 = vmatpush.msrb.mxu3 %v15727_v58 }
 0x874   :  { %7538 = vmatpush.msrb.mxu2 %v15827_v10  ;;  %7433 = vmatpush.msra.mxu0 %v19495_v56  ;;  %v7670_v10 = vld [vmem:[%s19141_s17 + $0x60] sm:$0xff]  ;;  %v16321_v56 = vand.u32 4294901760, %v7664_v9 }
 0x875   :  { %v6921_v8 = vadd.f32 %v6920_v60, %v6896_v39  ;;  %7491 = vmatpush.msra.mxu1 %v15807_v26  ;;  %7595 = vmatpush.msrb.mxu3 %v15750_v23  ;;  %v7783_v60 = vand.u32 4294901760, %v16302_v32  ;;  %v16317_v39 = vsub.f32 %v7665_v11, %v16304_v25 }
 0x876   :  { %7542 = vmatpush.msrb.mxu2 %v15856_v15  ;;  %7239 = vmatmul.f32.vlgmr.msrb.gmra.mxu0 %v6971_v7 }
 0x877   :  { %v7312_v5 = vand.u32 4294901760, %v6921_v8  ;;  %7436 = vmatpush.msra.mxu0 %v15764_v36  ;;  %7493 = vmatpush.msra.mxu1 %v15830_v28 }
 0x878   :  { %7597 = vmatpush.msrb.mxu3 %v15779_v2  ;;  %7546 = vmatpush.msrb.mxu2 %v15881_v40  ;;  %v7672_v2 = vld [vmem:[%s19141_s17 + $0x70] sm:$0xff] }
 0x879   :  { %v7313_v37 = vsub.f32 %v6921_v8, %v7312_v5  ;;  %7418 = vmatmul.f32.vlgmr.msra.gmra.mxu3 %v7312_v5  ;;  %7439 = vmatpush.msra.mxu0 %v15791_v27  ;;  %v7671_v27 = vld [vmem:[%s19141_s17 + $0x68] sm:$0xff] }
 0x87a   :  { %7495 = vmatpush.msra.mxu1 %v15859_v31  ;;  %7599 = vmatpush.msrb.mxu3 %v15807_v26 }
 0x87b   :  { %v7314_v58 = vand.u32 4294901760, %v7313_v37  ;;  %7550 = vmatpush.msrb.mxu2 %v15899_v35  ;;  %7442 = vmatpush.msra.mxu0 %v15821_v41  ;;  %v16216_v41 = vand.u32 4294901760, %v7671_v27 }
 0x87c   :  { %7497 = vmatpush.msra.mxu1 %v15874_v3  ;;  %7601 = vmatpush.msrb.mxu3 %v15830_v28 }
 0x87d   :  { %v7315_v23 = vsub.f32 %v7313_v37, %v7314_v58  ;;  %7554 = vmatpush.msrb.mxu2 %v15923_v43  ;;  %7445 = vmatpush.msra.mxu0 %v15846_v49  ;;  %v16228_v15 = vsub.f32 %v7671_v27, %v16216_v41  ;;  %v7668_v43 = vld [vmem:[%s19141_s17 + $0x50] sm:$0xff]  ;;  %v7662_v27 = vld [vmem:[%s19141_s17 + $0x20] sm:$0xff] }
 0x87e   :  { %7499 = vmatpush.msra.mxu1 %v15892_v19  ;;  %7603 = vmatpush.msrb.mxu3 %v15859_v31  ;;  %v16231_v31 = vand.u32 4294901760, %v7670_v10 }
 0x87f   :  { %v7316_v36 = vand.u32 4294901760, %v7315_v23  ;;  %7558 = vmatpush.msrb.mxu2 %v15941_v30  ;;  %7448 = vmatpush.msra.mxu0 %v15868_v42  ;;  %v7789_v23 = vand.u32 4294901760, %v16317_v39 }
 0x880   :  { %7501 = vmatpush.msra.mxu1 %v15909_v22  ;;  %7605 = vmatpush.msrb.mxu3 %v15874_v3  ;;  %v7669_v3 = vld [vmem:[%s19141_s17 + $0x58] sm:$0xff]  ;;  %v16243_v35 = vsub.f32 %v7670_v10, %v16231_v31 }
 0x881   :  { %7562 = vmatpush.msrb.mxu2 %v15958_v20  ;;  %7451 = vmatpush.msra.mxu0 %v15890_v4 }
 0x882   :  { %7317 = vmatmul.f32.vlgmr.msra.gmra.mxu2 %v7316_v36  ;;  %7503 = vmatpush.msra.mxu1 %v15929_v61  ;;  %v7759_v30 = vand.u32 4294901760, %v16243_v35 }
 0x883   :  { %7607 = vmatpush.msrb.mxu3 %v15892_v19  ;;  %7566 = vmatpush.msrb.mxu2 %v15975_v0  ;;  %v7753_v19 = vand.u32 4294901760, %v16228_v15  ;;  %v7667_v0 = vld [vmem:[%s19141_s17 + $0x48] sm:$0xff] }
 0x884   :  { %7454 = vmatpush.msra.mxu0 %v15907_v53  ;;  %7505 = vmatpush.msra.mxu1 %v15946_v50 }
 0x885   :  { %7609 = vmatpush.msrb.mxu3 %v15909_v22  ;;  %7570 = vmatpush.msrb.mxu2 %v15989_v14  ;;  %v16247_v22 = vand.u32 4294901760, %v7669_v3  ;;  %v7760_v14 = vsub.f32 %v16243_v35, %v7759_v30 }
 0x886   :  { %7457 = vmatpush.msra.mxu0 %v15927_v17  ;;  %7507 = vmatpush.msra.mxu1 %v15963_v1 }
 0x887   :  { %7611 = vmatpush.msrb.mxu3 %v15929_v61  ;;  %7511 = vmatmul.f32.vlgmr.msra.gmra.mxu1 %v7314_v58  ;;  %v7754_v61 = vsub.f32 %v16228_v15, %v7753_v19  ;;  %v7761_v16 = vand.u32 4294901760, %v7760_v14  ;;  %v7784_v58 = vsub.f32 %v16302_v32, %v7783_v60 }
 0x888   :  { %7574 = vmatpush.msrb.mxu2 %v16003_v21  ;;  %7460 = vmatpush.msra.mxu0 %v15944_v13  ;;  %v7673_v21 = vld [vmem:[%s19141_s17 + $0x78] sm:$0xff]  ;;  %v16258_v13 = vand.u32 4294901760, %v7668_v43 }
 0x889   :  { %7613 = vmatpush.msrb.mxu3 %v15946_v50  ;;  %v16196_v20 = vand.u32 4294901760, %v7673_v21 }
 0x88a   :  { %7578 = vmatpush.msrb.mxu2 %v16014_v45  ;;  %7463 = vmatpush.msra.mxu0 %v15961_v12  ;;  %v16261_v12 = vsub.f32 %v7669_v3, %v16247_v22  ;;  %v16274_v45 = vand.u32 4294901760, %v7667_v0 }
 0x88b   :  { %7580 = vmatmul.f32.vlgmr.msrb.gmra.mxu2 %v7312_v5  ;;  %7615 = vmatpush.msrb.mxu3 %v15963_v1  ;;  %v16202_v63 = vsub.f32 %v7673_v21, %v16196_v20  ;;  %v16204_v1 = vand.u32 4294901760, %v7672_v2 }
 0x88c   :  { %7617 = vmatmul.f32.vlgmr.msrb.gmra.mxu3 %v7312_v5  ;;  %7466 = vmatpush.msra.mxu0 %v15978_v47  ;;  %v7755_v47 = vand.u32 4294901760, %v7754_v61  ;;  %v7765_v51 = vand.u32 4294901760, %v16261_v12  ;;  %v16284_v55 = vsub.f32 %v7667_v0, %v16274_v45  ;;  %v7663_v5 = vld [vmem:[%s19141_s17 + $0x28] sm:$0xff] }
 0x88d   :  { %7922 = vmatpush.msra.mxu3 %v16196_v20  ;;  %v7741_v62 = vand.u32 4294901760, %v16202_v63  ;;  %v16213_v26 = vsub.f32 %v7672_v2, %v16204_v1  ;;  %7854 = vmatpush.msra.mxu2 %v16202_v63  ;;  %v16330_v36 = vand.u32 4294901760, %v7663_v5  ;;  %v16335_v2 = vsub.f32 %v7664_v9, %v16321_v56  ;;  %v7659_v9 = vld [vmem:[%s19141_s17 + $0x8] sm:$0xff] }
 0x88e   :  { %7469 = vmatpush.msra.mxu0 %v15992_v29  ;;  %v16272_v29 = vsub.f32 %v7668_v43, %v16258_v13  ;;  %v7766_v7 = vsub.f32 %v16261_v12, %v7765_v51  ;;  %v7777_v34 = vand.u32 4294901760, %v16284_v55 }
 0x88f   :  { %7472 = vmatmul.f32.vlgmr.msra.gmra.mxu0 %v7313_v37  ;;  %7924 = vmatpush.msra.mxu3 %v16204_v1  ;;  %v7742_v28 = vsub.f32 %v16202_v63, %v7741_v62  ;;  %v7747_v49 = vand.u32 4294901760, %v16213_v26  ;;  %v16345_v3 = vsub.f32 %v7663_v5, %v16330_v36  ;;  %v7795_v43 = vand.u32 4294901760, %v16335_v2  ;;  %v8121_v63 = vld [vmem:[%s19142_s18 + $0x68] sm:$0xff] }
 0x890   :  { %7675 = vmatpush.msrb.mxu0 %v16196_v20  ;;  %7857 = vmatpush.msra.mxu2 %v16213_v26  ;;  %v7771_v33 = vand.u32 4294901760, %v16272_v29  ;;  %v7767_v44 = vand.u32 4294901760, %v7766_v7  ;;  %v7778_v24 = vsub.f32 %v16284_v55, %v7777_v34 }
 0x891   :  { %7926 = vmatpush.msra.mxu3 %v16216_v41  ;;  %v7743_v40 = vand.u32 4294901760, %v7742_v28  ;;  %v7748_v4 = vsub.f32 %v16213_v26, %v7747_v49  ;;  %v7785_v28 = vand.u32 4294901760, %v7784_v58  ;;  %v16398_v58 = vand.u32 4294901760, %v7659_v9 }
 0x892   :  { %7677 = vmatpush.msrb.mxu0 %v16204_v1  ;;  %7860 = vmatpush.msra.mxu2 %v16228_v15  ;;  %v7772_v54 = vsub.f32 %v16272_v29, %v7771_v33  ;;  %v7779_v37 = vand.u32 4294901760, %v7778_v24 }
 0x893   :  { %7928 = vmatpush.msra.mxu3 %v16231_v31  ;;  %7744 = vmatpush.msrb.mxu1 %v7743_v40  ;;  %v7749_v17 = vand.u32 4294901760, %v7748_v4  ;;  %v16347_v40 = vand.u32 4294901760, %v7662_v27 }
 0x894   :  { %7679 = vmatpush.msrb.mxu0 %v16216_v41  ;;  %7863 = vmatpush.msra.mxu2 %v16243_v35  ;;  %v7773_v48 = vand.u32 4294901760, %v7772_v54  ;;  %v8118_v35 = vld [vmem:[%s19142_s18 + $0x50] sm:$0xff] }
 0x895   :  { %7930 = vmatpush.msra.mxu3 %v16247_v22  ;;  %7750 = vmatpush.msrb.mxu1 %v7749_v17  ;;  %v7661_v17 = vld [vmem:[%s19141_s17 + $0x18] sm:$0xff]  ;;  %v16358_v0 = vsub.f32 %v7662_v27, %v16347_v40 }
 0x896   :  { %7681 = vmatpush.msrb.mxu0 %v16231_v31  ;;  %7866 = vmatpush.msra.mxu2 %v16261_v12 }
 0x897   :  { %7932 = vmatpush.msra.mxu3 %v16258_v13  ;;  %7756 = vmatpush.msrb.mxu1 %v7755_v47  ;;  %v16360_v47 = vand.u32 4294901760, %v7661_v17  ;;  %v7807_v7 = vand.u32 4294901760, %v16358_v0 }
 0x898   :  { %7683 = vmatpush.msrb.mxu0 %v16247_v22  ;;  %7869 = vmatpush.msra.mxu2 %v16272_v29 }
 0x899   :  { %7934 = vmatpush.msra.mxu3 %v16274_v45  ;;  %7762 = vmatpush.msrb.mxu1 %v7761_v16  ;;  %v16376_v11 = vsub.f32 %v7661_v17, %v16360_v47  ;;  %v16412_v17 = vsub.f32 %v7659_v9, %v16398_v58 }
 0x89a   :  { %7685 = vmatpush.msrb.mxu0 %v16258_v13  ;;  %7872 = vmatpush.msra.mxu2 %v16284_v55 }
 0x89b   :  { %7936 = vmatpush.msra.mxu3 %v16286_v57  ;;  %7768 = vmatpush.msrb.mxu1 %v7767_v44  ;;  %v16383_v44 = vand.u32 4294901760, %v7660_v52 }
 0x89c   :  { %7687 = vmatpush.msrb.mxu0 %v16274_v45  ;;  %7875 = vmatpush.msra.mxu2 %v16302_v32 }
 0x89d   :  { %7938 = vmatpush.msra.mxu3 %v16304_v25  ;;  %7774 = vmatpush.msrb.mxu1 %v7773_v48 }
 0x89e   :  { %7689 = vmatpush.msrb.mxu0 %v16286_v57  ;;  %7878 = vmatpush.msra.mxu2 %v16317_v39 }
 0x89f   :  { %7940 = vmatpush.msra.mxu3 %v16321_v56  ;;  %7780 = vmatpush.msrb.mxu1 %v7779_v37  ;;  %v16395_v37 = vsub.f32 %v7660_v52, %v16383_v44 }
 0x8a0   :  { %7691 = vmatpush.msrb.mxu0 %v16304_v25  ;;  %7881 = vmatpush.msra.mxu2 %v16335_v2 }
 0x8a1   :  { %7942 = vmatpush.msra.mxu3 %v16330_v36  ;;  %7786 = vmatpush.msrb.mxu1 %v7785_v28 }
 0x8a2   :  { %7693 = vmatpush.msrb.mxu0 %v16321_v56  ;;  %7884 = vmatpush.msra.mxu2 %v16345_v3 }
 0x8a3   :  { %7944 = vmatpush.msra.mxu3 %v16347_v40 }
 0x8a4   :  { %7695 = vmatpush.msrb.mxu0 %v16330_v36  ;;  %7887 = vmatpush.msra.mxu2 %v16358_v0 }
 0x8a5   :  { %7946 = vmatpush.msra.mxu3 %v16360_v47 }
 0x8a6   :  { %7697 = vmatpush.msrb.mxu0 %v16347_v40  ;;  %7890 = vmatpush.msra.mxu2 %v16376_v11 }
 0x8a7   :  { %7948 = vmatpush.msra.mxu3 %v16383_v44 }
 0x8a8   :  { %7699 = vmatpush.msrb.mxu0 %v16360_v47  ;;  %7893 = vmatpush.msra.mxu2 %v16395_v37 }
 0x8a9   :  { %7950 = vmatpush.msra.mxu3 %v16398_v58 }
 0x8aa   :  { %7701 = vmatpush.msrb.mxu0 %v16383_v44  ;;  %7896 = vmatpush.msra.mxu2 %v16412_v17 }
 0x8ac   :  { %7703 = vmatpush.msrb.mxu0 %v16398_v58 }
 0x8e2   :  { %v7078_v53 = vpop.f32.mrf.mxu1 }
 0x8ea   :  { %v6977_v42 = vpop.f32.mrf.mxu0  ;;  %v7132_v50 = vpop.f32.mrf.mxu2 }
 0x8eb   :  { %v7079_v6 = vadd.f32 %v7078_v53, %v6977_v42  ;;  %v7277_v18 = vpop.f32.mrf.mxu1  ;;  %v7790_v42 = vsub.f32 %v16317_v39, %v7789_v23 }
 0x8ec   :  { %v7171_v46 = vpop.f32.mrf.mxu3 }
 0x8ed   :  { %v7133_v38 = vadd.f32 %v7132_v50, %v7079_v6  ;;  %v7791_v61 = vand.u32 4294901760, %v7790_v42  ;;  %v7801_v50 = vand.u32 4294901760, %v16345_v3  ;;  %v7796_v6 = vsub.f32 %v16335_v2, %v7795_v43 }
 0x8ef   :  { %v7172_v21 = vadd.f32 %v7171_v46, %v7133_v38  ;;  %v7802_v16 = vsub.f32 %v16345_v3, %v7801_v50  ;;  %7792 = vmatpush.msrb.mxu1 %v7791_v61 }
 0x8f1   :  { %v7803_v24 = vand.u32 4294901760, %v7802_v16  ;;  %v7825_v16 = vand.u32 4294901760, %v16412_v17 }
 0x8f3   :  { %v7240_v59 = vpop.f32.mrf.mxu0 }
 0x8f4   :  { %v7241_v4 = vadd.f32 %v7240_v59, %v7172_v21  ;;  %v7797_v59 = vand.u32 4294901760, %v7796_v6  ;;  %v7658_v21 = vld [vmem:[%s19141_s17] sm:$0xff] }
 0x8f5   :  { %v16406_v42 = vand.u32 4294901760, %v7658_v21 }
 0x8f6   :  { %v16380_v54 = vadd.f32 %v7277_v18, %v7241_v4  ;;  %v7813_v18 = vand.u32 4294901760, %v16376_v11  ;;  %7798 = vmatpush.msrb.mxu1 %v7797_v59 }
 0x8f7   :  { %v16418_v52 = vsub.f32 %v7658_v21, %v16406_v42  ;;  %7952 = vmatpush.msra.mxu3 %v16406_v42  ;;  %7705 = vmatpush.msrb.mxu0 %v16406_v42 }
 0x8f8   :  { %v7814_v28 = vsub.f32 %v16376_v11, %v7813_v18  ;;  %7804 = vmatpush.msrb.mxu1 %v7803_v24  ;;  %v8123_v24 = vld [vmem:[%s19142_s18 + $0x78] sm:$0xff] }
 0x8f9   :  { %v7831_v59 = vand.u32 4294901760, %v16418_v52  ;;  %7899 = vmatpush.msra.mxu2 %v16418_v52  ;;  %v16440_v21 = vand.u32 4294901760, %v8123_v24  ;;  %7981 = vmatpush.msra.mxu0 %v7741_v62 }
 0x8fa   :  { %v7815_v6 = vand.u32 4294901760, %v7814_v28 }
 0x8fb   :  { %8125 = vmatpush.msrb.mxu2 %v16440_v21  ;;  %7985 = vmatpush.msra.mxu0 %v7747_v49  ;;  %v8120_v49 = vld [vmem:[%s19142_s18 + $0x60] sm:$0xff] }
 0x8fc   :  { %v7419_v10 = vpop.f32.mrf.mxu3 }
 0x8fd   :  { %7989 = vmatpush.msra.mxu0 %v7753_v19 }
 0x8ff   :  { %7993 = vmatpush.msra.mxu0 %v7759_v30 }
 0x901   :  { %7997 = vmatpush.msra.mxu0 %v7765_v51 }
 0x903   :  { %8001 = vmatpush.msra.mxu0 %v7771_v33 }
 0x904   :  { %v7512_v38 = vpop.f32.mrf.mxu1 }
 0x905   :  { %v7318_v8 = vpop.f32.mrf.mxu2  ;;  %8005 = vmatpush.msra.mxu0 %v7777_v34 }
 0x906   :  { %v7420_v53 = vadd.f32 %v7419_v10, %v7318_v8  ;;  %v7808_v8 = vsub.f32 %v16358_v0, %v7807_v7  ;;  %v19496_v0 = vld [vmem:[#allocation7_spill] sm:$0xff] }
 0x907   :  { %8009 = vmatpush.msra.mxu0 %v7783_v60 }
 0x908   :  { %v7809_v10 = vand.u32 4294901760, %v7808_v8 }
 0x909   :  { %8013 = vmatpush.msra.mxu0 %v7789_v23 }
 0x90a   :  { %7810 = vmatpush.msrb.mxu1 %v7809_v10  ;;  %v8122_v10 = vld [vmem:[%s19142_s18 + $0x70] sm:$0xff] }
 0x90b   :  { %8017 = vmatpush.msra.mxu0 %v7795_v43 }
 0x90c   :  { %v7473_v14 = vpop.f32.mrf.mxu0  ;;  %7816 = vmatpush.msrb.mxu1 %v7815_v6  ;;  %v16463_v6 = vand.u32 4294901760, %v8121_v63 }
 0x90d   :  { %v7474_v46 = vadd.f32 %v7473_v14, %v7420_v53  ;;  %v7819_v53 = vand.u32 4294901760, %v16395_v37  ;;  %v7621_v14 = vmul.f32 %v16380_v54, %v16380_v54  ;;  %8021 = vmatpush.msra.mxu0 %v7801_v50 }
 0x90e   :  { %v7581_v5 = vpop.f32.mrf.mxu2  ;;  %v16481_v15 = vsub.f32 %v8121_v63, %v16463_v6 }
 0x90f   :  { %v7513_v48 = vadd.f32 %v7512_v38, %v7474_v46  ;;  %v7618_v4 = vpop.f32.mrf.mxu3  ;;  %v7820_v46 = vsub.f32 %v16395_v37, %v7819_v53  ;;  %8025 = vmatpush.msra.mxu0 %v7807_v7 }
 0x911   :  { %v7582_v27 = vadd.f32 %v7581_v5, %v7513_v48  ;;  %v7821_v9 = vand.u32 4294901760, %v7820_v46  ;;  %v7826_v48 = vsub.f32 %v16412_v17, %v7825_v16  ;;  %v7832_v5 = vsub.f32 %v16418_v52, %v7831_v59  ;;  %8029 = vmatpush.msra.mxu0 %v7813_v18 }
 0x913   :  { %v7619_v61 = vadd.f32 %v7618_v4, %v7582_v27  ;;  %7822 = vmatpush.msrb.mxu1 %v7821_v9  ;;  %v7827_v27 = vand.u32 4294901760, %v7826_v48  ;;  %v7833_v4 = vand.u32 4294901760, %v7832_v5  ;;  %v8119_v9 = vld [vmem:[%s19142_s18 + $0x58] sm:$0xff]  ;;  %v8203_v48 = vand.u32 4294901760, %v16481_v15  ;;  %8033 = vmatpush.msra.mxu0 %v7819_v53 }
 0x915   :  { %v7622_v38 = vsub.f32 %v7619_v61, %v7621_v14  ;;  %v16451_v61 = vsub.f32 %v8123_v24, %v16440_v21  ;;  %v16453_v14 = vand.u32 4294901760, %v8122_v10  ;;  %7828 = vmatpush.msrb.mxu1 %v7827_v27  ;;  %v16492_v24 = vand.u32 4294901760, %v8119_v9  ;;  %8037 = vmatpush.msra.mxu0 %v7825_v16 }
 0x916   :  { %v8204_v30 = vsub.f32 %v16481_v15, %v8203_v48 }
 0x917   :  { %v7623_v8 = vmax.f32 %v7622_v38, 0.0  ;;  %8127 = vmatpush.msrb.mxu2 %v16453_v14  ;;  %v8191_v62 = vand.u32 4294901760, %v16451_v61  ;;  %7834 = vmatpush.msrb.mxu1 %v7833_v4  ;;  %v16468_v26 = vsub.f32 %v8122_v10, %v16453_v14  ;;  %v16478_v38 = vand.u32 4294901760, %v8120_v49 }
 0x918   :  { %v16512_v10 = vand.u32 4294901760, %v8118_v35  ;;  %v16515_v4 = vsub.f32 %v8119_v9, %v16492_v24  ;;  %v8205_v63 = vand.u32 4294901760, %v8204_v30  ;;  %8041 = vmatpush.msra.mxu0 %v7831_v59 }
 0x919   :  { %v16447_v28 = vadd.f32 1e-05, %v7623_v8  ;;  %8060 = vmatpush.msra.mxu1 %v16196_v20  ;;  %v8192_v46 = vsub.f32 %v16451_v61, %v8191_v62  ;;  %8129 = vmatpush.msrb.mxu2 %v16463_v6  ;;  %v8197_v19 = vand.u32 4294901760, %v16468_v26  ;;  %v16495_v8 = vsub.f32 %v8120_v49, %v16478_v38 }
 0x91b   :  { %11628 = vrsqrt.f32 %v16447_v28  ;;  %8062 = vmatpush.msra.mxu1 %v16204_v1  ;;  %v8193_v20 = vand.u32 4294901760, %v8192_v46  ;;  %8131 = vmatpush.msrb.mxu2 %v16478_v38  ;;  %v8198_v5 = vsub.f32 %v16468_v26, %v8197_v19  ;;  %v8209_v27 = vand.u32 4294901760, %v16495_v8 }
 0x91c   :  { %v19194_v46 = vand.u32 4294901760, %v16515_v4  ;;  %vm7632_vm7 = vweird.f32 %v16447_v28 }
 0x91d   :  { %8064 = vmatpush.msra.mxu1 %v16216_v41  ;;  %8194 = vmatpush.msrb.mxu3 %v8193_v20  ;;  %v8199_v51 = vand.u32 4294901760, %v8198_v5  ;;  %v8117_v41 = vld [vmem:[%s19142_s18 + $0x48] sm:$0xff]  ;;  %v8210_v49 = vsub.f32 %v16495_v8, %v8209_v27  ;;  %v16535_v5 = vsub.f32 %v8118_v35, %v16512_v10 }
 0x91e   :  { %8133 = vmatpush.msrb.mxu2 %v16492_v24  ;;  %v16530_v9 = vand.u32 4294901760, %v8117_v41  ;;  %v8216_v33 = vsub.f32 %v16515_v4, %v19194_v46 }
 0x91f   :  { %8066 = vmatpush.msra.mxu1 %v16231_v31  ;;  %8200 = vmatpush.msrb.mxu3 %v8199_v51  ;;  %v8116_v31 = vld [vmem:[%s19142_s18 + $0x40] sm:$0xff]  ;;  %v8211_v29 = vand.u32 4294901760, %v8210_v49  ;;  %v8221_v51 = vand.u32 4294901760, %v16535_v5 }
 0x920   :  { %8135 = vmatpush.msrb.mxu2 %v16512_v10  ;;  %v16544_v30 = vand.u32 4294901760, %v8116_v31  ;;  %v8217_v49 = vand.u32 4294901760, %v8216_v33 }
 0x921   :  { %v16505_v1 = vpop.eup %11628  ;;  %8068 = vmatpush.msra.mxu1 %v16247_v22  ;;  %8206 = vmatpush.msrb.mxu3 %v8205_v63  ;;  %v8115_v22 = vld [vmem:[%s19142_s18 + $0x38] sm:$0xff]  ;;  %v8222_v63 = vsub.f32 %v16535_v5, %v8221_v51 }
 0x922   :  { %v7627_v12 = vmul.f32 %v16505_v1, %v16447_v28  ;;  %8137 = vmatpush.msrb.mxu2 %v16530_v9  ;;  %v16561_v55 = vsub.f32 %v8116_v31, %v16544_v30  ;;  %vm7633_vm6 = vweird.f32 %v16505_v1 }
 0x923   :  { %8070 = vmatpush.msra.mxu1 %v16258_v13  ;;  %8212 = vmatpush.msrb.mxu3 %v8211_v29  ;;  %v8114_v13 = vld [vmem:[%s19142_s18 + $0x30] sm:$0xff]  ;;  %v7624_v29 = vld [vmem:[%s19137_s13] sm:$0x1]  ;;  %v8223_v33 = vand.u32 4294901760, %v8222_v63  ;;  %vm7634_vm8 = vmor %vm7632_vm7, %vm7633_vm6 }
 0x924   :  { %v7628_v20 = vmul.f32 %v16505_v1, %v7627_v12  ;;  %v16547_v12 = vsub.f32 %v8117_v41, %v16530_v9  ;;  %v16558_v41 = vand.u32 4294901760, %v8115_v22  ;;  %8139 = vmatpush.msrb.mxu2 %v16544_v30  ;;  %v8233_v60 = vand.u32 4294901760, %v16561_v55 }
 0x925   :  { %8072 = vmatpush.msra.mxu1 %v16274_v45  ;;  %8218 = vmatpush.msrb.mxu3 %v8217_v49 }
 0x926   :  { %v7629_v35 = vmul.f32 0.5, %v7628_v20  ;;  %v8227_v46 = vand.u32 4294901760, %v16547_v12  ;;  %v16578_v20 = vand.u32 4294901760, %v8114_v13  ;;  %v16581_v31 = vsub.f32 %v8115_v22, %v16558_v41  ;;  %8141 = vmatpush.msrb.mxu2 %v16558_v41 }
 0x927   :  { %8074 = vmatpush.msra.mxu1 %v16286_v57  ;;  %v8234_v23 = vsub.f32 %v16561_v55, %v8233_v60  ;;  %8224 = vmatpush.msrb.mxu3 %v8223_v33  ;;  %v8112_v57 = vld [vmem:[%s19142_s18 + $0x20] sm:$0xff] }
 0x928   :  { %v7630_v34 = vsub.f32 1.5, %v7629_v35  ;;  %v8228_v32 = vsub.f32 %v16547_v12, %v8227_v46  ;;  %v8113_v35 = vld [vmem:[%s19142_s18 + $0x28] sm:$0xff]  ;;  %v19198_v28 = vand.u32 4294901760, %v16581_v31  ;;  %8143 = vmatpush.msrb.mxu2 %v16578_v20  ;;  %v16617_v43 = vand.u32 4294901760, %v8112_v57 }
 0x929   :  { %v16601_v22 = vand.u32 4294901760, %v8113_v35  ;;  %8076 = vmatpush.msra.mxu1 %v16304_v25 }
 0x92a   :  { %v7631_v45 = vmul.f32 %v16505_v1, %v7630_v34  ;;  %v8229_v39 = vand.u32 4294901760, %v8228_v32  ;;  %v16608_v34 = vsub.f32 %v8114_v13, %v16578_v20  ;;  %v8235_v32 = vand.u32 4294901760, %v8234_v23 }
 0x92b   :  { %v8240_v2 = vsub.f32 %v16581_v31, %v19198_v28  ;;  %8145 = vmatpush.msrb.mxu2 %v16601_v22  ;;  %v16627_v25 = vsub.f32 %v8113_v35, %v16601_v22  ;;  %8078 = vmatpush.msra.mxu1 %v16321_v56  ;;  %v8110_v56 = vld [vmem:[%s19142_s18 + $0x10] sm:$0xff] }
 0x92c   :  { %v7635_v49 = vsel %vm7634_vm8, %v16505_v1, %v7631_v45  ;;  %v7637_v1 = vld [vmem:[%s19138_s14] sm:$0x1]  ;;  %8230 = vmatpush.msrb.mxu3 %v8229_v39  ;;  %v19197_v13 = vand.u32 4294901760, %v16608_v34 }
 0x92d   :  { %v7636_v63 = vmul.f32 %v7635_v49, %v7624_v29  ;;  %v8111_v29 = vld [vmem:[%s19142_s18 + $0x18] sm:$0xff]  ;;  %v8241_v50 = vand.u32 4294901760, %v8240_v2  ;;  %8147 = vmatpush.msrb.mxu2 %v16617_v43  ;;  %v19195_v39 = vand.u32 4294901760, %v16627_v25  ;;  %8080 = vmatpush.msra.mxu1 %v16330_v36  ;;  %v19497_v2 = vld [vmem:[#allocation19_spill] sm:$0xff] }
 0x92e   :  { %v16636_v33 = vand.u32 4294901760, %v8111_v29  ;;  %8236 = vmatpush.msrb.mxu3 %v8235_v32  ;;  %v8246_v35 = vsub.f32 %v16608_v34, %v19197_v13  ;;  %v8109_v32 = vld [vmem:[%s19142_s18 + $0x8] sm:$0xff] }
 0x92f   :  { %v7638_v45 = vmul.f32 %v7636_v63, %v16380_v54  ;;  %v16633_v3 = vperm.slane %v7636_v63, 0  ;;  %v16646_v54 = vsub.f32 %v8112_v57, %v16617_v43  ;;  %v8252_v63 = vsub.f32 %v16627_v25, %v19195_v39  ;;  %8082 = vmatpush.msra.mxu1 %v16347_v40  ;;  %v8108_v40 = vld [vmem:[%s19142_s18] sm:$0xff] }
 0x930   :  { %8242 = vmatpush.msrb.mxu3 %v8241_v50  ;;  %v8247_v49 = vand.u32 4294901760, %v8246_v35  ;;  %8149 = vmatpush.msrb.mxu2 %v16636_v33  ;;  %v16668_v50 = vsub.f32 %v8111_v29, %v16636_v33  ;;  %v16675_v39 = vand.u32 4294901760, %v8109_v32 }
 0x931   :  { %v7639_v23 = vsub.f32 %v7637_v1, %v7638_v45  ;;  %v7643_v7 = vmul.f32 %v16633_v3, %v19496_v0  ;;  %v19196_v57 = vand.u32 4294901760, %v16646_v54  ;;  %v7644_v36 = vmul.f32 %v16633_v3, %v19497_v2  ;;  %8084 = vmatpush.msra.mxu1 %v16360_v47 }
 0x932   :  { %v16665_v45 = vand.u32 4294901760, %v8110_v56  ;;  %8248 = vmatpush.msrb.mxu3 %v8247_v49  ;;  %v8253_v35 = vand.u32 4294901760, %v8252_v63  ;;  %v8263_v11 = vand.u32 4294901760, %v16668_v50  ;;  %v16686_v49 = vand.u32 4294901760, %v8108_v40  ;;  %v19498_v63 = vld [vmem:[#allocation40_spill] sm:$0xff] }
 0x933   :  { %v7648_v1 = vperm.slane %v7639_v23, 0  ;;  %v8258_v0 = vsub.f32 %v16646_v54, %v19196_v57  ;;  %v7645_v57 = vmul.f32 %v16633_v3, %v19498_v63  ;;  %8086 = vmatpush.msra.mxu1 %v16383_v44  ;;  %v19499_v63 = vld [vmem:[#allocation23_spill] sm:$0xff] }
 0x934   :  { %8254 = vmatpush.msrb.mxu3 %v8253_v35  ;;  %8151 = vmatpush.msrb.mxu2 %v16665_v45  ;;  %v16684_v18 = vsub.f32 %v8110_v56, %v16665_v45  ;;  %v8264_v47 = vsub.f32 %v16668_v50, %v8263_v11 }
 0x935   :  { %v7650_v23 = vadd.f32 %v7648_v1, %v7643_v7  ;;  %v7651_v2 = vadd.f32 %v7648_v1, %v7644_v36  ;;  %v8259_v29 = vand.u32 4294901760, %v8258_v0  ;;  %v16699_v7 = vsub.f32 %v8109_v32, %v16675_v39  ;;  %8088 = vmatpush.msra.mxu1 %v16398_v58 }
 0x936   :  { %8153 = vmatpush.msrb.mxu2 %v16675_v39  ;;  %v8269_v56 = vand.u32 4294901760, %v16684_v18  ;;  %v16702_v36 = vsub.f32 %v8108_v40, %v16686_v49  ;;  %v7652_v35 = vadd.f32 %v7648_v1, %v7645_v57  ;;  %v8265_v53 = vand.u32 4294901760, %v8264_v47 }
 0x937   :  { %v7654_v13 = vmax.f32 %v7650_v23, 0.0  ;;  %v7655_v28 = vmax.f32 %v7651_v2, 0.0  ;;  %8260 = vmatpush.msrb.mxu3 %v8259_v29  ;;  %v8275_v32 = vand.u32 4294901760, %v16699_v7  ;;  %8090 = vmatpush.msra.mxu1 %v16406_v42  ;;  %v7646_v47 = vmul.f32 %v16633_v3, %v19499_v63 }
 0x938   :  { %v8270_v0 = vsub.f32 %v16684_v18, %v8269_v56  ;;  %8155 = vmatpush.msrb.mxu2 %v16686_v49  ;;  %v8281_v57 = vand.u32 4294901760, %v16702_v36  ;;  %v7656_v2 = vmax.f32 %v7652_v35, 0.0 }
 0x939   :  { %v16704_v44 = vand.u32 4294901760, %v7654_v13  ;;  %v16706_v37 = vand.u32 4294901760, %v7655_v28  ;;  %8266 = vmatpush.msrb.mxu3 %v8265_v53  ;;  %v8276_v17 = vsub.f32 %v16699_v7, %v8275_v32 }
 0x93a   :  { %v8271_v58 = vand.u32 4294901760, %v8270_v0  ;;  %v8282_v16 = vsub.f32 %v16702_v36, %v8281_v57 }
 0x93b   :  { %7836 = vmatmul.f32.vlgmr.msrb.gmra.mxu1 %v16704_v44  ;;  %v16719_v40 = vsub.f32 %v7654_v13, %v16704_v44  ;;  %v16733_v13 = vsub.f32 %v7655_v28, %v16706_v37  ;;  %v8277_v42 = vand.u32 4294901760, %v8276_v17  ;;  %v7653_v28 = vadd.f32 %v7648_v1, %v7646_v47 }
 0x93c   :  { %8372 = vmatpush.msrb.mxu1 %v16440_v21  ;;  %8272 = vmatpush.msrb.mxu3 %v8271_v58  ;;  %v8283_v29 = vand.u32 4294901760, %v8282_v16  ;;  %v16749_v58 = vand.u32 4294901760, %v7656_v2 }
 0x93d   :  { %7902 = vmatmul.f32.vlgmr.msra.gmra.mxu2 %v16719_v40  ;;  %v16730_v23 = vand.u32 4294901760, %v16719_v40  ;;  %v16747_v0 = vand.u32 4294901760, %v16733_v13  ;;  %v7657_v52 = vmax.f32 %v7653_v28, 0.0 }
 0x93e   :  { %8431 = vmatpush.msra.mxu2 %v8191_v62  ;;  %8278 = vmatpush.msrb.mxu3 %v8277_v42 }
 0x93f   :  { %7956 = vmatmul.f32.vlgmr.msra.gmra.mxu3 %v16730_v23  ;;  %v7709_v53 = vsub.f32 %v16719_v40, %v16730_v23  ;;  %8374 = vmatpush.msrb.mxu1 %v16453_v14  ;;  %v7717_v62 = vsub.f32 %v16733_v13, %v16747_v0 }
 0x940   :  { %8435 = vmatpush.msra.mxu2 %v8197_v19  ;;  %8284 = vmatpush.msrb.mxu3 %v8283_v29  ;;  %v16764_v19 = vsub.f32 %v7656_v2, %v16749_v58 }
 0x941   :  { %v16744_v35 = vand.u32 4294901760, %v7709_v53  ;;  %8376 = vmatpush.msrb.mxu1 %v16463_v6  ;;  %v16775_v59 = vand.u32 4294901760, %v7717_v62 }
 0x942   :  { %8510 = vmatpush.msra.mxu3 %v16440_v21  ;;  %8439 = vmatpush.msra.mxu2 %v8203_v48  ;;  %v16778_v21 = vand.u32 4294901760, %v16764_v19 }
 0x943   :  { %7711 = vmatmul.f32.vlgmr.msrb.gmra.mxu0 %v16744_v35  ;;  %7840 = vmatmul.f32.gmra.mxu1 %v16706_v37 }
 0x944   :  { %8378 = vmatpush.msrb.mxu1 %v16478_v38  ;;  %8304 = vmatpush.msrb.mxu0 %v16451_v61  ;;  %v16780_v61 = vand.u32 4294901760, %v7657_v52 }
 0x945   :  { %7907 = vmatmul.f32.gmra.mxu2 %v16733_v13  ;;  %8512 = vmatpush.msra.mxu3 %v16453_v14  ;;  %v19500_v14 = vand.u32 4294901760, %v16515_v4 }
 0x946   :  { %8380 = vmatpush.msrb.mxu1 %v16492_v24  ;;  %8443 = vmatpush.msra.mxu2 %v8209_v27 }
 0x947   :  { %7962 = vmatmul.f32.gmra.mxu3 %v16747_v0  ;;  %8307 = vmatpush.msrb.mxu0 %v16468_v26  ;;  %v16795_v26 = vsub.f32 %v7657_v52, %v16780_v61 }
 0x948   :  { %8514 = vmatpush.msra.mxu3 %v16463_v6  ;;  %8382 = vmatpush.msrb.mxu1 %v16512_v10  ;;  %v7725_v6 = vsub.f32 %v16764_v19, %v16778_v21 }
 0x949   :  { %8447 = vmatpush.msra.mxu2 %v19500_v14  ;;  %8310 = vmatpush.msrb.mxu0 %v16481_v15  ;;  %v16807_v15 = vand.u32 4294901760, %v16795_v26 }
 0x94a   :  { %8516 = vmatpush.msra.mxu3 %v16478_v38  ;;  %8384 = vmatpush.msrb.mxu1 %v16530_v9  ;;  %v7726_v38 = vand.u32 4294901760, %v7725_v6 }
 0x94b   :  { %7719 = vmatmul.f32.gmra.mxu0 %v16775_v59  ;;  %7844 = vmatmul.f32.gmra.mxu1 %v16749_v58  ;;  %v7733_v48 = vsub.f32 %v16795_v26, %v16807_v15 }
 0x94c   :  { %8518 = vmatpush.msra.mxu3 %v16492_v24  ;;  %8451 = vmatpush.msra.mxu2 %v8221_v51  ;;  %v19501_v24 = vand.u32 4294901760, %v16581_v31 }
 0x94d   :  { %7912 = vmatmul.f32.gmra.mxu2 %v16764_v19  ;;  %8313 = vmatpush.msrb.mxu0 %v16495_v8  ;;  %v19502_v8 = vand.u32 4294901760, %v16608_v34  ;;  %v7734_v27 = vand.u32 4294901760, %v7733_v48  ;;  %v8562_v48 = vld [vmem:[%s19143_s19] sm:$0xff] }
 0x94e   :  { %8386 = vmatpush.msrb.mxu1 %v16544_v30  ;;  %8455 = vmatpush.msra.mxu2 %v8227_v46 }
 0x94f   :  { %7968 = vmatmul.f32.gmra.mxu3 %v16778_v21  ;;  %8316 = vmatpush.msrb.mxu0 %v16515_v4  ;;  %v19504_v4 = vand.u32 4294901760, %v16646_v54 }
 0x950   :  { %8520 = vmatpush.msra.mxu3 %v16512_v10  ;;  %8388 = vmatpush.msrb.mxu1 %v16558_v41  ;;  %v19503_v10 = vand.u32 4294901760, %v16627_v25 }
 0x951   :  { %8459 = vmatpush.msra.mxu2 %v8233_v60  ;;  %8319 = vmatpush.msrb.mxu0 %v16535_v5 }
 0x952   :  { %8522 = vmatpush.msra.mxu3 %v16530_v9  ;;  %8390 = vmatpush.msrb.mxu1 %v16578_v20 }
 0x953   :  { %7727 = vmatmul.f32.gmra.mxu0 %v7726_v38  ;;  %7848 = vmatmul.f32.gmra.mxu1 %v16780_v61 }
 0x954   :  { %8524 = vmatpush.msra.mxu3 %v16544_v30  ;;  %8463 = vmatpush.msra.mxu2 %v19501_v24 }
 0x955   :  { %7917 = vmatmul.f32.gmra.mxu2 %v16795_v26  ;;  %8322 = vmatpush.msrb.mxu0 %v16547_v12 }
 0x956   :  { %8392 = vmatpush.msrb.mxu1 %v16601_v22  ;;  %8467 = vmatpush.msra.mxu2 %v19502_v8 }
 0x957   :  { %7974 = vmatmul.f32.gmra.mxu3 %v16807_v15  ;;  %8325 = vmatpush.msrb.mxu0 %v16561_v55 }
 0x958   :  { %8526 = vmatpush.msra.mxu3 %v16558_v41  ;;  %8394 = vmatpush.msrb.mxu1 %v16617_v43 }
 0x959   :  { %8471 = vmatpush.msra.mxu2 %v19503_v10  ;;  %8328 = vmatpush.msrb.mxu0 %v16581_v31 }
 0x95a   :  { %8528 = vmatpush.msra.mxu3 %v16578_v20  ;;  %8396 = vmatpush.msrb.mxu1 %v16636_v33 }
 0x95b   :  { %7735 = vmatmul.f32.gmra.mxu0 %v7734_v27  ;;  %8092 = vmatmul.f32.vlgmr.msra.gmra.mxu1 %v16704_v44 }
 0x95c   :  { %8530 = vmatpush.msra.mxu3 %v16601_v22  ;;  %8475 = vmatpush.msra.mxu2 %v19504_v4 }
 0x95d   :  { %8161 = vmatmul.f32.vlgmr.msrb.gmra.mxu2 %v16744_v35  ;;  %8331 = vmatpush.msrb.mxu0 %v16608_v34 }
 0x95e   :  { %8398 = vmatpush.msrb.mxu1 %v16665_v45  ;;  %8479 = vmatpush.msra.mxu2 %v8263_v11 }
 0x95f   :  { %8286 = vmatmul.f32.vlgmr.msrb.gmra.mxu3 %v16704_v44  ;;  %8334 = vmatpush.msrb.mxu0 %v16627_v25 }
 0x960   :  { %8532 = vmatpush.msra.mxu3 %v16617_v43  ;;  %8400 = vmatpush.msrb.mxu1 %v16675_v39 }
 0x961   :  { %8483 = vmatpush.msra.mxu2 %v8269_v56  ;;  %8337 = vmatpush.msrb.mxu0 %v16646_v54 }
 0x962   :  { %8534 = vmatpush.msra.mxu3 %v16636_v33  ;;  %8402 = vmatpush.msrb.mxu1 %v16686_v49 }
 0x963   :  { %8043 = vmatmul.f32.vlgmr.msra.gmra.mxu0 %v16704_v44  ;;  %8096 = vmatmul.f32.gmra.mxu1 %v16706_v37 }
 0x964   :  { %8536 = vmatpush.msra.mxu3 %v16665_v45  ;;  %8487 = vmatpush.msra.mxu2 %v8275_v32 }
 0x965   :  { %8169 = vmatmul.f32.gmra.mxu2 %v16775_v59  ;;  %8340 = vmatpush.msrb.mxu0 %v16668_v50 }
 0x966   :  { %8491 = vmatpush.msra.mxu2 %v8281_v57  ;;  %8538 = vmatpush.msra.mxu3 %v16675_v39 }
 0x967   :  { %8290 = vmatmul.f32.gmra.mxu3 %v16706_v37  ;;  %8343 = vmatpush.msrb.mxu0 %v16684_v18 }
 0x968   :  { %8540 = vmatpush.msra.mxu3 %v16686_v49 }
 0x969   :  { %8346 = vmatpush.msrb.mxu0 %v16699_v7 }
 0x96b   :  { %8047 = vmatmul.f32.gmra.mxu0 %v16706_v37  ;;  %8100 = vmatmul.f32.gmra.mxu1 %v16749_v58 }
 0x96c   :  { %8349 = vmatpush.msrb.mxu0 %v16702_v36 }
 0x96d   :  { %8177 = vmatmul.f32.gmra.mxu2 %v7726_v38 }
 0x96f   :  { %8294 = vmatmul.f32.gmra.mxu3 %v16749_v58 }
 0x973   :  { %8051 = vmatmul.f32.gmra.mxu0 %v16749_v58  ;;  %8104 = vmatmul.f32.gmra.mxu1 %v16780_v61 }
 0x975   :  { %8185 = vmatmul.f32.gmra.mxu2 %v7734_v27 }
 0x977   :  { %8298 = vmatmul.f32.gmra.mxu3 %v16780_v61 }
 0x97b   :  { %8055 = vmatmul.f32.gmra.mxu0 %v16780_v61  ;;  %8406 = vmatmul.f32.vlgmr.msrb.gmra.mxu1 %v16730_v23 }
 0x97d   :  { %8493 = vmatmul.f32.vlgmr.msra.gmra.mxu2 %v16704_v44 }
 0x97f   :  { %8542 = vmatmul.f32.vlgmr.msra.gmra.mxu3 %v16704_v44 }
 0x983   :  { %8352 = vmatmul.f32.vlgmr.msrb.gmra.mxu0 %v16719_v40  ;;  %8412 = vmatmul.f32.gmra.mxu1 %v16747_v0 }
 0x985   :  { %8497 = vmatmul.f32.gmra.mxu2 %v16706_v37 }
 0x987   :  { %8546 = vmatmul.f32.gmra.mxu3 %v16706_v37 }
 0x98b   :  { %8357 = vmatmul.f32.gmra.mxu0 %v16733_v13  ;;  %8418 = vmatmul.f32.gmra.mxu1 %v16778_v21 }
 0x98d   :  { %8501 = vmatmul.f32.gmra.mxu2 %v16749_v58 }
 0x98f   :  { %8550 = vmatmul.f32.gmra.mxu3 %v16749_v58 }
 0x993   :  { %8362 = vmatmul.f32.gmra.mxu0 %v16764_v19  ;;  %8424 = vmatmul.f32.gmra.mxu1 %v16807_v15 }
 0x995   :  { %8505 = vmatmul.f32.gmra.mxu2 %v16780_v61 }
 0x997   :  { %8554 = vmatmul.f32.gmra.mxu3 %v16780_v61 }
 0x99b   :  { %8367 = vmatmul.f32.gmra.mxu0 %v16795_v26 }
 0x9b8   :  { %v7837_v46 = vpop.f32.mrf.mxu1 }
 0x9c0   :  { %v7712_v9 = vpop.f32.mrf.mxu0  ;;  %v7841_v5 = vpop.f32.mrf.mxu1 }
 0x9c1   :  { %v7903_v30 = vpop.f32.mrf.mxu2  ;;  %v7838_v0 = vadd.f32 %v7837_v46, %v7712_v9 }
 0x9c2   :  { %v16892_v12 = vpop.f32.mrf.mxu3 }
 0x9c3   :  { %v7904_v26 = vadd.f32 %v7903_v30, %v7838_v0 }
 0x9c8   :  { %v7720_v51 = vpop.f32.mrf.mxu0  ;;  %v7845_v41 = vpop.f32.mrf.mxu1 }
 0x9c9   :  { %v7908_v55 = vpop.f32.mrf.mxu2  ;;  %v7842_v53 = vadd.f32 %v7841_v5, %v7720_v51  ;;  %v8565_v51 = vsel %vm100_vm0, %v8562_v48, 0 }
 0x9ca   :  { %v7963_v60 = vpop.f32.mrf.mxu3 }
 0x9cb   :  { %v7909_v52 = vadd.f32 %v7908_v55, %v7842_v53 }
 0x9cd   :  { %v7964_v27 = vadd.f32 %v7963_v60, %v7909_v52 }
 0x9d0   :  { %v7728_v20 = vpop.f32.mrf.mxu0  ;;  %v7849_v31 = vpop.f32.mrf.mxu1 }
 0x9d1   :  { %v7913_v22 = vpop.f32.mrf.mxu2  ;;  %v7846_v29 = vadd.f32 %v7845_v41, %v7728_v20  ;;  %v7958_v41 = vadd.f32 %v16892_v12, %v7904_v26 }
 0x9d2   :  { %v7969_v34 = vpop.f32.mrf.mxu3 }
 0x9d3   :  { %v7914_v58 = vadd.f32 %v7913_v22, %v7846_v29 }
 0x9d5   :  { %v7970_v38 = vadd.f32 %v7969_v34, %v7914_v58 }
 0x9d8   :  { %v7736_v43 = vpop.f32.mrf.mxu0  ;;  %v16894_v25 = vpop.f32.mrf.mxu1 }
 0x9d9   :  { %v7918_v3 = vpop.f32.mrf.mxu2  ;;  %v7850_v61 = vadd.f32 %v7849_v31, %v7736_v43  ;;  %v16905_v43 = vand.u32 4294901760, %v8565_v51 }
 0x9da   :  { %v7975_v33 = vpop.f32.mrf.mxu3 }
 0x9db   :  { %v7919_v46 = vadd.f32 %v7918_v3, %v7850_v61  ;;  %v8786_v61 = vld [vmem:[%s19144_s20] sm:$0xff] }
 0x9e0   :  { %v8044_v39 = vpop.f32.mrf.mxu0  ;;  %v16896_v54 = vpop.f32.mrf.mxu1 }
 0x9e1   :  { %v8162_v1 = vpop.f32.mrf.mxu2 }
 0x9e2   :  { %v8287_v45 = vpop.f32.mrf.mxu3 }
 0x9e3   :  { %v8288_v28 = vadd.f32 %v8287_v45, %v8162_v1  ;;  %v7976_v1 = vadd.f32 %v7975_v33, %v7919_v46  ;;  %v8045_v45 = vadd.f32 %v8044_v39, %v7958_v41  ;;  %v8563_v33 = vld [vmem:[%s19143_s19 + $0x8] sm:$0x3f] }
 0x9e8   :  { %v8048_v50 = vpop.f32.mrf.mxu0  ;;  %v8101_v11 = vpop.f32.mrf.mxu1 }
 0x9e9   :  { %v8170_v18 = vpop.f32.mrf.mxu2  ;;  %v8049_v55 = vadd.f32 %v8048_v50, %v7964_v27  ;;  %v8591_v50 = vsub.f32 %v8565_v51, %v16905_v43 }
 0x9ea   :  { %v8291_v49 = vpop.f32.mrf.mxu3 }
 0x9eb   :  { %v8292_v47 = vadd.f32 %v8291_v49, %v8170_v18 }
 0x9f0   :  { %v8052_v56 = vpop.f32.mrf.mxu0  ;;  %v16898_v36 = vpop.f32.mrf.mxu1 }
 0x9f1   :  { %v8178_v7 = vpop.f32.mrf.mxu2  ;;  %v8053_v10 = vadd.f32 %v8052_v56, %v7970_v38  ;;  %v8098_v56 = vadd.f32 %v16896_v54, %v8049_v55 }
 0x9f2   :  { %v8295_v44 = vpop.f32.mrf.mxu3 }
 0x9f3   :  { %v8296_v62 = vadd.f32 %v8295_v44, %v8178_v7  ;;  %v8102_v22 = vadd.f32 %v8101_v11, %v8053_v10 }
 0x9f8   :  { %v8056_v37 = vpop.f32.mrf.mxu0  ;;  %v8407_v40 = vpop.f32.mrf.mxu1 }
 0x9f9   :  { %v8186_v32 = vpop.f32.mrf.mxu2  ;;  %v8057_v7 = vadd.f32 %v8056_v37, %v7976_v1 }
 0x9fa   :  { %v8299_v57 = vpop.f32.mrf.mxu3 }
 0x9fb   :  { %v8300_v30 = vadd.f32 %v8299_v57, %v8186_v32  ;;  %v8094_v32 = vadd.f32 %v16894_v25, %v8045_v45  ;;  %v9058_v45 = vld [vmem:[%s19145_s21 + $0x78] sm:$0xff] }
 0xa00   :  { %v8353_v17 = vpop.f32.mrf.mxu0  ;;  %v8413_v13 = vpop.f32.mrf.mxu1 }
 0xa01   :  { %v8494_v16 = vpop.f32.mrf.mxu2  ;;  %v8354_v19 = vadd.f32 %v8353_v17, %v8288_v28 }
 0xa02   :  { %v8543_v23 = vpop.f32.mrf.mxu3 }
 0xa03   :  { %v8408_v24 = vadd.f32 %v8407_v40, %v8354_v19 }
 0xa05   :  { %v8495_v20 = vadd.f32 %v8494_v16, %v8408_v24  ;;  %v8106_v16 = vadd.f32 %v16898_v36, %v8057_v7 }
 0xa07   :  { %v8544_v44 = vadd.f32 %v8543_v23, %v8495_v20  ;;  %v8592_v23 = vand.u32 4294901760, %v8591_v50 }
 0xa08   :  { %v8358_v2 = vpop.f32.mrf.mxu0  ;;  %v8419_v59 = vpop.f32.mrf.mxu1 }
 0xa09   :  { %v8498_v42 = vpop.f32.mrf.mxu2  ;;  %v8359_v35 = vadd.f32 %v8358_v2, %v8292_v47  ;;  %v8558_v54 = vmax.f32 %v8094_v32, %v8544_v44  ;;  %v8593_v53 = vsub.f32 %v8591_v50, %v8592_v23 }
 0xa0a   :  { %v8547_v63 = vpop.f32.mrf.mxu3 }
 0xa0b   :  { %v8414_v14 = vadd.f32 %v8413_v13, %v8359_v35  ;;  %v8568_v13 = vsel %vm100_vm0, %v8563_v33, 0  ;;  %v16922_v29 = vand.u32 4294901760, %v8558_v54  ;;  %v8594_v19 = vand.u32 4294901760, %v8593_v53 }
 0xa0c   :  { %v16926_v47 = vand.u32 4294901760, %v8568_v13 }
 0xa0d   :  { %v8499_v9 = vadd.f32 %v8498_v42, %v8414_v14  ;;  %v16938_v0 = vsub.f32 %v8558_v54, %v16922_v29 }
 0xa0f   :  { %v8548_v60 = vadd.f32 %v8547_v63, %v8499_v9 }
 0xa10   :  { %v8363_v21 = vpop.f32.mrf.mxu0  ;;  %v8425_v49 = vpop.f32.mrf.mxu1 }
 0xa11   :  { %v8364_v6 = vadd.f32 %v8363_v21, %v8296_v62  ;;  %v8502_v15 = vpop.f32.mrf.mxu2  ;;  %v8559_v11 = vmax.f32 %v8098_v56, %v8548_v60  ;;  %v8599_v62 = vsub.f32 %v8568_v13, %v16926_v47  ;;  %v16994_v60 = vand.u32 4294901760, %v9058_v45 }
 0xa12   :  { %v8551_v4 = vpop.f32.mrf.mxu3 }
 0xa13   :  { %v8420_v8 = vadd.f32 %v8419_v59, %v8364_v6  ;;  %v16917_v2 = vand.u32 4294901760, %v8559_v11  ;;  %v8639_v6 = vand.u32 4294901760, %v16938_v0  ;;  %v8600_v26 = vand.u32 4294901760, %v8599_v62 }
 0xa15   :  { %v8503_v5 = vadd.f32 %v8502_v15, %v8420_v8  ;;  %v16929_v36 = vsub.f32 %v8559_v11, %v16917_v2  ;;  %v8789_v15 = vsel %vm100_vm0, %v8786_v61, 0  ;;  %v8640_v24 = vsub.f32 %v16938_v0, %v8639_v6 }
 0xa16   :  { %v8601_v8 = vsub.f32 %v8599_v62, %v8600_v26  ;;  %v8814_v27 = vand.u32 4294901760, %v8789_v15 }
 0xa17   :  { %v8552_v31 = vadd.f32 %v8551_v4, %v8503_v5  ;;  %v8633_v59 = vand.u32 4294901760, %v16929_v36  ;;  %v8787_v4 = vld [vmem:[%s19144_s20 + $0x8] sm:$0x3f]  ;;  %v8641_v46 = vand.u32 4294901760, %v8640_v24 }
 0xa18   :  { %v8368_v34 = vpop.f32.mrf.mxu0  ;;  %v8602_v9 = vand.u32 4294901760, %v8601_v8  ;;  %v8815_v5 = vsub.f32 %v8789_v15, %v8814_v27  ;;  %v8792_v51 = vsel %vm100_vm0, %v8787_v4, 0 }
 0xa19   :  { %v8369_v18 = vadd.f32 %v8368_v34, %v8300_v30  ;;  %v8560_v3 = vmax.f32 %v8102_v22, %v8552_v31  ;;  %v8506_v12 = vpop.f32.mrf.mxu2  ;;  %v8634_v38 = vsub.f32 %v16929_v36, %v8633_v59  ;;  %v8822_v55 = vand.u32 4294901760, %v8792_v51 }
 0xa1a   :  { %v8555_v17 = vpop.f32.mrf.mxu3  ;;  %v8816_v41 = vand.u32 4294901760, %v8815_v5 }
 0xa1b   :  { %v8426_v40 = vadd.f32 %v8425_v49, %v8369_v18  ;;  %v16913_v39 = vand.u32 4294901760, %v8560_v3  ;;  %v8635_v10 = vand.u32 4294901760, %v8634_v38  ;;  %v8823_v20 = vsub.f32 %v8792_v51, %v8822_v55 }
 0xa1c   :  { %v8817_v30 = vsub.f32 %v8815_v5, %v8816_v41  ;;  %v17000_v18 = vsub.f32 %v9058_v45, %v16994_v60 }
 0xa1d   :  { %v8507_v57 = vadd.f32 %v8506_v12, %v8426_v40  ;;  %v16920_v25 = vsub.f32 %v8560_v3, %v16913_v39  ;;  %v8824_v22 = vand.u32 4294901760, %v8823_v20  ;;  %v9056_v3 = vld [vmem:[%s19145_s21 + $0x68] sm:$0xff]  ;;  %v9055_v40 = vld [vmem:[%s19145_s21 + $0x60] sm:$0xff] }
 0xa1e   :  { %v8818_v31 = vand.u32 4294901760, %v8817_v30  ;;  %v9221_v56 = vand.u32 4294901760, %v17000_v18  ;;  %v17014_v44 = vand.u32 4294901760, %v9056_v3  ;;  %v17029_v11 = vand.u32 4294901760, %v9055_v40 }
 0xa1f   :  { %v8556_v37 = vadd.f32 %v8555_v17, %v8507_v57  ;;  %v16935_v35 = vand.u32 4294901760, %v16920_v25  ;;  %v8825_v34 = vsub.f32 %v8823_v20, %v8824_v22  ;;  %v9054_v57 = vld [vmem:[%s19145_s21 + $0x58] sm:$0xff] }
 0xa20   :  { %v9222_v12 = vsub.f32 %v17000_v18, %v9221_v56  ;;  %v17026_v32 = vsub.f32 %v9056_v3, %v17014_v44  ;;  %v17043_v54 = vsub.f32 %v9055_v40, %v17029_v11 }
 0xa21   :  { %v8561_v42 = vmax.f32 %v8106_v16, %v8556_v37  ;;  %v8628_v21 = vsub.f32 %v16920_v25, %v16935_v35  ;;  %v8826_v1 = vand.u32 4294901760, %v8825_v34  ;;  %v17047_v37 = vand.u32 4294901760, %v9054_v57 }
 0xa22   :  { %v9233_v16 = vand.u32 4294901760, %v17026_v32 }
 0xa23   :  { %v16924_v63 = vand.u32 4294901760, %v8561_v42  ;;  %v8629_v48 = vand.u32 4294901760, %v8628_v21  ;;  %v9051_v21 = vld [vmem:[%s19145_s21 + $0x40] sm:$0xff] }
 0xa25   :  { %v8620_v28 = vsub.f32 %v8561_v42, %v16924_v63  ;;  %8583 = vmatpush.msra.mxu0 %v16924_v63  ;;  %8700 = vmatpush.msrb.mxu3 %v16924_v63  ;;  %v9239_v42 = vand.u32 4294901760, %v17043_v54 }
 0xa27   :  { %8585 = vmatpush.msra.mxu0 %v16913_v39  ;;  %8666 = vmatpush.msrb.mxu2 %v8620_v28  ;;  %v8621_v58 = vand.u32 4294901760, %v8620_v28  ;;  %v9240_v53 = vsub.f32 %v17043_v54, %v9239_v42 }
 0xa28   :  { %8702 = vmatpush.msrb.mxu3 %v16913_v39 }
 0xa29   :  { %8587 = vmatpush.msra.mxu0 %v16917_v2  ;;  %8669 = vmatpush.msrb.mxu2 %v16920_v25  ;;  %v8622_v52 = vsub.f32 %v8620_v28, %v8621_v58 }
 0xa2a   :  { %8704 = vmatpush.msrb.mxu3 %v16917_v2 }
 0xa2b   :  { %8589 = vmatpush.msra.mxu0 %v16922_v29  ;;  %8672 = vmatpush.msrb.mxu2 %v16929_v36  ;;  %v8623_v14 = vand.u32 4294901760, %v8622_v52 }
 0xa2c   :  { %8706 = vmatpush.msrb.mxu3 %v16922_v29  ;;  %8595 = vmatmul.f32.vlgmr.msra.gmra.mxu0 %v8594_v19 }
 0xa2d   :  { %8735 = vmatpush.msrb.mxu0 %v8621_v58  ;;  %8624 = vmatpush.msra.mxu1 %v8623_v14 }
 0xa2e   :  { %8675 = vmatpush.msrb.mxu2 %v16938_v0  ;;  %8848 = vmatpush.msra.mxu3 %v8623_v14  ;;  %v17097_v14 = vand.u32 4294901760, %v9051_v21 }
 0xa2f   :  { %8739 = vmatpush.msrb.mxu0 %v16935_v35  ;;  %8630 = vmatpush.msra.mxu1 %v8629_v48 }
 0xa30   :  { %8807 = vmatpush.msra.mxu2 %v16924_v63  ;;  %8854 = vmatpush.msra.mxu3 %v8629_v48  ;;  %v9050_v48 = vld [vmem:[%s19145_s21 + $0x38] sm:$0xff] }
 0xa31   :  { %8678 = vmatmul.f32.vlgmr.msrb.gmra.mxu2 %v8591_v50  ;;  %8710 = vmatmul.f32.vlgmr.msrb.gmra.mxu3 %v8592_v23  ;;  %v9053_v23 = vld [vmem:[%s19145_s21 + $0x50] sm:$0xff] }
 0xa32   :  { %8743 = vmatpush.msrb.mxu0 %v8633_v59  ;;  %8809 = vmatpush.msra.mxu2 %v16913_v39 }
 0xa33   :  { %8636 = vmatpush.msra.mxu1 %v8635_v10  ;;  %8860 = vmatpush.msra.mxu3 %v8635_v10  ;;  %v17117_v10 = vand.u32 4294901760, %v9050_v48 }
 0xa34   :  { %8747 = vmatpush.msrb.mxu0 %v8639_v6  ;;  %8811 = vmatpush.msra.mxu2 %v16917_v2 }
 0xa35   :  { %8642 = vmatpush.msra.mxu1 %v8641_v46  ;;  %8866 = vmatpush.msra.mxu3 %v8641_v46  ;;  %v9049_v46 = vld [vmem:[%s19145_s21 + $0x30] sm:$0xff] }
 0xa36   :  { %8890 = vmatpush.msra.mxu0 %v8620_v28  ;;  %8644 = vmatmul.f32.vlgmr.msra.gmra.mxu1 %v16905_v43  ;;  %v17129_v51 = vand.u32 4294901760, %v9049_v46 }
 0xa37   :  { %8603 = vmatmul.f32.gmra.mxu0 %v8602_v9  ;;  %8770 = vmatpush.msrb.mxu1 %v16924_v63 }
 0xa38   :  { %8813 = vmatpush.msra.mxu2 %v16922_v29  ;;  %8994 = vmatpush.msrb.mxu3 %v16924_v63 }
 0xa39   :  { %8893 = vmatpush.msra.mxu0 %v16920_v25  ;;  %8772 = vmatpush.msrb.mxu1 %v16913_v39  ;;  %v17058_v25 = vand.u32 4294901760, %v9053_v23 }
 0xa3a   :  { %8959 = vmatpush.msrb.mxu2 %v8621_v58  ;;  %8996 = vmatpush.msrb.mxu3 %v16913_v39 }
 0xa3b   :  { %8896 = vmatpush.msra.mxu0 %v16929_v36  ;;  %8683 = vmatmul.f32.gmra.mxu2 %v8599_v62  ;;  %v17072_v36 = vsub.f32 %v9053_v23, %v17058_v25  ;;  %v9046_v23 = vld [vmem:[%s19145_s21 + $0x18] sm:$0xff] }
 0xa3c   :  { %8963 = vmatpush.msrb.mxu2 %v16935_v35  ;;  %8716 = vmatmul.f32.gmra.mxu3 %v8600_v26 }
 0xa3d   :  { %8774 = vmatpush.msrb.mxu1 %v16917_v2  ;;  %8998 = vmatpush.msrb.mxu3 %v16917_v2  ;;  %v9251_v58 = vand.u32 4294901760, %v17072_v36 }
 0xa3e   :  { %8899 = vmatpush.msra.mxu0 %v16938_v0  ;;  %8967 = vmatpush.msrb.mxu2 %v8633_v59  ;;  %v9241_v0 = vand.u32 4294901760, %v9240_v53 }
 0xa3f   :  { %8776 = vmatpush.msrb.mxu1 %v16922_v29  ;;  %9000 = vmatpush.msrb.mxu3 %v16922_v29  ;;  %v9252_v52 = vsub.f32 %v17072_v36, %v9251_v58 }
 0xa40   :  { %8971 = vmatpush.msrb.mxu2 %v8639_v6  ;;  %8648 = vmatmul.f32.gmra.mxu1 %v16926_v47 }
 0xa41   :  { %8924 = vmatpush.msra.mxu1 %v16924_v63  ;;  %8749 = vmatmul.f32.vlgmr.msrb.gmra.mxu0 %v16905_v43  ;;  %v9052_v63 = vld [vmem:[%s19145_s21 + $0x48] sm:$0xff]  ;;  %v9253_v38 = vand.u32 4294901760, %v9252_v52 }
 0xa42   :  { %9179 = vmatpush.msrb.mxu0 %v16994_v60  ;;  %v17074_v28 = vand.u32 4294901760, %v9052_v63 }
 0xa43   :  { %8926 = vmatpush.msra.mxu1 %v16913_v39  ;;  %8819 = vmatmul.f32.vlgmr.msra.gmra.mxu2 %v8818_v31  ;;  %v9223_v39 = vand.u32 4294901760, %v9222_v12 }
 0xa44   :  { %8868 = vmatmul.f32.vlgmr.msra.gmra.mxu3 %v8814_v27  ;;  %9322 = vmatpush.msra.mxu2 %v17000_v18  ;;  %v17081_v62 = vsub.f32 %v9052_v63, %v17074_v28  ;;  %v9072_v18 = vld [vmem:[%s19145_s21 + $0xe8] sm:$0xff] }
 0xa45   :  { %8928 = vmatpush.msra.mxu1 %v16917_v2  ;;  %9375 = vmatpush.msra.mxu3 %v16994_v60  ;;  %v9234_v2 = vsub.f32 %v17026_v32, %v9233_v16 }
 0xa46   :  { %v19209_v59 = vand.u32 4294901760, %v17081_v62 }
 0xa47   :  { %8930 = vmatpush.msra.mxu1 %v16922_v29  ;;  %v17061_v29 = vsub.f32 %v9054_v57, %v17047_v37 }
 0xa48   :  { %8778 = vmatmul.f32.vlgmr.msrb.gmra.mxu1 %v16905_v43  ;;  %v9057_v43 = vld [vmem:[%s19145_s21 + $0x70] sm:$0xff]  ;;  %v9258_v15 = vsub.f32 %v17081_v62, %v19209_v59 }
 0xa49   :  { %8753 = vmatmul.f32.gmra.mxu0 %v16926_v47  ;;  %v17002_v49 = vand.u32 4294901760, %v9057_v43  ;;  %9224 = vmatpush.msrb.mxu1 %v9223_v39  ;;  %v9245_v35 = vand.u32 4294901760, %v17061_v29 }
 0xa4a   :  { %v9259_v4 = vand.u32 4294901760, %v9258_v15  ;;  %v9044_v15 = vld [vmem:[%s19145_s21 + $0x8] sm:$0xff] }
 0xa4b   :  { %8827 = vmatmul.f32.gmra.mxu2 %v8826_v1  ;;  %v17011_v7 = vsub.f32 %v9057_v43, %v17002_v49  ;;  %9377 = vmatpush.msra.mxu3 %v17002_v49  ;;  %v9246_v19 = vsub.f32 %v17061_v29, %v9245_v35  ;;  %v9047_v43 = vld [vmem:[%s19145_s21 + $0x20] sm:$0xff] }
 0xa4c   :  { %8872 = vmatmul.f32.gmra.mxu3 %v8822_v55  ;;  %9181 = vmatpush.msrb.mxu0 %v17002_v49  ;;  %v17165_v57 = vand.u32 4294901760, %v9047_v43 }
 0xa4d   :  { %v9227_v50 = vand.u32 4294901760, %v17011_v7  ;;  %9325 = vmatpush.msra.mxu2 %v17011_v7  ;;  %9379 = vmatpush.msra.mxu3 %v17014_v44  ;;  %v9247_v61 = vand.u32 4294901760, %v9246_v19  ;;  %v9045_v19 = vld [vmem:[%s19145_s21 + $0x10] sm:$0xff] }
 0xa4e   :  { %9183 = vmatpush.msrb.mxu0 %v17014_v44  ;;  %v17184_v53 = vsub.f32 %v9047_v43, %v17165_v57 }
 0xa4f   :  { %v9228_v17 = vsub.f32 %v17011_v7, %v9227_v50  ;;  %9328 = vmatpush.msra.mxu2 %v17026_v32  ;;  %9381 = vmatpush.msra.mxu3 %v17029_v11  ;;  %v9071_v7 = vld [vmem:[%s19145_s21 + $0xe0] sm:$0xff] }
 0xa50   :  { %8782 = vmatmul.f32.gmra.mxu1 %v16926_v47  ;;  %9185 = vmatpush.msrb.mxu0 %v17029_v11  ;;  %v9235_v47 = vand.u32 4294901760, %v9234_v2 }
 0xa51   :  { %8902 = vmatmul.f32.vlgmr.msra.gmra.mxu0 %v8815_v5  ;;  %v9229_v13 = vand.u32 4294901760, %v9228_v17  ;;  %9331 = vmatpush.msra.mxu2 %v17043_v54  ;;  %v17126_v5 = vsub.f32 %v9050_v48, %v17117_v10  ;;  %v9069_v54 = vld [vmem:[%s19145_s21 + $0xd0] sm:$0xff] }
 0xa52   :  { %9383 = vmatpush.msra.mxu3 %v17047_v37  ;;  %9187 = vmatpush.msrb.mxu0 %v17047_v37 }
 0xa53   :  { %8973 = vmatmul.f32.vlgmr.msrb.gmra.mxu2 %v8814_v27  ;;  %9230 = vmatpush.msrb.mxu1 %v9229_v13  ;;  %v19206_v30 = vand.u32 4294901760, %v17126_v5 }
 0xa54   :  { %9002 = vmatmul.f32.vlgmr.msrb.gmra.mxu3 %v8814_v27  ;;  %9334 = vmatpush.msra.mxu2 %v17061_v29  ;;  %v17115_v27 = vsub.f32 %v9051_v21, %v17097_v14  ;;  %v17192_v21 = vand.u32 4294901760, %v9045_v19 }
 0xa55   :  { %9385 = vmatpush.msra.mxu3 %v17058_v25  ;;  %9236 = vmatpush.msrb.mxu1 %v9235_v47  ;;  %v9270_v34 = vsub.f32 %v17126_v5, %v19206_v30 }
 0xa56   :  { %9189 = vmatpush.msrb.mxu0 %v17058_v25  ;;  %9337 = vmatpush.msra.mxu2 %v17072_v36  ;;  %v19207_v9 = vand.u32 4294901760, %v17115_v27  ;;  %v17204_v48 = vsub.f32 %v9045_v19, %v17192_v21 }
 0xa57   :  { %9387 = vmatpush.msra.mxu3 %v17074_v28  ;;  %9242 = vmatpush.msrb.mxu1 %v9241_v0  ;;  %v9271_v3 = vand.u32 4294901760, %v9270_v34  ;;  %v17186_v0 = vand.u32 4294901760, %v9046_v23 }
 0xa58   :  { %8934 = vmatmul.f32.vlgmr.msra.gmra.mxu1 %v8816_v41  ;;  %9191 = vmatpush.msrb.mxu0 %v17074_v28  ;;  %v9048_v41 = vld [vmem:[%s19145_s21 + $0x28] sm:$0xff] }
 0xa59   :  { %8907 = vmatmul.f32.gmra.mxu0 %v8823_v20  ;;  %9340 = vmatpush.msra.mxu2 %v17081_v62  ;;  %v17141_v20 = vsub.f32 %v9049_v46, %v17129_v51  ;;  %v17144_v31 = vand.u32 4294901760, %v9048_v41 }
 0xa5a   :  { %9248 = vmatpush.msrb.mxu1 %v9247_v61  ;;  %9389 = vmatpush.msra.mxu3 %v17097_v14  ;;  %v19199_v61 = vand.u32 4294901760, %v17184_v53 }
 0xa5b   :  { %8977 = vmatmul.f32.gmra.mxu2 %v8822_v55  ;;  %9193 = vmatpush.msrb.mxu0 %v17097_v14  ;;  %v19204_v1 = vand.u32 4294901760, %v17141_v20  ;;  %v17153_v45 = vsub.f32 %v9048_v41, %v17144_v31 }
 0xa5c   :  { %9006 = vmatmul.f32.gmra.mxu3 %v8822_v55  ;;  %9254 = vmatpush.msrb.mxu1 %v9253_v38  ;;  %v9264_v55 = vsub.f32 %v17115_v27, %v19207_v9  ;;  %v17196_v38 = vsub.f32 %v9046_v23, %v17186_v0  ;;  %v9288_v46 = vsub.f32 %v17184_v53, %v19199_v61 }
 0xa5d   :  { %9343 = vmatpush.msra.mxu2 %v17115_v27  ;;  %9391 = vmatpush.msra.mxu3 %v17117_v10  ;;  %v9276_v40 = vsub.f32 %v17141_v20, %v19204_v1  ;;  %v19201_v12 = vand.u32 4294901760, %v17153_v45 }
 0xa5e   :  { %9195 = vmatpush.msrb.mxu0 %v17117_v10  ;;  %9260 = vmatpush.msrb.mxu1 %v9259_v4  ;;  %v17206_v4 = vand.u32 4294901760, %v9044_v15  ;;  %v19200_v41 = vand.u32 4294901760, %v17196_v38  ;;  %v9289_v23 = vand.u32 4294901760, %v9288_v46 }
 0xa5f   :  { %9346 = vmatpush.msra.mxu2 %v17126_v5  ;;  %9393 = vmatpush.msra.mxu3 %v17129_v51  ;;  %v9277_v63 = vand.u32 4294901760, %v9276_v40  ;;  %v9282_v47 = vsub.f32 %v17153_v45, %v19201_v12 }
 0xa60   :  { %8940 = vmatmul.f32.gmra.mxu1 %v8824_v22  ;;  %9197 = vmatpush.msrb.mxu0 %v17129_v51  ;;  %v9265_v22 = vand.u32 4294901760, %v9264_v55  ;;  %v9043_v55 = vld [vmem:[%s19145_s21] sm:$0xff]  ;;  %v17220_v34 = vsub.f32 %v9044_v15, %v17206_v4 }
 0xa61   :  { %9349 = vmatpush.msra.mxu2 %v17141_v20  ;;  %9395 = vmatpush.msra.mxu3 %v17144_v31  ;;  %v9283_v52 = vand.u32 4294901760, %v9282_v47  ;;  %v17222_v43 = vand.u32 4294901760, %v9043_v55 }
 0xa62   :  { %9199 = vmatpush.msrb.mxu0 %v17144_v31  ;;  %9266 = vmatpush.msrb.mxu1 %v9265_v22  ;;  %v19202_v22 = vand.u32 4294901760, %v17204_v48 }
 0xa63   :  { %9352 = vmatpush.msra.mxu2 %v17153_v45  ;;  %9397 = vmatpush.msra.mxu3 %v17165_v57  ;;  %v17240_v61 = vsub.f32 %v9043_v55, %v17222_v43 }
 0xa64   :  { %9272 = vmatpush.msrb.mxu1 %v9271_v3  ;;  %9201 = vmatpush.msrb.mxu0 %v17165_v57  ;;  %v9300_v19 = vsub.f32 %v17204_v48, %v19202_v22  ;;  %v9074_v22 = vld [vmem:[%s19145_s21 + $0xf8] sm:$0xff] }
 0xa65   :  { %9355 = vmatpush.msra.mxu2 %v17184_v53  ;;  %9399 = vmatpush.msra.mxu3 %v17186_v0  ;;  %v17253_v55 = vand.u32 4294901760, %v9074_v22 }
 0xa66   :  { %9278 = vmatpush.msrb.mxu1 %v9277_v63  ;;  %9203 = vmatpush.msrb.mxu0 %v17186_v0  ;;  %v9294_v63 = vsub.f32 %v17196_v38, %v19200_v41  ;;  %v9301_v41 = vand.u32 4294901760, %v9300_v19  ;;  %v9073_v19 = vld [vmem:[%s19145_s21 + $0xf0] sm:$0xff] }
 0xa67   :  { %9358 = vmatpush.msra.mxu2 %v17196_v38  ;;  %9401 = vmatpush.msra.mxu3 %v17192_v21  ;;  %v17267_v1 = vand.u32 4294901760, %v9073_v19 }
 0xa68   :  { %9284 = vmatpush.msrb.mxu1 %v9283_v52  ;;  %9205 = vmatpush.msrb.mxu0 %v17192_v21  ;;  %v19203_v52 = vand.u32 4294901760, %v17220_v34  ;;  %v9295_v46 = vand.u32 4294901760, %v9294_v63 }
 0xa69   :  { %9361 = vmatpush.msra.mxu2 %v17204_v48  ;;  %9403 = vmatpush.msra.mxu3 %v17206_v4  ;;  %v17283_v30 = vsub.f32 %v9073_v19, %v17267_v1  ;;  %v17299_v19 = vand.u32 4294901760, %v9071_v7 }
 0xa6a   :  { %9207 = vmatpush.msrb.mxu0 %v17206_v4  ;;  %9290 = vmatpush.msrb.mxu1 %v9289_v23  ;;  %v9306_v12 = vsub.f32 %v17220_v34, %v19203_v52  ;;  %v19205_v23 = vand.u32 4294901760, %v17240_v61 }
 0xa6b   :  { %9364 = vmatpush.msra.mxu2 %v17220_v34  ;;  %9405 = vmatpush.msra.mxu3 %v17222_v43 }
 0xa6c   :  { %9209 = vmatpush.msrb.mxu0 %v17222_v43  ;;  %9296 = vmatpush.msrb.mxu1 %v9295_v46  ;;  %v9307_v63 = vand.u32 4294901760, %v9306_v12  ;;  %v9312_v52 = vsub.f32 %v17240_v61, %v19205_v23  ;;  %v17265_v46 = vsub.f32 %v9074_v22, %v17253_v55  ;;  %v17280_v23 = vand.u32 4294901760, %v9072_v18 }
 0xa6d   :  { %9367 = vmatpush.msra.mxu2 %v17240_v61 }
 0xa6e   :  { %9416 = vmatpush.msra.mxu0 %v9221_v56  ;;  %9302 = vmatpush.msrb.mxu1 %v9301_v41  ;;  %v9313_v41 = vand.u32 4294901760, %v9312_v52  ;;  %v19208_v22 = vand.u32 4294901760, %v17265_v46  ;;  %v17302_v9 = vsub.f32 %v9072_v18, %v17280_v23 }
 0xa6f   :  { %9520 = vmatpush.msrb.mxu2 %v17253_v55 }
 0xa70   :  { %9420 = vmatpush.msra.mxu0 %v9227_v50  ;;  %9308 = vmatpush.msrb.mxu1 %v9307_v63  ;;  %v9563_v52 = vsub.f32 %v17265_v46, %v19208_v22  ;;  %v9568_v63 = vand.u32 4294901760, %v17283_v30  ;;  %v9574_v18 = vand.u32 4294901760, %v17302_v9 }
 0xa71   :  { %9522 = vmatpush.msrb.mxu2 %v17267_v1 }
 0xa72   :  { %9424 = vmatpush.msra.mxu0 %v9233_v16  ;;  %9314 = vmatpush.msrb.mxu1 %v9313_v41  ;;  %v9070_v16 = vld [vmem:[%s19145_s21 + $0xd8] sm:$0xff]  ;;  %v9564_v41 = vand.u32 4294901760, %v9563_v52  ;;  %v9569_v22 = vsub.f32 %v17283_v30, %v9568_v63 }
 0xa73   :  { %9524 = vmatpush.msrb.mxu2 %v17280_v23  ;;  %v17316_v59 = vand.u32 4294901760, %v9070_v16 }
 0xa74   :  { %9483 = vmatpush.msra.mxu1 %v16994_v60  ;;  %9428 = vmatpush.msra.mxu0 %v9239_v42  ;;  %v17320_v60 = vsub.f32 %v9071_v7, %v17299_v19  ;;  %v9570_v42 = vand.u32 4294901760, %v9569_v22  ;;  %v9068_v22 = vld [vmem:[%s19145_s21 + $0xc8] sm:$0xff] }
 0xa75   :  { %9526 = vmatpush.msrb.mxu2 %v17299_v19  ;;  %9565 = vmatpush.msrb.mxu3 %v9564_v41  ;;  %v19505_v41 = vand.u32 4294901760, %v17081_v62 }
 0xa76   :  { %9485 = vmatpush.msra.mxu1 %v17002_v49  ;;  %9432 = vmatpush.msra.mxu0 %v9245_v35  ;;  %v17334_v49 = vsub.f32 %v9070_v16, %v17316_v59  ;;  %v9580_v35 = vand.u32 4294901760, %v17320_v60 }
 0xa77   :  { %9528 = vmatpush.msrb.mxu2 %v17316_v59  ;;  %9571 = vmatpush.msrb.mxu3 %v9570_v42 }
 0xa78   :  { %9487 = vmatpush.msra.mxu1 %v17014_v44  ;;  %9436 = vmatpush.msra.mxu0 %v9251_v58  ;;  %v9581_v36 = vsub.f32 %v17320_v60, %v9580_v35  ;;  %v9067_v58 = vld [vmem:[%s19145_s21 + $0xc0] sm:$0xff] }
 0xa7a   :  { %9489 = vmatpush.msra.mxu1 %v17029_v11  ;;  %9440 = vmatpush.msra.mxu0 %v19505_v41 }
 0xa7c   :  { %9491 = vmatpush.msra.mxu1 %v17047_v37 }
 0xa7e   :  { %9493 = vmatpush.msra.mxu1 %v17058_v25  ;;  %v19507_v25 = vand.u32 4294901760, %v17126_v5 }
 0xa80   :  { %9495 = vmatpush.msra.mxu1 %v17074_v28  ;;  %v19508_v28 = vand.u32 4294901760, %v17141_v20 }
 0xa82   :  { %9497 = vmatpush.msra.mxu1 %v17097_v14 }
 0xa84   :  { %9499 = vmatpush.msra.mxu1 %v17117_v10 }
 0xa86   :  { %9501 = vmatpush.msra.mxu1 %v17129_v51  ;;  %v19511_v51 = vand.u32 4294901760, %v17196_v38 }
 0xa88   :  { %9503 = vmatpush.msra.mxu1 %v17144_v31 }
 0xa8a   :  { %9505 = vmatpush.msra.mxu1 %v17165_v57  ;;  %v19513_v57 = vand.u32 4294901760, %v17220_v34 }
 0xa8c   :  { %9507 = vmatpush.msra.mxu1 %v17186_v0 }
 0xa8e   :  { %9509 = vmatpush.msra.mxu1 %v17192_v21 }
 0xa90   :  { %9511 = vmatpush.msra.mxu1 %v17206_v4 }
 0xa92   :  { %9513 = vmatpush.msra.mxu1 %v17222_v43 }
 0xaa9   :  { %v17036_v33 = vpop.f32.mrf.mxu0 }
 0xab3   :  { %v17102_v26 = vpop.f32.mrf.mxu1 }
 0xab4   :  { %v17100_v6 = vpop.f32.mrf.mxu0  ;;  %v17110_v24 = vpop.f32.mrf.mxu2  ;;  %v8646_v12 = vadd.f32 %v17102_v26, %v17036_v33 }
 0xab5   :  { %v17112_v8 = vpop.f32.mrf.mxu3 }
 0xab6   :  { %v8680_v32 = vadd.f32 %v17110_v24, %v8646_v12  ;;  %v9575_v12 = vsub.f32 %v17302_v9, %v9574_v18 }
 0xab8   :  { %v9576_v16 = vand.u32 4294901760, %v9575_v12 }
 0xaba   :  { %9577 = vmatpush.msrb.mxu3 %v9576_v16  ;;  %v19506_v16 = vand.u32 4294901760, %v17115_v27 }
 0xabc   :  { %9444 = vmatpush.msra.mxu0 %v19506_v16 }
 0xabd   :  { %v17168_v39 = vpop.f32.mrf.mxu1 }
 0xabe   :  { %v17170_v17 = vpop.f32.mrf.mxu0  ;;  %v17175_v13 = vpop.f32.mrf.mxu2  ;;  %v8650_v7 = vadd.f32 %v17168_v39, %v17100_v6  ;;  %v17348_v6 = vand.u32 4294901760, %v9068_v22  ;;  %9448 = vmatpush.msra.mxu0 %v19507_v25 }
 0xabf   :  { %v17177_v2 = vpop.f32.mrf.mxu3 }
 0xac0   :  { %v17371_v42 = vsub.f32 %v9068_v22, %v17348_v6  ;;  %v8685_v12 = vadd.f32 %v17175_v13, %v8650_v7  ;;  %9452 = vmatpush.msra.mxu0 %v19508_v28 }
 0xac2   :  { %v9598_v13 = vand.u32 4294901760, %v17371_v42 }
 0xac5   :  { %v17227_v40 = vpop.f32.mrf.mxu1 }
 0xac6   :  { %v17225_v3 = vpop.f32.mrf.mxu0  ;;  %v8820_v47 = vpop.f32.mrf.mxu2 }
 0xac7   :  { %v8869_v15 = vpop.f32.mrf.mxu3 }
 0xac8   :  { %v8870_v24 = vadd.f32 %v8869_v15, %v8820_v47  ;;  %v17331_v47 = vand.u32 4294901760, %v9069_v54  ;;  %v8712_v15 = vadd.f32 %v17112_v8, %v8680_v32  ;;  %v19210_v8 = vand.u32 4294901760, %v17334_v49 }
 0xaca   :  { %9530 = vmatpush.msrb.mxu2 %v17331_v47  ;;  %v17351_v44 = vsub.f32 %v9069_v54, %v17331_v47  ;;  %v8751_v39 = vadd.f32 %v17170_v17, %v8712_v15  ;;  %v9587_v17 = vsub.f32 %v17334_v49, %v19210_v8  ;;  %v17368_v54 = vand.u32 4294901760, %v9067_v58 }
 0xacc   :  { %9532 = vmatpush.msrb.mxu2 %v17348_v6  ;;  %v9592_v11 = vand.u32 4294901760, %v17351_v44  ;;  %v8780_v62 = vadd.f32 %v17227_v40, %v8751_v39  ;;  %v9588_v8 = vand.u32 4294901760, %v9587_v17  ;;  %v17392_v27 = vsub.f32 %v9067_v58, %v17368_v54  ;;  %v9065_v39 = vld [vmem:[%s19145_s21 + $0xb0] sm:$0xff]  ;;  %v9064_v17 = vld [vmem:[%s19145_s21 + $0xa8] sm:$0xff] }
 0xacd   :  { %v17276_v56 = vpop.f32.mrf.mxu1  ;;  %v17417_v5 = vand.u32 4294901760, %v9064_v17 }
 0xace   :  { %v17285_v33 = vpop.f32.mrf.mxu2  ;;  %v8903_v50 = vpop.f32.mrf.mxu0  ;;  %v9593_v22 = vsub.f32 %v17351_v44, %v9592_v11  ;;  %9534 = vmatpush.msrb.mxu2 %v17368_v54 }
 0xacf   :  { %v17292_v26 = vpop.f32.mrf.mxu3  ;;  %v8904_v29 = vadd.f32 %v8903_v50, %v8870_v24 }
 0xad0   :  { %v8874_v37 = vadd.f32 %v17292_v26, %v17285_v33 }
 0xad5   :  { %v8935_v52 = vpop.f32.mrf.mxu1 }
 0xad6   :  { %v8936_v50 = vadd.f32 %v8935_v52, %v8904_v29  ;;  %v8974_v32 = vpop.f32.mrf.mxu2  ;;  %v9582_v29 = vand.u32 4294901760, %v9581_v36  ;;  %v9066_v52 = vld [vmem:[%s19145_s21 + $0xb8] sm:$0xff]  ;;  %v8908_v41 = vpop.f32.mrf.mxu0  ;;  %v17401_v36 = vand.u32 4294901760, %v9065_v39 }
 0xad7   :  { %v9003_v24 = vpop.f32.mrf.mxu3  ;;  %v17386_v40 = vand.u32 4294901760, %v9066_v52  ;;  %v8909_v26 = vadd.f32 %v8908_v41, %v8874_v37  ;;  %v9063_v37 = vld [vmem:[%s19145_s21 + $0xa0] sm:$0xff] }
 0xad8   :  { %v8975_v15 = vadd.f32 %v8974_v32, %v8936_v50  ;;  %9583 = vmatpush.msrb.mxu3 %v9582_v29  ;;  %v9594_v50 = vand.u32 4294901760, %v9593_v22  ;;  %v9599_v32 = vsub.f32 %v17371_v42, %v9598_v13 }
 0xad9   :  { %9536 = vmatpush.msrb.mxu2 %v17386_v40  ;;  %v17404_v33 = vsub.f32 %v9066_v52, %v17386_v40 }
 0xada   :  { %v9004_v7 = vadd.f32 %v9003_v24, %v8975_v15  ;;  %9589 = vmatpush.msrb.mxu3 %v9588_v8  ;;  %v9604_v24 = vand.u32 4294901760, %v17392_v27  ;;  %v9600_v29 = vand.u32 4294901760, %v9599_v32  ;;  %v8718_v8 = vadd.f32 %v17177_v2, %v8685_v12 }
 0xadb   :  { %9538 = vmatpush.msrb.mxu2 %v17401_v36  ;;  %v9610_v52 = vand.u32 4294901760, %v17404_v33  ;;  %v17439_v12 = vand.u32 4294901760, %v9063_v37 }
 0xadc   :  { %v17408_v58 = vmax.f32 %v8780_v62, %v9004_v7  ;;  %v17420_v62 = vsub.f32 %v9065_v39, %v17401_v36  ;;  %9595 = vmatpush.msrb.mxu3 %v9594_v50  ;;  %v9605_v22 = vsub.f32 %v17392_v27, %v9604_v24  ;;  %v17442_v7 = vsub.f32 %v9064_v17, %v17417_v5 }
 0xadd   :  { %v8941_v15 = vpop.f32.mrf.mxu1  ;;  %v9611_v2 = vsub.f32 %v17404_v33, %v9610_v52  ;;  %9540 = vmatpush.msrb.mxu2 %v17417_v5  ;;  %v19509_v39 = vand.u32 4294901760, %v17153_v45  ;;  %v8755_v50 = vadd.f32 %v17225_v3, %v8718_v8  ;;  %v19510_v3 = vand.u32 4294901760, %v17184_v53 }
 0xade   :  { %9012 = vst [vmem:[#allocation3] sm:$0x3] %v17408_v58  ;;  %v8942_v16 = vadd.f32 %v8941_v15, %v8909_v26  ;;  %v8978_v41 = vpop.f32.mrf.mxu2  ;;  %v9616_v14 = vand.u32 4294901760, %v17420_v62  ;;  %9601 = vmatpush.msrb.mxu3 %v9600_v29  ;;  %v9606_v25 = vand.u32 4294901760, %v9605_v22  ;;  %v9062_v26 = vld [vmem:[%s19145_s21 + $0x98] sm:$0xff]  ;;  %v9622_v45 = vand.u32 4294901760, %v17442_v7 }
 0xadf   :  { %9014 = vst.sshfl [vmem:[#allocation1] sm:$0xff pattern:$0x73625140] %v17408_v58  ;;  %v9007_v20 = vpop.f32.mrf.mxu3  ;;  %9456 = vmatpush.msra.mxu0 %v19509_v39  ;;  %v9612_v15 = vand.u32 4294901760, %v9611_v2  ;;  %9542 = vmatpush.msrb.mxu2 %v17439_v12  ;;  %v17456_v28 = vand.u32 4294901760, %v9062_v26  ;;  %v8784_v10 = vadd.f32 %v17276_v56, %v8755_v50  ;;  %v17463_v8 = vsub.f32 %v9063_v37, %v17439_v12  ;;  %v9060_v2 = vld [vmem:[%s19145_s21 + $0x88] sm:$0xff] }
 0xae0   :  { %v8979_v32 = vadd.f32 %v8978_v41, %v8942_v16  ;;  %v9617_v17 = vsub.f32 %v17420_v62, %v9616_v14  ;;  %9607 = vmatpush.msrb.mxu3 %v9606_v25  ;;  %v9061_v16 = vld [vmem:[%s19145_s21 + $0x90] sm:$0xff]  ;;  %v9623_v22 = vsub.f32 %v17442_v7, %v9622_v45  ;;  %v19512_v25 = vand.u32 4294901760, %v17204_v48  ;;  %v9059_v48 = vld [vmem:[%s19145_s21 + $0x80] sm:$0xff] }
 0xae1   :  { %9460 = vmatpush.msra.mxu0 %v19510_v3  ;;  %9544 = vmatpush.msrb.mxu2 %v17456_v28  ;;  %v17472_v53 = vand.u32 4294901760, %v9061_v16  ;;  %v17475_v56 = vsub.f32 %v9062_v26, %v17456_v28 }
 0xae2   :  { %v9008_v29 = vadd.f32 %v9007_v20, %v8979_v32  ;;  %v9618_v41 = vand.u32 4294901760, %v9617_v17  ;;  %9613 = vmatpush.msrb.mxu3 %v9612_v15  ;;  %v9628_v20 = vand.u32 4294901760, %v17463_v8  ;;  %v9624_v39 = vand.u32 4294901760, %v9623_v22 }
 0xae3   :  { %9464 = vmatpush.msra.mxu0 %v19511_v51  ;;  %9546 = vmatpush.msrb.mxu2 %v17472_v53  ;;  %v9634_v50 = vand.u32 4294901760, %v17475_v56  ;;  %v17486_v32 = vand.u32 4294901760, %v9060_v2  ;;  %v17489_v38 = vsub.f32 %v9061_v16, %v17472_v53  ;;  %v19514_v22 = vand.u32 4294901760, %v17240_v61 }
 0xae4   :  { %v9011_v37 = vmax.f32 %v8784_v10, %v9008_v29  ;;  %9619 = vmatpush.msrb.mxu3 %v9618_v41  ;;  %v9629_v26 = vsub.f32 %v17463_v8, %v9628_v20  ;;  %v17509_v10 = vand.u32 4294901760, %v9059_v48 }
 0xae5   :  { %9468 = vmatpush.msra.mxu0 %v19512_v25  ;;  %v9635_v15 = vsub.f32 %v17475_v56, %v9634_v50  ;;  %9548 = vmatpush.msrb.mxu2 %v17486_v32  ;;  %v9640_v17 = vand.u32 4294901760, %v17489_v38  ;;  %v17512_v29 = vsub.f32 %v9060_v2, %v17486_v32 }
 0xae6   :  { %v9016_v31 = vld [vmem:[#allocation1 + $0x1] ss:$4 sm:$0xff]  ;;  %9029 = vst [vmem:[#allocation3 + $0x8] sm:$0x3] %v9011_v37  ;;  %9625 = vmatpush.msrb.mxu3 %v9624_v39  ;;  %v9630_v3 = vand.u32 4294901760, %v9629_v26  ;;  %v17522_v34 = vsub.f32 %v9059_v48, %v17509_v10 }
 0xae7   :  { %9018 = vst [vmem:[#allocation3 + $0x2] sm:$0x3] %v9016_v31  ;;  %9472 = vmatpush.msra.mxu0 %v19513_v57  ;;  %v9636_v16 = vand.u32 4294901760, %v9635_v15  ;;  %v9641_v41 = vsub.f32 %v17489_v38, %v9640_v17  ;;  %v9646_v0 = vand.u32 4294901760, %v17512_v29  ;;  %9550 = vmatpush.msrb.mxu2 %v17509_v10 }
 0xae8   :  { %9019 = vst.sshfl [vmem:[#allocation1] sm:$0xff pattern:$0x73625140] %v17408_v58  ;;  %9631 = vmatpush.msrb.mxu3 %v9630_v3  ;;  %v9652_v61 = vand.u32 4294901760, %v17522_v34 }
 0xae9   :  { %9476 = vmatpush.msra.mxu0 %v19514_v22  ;;  %v9642_v51 = vand.u32 4294901760, %v9641_v41  ;;  %v9647_v2 = vsub.f32 %v17512_v29, %v9646_v0 }
 0xaea   :  { %9637 = vmatpush.msrb.mxu3 %v9636_v16  ;;  %v9653_v39 = vsub.f32 %v17522_v34, %v9652_v61 }
 0xaeb   :  { %v9648_v21 = vand.u32 4294901760, %v9647_v2 }
 0xaec   :  { %9643 = vmatpush.msrb.mxu3 %v9642_v51  ;;  %v9654_v31 = vand.u32 4294901760, %v9653_v39 }
 0xaee   :  { %9649 = vmatpush.msrb.mxu3 %v9648_v21 }
 0xaef   :  { %v9021_v25 = vld [vmem:[#allocation1 + $0x2] ss:$4 sm:$0xff] }
 0xaf0   :  { %9023 = vst [vmem:[#allocation3 + $0x4] sm:$0x3] %v9021_v25  ;;  %9655 = vmatpush.msrb.mxu3 %v9654_v31 }
 0xaf1   :  { %9024 = vst.sshfl [vmem:[#allocation1] sm:$0xff pattern:$0x73625140] %v17408_v58 }
 0xaf8   :  { %v9026_v4 = vld [vmem:[#allocation1 + $0x3] ss:$4 sm:$0xff] }
 0xaf9   :  { %9028 = vst [vmem:[#allocation3 + $0x6] sm:$0x3] %v9026_v4 }
 0xafa   :  { %9031 = vst.sshfl [vmem:[#allocation1] sm:$0xff pattern:$0x73625140] %v9011_v37 }
 0xb00   :  { %v9041_v15 = vld [vmem:[#allocation3] sm:$0xff] }
 0xb01   :  { %v9033_v26 = vld [vmem:[#allocation1 + $0x1] ss:$4 sm:$0xff] }
 0xb02   :  { %9035 = vst [vmem:[#allocation3 + $0xa] sm:$0x3] %v9033_v26 }
 0xb03   :  { %9036 = vst.sshfl [vmem:[#allocation1] sm:$0xff pattern:$0x73625140] %v9011_v37  ;;  %v19515_v37 = vand.u32 4294901760, %v17265_v46 }
 0xb04   :  { %9161 = vst [vmem:[#allocation1] ss:$4 sm:$0xff] %v9041_v15 }
 0xb0a   :  { %v9038_v43 = vld [vmem:[#allocation1 + $0x2] ss:$4 sm:$0xff] }
 0xb0b   :  { %9040 = vst [vmem:[#allocation3 + $0xc] sm:$0x3] %v9038_v43  ;;  %v9164_v48 = vld.sshfl [vmem:[#allocation1] sm:$0xff pattern:$0x73625140] }
 0xb0c   :  { %v9210_v57 = vand.u32 4294901760, %v9164_v48  ;;  %v9165_v3 = vld.sshfl [vmem:[#allocation1 + $0x8] sm:$0xff pattern:$0x73625140] }
 0xb0d   :  { %v17535_v16 = vand.u32 4294901760, %v9165_v3 }
 0xb0e   :  { %9316 = vmatmul.f32.vlgmr.msrb.gmra.mxu1 %v9210_v57  ;;  %v9211_v41 = vsub.f32 %v9164_v48, %v9210_v57 }
 0xb0f   :  { %9716 = vmatpush.msrb.mxu1 %v17253_v55  ;;  %v17539_v58 = vsub.f32 %v9165_v3, %v17535_v16  ;;  %v9079_v3 = vld [vmem:[%s19145_s21 + $0x120] sm:$0xff] }
 0xb10   :  { %9370 = vmatmul.f32.vlgmr.msra.gmra.mxu2 %v9211_v41  ;;  %v9212_v22 = vand.u32 4294901760, %v9211_v41 }
 0xb11   :  { %9718 = vmatpush.msrb.mxu1 %v17267_v1  ;;  %9757 = vmatpush.msra.mxu2 %v19515_v37  ;;  %v9553_v51 = vand.u32 4294901760, %v17539_v58  ;;  %v9078_v37 = vld [vmem:[%s19145_s21 + $0x118] sm:$0xff] }
 0xb12   :  { %v9042_v2 = vld [vmem:[#allocation3 + $0x8] sm:$0x3f]  ;;  %9409 = vmatmul.f32.vlgmr.msra.gmra.mxu3 %v9212_v22  ;;  %v9213_v21 = vsub.f32 %v9211_v41, %v9212_v22 }
 0xb13   :  { %9163 = vst [vmem:[#allocation1 + $0x20] ss:$4 sm:$0xff] %v9042_v2  ;;  %9720 = vmatpush.msrb.mxu1 %v17280_v23  ;;  %9761 = vmatpush.msra.mxu2 %v9568_v63  ;;  %v9554_v39 = vsub.f32 %v17539_v58, %v9553_v51  ;;  %v17744_v2 = vand.u32 4294901760, %v9079_v3 }
 0xb14   :  { %9824 = vmatpush.msra.mxu3 %v17253_v55  ;;  %v9214_v25 = vand.u32 4294901760, %v9213_v21  ;;  %v19516_v55 = vand.u32 4294901760, %v17334_v49 }
 0xb15   :  { %9722 = vmatpush.msrb.mxu1 %v17299_v19  ;;  %9765 = vmatpush.msra.mxu2 %v9574_v18  ;;  %v9555_v31 = vand.u32 4294901760, %v9554_v39  ;;  %v9086_v18 = vld [vmem:[%s19145_s21 + $0x158] sm:$0xff] }
 0xb16   :  { %9826 = vmatpush.msra.mxu3 %v17267_v1  ;;  %9215 = vmatmul.f32.vlgmr.msrb.gmra.mxu0 %v9214_v25  ;;  %v9090_v1 = vld [vmem:[%s19145_s21 + $0x178] sm:$0xff] }
 0xb17   :  { %9515 = vmatmul.f32.vlgmr.msra.gmra.mxu1 %v9210_v57  ;;  %9663 = vmatpush.msrb.mxu0 %v17265_v46 }
 0xb18   :  { %9724 = vmatpush.msrb.mxu1 %v17316_v59  ;;  %9769 = vmatpush.msra.mxu2 %v9580_v35 }
 0xb19   :  { %9828 = vmatpush.msra.mxu3 %v17280_v23  ;;  %9556 = vmatmul.f32.vlgmr.msrb.gmra.mxu2 %v9555_v31  ;;  %v17579_v23 = vand.u32 4294901760, %v9090_v1 }
 0xb1a   :  { %9666 = vmatpush.msrb.mxu0 %v17283_v30  ;;  %9726 = vmatpush.msrb.mxu1 %v17331_v47  ;;  %v9089_v30 = vld [vmem:[%s19145_s21 + $0x170] sm:$0xff] }
 0xb1b   :  { %9773 = vmatpush.msra.mxu2 %v19516_v55  ;;  %9830 = vmatpush.msra.mxu3 %v17299_v19  ;;  %v17588_v46 = vand.u32 4294901760, %v9089_v30  ;;  %v17599_v63 = vsub.f32 %v9090_v1, %v17579_v23  ;;  %v9076_v55 = vld [vmem:[%s19145_s21 + $0x108] sm:$0xff] }
 0xb1c   :  { %9657 = vmatmul.f32.vlgmr.msrb.gmra.mxu3 %v17535_v16  ;;  %9669 = vmatpush.msrb.mxu0 %v17302_v9  ;;  %v9088_v9 = vld [vmem:[%s19145_s21 + $0x168] sm:$0xff] }
 0xb1d   :  { %9728 = vmatpush.msrb.mxu1 %v17348_v6  ;;  %9777 = vmatpush.msra.mxu2 %v9592_v11  ;;  %v17601_v19 = vand.u32 4294901760, %v9088_v9  ;;  %v9084_v11 = vld [vmem:[%s19145_s21 + $0x148] sm:$0xff] }
 0xb1e   :  { %9832 = vmatpush.msra.mxu3 %v17316_v59  ;;  %9672 = vmatpush.msrb.mxu0 %v17320_v60  ;;  %v9087_v59 = vld [vmem:[%s19145_s21 + $0x160] sm:$0xff]  ;;  %v17612_v60 = vsub.f32 %v9089_v30, %v17588_v46 }
 0xb1f   :  { %9730 = vmatpush.msrb.mxu1 %v17368_v54  ;;  %9781 = vmatpush.msra.mxu2 %v9598_v13  ;;  %v17623_v35 = vsub.f32 %v9088_v9, %v17601_v19  ;;  %v17772_v9 = vsub.f32 %v9079_v3, %v17744_v2 }
 0xb20   :  { %9834 = vmatpush.msra.mxu3 %v17331_v47  ;;  %9478 = vmatmul.f32.vlgmr.msra.gmra.mxu0 %v9210_v57  ;;  %v17614_v47 = vand.u32 4294901760, %v9087_v59 }
 0xb21   :  { %9675 = vmatpush.msrb.mxu0 %v17334_v49  ;;  %9732 = vmatpush.msrb.mxu1 %v17386_v40  ;;  %v19229_v49 = vand.u32 4294901760, %v17599_v63 }
 0xb22   :  { %9785 = vmatpush.msra.mxu2 %v9604_v24  ;;  %9836 = vmatpush.msra.mxu3 %v17348_v6  ;;  %v17625_v6 = vand.u32 4294901760, %v9086_v18  ;;  %v17659_v24 = vand.u32 4294901760, %v9084_v11 }
 0xb23   :  { %9678 = vmatpush.msrb.mxu0 %v17351_v44  ;;  %9734 = vmatpush.msrb.mxu1 %v17401_v36  ;;  %v9085_v44 = vld [vmem:[%s19145_s21 + $0x150] sm:$0xff] }
 0xb24   :  { %9789 = vmatpush.msra.mxu2 %v9610_v52  ;;  %9838 = vmatpush.msra.mxu3 %v17368_v54  ;;  %v19227_v54 = vand.u32 4294901760, %v17612_v60  ;;  %v17644_v13 = vand.u32 4294901760, %v9085_v44  ;;  %v17688_v4 = vsub.f32 %v9084_v11, %v17659_v24 }
 0xb25   :  { %9681 = vmatpush.msrb.mxu0 %v17371_v42  ;;  %9736 = vmatpush.msrb.mxu1 %v17417_v5  ;;  %v17640_v42 = vsub.f32 %v9087_v59, %v17614_v47 }
 0xb26   :  { %9793 = vmatpush.msra.mxu2 %v9616_v14  ;;  %9840 = vmatpush.msra.mxu3 %v17386_v40  ;;  %v9083_v40 = vld [vmem:[%s19145_s21 + $0x140] sm:$0xff]  ;;  %v9910_v52 = vsub.f32 %v17612_v60, %v19227_v54  ;;  %v19221_v57 = vand.u32 4294901760, %v17688_v4 }
 0xb27   :  { %9684 = vmatpush.msrb.mxu0 %v17392_v27  ;;  %9738 = vmatpush.msrb.mxu1 %v17439_v12  ;;  %v9904_v27 = vsub.f32 %v17599_v63, %v19229_v49  ;;  %v17670_v14 = vand.u32 4294901760, %v9083_v40 }
 0xb28   :  { %9797 = vmatpush.msra.mxu2 %v9622_v45  ;;  %9842 = vmatpush.msra.mxu3 %v17401_v36  ;;  %v19226_v36 = vand.u32 4294901760, %v17623_v35  ;;  %v9082_v45 = vld [vmem:[%s19145_s21 + $0x138] sm:$0xff]  ;;  %v9940_v39 = vsub.f32 %v17688_v4, %v19221_v57 }
 0xb29   :  { %9687 = vmatpush.msrb.mxu0 %v17404_v33  ;;  %9740 = vmatpush.msrb.mxu1 %v17456_v28  ;;  %v17657_v33 = vsub.f32 %v9086_v18, %v17625_v6  ;;  %v17704_v15 = vsub.f32 %v9083_v40, %v17670_v14  ;;  %v9075_v18 = vld [vmem:[%s19145_s21 + $0x100] sm:$0xff] }
 0xb2a   :  { %9801 = vmatpush.msra.mxu2 %v9628_v20  ;;  %9844 = vmatpush.msra.mxu3 %v17417_v5  ;;  %v19225_v5 = vand.u32 4294901760, %v17640_v42  ;;  %v9916_v20 = vsub.f32 %v17623_v35, %v19226_v36  ;;  %v9941_v59 = vand.u32 4294901760, %v9940_v39  ;;  %v9105_v39 = vld [vmem:[%s19145_s21 + $0x1f0] sm:$0xff] }
 0xb2b   :  { %9690 = vmatpush.msrb.mxu0 %v17420_v62  ;;  %9742 = vmatpush.msrb.mxu1 %v17472_v53  ;;  %v17678_v62 = vsub.f32 %v9085_v44, %v17644_v13  ;;  %v19220_v22 = vand.u32 4294901760, %v17704_v15 }
 0xb2c   :  { %9805 = vmatpush.msra.mxu2 %v9634_v50  ;;  %9846 = vmatpush.msra.mxu3 %v17439_v12  ;;  %v9905_v12 = vand.u32 4294901760, %v9904_v27  ;;  %v19224_v50 = vand.u32 4294901760, %v17657_v33  ;;  %v9922_v26 = vsub.f32 %v17640_v42, %v19225_v5  ;;  %v9917_v43 = vand.u32 4294901760, %v9916_v20 }
 0xb2d   :  { %9693 = vmatpush.msrb.mxu0 %v17442_v7  ;;  %9744 = vmatpush.msrb.mxu1 %v17486_v32  ;;  %v9081_v7 = vld [vmem:[%s19145_s21 + $0x130] sm:$0xff]  ;;  %v9946_v31 = vsub.f32 %v17704_v15, %v19220_v22 }
 0xb2e   :  { %9809 = vmatpush.msra.mxu2 %v9640_v17  ;;  %9848 = vmatpush.msra.mxu3 %v17456_v28  ;;  %v17695_v17 = vand.u32 4294901760, %v9082_v45  ;;  %v9911_v28 = vand.u32 4294901760, %v9910_v52  ;;  %v9928_v48 = vsub.f32 %v17657_v33, %v19224_v50  ;;  %v19215_v52 = vand.u32 4294901760, %v17772_v9 }
 0xb2f   :  { %9696 = vmatpush.msrb.mxu0 %v17463_v8  ;;  %9746 = vmatpush.msrb.mxu1 %v17509_v10  ;;  %v9080_v8 = vld [vmem:[%s19145_s21 + $0x128] sm:$0xff]  ;;  %v9947_v27 = vand.u32 4294901760, %v9946_v31 }
 0xb30   :  { %9813 = vmatpush.msra.mxu2 %v9646_v0  ;;  %9850 = vmatpush.msra.mxu3 %v17472_v53  ;;  %v19222_v0 = vand.u32 4294901760, %v17678_v62  ;;  %v17713_v53 = vand.u32 4294901760, %v9081_v7  ;;  %v17729_v41 = vand.u32 4294901760, %v9080_v8  ;;  %v9929_v21 = vand.u32 4294901760, %v9928_v48 }
 0xb31   :  { %9750 = vmatmul.f32.vlgmr.msrb.gmra.mxu1 %v9553_v51  ;;  %9699 = vmatpush.msrb.mxu0 %v17475_v56  ;;  %v17727_v56 = vsub.f32 %v9082_v45, %v17695_v17 }
 0xb32   :  { %9906 = vmatpush.msra.mxu1 %v9905_v12  ;;  %9817 = vmatpush.msra.mxu2 %v9652_v61  ;;  %v9923_v61 = vand.u32 4294901760, %v9922_v26  ;;  %v17742_v51 = vsub.f32 %v9081_v7, %v17713_v53  ;;  %v17757_v25 = vsub.f32 %v9080_v8, %v17729_v41  ;;  %v17801_v12 = vand.u32 4294901760, %v9075_v18 }
 0xb33   :  { %9852 = vmatpush.msra.mxu3 %v17486_v32  ;;  %9819 = vmatmul.f32.vlgmr.msra.gmra.mxu2 %v17535_v16  ;;  %v9934_v32 = vsub.f32 %v17678_v62, %v19222_v0 }
 0xb34   :  { %9912 = vmatpush.msra.mxu1 %v9911_v28  ;;  %10004 = vmatpush.msrb.mxu2 %v17599_v63  ;;  %v19218_v30 = vand.u32 4294901760, %v17742_v51  ;;  %v19216_v11 = vand.u32 4294901760, %v17757_v25  ;;  %v17821_v3 = vsub.f32 %v9075_v18, %v17801_v12 }
 0xb35   :  { %9702 = vmatpush.msrb.mxu0 %v17489_v38  ;;  %9854 = vmatpush.msra.mxu3 %v17509_v10  ;;  %v9077_v38 = vld [vmem:[%s19145_s21 + $0x110] sm:$0xff]  ;;  %v19219_v10 = vand.u32 4294901760, %v17727_v56  ;;  %v9935_v1 = vand.u32 4294901760, %v9934_v32 }
 0xb36   :  { %9856 = vmatmul.f32.vlgmr.msra.gmra.mxu3 %v17535_v16  ;;  %9918 = vmatpush.msra.mxu1 %v9917_v43  ;;  %v17759_v16 = vand.u32 4294901760, %v9078_v37  ;;  %v9964_v7 = vsub.f32 %v17757_v25, %v19216_v11  ;;  %v9970_v43 = vsub.f32 %v17772_v9, %v19215_v52  ;;  %v9099_v11 = vld [vmem:[%s19145_s21 + $0x1c0] sm:$0xff] }
 0xb37   :  { %10007 = vmatpush.msrb.mxu2 %v17612_v60  ;;  %10057 = vmatpush.msrb.mxu3 %v17579_v23  ;;  %v9952_v44 = vsub.f32 %v17727_v56, %v19219_v10  ;;  %v9098_v10 = vld [vmem:[%s19145_s21 + $0x1b8] sm:$0xff]  ;;  %v17939_v57 = vand.u32 4294901760, %v9099_v11 }
 0xb38   :  { %9705 = vmatpush.msrb.mxu0 %v17512_v29  ;;  %9924 = vmatpush.msra.mxu1 %v9923_v61  ;;  %v17774_v29 = vand.u32 4294901760, %v9077_v38  ;;  %v17787_v40 = vsub.f32 %v9078_v37, %v17759_v16  ;;  %v9106_v61 = vld [vmem:[%s19145_s21 + $0x1f8] sm:$0xff]  ;;  %v9965_v37 = vand.u32 4294901760, %v9964_v7  ;;  %v17954_v5 = vand.u32 4294901760, %v9098_v10 }
 0xb39   :  { %10010 = vmatpush.msrb.mxu2 %v17623_v35  ;;  %10059 = vmatpush.msrb.mxu3 %v17588_v46  ;;  %v9953_v20 = vand.u32 4294901760, %v9952_v44  ;;  %v17851_v44 = vand.u32 4294901760, %v9105_v39 }
 0xb3a   :  { %9708 = vmatpush.msrb.mxu0 %v17522_v34  ;;  %9930 = vmatpush.msra.mxu1 %v9929_v21  ;;  %v17789_v34 = vand.u32 4294901760, %v9076_v55  ;;  %v17799_v45 = vsub.f32 %v9077_v38, %v17774_v29  ;;  %v19214_v28 = vand.u32 4294901760, %v17787_v40  ;;  %v9971_v38 = vand.u32 4294901760, %v9970_v43  ;;  %v9103_v43 = vld [vmem:[%s19145_s21 + $0x1e0] sm:$0xff] }
 0xb3b   :  { %9711 = vmatmul.f32.vlgmr.msrb.gmra.mxu0 %v17539_v58  ;;  %10013 = vmatpush.msrb.mxu2 %v17640_v42  ;;  %v9958_v58 = vsub.f32 %v17742_v51, %v19218_v30 }
 0xb3c   :  { %9861 = vmatpush.msra.mxu0 %v17579_v23  ;;  %10061 = vmatpush.msrb.mxu3 %v17601_v19  ;;  %v17811_v26 = vsub.f32 %v9076_v55, %v17789_v34  ;;  %v19213_v48 = vand.u32 4294901760, %v17799_v45  ;;  %v9976_v32 = vsub.f32 %v17787_v40, %v19214_v28  ;;  %v19211_v55 = vand.u32 4294901760, %v17821_v3 }
 0xb3d   :  { %9936 = vmatpush.msra.mxu1 %v9935_v1  ;;  %10016 = vmatpush.msrb.mxu2 %v17657_v33  ;;  %v9959_v8 = vand.u32 4294901760, %v9958_v58  ;;  %v17843_v1 = vand.u32 4294901760, %v9106_v61  ;;  %v9166_v58 = vld.sshfl [vmem:[#allocation1 + $0x10] sm:$0xff pattern:$0x73625140] }
 0xb3e   :  { %9863 = vmatpush.msra.mxu0 %v17588_v46  ;;  %10063 = vmatpush.msrb.mxu3 %v17614_v47  ;;  %v19212_v21 = vand.u32 4294901760, %v17811_v26  ;;  %v9982_v31 = vsub.f32 %v17799_v45, %v19213_v48  ;;  %v9994_v7 = vsub.f32 %v17821_v3, %v19211_v55  ;;  %v17883_v55 = vand.u32 4294901760, %v9103_v43 }
 0xb3f   :  { %9942 = vmatpush.msra.mxu1 %v9941_v59  ;;  %10019 = vmatpush.msrb.mxu2 %v17678_v62  ;;  %v9977_v59 = vand.u32 4294901760, %v9976_v32  ;;  %v9102_v32 = vld [vmem:[%s19145_s21 + $0x1d8] sm:$0xff] }
 0xb40   :  { %9865 = vmatpush.msra.mxu0 %v17601_v19  ;;  %10065 = vmatpush.msrb.mxu3 %v17625_v6  ;;  %v9988_v18 = vsub.f32 %v17811_v26, %v19212_v21  ;;  %v9101_v21 = vld [vmem:[%s19145_s21 + $0x1d0] sm:$0xff]  ;;  %v17890_v48 = vand.u32 4294901760, %v9102_v32 }
 0xb41   :  { %9948 = vmatpush.msra.mxu1 %v9947_v27  ;;  %10022 = vmatpush.msrb.mxu2 %v17688_v4  ;;  %v9104_v27 = vld [vmem:[%s19145_s21 + $0x1e8] sm:$0xff]  ;;  %v17900_v52 = vand.u32 4294901760, %v9101_v21 }
 0xb42   :  { %9867 = vmatpush.msra.mxu0 %v17614_v47  ;;  %10067 = vmatpush.msrb.mxu3 %v17644_v13 }
 0xb43   :  { %9954 = vmatpush.msra.mxu1 %v9953_v20  ;;  %10025 = vmatpush.msrb.mxu2 %v17704_v15  ;;  %v9983_v20 = vand.u32 4294901760, %v9982_v31  ;;  %v17879_v31 = vsub.f32 %v9105_v39, %v17851_v44  ;;  %v17931_v30 = vsub.f32 %v9101_v21, %v17900_v52  ;;  %v9097_v21 = vld [vmem:[%s19145_s21 + $0x1b0] sm:$0xff] }
 0xb44   :  { %9869 = vmatpush.msra.mxu0 %v17625_v6  ;;  %10069 = vmatpush.msrb.mxu3 %v17659_v24  ;;  %v17969_v49 = vand.u32 4294901760, %v9097_v21 }
 0xb45   :  { %9960 = vmatpush.msra.mxu1 %v9959_v8  ;;  %10028 = vmatpush.msrb.mxu2 %v17727_v56  ;;  %v17863_v8 = vsub.f32 %v9106_v61, %v17843_v1  ;;  %v17876_v61 = vand.u32 4294901760, %v9166_v58  ;;  %19517 = vst [vmem:[#allocation41_spill] sm:$0xff] %v17931_v30  ;;  %v19232_v54 = vand.u32 4294901760, %v17931_v30 }
 0xb46   :  { %9871 = vmatpush.msra.mxu0 %v17644_v13  ;;  %10071 = vmatpush.msrb.mxu3 %v17670_v14 }
 0xb47   :  { %9966 = vmatpush.msra.mxu1 %v9965_v37  ;;  %10031 = vmatpush.msrb.mxu2 %v17742_v51  ;;  %v17870_v37 = vand.u32 4294901760, %v9104_v27  ;;  %v9893_v28 = vsub.f32 %v9166_v58, %v17876_v61 }
 0xb48   :  { %9873 = vmatpush.msra.mxu0 %v17659_v24  ;;  %10073 = vmatpush.msrb.mxu3 %v17695_v17 }
 0xb49   :  { %9972 = vmatpush.msra.mxu1 %v9971_v38  ;;  %10034 = vmatpush.msrb.mxu2 %v17757_v25  ;;  %v9989_v38 = vand.u32 4294901760, %v9988_v18  ;;  %v19217_v18 = vand.u32 4294901760, %v17863_v8  ;;  %v17895_v39 = vsub.f32 %v9104_v27, %v17870_v37  ;;  %v17908_v27 = vsub.f32 %v9103_v43, %v17883_v55 }
 0xb4a   :  { %9875 = vmatpush.msra.mxu0 %v17670_v14  ;;  %10075 = vmatpush.msrb.mxu3 %v17713_v53 }
 0xb4b   :  { %9978 = vmatpush.msra.mxu1 %v9977_v59  ;;  %10037 = vmatpush.msrb.mxu2 %v17772_v9  ;;  %v9995_v59 = vand.u32 4294901760, %v9994_v7  ;;  %v9100_v7 = vld [vmem:[%s19145_s21 + $0x1c8] sm:$0xff]  ;;  %v10245_v58 = vsub.f32 %v17863_v8, %v19217_v18  ;;  %v19228_v43 = vand.u32 4294901760, %v17895_v39  ;;  %v9894_v18 = vand.u32 4294901760, %v9893_v28 }
 0xb4c   :  { %9877 = vmatpush.msra.mxu0 %v17695_v17  ;;  %10077 = vmatpush.msrb.mxu3 %v17729_v41  ;;  %v19230_v22 = vand.u32 4294901760, %v17908_v27 }
 0xb4d   :  { %9984 = vmatpush.msra.mxu1 %v9983_v20  ;;  %10040 = vmatpush.msrb.mxu2 %v17787_v40  ;;  %v19223_v20 = vand.u32 4294901760, %v17879_v31  ;;  %v10246_v0 = vand.u32 4294901760, %v10245_v58  ;;  %v9895_v36 = vsub.f32 %v9893_v28, %v9894_v18 }
 0xb4e   :  { %9879 = vmatpush.msra.mxu0 %v17713_v53  ;;  %10079 = vmatpush.msrb.mxu3 %v17744_v2 }
 0xb4f   :  { %9990 = vmatpush.msra.mxu1 %v9989_v38  ;;  %10043 = vmatpush.msrb.mxu2 %v17799_v45  ;;  %v17915_v38 = vsub.f32 %v9102_v32, %v17890_v48  ;;  %v10251_v32 = vsub.f32 %v17879_v31, %v19223_v20 }
 0xb50   :  { %9881 = vmatpush.msra.mxu0 %v17729_v41  ;;  %10081 = vmatpush.msrb.mxu3 %v17759_v16 }
 0xb51   :  { %9996 = vmatpush.msra.mxu1 %v9995_v59  ;;  %10046 = vmatpush.msrb.mxu2 %v17811_v26  ;;  %v17923_v59 = vand.u32 4294901760, %v9100_v7  ;;  %v19231_v20 = vand.u32 4294901760, %v17915_v38  ;;  %v10252_v58 = vand.u32 4294901760, %v10251_v32  ;;  %v17982_v32 = vsub.f32 %v9098_v10, %v17954_v5 }
 0xb52   :  { %9883 = vmatpush.msra.mxu0 %v17744_v2  ;;  %10083 = vmatpush.msrb.mxu3 %v17774_v29 }
 0xb53   :  { %9998 = vmatmul.f32.vlgmr.msra.gmra.mxu1 %v17876_v61  ;;  %10049 = vmatpush.msrb.mxu2 %v17821_v3  ;;  %v17952_v50 = vsub.f32 %v9100_v7, %v17923_v59  ;;  %v10263_v7 = vsub.f32 %v17908_v27, %v19230_v22  ;;  %19518 = vst [vmem:[#allocation15_spill] sm:$0xff] %v17982_v32 }
 0xb54   :  { %10165 = vmatpush.msrb.mxu1 %v17579_v23  ;;  %9885 = vmatpush.msra.mxu0 %v17759_v16  ;;  %v10257_v23 = vsub.f32 %v17895_v39, %v19228_v43  ;;  %v17967_v43 = vsub.f32 %v9099_v11, %v17939_v57  ;;  %v17997_v11 = vsub.f32 %v9097_v21, %v17969_v49 }
 0xb55   :  { %10085 = vmatpush.msrb.mxu3 %v17789_v34  ;;  %10052 = vmatmul.f32.vlgmr.msrb.gmra.mxu2 %v9893_v28  ;;  %v10269_v28 = vsub.f32 %v17915_v38, %v19231_v20  ;;  %v10275_v20 = vsub.f32 %v17931_v30, %v19232_v54  ;;  %v10264_v10 = vand.u32 4294901760, %v10263_v7  ;;  %v9093_v54 = vld [vmem:[%s19145_s21 + $0x190] sm:$0xff]  ;;  %v19519_v30 = vand.u32 4294901760, %v17599_v63 }
 0xb56   :  { %10167 = vmatpush.msrb.mxu1 %v17588_v46  ;;  %10202 = vmatpush.msra.mxu2 %v17843_v1  ;;  %v9096_v46 = vld [vmem:[%s19145_s21 + $0x1a8] sm:$0xff]  ;;  %v19521_v63 = vand.u32 4294901760, %v17612_v60  ;;  %v18027_v21 = vand.u32 4294901760, %v9093_v54  ;;  %v19523_v60 = vand.u32 4294901760, %v17623_v35 }
 0xb57   :  { %9887 = vmatpush.msra.mxu0 %v17774_v29  ;;  %10087 = vmatpush.msrb.mxu3 %v17801_v12  ;;  %v17984_v22 = vand.u32 4294901760, %v9096_v46 }
 0xb58   :  { %10091 = vmatmul.f32.vlgmr.msrb.gmra.mxu3 %v9894_v18  ;;  %10169 = vmatpush.msrb.mxu1 %v17601_v19  ;;  %v9095_v19 = vld [vmem:[%s19145_s21 + $0x1a0] sm:$0xff]  ;;  %v10258_v18 = vand.u32 4294901760, %v10257_v23 }
 0xb59   :  { %10204 = vmatpush.msra.mxu2 %v17851_v44  ;;  %10247 = vmatpush.msra.mxu3 %v10246_v0  ;;  %v9896_v0 = vand.u32 4294901760, %v9895_v36  ;;  %v10270_v36 = vand.u32 4294901760, %v10269_v28  ;;  %v18012_v23 = vsub.f32 %v9096_v46, %v17984_v22  ;;  %v10276_v28 = vand.u32 4294901760, %v10275_v20 }
 0xb5a   :  { %9889 = vmatpush.msra.mxu0 %v17789_v34  ;;  %10171 = vmatpush.msrb.mxu1 %v17614_v47  ;;  %v9094_v47 = vld [vmem:[%s19145_s21 + $0x198] sm:$0xff] }
 0xb5b   :  { %10206 = vmatpush.msra.mxu2 %v17870_v37  ;;  %10253 = vmatpush.msra.mxu3 %v10252_v58  ;;  %v17999_v58 = vand.u32 4294901760, %v9095_v19 }
 0xb5c   :  { %9891 = vmatpush.msra.mxu0 %v17801_v12  ;;  %10173 = vmatpush.msrb.mxu1 %v17625_v6  ;;  %v19520_v6 = vand.u32 4294901760, %v17952_v50 }
 0xb5d   :  { %9897 = vmatmul.f32.vlgmr.msra.gmra.mxu0 %v9896_v0  ;;  %10208 = vmatpush.msra.mxu2 %v17883_v55  ;;  %v18014_v0 = vand.u32 4294901760, %v9094_v47  ;;  %v18025_v46 = vsub.f32 %v9095_v19, %v17999_v58 }
 0xb5e   :  { %10098 = vmatpush.msrb.mxu0 %v19519_v30  ;;  %10259 = vmatpush.msra.mxu3 %v10258_v18  ;;  %v10281_v7 = vsub.f32 %v17952_v50, %v19520_v6  ;;  %v19522_v30 = vand.u32 4294901760, %v17967_v43  ;;  %v9167_v6 = vld.sshfl [vmem:[#allocation1 + $0x18] sm:$0xff pattern:$0x73625140] }
 0xb5f   :  { %10175 = vmatpush.msrb.mxu1 %v17644_v13  ;;  %10210 = vmatpush.msra.mxu2 %v17890_v48  ;;  %v9092_v13 = vld [vmem:[%s19145_s21 + $0x188] sm:$0xff] }
 0xb60   :  { %10102 = vmatpush.msrb.mxu0 %v19521_v63  ;;  %10265 = vmatpush.msra.mxu3 %v10264_v10  ;;  %v10287_v18 = vsub.f32 %v17967_v43, %v19522_v30  ;;  %v10282_v20 = vand.u32 4294901760, %v10281_v7  ;;  %v19524_v10 = vand.u32 4294901760, %v17982_v32  ;;  %v18041_v30 = vsub.f32 %v9094_v47, %v18014_v0 }
 0xb61   :  { %10177 = vmatpush.msrb.mxu1 %v17659_v24  ;;  %10212 = vmatpush.msra.mxu2 %v17900_v52  ;;  %v9091_v24 = vld [vmem:[%s19145_s21 + $0x180] sm:$0xff]  ;;  %v18048_v35 = vand.u32 4294901760, %v9092_v13  ;;  %v18057_v63 = vsub.f32 %v9093_v54, %v18027_v21 }
 0xb62   :  { %10106 = vmatpush.msrb.mxu0 %v19523_v60  ;;  %10271 = vmatpush.msra.mxu3 %v10270_v36  ;;  %v10293_v19 = vsub.f32 %v17982_v32, %v19524_v10  ;;  %v19525_v36 = vand.u32 4294901760, %v17640_v42  ;;  %v10288_v7 = vand.u32 4294901760, %v10287_v18  ;;  %v19526_v60 = vand.u32 4294901760, %v17997_v11 }
 0xb63   :  { %10179 = vmatpush.msrb.mxu1 %v17670_v14  ;;  %10214 = vmatpush.msra.mxu2 %v17923_v59  ;;  %v10310_v10 = vand.u32 4294901760, %v18025_v46  ;;  %v18061_v14 = vand.u32 4294901760, %v9091_v24  ;;  %v18063_v32 = vand.u32 4294901760, %v9167_v6  ;;  %v19527_v42 = vand.u32 4294901760, %v17657_v33 }
 0xb64   :  { %10110 = vmatpush.msrb.mxu0 %v19525_v36  ;;  %10277 = vmatpush.msra.mxu3 %v10276_v28  ;;  %v10299_v47 = vsub.f32 %v17997_v11, %v19526_v60  ;;  %v10294_v28 = vand.u32 4294901760, %v10293_v19  ;;  %v19528_v18 = vand.u32 4294901760, %v18012_v23  ;;  %v10316_v54 = vand.u32 4294901760, %v18041_v30 }
 0xb65   :  { %10181 = vmatpush.msrb.mxu1 %v17695_v17  ;;  %10216 = vmatpush.msra.mxu2 %v17939_v57  ;;  %v18074_v17 = vsub.f32 %v9092_v13, %v18048_v35  ;;  %v19529_v60 = vand.u32 4294901760, %v17678_v62  ;;  %v10322_v19 = vand.u32 4294901760, %v18057_v63  ;;  %v18088_v13 = vsub.f32 %v9091_v24, %v18061_v14 }
 0xb66   :  { %10114 = vmatpush.msrb.mxu0 %v19527_v42  ;;  %10283 = vmatpush.msra.mxu3 %v10282_v20  ;;  %v10305_v36 = vsub.f32 %v18012_v23, %v19528_v18  ;;  %v10300_v33 = vand.u32 4294901760, %v10299_v47  ;;  %v10311_v20 = vsub.f32 %v18025_v46, %v10310_v10  ;;  %v19530_v62 = vand.u32 4294901760, %v17688_v4 }
 0xb67   :  { %10183 = vmatpush.msrb.mxu1 %v17713_v53  ;;  %10218 = vmatpush.msra.mxu2 %v17954_v5  ;;  %v18085_v53 = vsub.f32 %v9167_v6, %v18063_v32  ;;  %v10317_v47 = vsub.f32 %v18041_v30, %v10316_v54  ;;  %v19531_v6 = vand.u32 4294901760, %v17704_v15  ;;  %v10323_v4 = vsub.f32 %v18057_v63, %v10322_v19 }
 0xb68   :  { %10118 = vmatpush.msrb.mxu0 %v19529_v60  ;;  %10289 = vmatpush.msra.mxu3 %v10288_v7  ;;  %v10306_v7 = vand.u32 4294901760, %v10305_v36  ;;  %v10312_v24 = vand.u32 4294901760, %v10311_v20  ;;  %v19534_v60 = vand.u32 4294901760, %v17757_v25  ;;  %v19536_v25 = vand.u32 4294901760, %v17787_v40 }
 0xb69   :  { %10185 = vmatpush.msrb.mxu1 %v17729_v41  ;;  %10220 = vmatpush.msra.mxu2 %v17969_v49  ;;  %v10328_v41 = vand.u32 4294901760, %v18074_v17  ;;  %v10235_v42 = vand.u32 4294901760, %v18085_v53  ;;  %v10318_v15 = vand.u32 4294901760, %v10317_v47  ;;  %v10324_v36 = vand.u32 4294901760, %v10323_v4  ;;  %v9118_v4 = vld [vmem:[%s19145_s21 + $0x258] sm:$0xff] }
 0xb6a   :  { %10122 = vmatpush.msrb.mxu0 %v19530_v62  ;;  %10295 = vmatpush.msra.mxu3 %v10294_v28  ;;  %v19532_v28 = vand.u32 4294901760, %v17727_v56  ;;  %v19539_v62 = vand.u32 4294901760, %v17879_v31  ;;  %v19540_v40 = vand.u32 4294901760, %v17811_v26  ;;  %v19543_v47 = vand.u32 4294901760, %v17908_v27 }
 0xb6b   :  { %10187 = vmatpush.msrb.mxu1 %v17744_v2  ;;  %10222 = vmatpush.msra.mxu2 %v17984_v22  ;;  %v10334_v2 = vand.u32 4294901760, %v18088_v13  ;;  %v10329_v18 = vsub.f32 %v18074_v17, %v10328_v41  ;;  %v10236_v56 = vsub.f32 %v18085_v53, %v10235_v42  ;;  %v19544_v26 = vand.u32 4294901760, %v17915_v38 }
 0xb6c   :  { %10126 = vmatpush.msrb.mxu0 %v19531_v6  ;;  %10301 = vmatpush.msra.mxu3 %v10300_v33 }
 0xb6d   :  { %10189 = vmatpush.msrb.mxu1 %v17759_v16  ;;  %10224 = vmatpush.msra.mxu2 %v17999_v58  ;;  %v19533_v16 = vand.u32 4294901760, %v17742_v51  ;;  %v10330_v51 = vand.u32 4294901760, %v10329_v18  ;;  %v10237_v33 = vand.u32 4294901760, %v10236_v56 }
 0xb6e   :  { %10130 = vmatpush.msrb.mxu0 %v19532_v28  ;;  %10307 = vmatpush.msra.mxu3 %v10306_v7  ;;  %v19541_v7 = vand.u32 4294901760, %v17895_v39  ;;  %v19551_v28 = vand.u32 4294901760, %v17997_v11 }
 0xb6f   :  { %10191 = vmatpush.msrb.mxu1 %v17774_v29  ;;  %10226 = vmatpush.msra.mxu2 %v18014_v0  ;;  %v10335_v29 = vsub.f32 %v18088_v13, %v10334_v2 }
 0xb70   :  { %10134 = vmatpush.msrb.mxu0 %v19533_v16  ;;  %10313 = vmatpush.msra.mxu3 %v10312_v24  ;;  %v9117_v16 = vld [vmem:[%s19145_s21 + $0x250] sm:$0xff] }
 0xb71   :  { %10193 = vmatpush.msrb.mxu1 %v17789_v34  ;;  %10228 = vmatpush.msra.mxu2 %v18027_v21  ;;  %v19535_v34 = vand.u32 4294901760, %v17772_v9  ;;  %v10336_v20 = vand.u32 4294901760, %v10335_v29  ;;  %v19538_v9 = vand.u32 4294901760, %v17799_v45  ;;  %v19542_v45 = vand.u32 4294901760, %v17821_v3  ;;  %v9122_v3 = vld [vmem:[%s19145_s21 + $0x278] sm:$0xff] }
 0xb72   :  { %10138 = vmatpush.msrb.mxu0 %v19534_v60  ;;  %10319 = vmatpush.msra.mxu3 %v10318_v15  ;;  %v18242_v29 = vand.u32 4294901760, %v9117_v16  ;;  %v9115_v60 = vld [vmem:[%s19145_s21 + $0x240] sm:$0xff] }
 0xb73   :  { %10195 = vmatpush.msrb.mxu1 %v17801_v12  ;;  %10230 = vmatpush.msra.mxu2 %v18048_v35  ;;  %v19537_v12 = vand.u32 4294901760, %v17863_v8 }
 0xb74   :  { %10142 = vmatpush.msrb.mxu0 %v19535_v34  ;;  %10325 = vmatpush.msra.mxu3 %v10324_v36  ;;  %v19552_v36 = vand.u32 4294901760, %v18012_v23 }
 0xb75   :  { %10197 = vmatmul.f32.vlgmr.msrb.gmra.mxu1 %v17876_v61  ;;  %10232 = vmatpush.msra.mxu2 %v18061_v14 }
 0xb76   :  { %10398 = vmatpush.msra.mxu1 %v17843_v1  ;;  %10146 = vmatpush.msrb.mxu0 %v19536_v25 }
 0xb77   :  { %10331 = vmatpush.msra.mxu3 %v10330_v51  ;;  %10238 = vmatmul.f32.vlgmr.msra.gmra.mxu2 %v10237_v33  ;;  %v18267_v33 = vand.u32 4294901760, %v9115_v60 }
 0xb78   :  { %10400 = vmatpush.msra.mxu1 %v17851_v44  ;;  %10439 = vmatpush.msrb.mxu2 %v19537_v12 }
 0xb79   :  { %10150 = vmatpush.msrb.mxu0 %v19538_v9  ;;  %10337 = vmatpush.msra.mxu3 %v10336_v20  ;;  %v9114_v20 = vld [vmem:[%s19145_s21 + $0x238] sm:$0xff] }
 0xb7a   :  { %10339 = vmatmul.f32.vlgmr.msra.gmra.mxu3 %v18063_v32  ;;  %10402 = vmatpush.msra.mxu1 %v17870_v37 }
 0xb7b   :  { %10443 = vmatpush.msrb.mxu2 %v19539_v62  ;;  %10506 = vmatpush.msrb.mxu3 %v17843_v1  ;;  %v19545_v1 = vld [vmem:[#allocation41_spill] sm:$0xff]  ;;  %v18301_v62 = vsub.f32 %v9115_v60, %v18267_v33 }
 0xb7c   :  { %10154 = vmatpush.msrb.mxu0 %v19540_v40  ;;  %10404 = vmatpush.msra.mxu1 %v17883_v55  ;;  %v9112_v40 = vld [vmem:[%s19145_s21 + $0x228] sm:$0xff] }
 0xb7d   :  { %10447 = vmatpush.msrb.mxu2 %v19541_v7  ;;  %10508 = vmatpush.msrb.mxu3 %v17851_v44  ;;  %v19546_v44 = vand.u32 4294901760, %v19545_v1 }
 0xb7e   :  { %10158 = vmatpush.msrb.mxu0 %v19542_v45  ;;  %10406 = vmatpush.msra.mxu1 %v17890_v48 }
 0xb7f   :  { %10160 = vmatmul.f32.vlgmr.msrb.gmra.mxu0 %v17876_v61  ;;  %10451 = vmatpush.msrb.mxu2 %v19543_v47  ;;  %v19547_v61 = vand.u32 4294901760, %v17952_v50  ;;  %v18326_v47 = vand.u32 4294901760, %v9112_v40 }
 0xb80   :  { %10345 = vmatpush.msra.mxu0 %v17863_v8  ;;  %10510 = vmatpush.msrb.mxu3 %v17870_v37  ;;  %v9121_v8 = vld [vmem:[%s19145_s21 + $0x270] sm:$0xff]  ;;  %v18175_v37 = vand.u32 4294901760, %v9122_v3 }
 0xb81   :  { %10408 = vmatpush.msra.mxu1 %v17900_v52  ;;  %10455 = vmatpush.msrb.mxu2 %v19544_v26  ;;  %v19246_v26 = vand.u32 4294901760, %v18301_v62 }
 0xb82   :  { %10348 = vmatpush.msra.mxu0 %v17879_v31  ;;  %10512 = vmatpush.msrb.mxu3 %v17883_v55  ;;  %v9120_v55 = vld [vmem:[%s19145_s21 + $0x268] sm:$0xff]  ;;  %v18185_v31 = vand.u32 4294901760, %v9121_v8  ;;  %v18196_v6 = vsub.f32 %v9122_v3, %v18175_v37  ;;  %v9110_v3 = vld [vmem:[%s19145_s21 + $0x218] sm:$0xff] }
 0xb83   :  { %10410 = vmatpush.msra.mxu1 %v17923_v59  ;;  %10459 = vmatpush.msrb.mxu2 %v19546_v44 }
 0xb84   :  { %10351 = vmatpush.msra.mxu0 %v17895_v39  ;;  %10514 = vmatpush.msrb.mxu3 %v17890_v48  ;;  %v19548_v48 = vand.u32 4294901760, %v17967_v43  ;;  %v9119_v39 = vld [vmem:[%s19145_s21 + $0x260] sm:$0xff]  ;;  %v19255_v15 = vand.u32 4294901760, %v18196_v6 }
 0xb85   :  { %10412 = vmatpush.msra.mxu1 %v17939_v57  ;;  %10463 = vmatpush.msrb.mxu2 %v19547_v61 }
 0xb86   :  { %10354 = vmatpush.msra.mxu0 %v17908_v27  ;;  %10516 = vmatpush.msrb.mxu3 %v17900_v52  ;;  %v18198_v27 = vand.u32 4294901760, %v9120_v55  ;;  %v19549_v52 = vld [vmem:[#allocation15_spill] sm:$0xff] }
 0xb87   :  { %10414 = vmatpush.msra.mxu1 %v17954_v5  ;;  %10467 = vmatpush.msrb.mxu2 %v19548_v48  ;;  %v19550_v24 = vand.u32 4294901760, %v19549_v52  ;;  %v10628_v48 = vsub.f32 %v18301_v62, %v19246_v26 }
 0xb88   :  { %10357 = vmatpush.msra.mxu0 %v17915_v38  ;;  %10518 = vmatpush.msrb.mxu3 %v17923_v59  ;;  %v18209_v38 = vsub.f32 %v9121_v8, %v18185_v31  ;;  %v18211_v59 = vand.u32 4294901760, %v9119_v39  ;;  %v18220_v18 = vsub.f32 %v9120_v55, %v18198_v27  ;;  %v18354_v55 = vsub.f32 %v9112_v40, %v18326_v47 }
 0xb89   :  { %10416 = vmatpush.msra.mxu1 %v17969_v49  ;;  %10471 = vmatpush.msrb.mxu2 %v19550_v24 }
 0xb8a   :  { %10360 = vmatpush.msra.mxu0 %v19545_v1  ;;  %10520 = vmatpush.msrb.mxu3 %v17939_v57  ;;  %v18222_v57 = vand.u32 4294901760, %v9118_v4  ;;  %v18237_v56 = vsub.f32 %v9119_v39, %v18211_v59  ;;  %v9108_v39 = vld [vmem:[%s19145_s21 + $0x208] sm:$0xff] }
 0xb8b   :  { %10418 = vmatpush.msra.mxu1 %v17984_v22  ;;  %10475 = vmatpush.msrb.mxu2 %v19551_v28 }
 0xb8c   :  { %10363 = vmatpush.msra.mxu0 %v17952_v50  ;;  %10522 = vmatpush.msrb.mxu3 %v17954_v5  ;;  %v9116_v5 = vld [vmem:[%s19145_s21 + $0x248] sm:$0xff]  ;;  %v19253_v50 = vand.u32 4294901760, %v18209_v38  ;;  %v18254_v51 = vsub.f32 %v9118_v4, %v18222_v57  ;;  %v19251_v34 = vand.u32 4294901760, %v18237_v56 }
 0xb8d   :  { %10420 = vmatpush.msra.mxu1 %v17999_v58  ;;  %10479 = vmatpush.msrb.mxu2 %v19552_v36 }
 0xb8e   :  { %10366 = vmatpush.msra.mxu0 %v17967_v43  ;;  %10524 = vmatpush.msrb.mxu3 %v17969_v49  ;;  %v10586_v49 = vsub.f32 %v18196_v6, %v19255_v15  ;;  %v19252_v43 = vand.u32 4294901760, %v18220_v18  ;;  %v19250_v25 = vand.u32 4294901760, %v18254_v51  ;;  %v10604_v9 = vsub.f32 %v18237_v56, %v19251_v34 }
 0xb8f   :  { %10422 = vmatpush.msra.mxu1 %v18014_v0  ;;  %10483 = vmatpush.msrb.mxu2 %v10310_v10  ;;  %v18256_v10 = vand.u32 4294901760, %v9116_v5 }
 0xb90   :  { %10369 = vmatpush.msra.mxu0 %v19549_v52  ;;  %10526 = vmatpush.msrb.mxu3 %v17984_v22  ;;  %v10592_v22 = vsub.f32 %v18209_v38, %v19253_v50  ;;  %v10610_v7 = vsub.f32 %v18254_v51, %v19250_v25 }
 0xb91   :  { %10424 = vmatpush.msra.mxu1 %v18027_v21  ;;  %10487 = vmatpush.msrb.mxu2 %v10316_v54  ;;  %v10598_v54 = vsub.f32 %v18220_v18, %v19252_v43  ;;  %v18285_v12 = vsub.f32 %v9116_v5, %v18256_v10  ;;  %v19242_v5 = vand.u32 4294901760, %v18354_v55 }
 0xb92   :  { %10372 = vmatpush.msra.mxu0 %v17997_v11  ;;  %10528 = vmatpush.msrb.mxu3 %v17999_v58  ;;  %v18276_v11 = vsub.f32 %v9117_v16, %v18242_v29  ;;  %v10587_v58 = vand.u32 4294901760, %v10586_v49  ;;  %v10611_v8 = vand.u32 4294901760, %v10610_v7  ;;  %v9107_v16 = vld [vmem:[%s19145_s21 + $0x200] sm:$0xff]  ;;  %v10629_v49 = vand.u32 4294901760, %v10628_v48 }
 0xb93   :  { %10426 = vmatpush.msra.mxu1 %v18048_v35  ;;  %10491 = vmatpush.msrb.mxu2 %v10322_v19  ;;  %v9113_v19 = vld [vmem:[%s19145_s21 + $0x230] sm:$0xff]  ;;  %v19247_v45 = vand.u32 4294901760, %v18285_v12 }
 0xb94   :  { %10375 = vmatpush.msra.mxu0 %v18012_v23  ;;  %10530 = vmatpush.msrb.mxu3 %v18014_v0  ;;  %v18293_v23 = vand.u32 4294901760, %v9114_v20  ;;  %v10593_v0 = vand.u32 4294901760, %v10592_v22 }
 0xb95   :  { %10428 = vmatpush.msra.mxu1 %v18061_v14  ;;  %10495 = vmatpush.msrb.mxu2 %v10328_v41  ;;  %v10599_v41 = vand.u32 4294901760, %v10598_v54  ;;  %v10622_v61 = vsub.f32 %v18285_v12, %v19247_v45 }
 0xb96   :  { %10378 = vmatpush.msra.mxu0 %v18025_v46  ;;  %10532 = vmatpush.msrb.mxu3 %v18027_v21  ;;  %v19248_v21 = vand.u32 4294901760, %v18276_v11  ;;  %v18311_v46 = vand.u32 4294901760, %v9113_v19 }
 0xb97   :  { %10432 = vmatmul.f32.vlgmr.msra.gmra.mxu1 %v10235_v42  ;;  %10499 = vmatpush.msrb.mxu2 %v10334_v2  ;;  %v9111_v42 = vld [vmem:[%s19145_s21 + $0x220] sm:$0xff]  ;;  %v18324_v2 = vsub.f32 %v9114_v20, %v18293_v23  ;;  %v10623_v28 = vand.u32 4294901760, %v10622_v61  ;;  %v9137_v61 = vld [vmem:[%s19145_s21 + $0x2f0] sm:$0xff] }
 0xb98   :  { %10588 = vmatpush.msrb.mxu1 %v10587_v58  ;;  %10381 = vmatpush.msra.mxu0 %v18041_v30  ;;  %v10605_v30 = vand.u32 4294901760, %v10604_v9  ;;  %v18339_v1 = vsub.f32 %v9113_v19, %v18311_v46  ;;  %v18341_v44 = vand.u32 4294901760, %v9111_v42  ;;  %v18398_v58 = vand.u32 4294901760, %v9107_v16 }
 0xb99   :  { %10534 = vmatpush.msrb.mxu3 %v18048_v35  ;;  %10501 = vmatmul.f32.vlgmr.msrb.gmra.mxu2 %v18063_v32  ;;  %v10616_v35 = vsub.f32 %v18276_v11, %v19248_v21  ;;  %v10646_v19 = vsub.f32 %v18354_v55, %v19242_v5  ;;  %v9131_v5 = vld [vmem:[%s19145_s21 + $0x2c0] sm:$0xff] }
 0xb9a   :  { %10594 = vmatpush.msrb.mxu1 %v10593_v0  ;;  %10686 = vmatpush.msra.mxu2 %v18196_v6  ;;  %v19244_v24 = vand.u32 4294901760, %v18339_v1  ;;  %v18369_v4 = vsub.f32 %v9111_v42, %v18341_v44  ;;  %v18418_v42 = vsub.f32 %v9107_v16, %v18398_v58  ;;  %v18536_v45 = vand.u32 4294901760, %v9131_v5 }
 0xb9b   :  { %10384 = vmatpush.msra.mxu0 %v18057_v63  ;;  %10536 = vmatpush.msrb.mxu3 %v18061_v14  ;;  %v9109_v63 = vld [vmem:[%s19145_s21 + $0x210] sm:$0xff]  ;;  %v19245_v14 = vand.u32 4294901760, %v18324_v2  ;;  %v10617_v52 = vand.u32 4294901760, %v10616_v35 }
 0xb9c   :  { %10538 = vmatmul.f32.vlgmr.msrb.gmra.mxu3 %v18063_v32  ;;  %10600 = vmatpush.msrb.mxu1 %v10599_v41  ;;  %v18356_v32 = vand.u32 4294901760, %v9110_v3  ;;  %v19241_v22 = vand.u32 4294901760, %v18369_v4 }
 0xb9d   :  { %10689 = vmatpush.msra.mxu2 %v18209_v38  ;;  %10739 = vmatpush.msra.mxu3 %v18175_v37  ;;  %v10634_v36 = vsub.f32 %v18324_v2, %v19245_v14  ;;  %v9130_v14 = vld [vmem:[%s19145_s21 + $0x2b8] sm:$0xff] }
 0xb9e   :  { %10387 = vmatpush.msra.mxu0 %v18074_v17  ;;  %10606 = vmatpush.msrb.mxu1 %v10605_v30  ;;  %v18371_v17 = vand.u32 4294901760, %v9109_v63  ;;  %v18384_v60 = vsub.f32 %v9110_v3, %v18356_v32  ;;  %v10652_v41 = vsub.f32 %v18369_v4, %v19241_v22  ;;  %v9138_v30 = vld [vmem:[%s19145_s21 + $0x2f8] sm:$0xff]  ;;  %v10647_v3 = vand.u32 4294901760, %v10646_v19 }
 0xb9f   :  { %10692 = vmatpush.msra.mxu2 %v18220_v18  ;;  %10741 = vmatpush.msra.mxu3 %v18185_v31  ;;  %v10635_v54 = vand.u32 4294901760, %v10634_v36  ;;  %v18448_v36 = vand.u32 4294901760, %v9137_v61  ;;  %v18551_v34 = vand.u32 4294901760, %v9130_v14 }
 0xba0   :  { %10390 = vmatpush.msra.mxu0 %v18088_v13  ;;  %10612 = vmatpush.msrb.mxu1 %v10611_v8  ;;  %v18386_v13 = vand.u32 4294901760, %v9108_v39  ;;  %v18396_v20 = vsub.f32 %v9109_v63, %v18371_v17  ;;  %v19240_v0 = vand.u32 4294901760, %v18384_v60  ;;  %v10653_v63 = vand.u32 4294901760, %v10652_v41  ;;  %v9135_v41 = vld [vmem:[%s19145_s21 + $0x2e0] sm:$0xff] }
 0xba1   :  { %10393 = vmatmul.f32.vlgmr.msra.gmra.mxu0 %v18085_v53  ;;  %10695 = vmatpush.msra.mxu2 %v18237_v56  ;;  %v10640_v53 = vsub.f32 %v18339_v1, %v19244_v24 }
 0xba2   :  { %10543 = vmatpush.msrb.mxu0 %v18175_v37  ;;  %10743 = vmatpush.msra.mxu3 %v18198_v27  ;;  %v18408_v9 = vsub.f32 %v9108_v39, %v18386_v13  ;;  %v19239_v7 = vand.u32 4294901760, %v18396_v20  ;;  %v10658_v35 = vsub.f32 %v18384_v60, %v19240_v0  ;;  %v19237_v39 = vand.u32 4294901760, %v18418_v42 }
 0xba3   :  { %10618 = vmatpush.msrb.mxu1 %v10617_v52  ;;  %10698 = vmatpush.msra.mxu2 %v18254_v51  ;;  %v10641_v40 = vand.u32 4294901760, %v10640_v53  ;;  %v18440_v52 = vand.u32 4294901760, %v9138_v30  ;;  %v9168_v53 = vld.sshfl [vmem:[#allocation1 + $0x20] sm:$0xff pattern:$0x73625140] }
 0xba4   :  { %10545 = vmatpush.msrb.mxu0 %v18185_v31  ;;  %10745 = vmatpush.msra.mxu3 %v18211_v59  ;;  %v19238_v8 = vand.u32 4294901760, %v18408_v9  ;;  %v10664_v48 = vsub.f32 %v18396_v20, %v19239_v7  ;;  %v10676_v19 = vsub.f32 %v18418_v42, %v19237_v39  ;;  %v18480_v39 = vand.u32 4294901760, %v9135_v41 }
 0xba5   :  { %10624 = vmatpush.msrb.mxu1 %v10623_v28  ;;  %10701 = vmatpush.msra.mxu2 %v18276_v11  ;;  %v10659_v28 = vand.u32 4294901760, %v10658_v35  ;;  %v9134_v35 = vld [vmem:[%s19145_s21 + $0x2d8] sm:$0xff] }
 0xba6   :  { %10547 = vmatpush.msrb.mxu0 %v18198_v27  ;;  %10747 = vmatpush.msra.mxu3 %v18222_v57  ;;  %v10670_v16 = vsub.f32 %v18408_v9, %v19238_v8  ;;  %v9133_v8 = vld [vmem:[%s19145_s21 + $0x2d0] sm:$0xff]  ;;  %v18487_v7 = vand.u32 4294901760, %v9134_v35 }
 0xba7   :  { %10630 = vmatpush.msrb.mxu1 %v10629_v49  ;;  %10704 = vmatpush.msra.mxu2 %v18285_v12  ;;  %v9136_v49 = vld [vmem:[%s19145_s21 + $0x2e8] sm:$0xff]  ;;  %v18497_v22 = vand.u32 4294901760, %v9133_v8 }
 0xba8   :  { %10549 = vmatpush.msrb.mxu0 %v18211_v59  ;;  %10749 = vmatpush.msra.mxu3 %v18242_v29 }
 0xba9   :  { %10636 = vmatpush.msrb.mxu1 %v10635_v54  ;;  %10707 = vmatpush.msra.mxu2 %v18301_v62  ;;  %v10665_v54 = vand.u32 4294901760, %v10664_v48  ;;  %v18476_v48 = vsub.f32 %v9137_v61, %v18448_v36  ;;  %v18528_v24 = vsub.f32 %v9133_v8, %v18497_v22  ;;  %v9129_v8 = vld [vmem:[%s19145_s21 + $0x2b0] sm:$0xff] }
 0xbaa   :  { %10551 = vmatpush.msrb.mxu0 %v18222_v57  ;;  %10751 = vmatpush.msra.mxu3 %v18256_v10  ;;  %v18566_v15 = vand.u32 4294901760, %v9129_v8 }
 0xbab   :  { %10642 = vmatpush.msrb.mxu1 %v10641_v40  ;;  %10710 = vmatpush.msra.mxu2 %v18324_v2  ;;  %v18460_v40 = vsub.f32 %v9138_v30, %v18440_v52  ;;  %v18473_v30 = vand.u32 4294901760, %v9168_v53  ;;  %19553 = vst [vmem:[#allocation8_spill] sm:$0xff] %v18528_v24  ;;  %v19258_v50 = vand.u32 4294901760, %v18528_v24 }
 0xbac   :  { %10553 = vmatpush.msrb.mxu0 %v18242_v29  ;;  %10753 = vmatpush.msra.mxu3 %v18267_v33 }
 0xbad   :  { %10648 = vmatpush.msrb.mxu1 %v10647_v3  ;;  %10713 = vmatpush.msra.mxu2 %v18339_v1  ;;  %v18467_v3 = vand.u32 4294901760, %v9136_v49  ;;  %v10575_v0 = vsub.f32 %v9168_v53, %v18473_v30 }
 0xbae   :  { %10555 = vmatpush.msrb.mxu0 %v18256_v10  ;;  %10755 = vmatpush.msra.mxu3 %v18293_v23 }
 0xbaf   :  { %10654 = vmatpush.msrb.mxu1 %v10653_v63  ;;  %10716 = vmatpush.msra.mxu2 %v18354_v55  ;;  %v10671_v63 = vand.u32 4294901760, %v10670_v16  ;;  %v19243_v16 = vand.u32 4294901760, %v18460_v40  ;;  %v18492_v61 = vsub.f32 %v9136_v49, %v18467_v3  ;;  %v18505_v49 = vsub.f32 %v9135_v41, %v18480_v39 }
 0xbb0   :  { %10557 = vmatpush.msrb.mxu0 %v18267_v33  ;;  %10757 = vmatpush.msra.mxu3 %v18311_v46 }
 0xbb1   :  { %10660 = vmatpush.msrb.mxu1 %v10659_v28  ;;  %10719 = vmatpush.msra.mxu2 %v18369_v4  ;;  %v10677_v28 = vand.u32 4294901760, %v10676_v19  ;;  %v9132_v19 = vld [vmem:[%s19145_s21 + $0x2c8] sm:$0xff]  ;;  %v10927_v53 = vsub.f32 %v18460_v40, %v19243_v16  ;;  %v19254_v41 = vand.u32 4294901760, %v18492_v61  ;;  %v10576_v16 = vand.u32 4294901760, %v10575_v0 }
 0xbb2   :  { %10559 = vmatpush.msrb.mxu0 %v18293_v23  ;;  %10759 = vmatpush.msra.mxu3 %v18326_v47  ;;  %v19256_v26 = vand.u32 4294901760, %v18505_v49 }
 0xbb3   :  { %10666 = vmatpush.msrb.mxu1 %v10665_v54  ;;  %10722 = vmatpush.msra.mxu2 %v18384_v60  ;;  %v19249_v54 = vand.u32 4294901760, %v18476_v48  ;;  %v10928_v21 = vand.u32 4294901760, %v10927_v53  ;;  %v10577_v43 = vsub.f32 %v10575_v0, %v10576_v16 }
 0xbb4   :  { %10561 = vmatpush.msrb.mxu0 %v18311_v46  ;;  %10761 = vmatpush.msra.mxu3 %v18341_v44 }
 0xbb5   :  { %10672 = vmatpush.msrb.mxu1 %v10671_v63  ;;  %10725 = vmatpush.msra.mxu2 %v18396_v20  ;;  %v18512_v63 = vsub.f32 %v9134_v35, %v18487_v7  ;;  %v10933_v35 = vsub.f32 %v18476_v48, %v19249_v54 }
 0xbb6   :  { %10563 = vmatpush.msrb.mxu0 %v18326_v47  ;;  %10763 = vmatpush.msra.mxu3 %v18356_v32 }
 0xbb7   :  { %10678 = vmatpush.msrb.mxu1 %v10677_v28  ;;  %10728 = vmatpush.msra.mxu2 %v18408_v9  ;;  %v18520_v28 = vand.u32 4294901760, %v9132_v19  ;;  %v19257_v54 = vand.u32 4294901760, %v18512_v63  ;;  %v10934_v53 = vand.u32 4294901760, %v10933_v35  ;;  %v18579_v35 = vsub.f32 %v9130_v14, %v18551_v34 }
 0xbb8   :  { %10565 = vmatpush.msrb.mxu0 %v18341_v44  ;;  %10765 = vmatpush.msra.mxu3 %v18371_v17 }
 0xbb9   :  { %10680 = vmatmul.f32.vlgmr.msrb.gmra.mxu1 %v18473_v30  ;;  %10731 = vmatpush.msra.mxu2 %v18418_v42  ;;  %v18549_v25 = vsub.f32 %v9132_v19, %v18520_v28  ;;  %v10945_v19 = vsub.f32 %v18505_v49, %v19256_v26  ;;  %19554 = vst [vmem:[#allocation25_spill] sm:$0xff] %v18579_v35 }
 0xbba   :  { %10847 = vmatpush.msra.mxu1 %v18175_v37  ;;  %10567 = vmatpush.msrb.mxu0 %v18356_v32  ;;  %v10939_v37 = vsub.f32 %v18492_v61, %v19254_v41  ;;  %v18564_v41 = vsub.f32 %v9131_v5, %v18536_v45  ;;  %v18594_v5 = vsub.f32 %v9129_v8, %v18566_v15 }
 0xbbb   :  { %10767 = vmatpush.msra.mxu3 %v18386_v13  ;;  %10734 = vmatmul.f32.vlgmr.msra.gmra.mxu2 %v10575_v0  ;;  %v10951_v0 = vsub.f32 %v18512_v63, %v19257_v54  ;;  %v10957_v54 = vsub.f32 %v18528_v24, %v19258_v50  ;;  %v10946_v14 = vand.u32 4294901760, %v10945_v19  ;;  %v9125_v50 = vld [vmem:[%s19145_s21 + $0x290] sm:$0xff]  ;;  %v19555_v24 = vand.u32 4294901760, %v18196_v6 }
 0xbbc   :  { %10849 = vmatpush.msra.mxu1 %v18185_v31  ;;  %10884 = vmatpush.msrb.mxu2 %v18440_v52  ;;  %v9128_v31 = vld [vmem:[%s19145_s21 + $0x2a8] sm:$0xff]  ;;  %v19557_v6 = vand.u32 4294901760, %v18209_v38  ;;  %v18624_v8 = vand.u32 4294901760, %v9125_v50  ;;  %v19559_v38 = vand.u32 4294901760, %v18220_v18 }
 0xbbd   :  { %10569 = vmatpush.msrb.mxu0 %v18371_v17  ;;  %10769 = vmatpush.msra.mxu3 %v18398_v58  ;;  %v18581_v26 = vand.u32 4294901760, %v9128_v31 }
 0xbbe   :  { %10773 = vmatmul.f32.vlgmr.msra.gmra.mxu3 %v10576_v16  ;;  %10851 = vmatpush.msra.mxu1 %v18198_v27  ;;  %v9127_v27 = vld [vmem:[%s19145_s21 + $0x2a0] sm:$0xff]  ;;  %v10940_v16 = vand.u32 4294901760, %v10939_v37 }
 0xbbf   :  { %10886 = vmatpush.msrb.mxu2 %v18448_v36  ;;  %10929 = vmatpush.msrb.mxu3 %v10928_v21  ;;  %v10578_v21 = vand.u32 4294901760, %v10577_v43  ;;  %v10952_v43 = vand.u32 4294901760, %v10951_v0  ;;  %v18609_v37 = vsub.f32 %v9128_v31, %v18581_v26  ;;  %v10958_v0 = vand.u32 4294901760, %v10957_v54 }
 0xbc0   :  { %10571 = vmatpush.msrb.mxu0 %v18386_v13  ;;  %10853 = vmatpush.msra.mxu1 %v18211_v59  ;;  %v9126_v59 = vld [vmem:[%s19145_s21 + $0x298] sm:$0xff] }
 0xbc1   :  { %10888 = vmatpush.msrb.mxu2 %v18467_v3  ;;  %10935 = vmatpush.msrb.mxu3 %v10934_v53  ;;  %v18596_v53 = vand.u32 4294901760, %v9127_v27 }
 0xbc2   :  { %10573 = vmatpush.msrb.mxu0 %v18398_v58  ;;  %10855 = vmatpush.msra.mxu1 %v18222_v57  ;;  %v19556_v57 = vand.u32 4294901760, %v18549_v25 }
 0xbc3   :  { %10579 = vmatmul.f32.vlgmr.msrb.gmra.mxu0 %v10578_v21  ;;  %10890 = vmatpush.msrb.mxu2 %v18480_v39  ;;  %v18611_v21 = vand.u32 4294901760, %v9126_v59  ;;  %v18622_v31 = vsub.f32 %v9127_v27, %v18596_v53 }
 0xbc4   :  { %10780 = vmatpush.msra.mxu0 %v19555_v24  ;;  %10941 = vmatpush.msrb.mxu3 %v10940_v16  ;;  %v10963_v19 = vsub.f32 %v18549_v25, %v19556_v57  ;;  %v19558_v24 = vand.u32 4294901760, %v18564_v41  ;;  %v9169_v57 = vld.sshfl [vmem:[#allocation1 + $0x28] sm:$0xff pattern:$0x73625140] }
 0xbc5   :  { %10857 = vmatpush.msra.mxu1 %v18242_v29  ;;  %10892 = vmatpush.msrb.mxu2 %v18487_v7  ;;  %v9124_v29 = vld [vmem:[%s19145_s21 + $0x288] sm:$0xff] }
 0xbc6   :  { %10784 = vmatpush.msra.mxu0 %v19557_v6  ;;  %10947 = vmatpush.msrb.mxu3 %v10946_v14  ;;  %v10969_v16 = vsub.f32 %v18564_v41, %v19558_v24  ;;  %v10964_v54 = vand.u32 4294901760, %v10963_v19  ;;  %v19560_v14 = vand.u32 4294901760, %v18579_v35  ;;  %v18638_v24 = vsub.f32 %v9126_v59, %v18611_v21 }
 0xbc7   :  { %10859 = vmatpush.msra.mxu1 %v18256_v10  ;;  %10894 = vmatpush.msrb.mxu2 %v18497_v22  ;;  %v9123_v10 = vld [vmem:[%s19145_s21 + $0x280] sm:$0xff]  ;;  %v18645_v18 = vand.u32 4294901760, %v9124_v29  ;;  %v18654_v6 = vsub.f32 %v9125_v50, %v18624_v8 }
 0xbc8   :  { %10788 = vmatpush.msra.mxu0 %v19559_v38  ;;  %10953 = vmatpush.msrb.mxu3 %v10952_v43  ;;  %v10975_v27 = vsub.f32 %v18579_v35, %v19560_v14  ;;  %v19561_v43 = vand.u32 4294901760, %v18237_v56  ;;  %v10970_v19 = vand.u32 4294901760, %v10969_v16  ;;  %v19562_v38 = vand.u32 4294901760, %v18594_v5 }
 0xbc9   :  { %10861 = vmatpush.msra.mxu1 %v18267_v33  ;;  %10896 = vmatpush.msrb.mxu2 %v18520_v28  ;;  %v10992_v14 = vand.u32 4294901760, %v18622_v31  ;;  %v18658_v33 = vand.u32 4294901760, %v9123_v10  ;;  %v18660_v35 = vand.u32 4294901760, %v9169_v57  ;;  %v19563_v56 = vand.u32 4294901760, %v18254_v51 }
 0xbca   :  { %10792 = vmatpush.msra.mxu0 %v19561_v43  ;;  %10959 = vmatpush.msrb.mxu3 %v10958_v0  ;;  %v10981_v59 = vsub.f32 %v18594_v5, %v19562_v38  ;;  %v10976_v0 = vand.u32 4294901760, %v10975_v27  ;;  %v19564_v16 = vand.u32 4294901760, %v18609_v37  ;;  %v10998_v50 = vand.u32 4294901760, %v18638_v24 }
 0xbcb   :  { %10863 = vmatpush.msra.mxu1 %v18293_v23  ;;  %10898 = vmatpush.msrb.mxu2 %v18536_v45  ;;  %v18671_v23 = vsub.f32 %v9124_v29, %v18645_v18  ;;  %v19565_v38 = vand.u32 4294901760, %v18276_v11  ;;  %v11004_v27 = vand.u32 4294901760, %v18654_v6  ;;  %v18685_v29 = vsub.f32 %v9123_v10, %v18658_v33 }
 0xbcc   :  { %10796 = vmatpush.msra.mxu0 %v19563_v56  ;;  %10965 = vmatpush.msrb.mxu3 %v10964_v54  ;;  %v10987_v43 = vsub.f32 %v18609_v37, %v19564_v16  ;;  %v10982_v51 = vand.u32 4294901760, %v10981_v59  ;;  %v10993_v54 = vsub.f32 %v18622_v31, %v10992_v14  ;;  %v19566_v11 = vand.u32 4294901760, %v18285_v12 }
 0xbcd   :  { %10865 = vmatpush.msra.mxu1 %v18311_v46  ;;  %10900 = vmatpush.msrb.mxu2 %v18551_v34  ;;  %v18682_v46 = vsub.f32 %v9169_v57, %v18660_v35  ;;  %v10999_v59 = vsub.f32 %v18638_v24, %v10998_v50  ;;  %v19567_v57 = vand.u32 4294901760, %v18301_v62  ;;  %v11005_v12 = vsub.f32 %v18654_v6, %v11004_v27 }
 0xbce   :  { %10800 = vmatpush.msra.mxu0 %v19565_v38  ;;  %10971 = vmatpush.msrb.mxu3 %v10970_v19  ;;  %v10988_v19 = vand.u32 4294901760, %v10987_v43  ;;  %v10994_v10 = vand.u32 4294901760, %v10993_v54  ;;  %v19570_v38 = vand.u32 4294901760, %v18354_v55  ;;  %v19572_v55 = vand.u32 4294901760, %v18384_v60 }
 0xbcf   :  { %10867 = vmatpush.msra.mxu1 %v18326_v47  ;;  %10902 = vmatpush.msrb.mxu2 %v18566_v15  ;;  %v11010_v47 = vand.u32 4294901760, %v18671_v23  ;;  %v10917_v56 = vand.u32 4294901760, %v18682_v46  ;;  %v11000_v62 = vand.u32 4294901760, %v10999_v59  ;;  %v11006_v43 = vand.u32 4294901760, %v11005_v12  ;;  %v9150_v12 = vld [vmem:[%s19145_s21 + $0x358] sm:$0xff] }
 0xbd0   :  { %10804 = vmatpush.msra.mxu0 %v19566_v11  ;;  %10977 = vmatpush.msrb.mxu3 %v10976_v0  ;;  %v19568_v0 = vand.u32 4294901760, %v18324_v2  ;;  %v19575_v11 = vand.u32 4294901760, %v18476_v48  ;;  %v19576_v60 = vand.u32 4294901760, %v18408_v9  ;;  %v19579_v59 = vand.u32 4294901760, %v18505_v49 }
 0xbd1   :  { %10869 = vmatpush.msra.mxu1 %v18341_v44  ;;  %10904 = vmatpush.msrb.mxu2 %v18581_v26  ;;  %v11016_v44 = vand.u32 4294901760, %v18685_v29  ;;  %v11011_v16 = vsub.f32 %v18671_v23, %v11010_v47  ;;  %v10918_v2 = vsub.f32 %v18682_v46, %v10917_v56  ;;  %v19580_v9 = vand.u32 4294901760, %v18512_v63 }
 0xbd2   :  { %10808 = vmatpush.msra.mxu0 %v19567_v57  ;;  %10983 = vmatpush.msrb.mxu3 %v10982_v51 }
 0xbd3   :  { %10871 = vmatpush.msra.mxu1 %v18356_v32  ;;  %10906 = vmatpush.msrb.mxu2 %v18596_v53  ;;  %v19569_v32 = vand.u32 4294901760, %v18339_v1  ;;  %v11012_v1 = vand.u32 4294901760, %v11011_v16  ;;  %v10919_v51 = vand.u32 4294901760, %v10918_v2 }
 0xbd4   :  { %10812 = vmatpush.msra.mxu0 %v19568_v0  ;;  %10989 = vmatpush.msrb.mxu3 %v10988_v19  ;;  %v19577_v19 = vand.u32 4294901760, %v18492_v61  ;;  %v19587_v0 = vand.u32 4294901760, %v18594_v5 }
 0xbd5   :  { %10873 = vmatpush.msra.mxu1 %v18371_v17  ;;  %10908 = vmatpush.msrb.mxu2 %v18611_v21  ;;  %v11017_v17 = vsub.f32 %v18685_v29, %v11016_v44 }
 0xbd6   :  { %10816 = vmatpush.msra.mxu0 %v19569_v32  ;;  %10995 = vmatpush.msrb.mxu3 %v10994_v10  ;;  %v9149_v32 = vld [vmem:[%s19145_s21 + $0x350] sm:$0xff] }
 0xbd7   :  { %10875 = vmatpush.msra.mxu1 %v18386_v13  ;;  %10910 = vmatpush.msrb.mxu2 %v18624_v8  ;;  %v19571_v13 = vand.u32 4294901760, %v18369_v4  ;;  %v11018_v54 = vand.u32 4294901760, %v11017_v17  ;;  %v19574_v4 = vand.u32 4294901760, %v18396_v20  ;;  %v19578_v20 = vand.u32 4294901760, %v18418_v42  ;;  %v9154_v42 = vld [vmem:[%s19145_s21 + $0x378] sm:$0xff] }
 0xbd8   :  { %10820 = vmatpush.msra.mxu0 %v19570_v38  ;;  %11001 = vmatpush.msrb.mxu3 %v11000_v62  ;;  %v18839_v17 = vand.u32 4294901760, %v9149_v32  ;;  %v9147_v38 = vld [vmem:[%s19145_s21 + $0x340] sm:$0xff] }
 0xbd9   :  { %10877 = vmatpush.msra.mxu1 %v18398_v58  ;;  %10912 = vmatpush.msrb.mxu2 %v18645_v18  ;;  %v19573_v58 = vand.u32 4294901760, %v18460_v40 }
 0xbda   :  { %10824 = vmatpush.msra.mxu0 %v19571_v13  ;;  %11007 = vmatpush.msrb.mxu3 %v11006_v43  ;;  %v19588_v43 = vand.u32 4294901760, %v18609_v37 }
 0xbdb   :  { %10879 = vmatmul.f32.vlgmr.msra.gmra.mxu1 %v18473_v30  ;;  %10914 = vmatpush.msrb.mxu2 %v18658_v33 }
 0xbdc   :  { %11080 = vmatpush.msrb.mxu1 %v18440_v52  ;;  %10828 = vmatpush.msra.mxu0 %v19572_v55 }
 0xbdd   :  { %11013 = vmatpush.msrb.mxu3 %v11012_v1  ;;  %10920 = vmatmul.f32.vlgmr.msrb.gmra.mxu2 %v10919_v51  ;;  %v18864_v51 = vand.u32 4294901760, %v9147_v38 }
 0xbde   :  { %11082 = vmatpush.msrb.mxu1 %v18448_v36  ;;  %11121 = vmatpush.msra.mxu2 %v19573_v58 }
 0xbdf   :  { %10832 = vmatpush.msra.mxu0 %v19574_v4  ;;  %11019 = vmatpush.msrb.mxu3 %v11018_v54  ;;  %v9146_v54 = vld [vmem:[%s19145_s21 + $0x338] sm:$0xff] }
 0xbe0   :  { %11021 = vmatmul.f32.vlgmr.msrb.gmra.mxu3 %v18660_v35  ;;  %11084 = vmatpush.msrb.mxu1 %v18467_v3 }
 0xbe1   :  { %11125 = vmatpush.msra.mxu2 %v19575_v11  ;;  %11188 = vmatpush.msra.mxu3 %v18440_v52  ;;  %v19581_v52 = vld [vmem:[#allocation8_spill] sm:$0xff]  ;;  %v18898_v11 = vsub.f32 %v9147_v38, %v18864_v51 }
 0xbe2   :  { %10836 = vmatpush.msra.mxu0 %v19576_v60  ;;  %11086 = vmatpush.msrb.mxu1 %v18480_v39  ;;  %v9144_v60 = vld [vmem:[%s19145_s21 + $0x328] sm:$0xff] }
 0xbe3   :  { %11129 = vmatpush.msra.mxu2 %v19577_v19  ;;  %11190 = vmatpush.msra.mxu3 %v18448_v36  ;;  %v19582_v36 = vand.u32 4294901760, %v19581_v52 }
 0xbe4   :  { %10840 = vmatpush.msra.mxu0 %v19578_v20  ;;  %11088 = vmatpush.msrb.mxu1 %v18487_v7 }
 0xbe5   :  { %10842 = vmatmul.f32.vlgmr.msra.gmra.mxu0 %v18473_v30  ;;  %11133 = vmatpush.msra.mxu2 %v19579_v59  ;;  %v19583_v30 = vand.u32 4294901760, %v18549_v25  ;;  %v18923_v59 = vand.u32 4294901760, %v9144_v60 }
 0xbe6   :  { %11027 = vmatpush.msrb.mxu0 %v18460_v40  ;;  %11192 = vmatpush.msra.mxu3 %v18467_v3  ;;  %v9153_v40 = vld [vmem:[%s19145_s21 + $0x370] sm:$0xff]  ;;  %v18772_v3 = vand.u32 4294901760, %v9154_v42 }
 0xbe7   :  { %11090 = vmatpush.msrb.mxu1 %v18497_v22  ;;  %11137 = vmatpush.msra.mxu2 %v19580_v9  ;;  %v11309_v9 = vand.u32 4294901760, %v18898_v11 }
 0xbe8   :  { %11030 = vmatpush.msrb.mxu0 %v18476_v48  ;;  %11194 = vmatpush.msra.mxu3 %v18480_v39  ;;  %v9152_v39 = vld [vmem:[%s19145_s21 + $0x368] sm:$0xff]  ;;  %v18782_v48 = vand.u32 4294901760, %v9153_v40  ;;  %v18793_v57 = vsub.f32 %v9154_v42, %v18772_v3  ;;  %v9142_v42 = vld [vmem:[%s19145_s21 + $0x318] sm:$0xff] }
 0xbe9   :  { %11092 = vmatpush.msrb.mxu1 %v18520_v28  ;;  %11141 = vmatpush.msra.mxu2 %v19582_v36 }
 0xbea   :  { %11033 = vmatpush.msrb.mxu0 %v18492_v61  ;;  %11196 = vmatpush.msra.mxu3 %v18487_v7  ;;  %v19584_v7 = vand.u32 4294901760, %v18564_v41  ;;  %v9151_v61 = vld [vmem:[%s19145_s21 + $0x360] sm:$0xff]  ;;  %v11267_v62 = vand.u32 4294901760, %v18793_v57 }
 0xbeb   :  { %11094 = vmatpush.msrb.mxu1 %v18536_v45  ;;  %11145 = vmatpush.msra.mxu2 %v19583_v30 }
 0xbec   :  { %11036 = vmatpush.msrb.mxu0 %v18505_v49  ;;  %11198 = vmatpush.msra.mxu3 %v18497_v22  ;;  %v18795_v49 = vand.u32 4294901760, %v9152_v39  ;;  %v19585_v22 = vld [vmem:[#allocation25_spill] sm:$0xff] }
 0xbed   :  { %11096 = vmatpush.msrb.mxu1 %v18551_v34  ;;  %11149 = vmatpush.msra.mxu2 %v19584_v7  ;;  %v19586_v10 = vand.u32 4294901760, %v19585_v22  ;;  %v11310_v7 = vsub.f32 %v18898_v11, %v11309_v9 }
 0xbee   :  { %11039 = vmatpush.msrb.mxu0 %v18512_v63  ;;  %11200 = vmatpush.msra.mxu3 %v18520_v28  ;;  %v18806_v63 = vsub.f32 %v9153_v40, %v18782_v48  ;;  %v18808_v28 = vand.u32 4294901760, %v9151_v61  ;;  %v18817_v16 = vsub.f32 %v9152_v39, %v18795_v49  ;;  %v18951_v39 = vsub.f32 %v9144_v60, %v18923_v59 }
 0xbef   :  { %11098 = vmatpush.msrb.mxu1 %v18566_v15  ;;  %11153 = vmatpush.msra.mxu2 %v19586_v10 }
 0xbf0   :  { %11042 = vmatpush.msrb.mxu0 %v19581_v52  ;;  %11202 = vmatpush.msra.mxu3 %v18536_v45  ;;  %v18819_v45 = vand.u32 4294901760, %v9150_v12  ;;  %v18834_v2 = vsub.f32 %v9151_v61, %v18808_v28  ;;  %v9140_v61 = vld [vmem:[%s19145_s21 + $0x308] sm:$0xff] }
 0xbf1   :  { %11100 = vmatpush.msrb.mxu1 %v18581_v26  ;;  %11157 = vmatpush.msra.mxu2 %v19587_v0 }
 0xbf2   :  { %11045 = vmatpush.msrb.mxu0 %v18549_v25  ;;  %11204 = vmatpush.msra.mxu3 %v18551_v34  ;;  %v9148_v34 = vld [vmem:[%s19145_s21 + $0x348] sm:$0xff]  ;;  %v11273_v25 = vand.u32 4294901760, %v18806_v63  ;;  %v18851_v1 = vsub.f32 %v9150_v12, %v18819_v45  ;;  %v11285_v13 = vand.u32 4294901760, %v18834_v2 }
 0xbf3   :  { %11102 = vmatpush.msrb.mxu1 %v18596_v53  ;;  %11161 = vmatpush.msra.mxu2 %v19588_v43 }
 0xbf4   :  { %11048 = vmatpush.msrb.mxu0 %v18564_v41  ;;  %11206 = vmatpush.msra.mxu3 %v18566_v15  ;;  %v11268_v15 = vsub.f32 %v18793_v57, %v11267_v62  ;;  %v11279_v41 = vand.u32 4294901760, %v18817_v16  ;;  %v11291_v55 = vand.u32 4294901760, %v18851_v1  ;;  %v11286_v4 = vsub.f32 %v18834_v2, %v11285_v13 }
 0xbf5   :  { %11104 = vmatpush.msrb.mxu1 %v18611_v21  ;;  %11165 = vmatpush.msra.mxu2 %v10992_v14  ;;  %v18853_v14 = vand.u32 4294901760, %v9148_v34 }
 0xbf6   :  { %11051 = vmatpush.msrb.mxu0 %v19585_v22  ;;  %11208 = vmatpush.msra.mxu3 %v18581_v26  ;;  %v11274_v26 = vsub.f32 %v18806_v63, %v11273_v25  ;;  %v11292_v19 = vsub.f32 %v18851_v1, %v11291_v55 }
 0xbf7   :  { %11106 = vmatpush.msrb.mxu1 %v18624_v8  ;;  %11169 = vmatpush.msra.mxu2 %v10998_v50  ;;  %v11280_v50 = vsub.f32 %v18817_v16, %v11279_v41  ;;  %v18882_v58 = vsub.f32 %v9148_v34, %v18853_v14  ;;  %v11327_v34 = vand.u32 4294901760, %v18951_v39 }
 0xbf8   :  { %11054 = vmatpush.msrb.mxu0 %v18594_v5  ;;  %11210 = vmatpush.msra.mxu3 %v18596_v53  ;;  %v18873_v5 = vsub.f32 %v9149_v32, %v18839_v17  ;;  %v11269_v53 = vand.u32 4294901760, %v11268_v15  ;;  %v11293_v40 = vand.u32 4294901760, %v11292_v19  ;;  %v9139_v32 = vld [vmem:[%s19145_s21 + $0x300] sm:$0xff]  ;;  %v11311_v15 = vand.u32 4294901760, %v11310_v7 }
 0xbf9   :  { %11108 = vmatpush.msrb.mxu1 %v18645_v18  ;;  %11173 = vmatpush.msra.mxu2 %v11004_v27  ;;  %v9145_v27 = vld [vmem:[%s19145_s21 + $0x330] sm:$0xff]  ;;  %v11303_v20 = vand.u32 4294901760, %v18882_v58 }
 0xbfa   :  { %11057 = vmatpush.msrb.mxu0 %v18609_v37  ;;  %11212 = vmatpush.msra.mxu3 %v18611_v21  ;;  %v18890_v37 = vand.u32 4294901760, %v9146_v54  ;;  %v11275_v21 = vand.u32 4294901760, %v11274_v26 }
 0xbfb   :  { %11110 = vmatpush.msrb.mxu1 %v18658_v33  ;;  %11177 = vmatpush.msra.mxu2 %v11010_v47  ;;  %v11281_v47 = vand.u32 4294901760, %v11280_v50  ;;  %v11304_v30 = vsub.f32 %v18882_v58, %v11303_v20 }
 0xbfc   :  { %11060 = vmatpush.msrb.mxu0 %v18622_v31  ;;  %11214 = vmatpush.msra.mxu3 %v18624_v8  ;;  %v11297_v8 = vand.u32 4294901760, %v18873_v5  ;;  %v18908_v31 = vand.u32 4294901760, %v9145_v27 }
 0xbfd   :  { %11114 = vmatmul.f32.vlgmr.msrb.gmra.mxu1 %v10917_v56  ;;  %11181 = vmatpush.msra.mxu2 %v11016_v44  ;;  %v9143_v56 = vld [vmem:[%s19145_s21 + $0x320] sm:$0xff]  ;;  %v18921_v44 = vsub.f32 %v9146_v54, %v18890_v37  ;;  %v11305_v0 = vand.u32 4294901760, %v11304_v30 }
 0xbfe   :  { %11270 = vmatpush.msra.mxu1 %v11269_v53  ;;  %11063 = vmatpush.msrb.mxu0 %v18638_v24  ;;  %v11287_v24 = vand.u32 4294901760, %v11286_v4  ;;  %v18936_v52 = vsub.f32 %v9145_v27, %v18908_v31  ;;  %v18938_v36 = vand.u32 4294901760, %v9143_v56  ;;  %v18995_v53 = vand.u32 4294901760, %v9139_v32 }
 0xbff   :  { %11216 = vmatpush.msra.mxu3 %v18645_v18  ;;  %11183 = vmatmul.f32.vlgmr.msra.gmra.mxu2 %v18660_v35  ;;  %v11298_v18 = vsub.f32 %v18873_v5, %v11297_v8  ;;  %v11328_v27 = vsub.f32 %v18951_v39, %v11327_v34 }
 0xc00   :  { %11276 = vmatpush.msra.mxu1 %v11275_v21  ;;  %11368 = vmatpush.msrb.mxu2 %v18793_v57  ;;  %v11321_v10 = vand.u32 4294901760, %v18936_v52  ;;  %v18966_v12 = vsub.f32 %v9143_v56, %v18938_v36  ;;  %v19015_v56 = vsub.f32 %v9139_v32, %v18995_v53  ;;  %v9216_v57 = vpop.f32.mrf.mxu0 }
 0xc01   :  { %11066 = vmatpush.msrb.mxu0 %v18654_v6  ;;  %11218 = vmatpush.msra.mxu3 %v18658_v33  ;;  %v9141_v6 = vld [vmem:[%s19145_s21 + $0x310] sm:$0xff]  ;;  %v11315_v33 = vand.u32 4294901760, %v18921_v44  ;;  %v11299_v22 = vand.u32 4294901760, %v11298_v18 }
 0xc02   :  { %11220 = vmatmul.f32.vlgmr.msra.gmra.mxu3 %v18660_v35  ;;  %11282 = vmatpush.msra.mxu1 %v11281_v47  ;;  %v18953_v35 = vand.u32 4294901760, %v9142_v42  ;;  %v11333_v26 = vand.u32 4294901760, %v18966_v12 }
 0xc03   :  { %11371 = vmatpush.msrb.mxu2 %v18806_v63  ;;  %11421 = vmatpush.msrb.mxu3 %v18772_v3  ;;  %v11316_v43 = vsub.f32 %v18921_v44, %v11315_v33  ;;  %v9317_v63 = vpop.f32.mrf.mxu1 }
 0xc04   :  { %11069 = vmatpush.msrb.mxu0 %v18671_v23  ;;  %11288 = vmatpush.msra.mxu1 %v11287_v24  ;;  %v18968_v23 = vand.u32 4294901760, %v9141_v6  ;;  %v18981_v38 = vsub.f32 %v9142_v42, %v18953_v35  ;;  %v11334_v47 = vsub.f32 %v18966_v12, %v11333_v26  ;;  %v11329_v24 = vand.u32 4294901760, %v11328_v27 }
 0xc05   :  { %11374 = vmatpush.msrb.mxu2 %v18817_v16  ;;  %11423 = vmatpush.msrb.mxu3 %v18782_v48  ;;  %v11317_v50 = vand.u32 4294901760, %v11316_v43 }
 0xc06   :  { %11072 = vmatpush.msrb.mxu0 %v18685_v29  ;;  %11294 = vmatpush.msra.mxu1 %v11293_v40  ;;  %v18983_v29 = vand.u32 4294901760, %v9140_v61  ;;  %v18993_v54 = vsub.f32 %v9141_v6, %v18968_v23  ;;  %v11339_v21 = vand.u32 4294901760, %v18981_v38  ;;  %v11335_v40 = vand.u32 4294901760, %v11334_v47 }
 0xc07   :  { %11075 = vmatmul.f32.vlgmr.msrb.gmra.mxu0 %v18682_v46  ;;  %11377 = vmatpush.msrb.mxu2 %v18834_v2  ;;  %v11322_v46 = vsub.f32 %v18936_v52, %v11321_v10  ;;  %v11357_v6 = vand.u32 4294901760, %v19015_v56 }
 0xc08   :  { %11225 = vmatpush.msra.mxu0 %v18772_v3  ;;  %11425 = vmatpush.msrb.mxu3 %v18795_v49  ;;  %v19005_v4 = vsub.f32 %v9140_v61, %v18983_v29  ;;  %v11345_v19 = vand.u32 4294901760, %v18993_v54  ;;  %v11340_v42 = vsub.f32 %v18981_v38, %v11339_v21  ;;  %v9479_v2 = vpop.f32.mrf.mxu0 }
 0xc09   :  { %11300 = vmatpush.msra.mxu1 %v11299_v22  ;;  %11380 = vmatpush.msrb.mxu2 %v18851_v1  ;;  %v11323_v60 = vand.u32 4294901760, %v11322_v46  ;;  %v9170_v22 = vld.sshfl [vmem:[#allocation1 + $0x30] sm:$0xff pattern:$0x73625140]  ;;  %v11358_v32 = vsub.f32 %v19015_v56, %v11357_v6 }
 0xc0a   :  { %11227 = vmatpush.msra.mxu0 %v18782_v48  ;;  %11427 = vmatpush.msrb.mxu3 %v18808_v28  ;;  %v11351_v18 = vand.u32 4294901760, %v19005_v4  ;;  %v11346_v30 = vsub.f32 %v18993_v54, %v11345_v19  ;;  %v11341_v7 = vand.u32 4294901760, %v11340_v42  ;;  %v19045_v43 = vand.u32 4294901760, %v9170_v22 }
 0xc0b   :  { %11306 = vmatpush.msra.mxu1 %v11305_v0  ;;  %11383 = vmatpush.msrb.mxu2 %v18873_v5  ;;  %v11359_v46 = vand.u32 4294901760, %v11358_v32 }
 0xc0c   :  { %11229 = vmatpush.msra.mxu0 %v18795_v49  ;;  %11429 = vmatpush.msrb.mxu3 %v18819_v45  ;;  %v11352_v61 = vsub.f32 %v19005_v4, %v11351_v18  ;;  %v11347_v0 = vand.u32 4294901760, %v11346_v30 }
 0xc0d   :  { %11312 = vmatpush.msra.mxu1 %v11311_v15  ;;  %11386 = vmatpush.msrb.mxu2 %v18882_v58 }
 0xc0e   :  { %11231 = vmatpush.msra.mxu0 %v18808_v28  ;;  %11431 = vmatpush.msrb.mxu3 %v18839_v17  ;;  %v11353_v15 = vand.u32 4294901760, %v11352_v61 }
 0xc0f   :  { %11318 = vmatpush.msra.mxu1 %v11317_v50  ;;  %11389 = vmatpush.msrb.mxu2 %v18898_v11  ;;  %v11257_v50 = vsub.f32 %v9170_v22, %v19045_v43 }
 0xc10   :  { %11233 = vmatpush.msra.mxu0 %v18819_v45  ;;  %11433 = vmatpush.msrb.mxu3 %v18853_v14  ;;  %v9712_v5 = vpop.f32.mrf.mxu0 }
 0xc11   :  { %11324 = vmatpush.msra.mxu1 %v11323_v60  ;;  %11392 = vmatpush.msrb.mxu2 %v18921_v44  ;;  %v11258_v27 = vand.u32 4294901760, %v11257_v50 }
 0xc12   :  { %11235 = vmatpush.msra.mxu0 %v18839_v17  ;;  %11435 = vmatpush.msrb.mxu3 %v18864_v51 }
 0xc13   :  { %11330 = vmatpush.msra.mxu1 %v11329_v24  ;;  %11395 = vmatpush.msrb.mxu2 %v18936_v52  ;;  %v11259_v60 = vsub.f32 %v11257_v50, %v11258_v27 }
 0xc14   :  { %11237 = vmatpush.msra.mxu0 %v18853_v14  ;;  %11437 = vmatpush.msrb.mxu3 %v18890_v37 }
 0xc15   :  { %11336 = vmatpush.msra.mxu1 %v11335_v40  ;;  %11398 = vmatpush.msrb.mxu2 %v18951_v39 }
 0xc16   :  { %11239 = vmatpush.msra.mxu0 %v18864_v51  ;;  %11439 = vmatpush.msrb.mxu3 %v18908_v31 }
 0xc17   :  { %11342 = vmatpush.msra.mxu1 %v11341_v7  ;;  %11401 = vmatpush.msrb.mxu2 %v18966_v12 }
 0xc18   :  { %11241 = vmatpush.msra.mxu0 %v18890_v37  ;;  %11441 = vmatpush.msrb.mxu3 %v18923_v59  ;;  %v9898_v44 = vpop.f32.mrf.mxu0 }
 0xc19   :  { %11348 = vmatpush.msra.mxu1 %v11347_v0  ;;  %11404 = vmatpush.msrb.mxu2 %v18981_v38 }
 0xc1a   :  { %11243 = vmatpush.msra.mxu0 %v18908_v31  ;;  %11443 = vmatpush.msrb.mxu3 %v18938_v36 }
 0xc1b   :  { %11354 = vmatpush.msra.mxu1 %v11353_v15  ;;  %11407 = vmatpush.msrb.mxu2 %v18993_v54 }
 0xc1c   :  { %11245 = vmatpush.msra.mxu0 %v18923_v59  ;;  %11445 = vmatpush.msrb.mxu3 %v18953_v35 }
 0xc1d   :  { %11360 = vmatpush.msra.mxu1 %v11359_v46  ;;  %11410 = vmatpush.msrb.mxu2 %v19005_v4 }
 0xc1e   :  { %11247 = vmatpush.msra.mxu0 %v18938_v36  ;;  %11447 = vmatpush.msrb.mxu3 %v18968_v23 }
 0xc1f   :  { %11362 = vmatmul.f32.vlgmr.msra.gmra.mxu1 %v19045_v43  ;;  %11413 = vmatpush.msrb.mxu2 %v19015_v56 }
 0xc20   :  { %11529 = vmatpush.msrb.mxu1 %v18772_v3  ;;  %11249 = vmatpush.msra.mxu0 %v18953_v35  ;;  %v11260_v3 = vand.u32 4294901760, %v11259_v60 }
 0xc21   :  { %11449 = vmatpush.msrb.mxu3 %v18983_v29  ;;  %11416 = vmatmul.f32.vlgmr.msrb.gmra.mxu2 %v11257_v50 }
 0xc22   :  { %11531 = vmatpush.msrb.mxu1 %v18782_v48  ;;  %11251 = vmatpush.msra.mxu0 %v18968_v23  ;;  %v11625_v48 = vld [vmem:[%s19146_s22] ss:$0 sm:$0xff]  ;;  %s11656_s22 = smov [#allocation4]  }
 0xc23   :  { %11451 = vmatpush.msrb.mxu3 %v18995_v53  ;;  %s11571_s30 = sshll.u32 %s11656_s22, 4  ;;  %s11572_s30 = int_to_ptr.vmem [resolvable:$true] %s11571_s30 }
 0xc24   :  { %11455 = vmatmul.f32.vlgmr.msrb.gmra.mxu3 %v11258_v27  ;;  %11533 = vmatpush.msrb.mxu1 %v18795_v49  ;;  %v9217_v49 = vadd.f32 %v11625_v48, %v9216_v57 }
 0xc25   :  { %11253 = vmatpush.msra.mxu0 %v18983_v29 }
 0xc26   :  { %11535 = vmatpush.msrb.mxu1 %v18808_v28  ;;  %v9318_v28 = vadd.f32 %v9317_v63, %v9217_v49 }
 0xc27   :  { %11255 = vmatpush.msra.mxu0 %v18995_v53 }
 0xc28   :  { %11261 = vmatmul.f32.vlgmr.msra.gmra.mxu0 %v11260_v3  ;;  %11537 = vmatpush.msrb.mxu1 %v18819_v45  ;;  %v9410_v45 = vpop.f32.mrf.mxu3 }
 0xc29   :  { %11462 = vmatpush.msrb.mxu0 %v11267_v62  ;;  %v9371_v62 = vpop.f32.mrf.mxu2 }
 0xc2a   :  { %11539 = vmatpush.msrb.mxu1 %v18839_v17  ;;  %v9372_v16 = vadd.f32 %v9371_v62, %v9318_v28 }
 0xc2b   :  { %11466 = vmatpush.msrb.mxu0 %v11273_v25 }
 0xc2c   :  { %11541 = vmatpush.msrb.mxu1 %v18853_v14  ;;  %v9411_v25 = vadd.f32 %v9410_v45, %v9372_v16 }
 0xc2d   :  { %11470 = vmatpush.msrb.mxu0 %v11279_v41  ;;  %v9516_v41 = vpop.f32.mrf.mxu1 }
 0xc2e   :  { %11543 = vmatpush.msrb.mxu1 %v18864_v51  ;;  %v9480_v17 = vadd.f32 %v9479_v2, %v9411_v25 }
 0xc2f   :  { %11474 = vmatpush.msrb.mxu0 %v11285_v13 }
 0xc30   :  { %11545 = vmatpush.msrb.mxu1 %v18890_v37  ;;  %v9517_v1 = vadd.f32 %v9516_v41, %v9480_v17  ;;  %v9658_v51 = vpop.f32.mrf.mxu3 }
 0xc31   :  { %11478 = vmatpush.msrb.mxu0 %v11291_v55  ;;  %v9557_v14 = vpop.f32.mrf.mxu2 }
 0xc32   :  { %11547 = vmatpush.msrb.mxu1 %v18908_v31  ;;  %v9558_v13 = vadd.f32 %v9557_v14, %v9517_v1 }
 0xc33   :  { %11482 = vmatpush.msrb.mxu0 %v11297_v8 }
 0xc34   :  { %11549 = vmatpush.msrb.mxu1 %v18923_v59  ;;  %v9659_v55 = vadd.f32 %v9658_v51, %v9558_v13 }
 0xc35   :  { %11486 = vmatpush.msrb.mxu0 %v11303_v20  ;;  %v9751_v37 = vpop.f32.mrf.mxu1 }
 0xc36   :  { %11551 = vmatpush.msrb.mxu1 %v18938_v36  ;;  %v9713_v58 = vadd.f32 %v9712_v5, %v9659_v55 }
 0xc37   :  { %11490 = vmatpush.msrb.mxu0 %v11309_v9 }
 0xc38   :  { %11553 = vmatpush.msrb.mxu1 %v18953_v35  ;;  %v9752_v11 = vadd.f32 %v9751_v37, %v9713_v58  ;;  %v9857_v20 = vpop.f32.mrf.mxu3 }
 0xc39   :  { %11494 = vmatpush.msrb.mxu0 %v11315_v33  ;;  %v9820_v8 = vpop.f32.mrf.mxu2 }
 0xc3a   :  { %11555 = vmatpush.msrb.mxu1 %v18968_v23  ;;  %v9821_v31 = vadd.f32 %v9820_v8, %v9752_v11 }
 0xc3b   :  { %11498 = vmatpush.msrb.mxu0 %v11321_v10  ;;  %v10161_v10 = vpop.f32.mrf.mxu0 }
 0xc3c   :  { %11557 = vmatpush.msrb.mxu1 %v18983_v29  ;;  %v9858_v59 = vadd.f32 %v9857_v20, %v9821_v31 }
 0xc3d   :  { %11502 = vmatpush.msrb.mxu0 %v11327_v34  ;;  %v9999_v52 = vpop.f32.mrf.mxu1 }
 0xc3e   :  { %11559 = vmatpush.msrb.mxu1 %v18995_v53  ;;  %v9899_v9 = vadd.f32 %v9898_v44, %v9858_v59 }
 0xc3f   :  { %11506 = vmatpush.msrb.mxu0 %v11333_v26  ;;  %11561 = vmatmul.f32.vlgmr.msrb.gmra.mxu1 %v19045_v43 }
 0xc40   :  { %v10000_v36 = vadd.f32 %v9999_v52, %v9899_v9  ;;  %v10092_v35 = vpop.f32.mrf.mxu3 }
 0xc41   :  { %11510 = vmatpush.msrb.mxu0 %v11339_v21  ;;  %v10053_v33 = vpop.f32.mrf.mxu2 }
 0xc42   :  { %v10054_v39 = vadd.f32 %v10053_v33, %v10000_v36 }
 0xc43   :  { %11514 = vmatpush.msrb.mxu0 %v11345_v19  ;;  %v10394_v53 = vpop.f32.mrf.mxu0 }
 0xc44   :  { %v10093_v12 = vadd.f32 %v10092_v35, %v10054_v39 }
 0xc45   :  { %11518 = vmatpush.msrb.mxu0 %v11351_v18  ;;  %v10198_v34 = vpop.f32.mrf.mxu1 }
 0xc46   :  { %v10162_v23 = vadd.f32 %v10161_v10, %v10093_v12 }
 0xc47   :  { %11522 = vmatpush.msrb.mxu0 %v11357_v6 }
 0xc48   :  { %11524 = vmatmul.f32.vlgmr.msrb.gmra.mxu0 %v19045_v43  ;;  %v10199_v38 = vadd.f32 %v10198_v34, %v10162_v23  ;;  %v10340_v54 = vpop.f32.mrf.mxu3 }
 0xc49   :  { %v10239_v29 = vpop.f32.mrf.mxu2 }
 0xc4a   :  { %v10240_v26 = vadd.f32 %v10239_v29, %v10199_v38 }
 0xc4b   :  { %v10580_v18 = vpop.f32.mrf.mxu0 }
 0xc4c   :  { %v10341_v21 = vadd.f32 %v10340_v54, %v10240_v26 }
 0xc4d   :  { %v10433_v47 = vpop.f32.mrf.mxu1 }
 0xc4e   :  { %v10395_v4 = vadd.f32 %v10394_v53, %v10341_v21 }
 0xc50   :  { %v10434_v19 = vadd.f32 %v10433_v47, %v10395_v4  ;;  %v10539_v42 = vpop.f32.mrf.mxu3 }
 0xc51   :  { %v10502_v56 = vpop.f32.mrf.mxu2 }
 0xc52   :  { %v10503_v24 = vadd.f32 %v10502_v56, %v10434_v19 }
 0xc54   :  { %v10540_v40 = vadd.f32 %v10539_v42, %v10503_v24 }
 0xc55   :  { %v10681_v6 = vpop.f32.mrf.mxu1 }
 0xc56   :  { %v10581_v30 = vadd.f32 %v10580_v18, %v10540_v40 }
 0xc58   :  { %v10682_v7 = vadd.f32 %v10681_v6, %v10581_v30  ;;  %v10774_v0 = vpop.f32.mrf.mxu3 }
 0xc59   :  { %v10735_v61 = vpop.f32.mrf.mxu2 }
 0xc5a   :  { %v10736_v22 = vadd.f32 %v10735_v61, %v10682_v7 }
 0xc5c   :  { %v10775_v43 = vadd.f32 %v10774_v0, %v10736_v22 }
 0xc5d   :  { %v10880_v46 = vpop.f32.mrf.mxu1 }
 0xc61   :  { %v10921_v27 = vpop.f32.mrf.mxu2 }
 0xc62   :  { %v10843_v32 = vpop.f32.mrf.mxu0 }
 0xc63   :  { %v10844_v15 = vadd.f32 %v10843_v32, %v10775_v43  ;;  %v11022_v3 = vpop.f32.mrf.mxu3 }
 0xc65   :  { %v10881_v50 = vadd.f32 %v10880_v46, %v10844_v15 }
 0xc67   :  { %v10922_v60 = vadd.f32 %v10921_v27, %v10881_v50 }
 0xc69   :  { %v11023_v57 = vadd.f32 %v11022_v3, %v10922_v60 }
 0xc7a   :  { %v11115_v63 = vpop.f32.mrf.mxu1 }
 0xc82   :  { %v11184_v62 = vpop.f32.mrf.mxu2 }
 0xc84   :  { %v11076_v48 = vpop.f32.mrf.mxu0 }
 0xc85   :  { %v11077_v49 = vadd.f32 %v11076_v48, %v11023_v57  ;;  %v11221_v45 = vpop.f32.mrf.mxu3 }
 0xc87   :  { %v11116_v28 = vadd.f32 %v11115_v63, %v11077_v49 }
 0xc89   :  { %v11185_v16 = vadd.f32 %v11184_v62, %v11116_v28 }
 0xc8b   :  { %v11222_v2 = vadd.f32 %v11221_v45, %v11185_v16 }
 0xc9c   :  { %v11363_v41 = vpop.f32.mrf.mxu1 }
 0xca4   :  { %v11417_v14 = vpop.f32.mrf.mxu2 }
 0xca5   :  { %v11262_v25 = vpop.f32.mrf.mxu0 }
 0xca6   :  { %v11263_v17 = vadd.f32 %v11262_v25, %v11222_v2 }
 0xca7   :  { %v11456_v51 = vpop.f32.mrf.mxu3 }
 0xca8   :  { %v11364_v1 = vadd.f32 %v11363_v41, %v11263_v17 }
 0xcaa   :  { %v11418_v13 = vadd.f32 %v11417_v14, %v11364_v1 }
 0xcac   :  { %v11457_v5 = vadd.f32 %v11456_v51, %v11418_v13 }
 0xcbc   :  { %v11562_v37 = vpop.f32.mrf.mxu1 }
 0xcc5   :  { %v11525_v55 = vpop.f32.mrf.mxu0 }
 0xcc6   :  { %v11526_v58 = vadd.f32 %v11525_v55, %v11457_v5 }
 0xcc8   :  { %v11563_v11 = vadd.f32 %v11562_v37, %v11526_v58 }
 0xcca   :  { %11565 = vst [vmem:[#allocation4] sm:$0x3] %v11563_v11 }
 0xccb   :  { %11576 = dma.vmem_to_hbm [thread:$0]  %s11572_s30, 32, %s11574_s11, [#allocation5]  }
 0xccc   :  { %11654 = dma.done.wait [#allocation5], 32  }
 0xccd   :  { %11655 = vsyncadd [#allocation5], 4294967264 }
 0xcce   :  { %11581 = vsyncpa [#allocation5], 1 }

</bundles_post_ra>
